<compile_context>
chip_gen: v5e
topology: v5e:2x2
jax: 0.10.0
libtpu: 0.0.40
codegen_flags: <defaults>
</compile_context>

<pallas_src>
import jax
import jax.numpy as jnp
from jax.experimental import pallas as pl
from jax.experimental.pallas import tpu as pltpu


# ---------------------------------------------------------------------------
# Static shape configuration (module dims + lane-aligned padded dims).
# ---------------------------------------------------------------------------
D1, H, D2 = 1750, 620, 79           # logical dims from the PyTorch module
N_TILES = 2                          # grid steps == output-column tiles (v7x: 1 per TC)
D1P = 1792                           # 14 * 128
HP = 640                             # 5  * 128
D2P_IN = 128                         # padded view-2 input dim
D2P_OUT = 128 * N_TILES              # padded view-2 output dim (1 lane tile / step)


def _networks_kernel(x1_ref, we1_ref, wd1_ref, x2_ref, we2_ref, wd2_ref,
                     o1_ref, o2_ref):
    # View 1: encoder is recomputed on each grid step (~17 MFLOP, free) so the
    # grid axis carries no state and can be megacore-parallel.  The decoder
    # produces this step's lane-aligned column tile of output1.
    x1 = x1_ref[...].astype(jnp.bfloat16)
    h1 = jnp.dot(x1, we1_ref[...], preferred_element_type=jnp.float32)
    h1 = jnp.maximum(h1, 0.0).astype(jnp.bfloat16)
    o1 = jnp.dot(h1, wd1_ref[...], preferred_element_type=jnp.float32)
    o1_ref[...] = jnp.maximum(o1, 0.0).astype(o1_ref.dtype)

    # View 2 (tiny): same structure; its (padded) output columns are also
    # split across the grid so every output block index is unique per step.
    x2 = x2_ref[...].astype(jnp.bfloat16)
    h2 = jnp.dot(x2, we2_ref[...], preferred_element_type=jnp.float32)
    h2 = jnp.maximum(h2, 0.0).astype(jnp.bfloat16)
    o2 = jnp.dot(h2, wd2_ref[...], preferred_element_type=jnp.float32)
    o2_ref[...] = jnp.maximum(o2, 0.0).astype(o2_ref.dtype)


def networks_forward(params, input1, input2):
    """Fused forward of both autoencoder views in a single pallas_call.

    params hold zero-padded bf16 weights already transposed to
    [in_features_padded, out_features_padded].
    input1: [N, 1750] f32, input2: [N, 79] f32 -> ([N, 1750] f32, [N, 79] f32).
    """
    we1, wd1 = params["w_enc1"], params["w_dec1"]   # [D1P,HP], [HP,D1P]
    we2, wd2 = params["w_enc2"], params["w_dec2"]   # [D2P_IN,HP], [HP,D2P_OUT]

    n = input1.shape[0]
    # Zero-pad activations to lane multiples (zeros are matmul-neutral).
    x1 = jnp.pad(input1, ((0, 0), (0, D1P - input1.shape[1])))
    x2 = jnp.pad(input2, ((0, 0), (0, D2P_IN - input2.shape[1])))

    tile1 = D1P // N_TILES        # 896
    tile2 = D2P_OUT // N_TILES    # 128

    # Advisory cost: useful FLOPs + actual HBM bytes (bf16 weights dominate).
    flops = 2 * n * (D1 * H + H * D1 + D2 * H + H * D2)
    bytes_accessed = (
        (we1.size + wd1.size + we2.size + wd2.size) * 2      # bf16 weights
        + (x1.size + x2.size) * 4                            # f32 inputs
        + (n * D1P + n * D2P_OUT) * 4)                       # f32 outputs
    cost = pl.CostEstimate(flops=int(flops), transcendentals=0,
                           bytes_accessed=int(bytes_accessed))

    grid_spec = pltpu.PrefetchScalarGridSpec(
        num_scalar_prefetch=0,
        grid=(N_TILES,),
        in_specs=[
            pl.BlockSpec((n, D1P), lambda j: (0, 0)),        # input1 (resident)
            pl.BlockSpec((D1P, HP), lambda j: (0, 0)),       # W_enc1 (resident)
            pl.BlockSpec((HP, tile1), lambda j: (0, j)),     # W_dec1 column tile
            pl.BlockSpec((n, D2P_IN), lambda j: (0, 0)),     # input2 (resident)
            pl.BlockSpec((D2P_IN, HP), lambda j: (0, 0)),    # W_enc2 (resident)
            pl.BlockSpec((HP, tile2), lambda j: (0, j)),     # W_dec2 column tile
        ],
        out_specs=[
            pl.BlockSpec((n, tile1), lambda j: (0, j)),      # output1 column tile
            pl.BlockSpec((n, tile2), lambda j: (0, j)),      # output2 column tile
        ],
    )

    out1_p, out2_p = pl.pallas_call(
        _networks_kernel,
        out_shape=(
            jax.ShapeDtypeStruct((n, D1P), input1.dtype),
            jax.ShapeDtypeStruct((n, D2P_OUT), input2.dtype),
        ),
        grid_spec=grid_spec,
        compiler_params=pltpu.CompilerParams(
            dimension_semantics=("parallel",),   # no cross-step state -> v7x 2-TC split
            vmem_limit_bytes=16 << 20,
        ),
        cost_estimate=cost,
    )(x1, we1, wd1, x2, we2, wd2)

    # Slice the zero padding back off.
    return out1_p[:, :D1], out2_p[:, :D2]


def init_params(key):
    """nn.Linear-style init (uniform +-1/sqrt(fan_in)), then transpose,
    zero-pad to lane-aligned shapes and cast to bf16 ONCE at init time."""
    def linear_wT_padded(k, in_f, out_f, in_pad, out_pad):
        bound = 1.0 / jnp.sqrt(jnp.float32(in_f))
        # PyTorch stores [out_f, in_f]; pre-transpose to [in_f, out_f] for x @ W.
        w = jax.random.uniform(k, (out_f, in_f), jnp.float32, -bound, bound)
        wt = jnp.pad(w.T, ((0, in_pad - in_f), (0, out_pad - out_f)))
        return wt.astype(jnp.bfloat16)

    k1, k2, k3, k4 = jax.random.split(key, 4)
    return {
        "w_enc1": linear_wT_padded(k1, 1750, 620, D1P, HP),      # Linear(1750, 620)
        "w_dec1": linear_wT_padded(k2, 620, 1750, HP, D1P),      # Linear(620, 1750)
        "w_enc2": linear_wT_padded(k3, 79, 620, D2P_IN, HP),     # Linear(79, 620)
        "w_dec2": linear_wT_padded(k4, 620, 79, HP, D2P_OUT),    # Linear(620, 79)
    }


def _reference_forward(params, input1, input2):
    """Pure-jnp reference performing the same bf16-operand / fp32-accum math
    on the same padded weights, sliced back to logical dims."""
    def ae(x, we, wd, in_pad, d_out):
        xp = jnp.pad(x, ((0, 0), (0, in_pad - x.shape[1]))).astype(jnp.bfloat16)
        h = jnp.dot(xp, we, preferred_element_type=jnp.float32)
        h = jnp.maximum(h, 0.0).astype(jnp.bfloat16)
        o = jnp.dot(h, wd, preferred_element_type=jnp.float32)
        return jnp.maximum(o, 0.0)[:, :d_out]

    return (ae(input1, params["w_enc1"], params["w_dec1"], D1P, D1),
            ae(input2, params["w_enc2"], params["w_dec2"], D2P_IN, D2))


if __name__ == "__main__":
    key = jax.random.PRNGKey(0)
    kp, kx1, kx2 = jax.random.split(key, 3)

    params = init_params(kp)

    N = 8  # small batch (the real lever for perf is a larger N — weights amortize)
    input1 = jax.random.normal(kx1, (N, 1750), jnp.float32)
    input2 = jax.random.normal(kx2, (N, 79), jnp.float32)

    out1, out2 = networks_forward(params, input1, input2)
    jax.block_until_ready((out1, out2))

    ref1, ref2 = _reference_forward(params, input1, input2)
    assert out1.shape == (N, 1750) and out2.shape == (N, 79)
    assert jnp.allclose(out1, ref1, atol=2e-2, rtol=2e-2)
    assert jnp.allclose(out2, ref2, atol=2e-2, rtol=2e-2)

    print("KERNEL_OK")
</pallas_src>

<mosaic_0001>
module attributes {stable_mosaic.version = 11 : i64} {
  func.func @_networks_kernel(%arg0: i32, %arg1: memref<8x1792xf32, #tpu.memory_space<vmem>>, %arg2: memref<1792x640xbf16, #tpu.memory_space<vmem>>, %arg3: memref<640x896xbf16, #tpu.memory_space<vmem>>, %arg4: memref<8x128xf32, #tpu.memory_space<vmem>>, %arg5: memref<128x640xbf16, #tpu.memory_space<vmem>>, %arg6: memref<640x128xbf16, #tpu.memory_space<vmem>>, %arg7: memref<8x896xf32, #tpu.memory_space<vmem>>, %arg8: memref<8x128xf32, #tpu.memory_space<vmem>>) attributes {dimension_semantics = [#tpu.dimension_semantics<parallel>], iteration_bounds = array<i64: 2>, scalar_prefetch = 0 : i64, scratch_operands = 0 : i64, tpu.core_type = #tpu.core_type<tc>, window_params = [{pipeline_mode = #tpu.pipeline_mode<synchronous>, transform_indices = @transform_0, window_bounds = array<i64: 8, 1792>}, {pipeline_mode = #tpu.pipeline_mode<synchronous>, transform_indices = @transform_1, window_bounds = array<i64: 1792, 640>}, {transform_indices = @transform_2, window_bounds = array<i64: 640, 896>}, {pipeline_mode = #tpu.pipeline_mode<synchronous>, transform_indices = @transform_3, window_bounds = array<i64: 8, 128>}, {pipeline_mode = #tpu.pipeline_mode<synchronous>, transform_indices = @transform_4, window_bounds = array<i64: 128, 640>}, {transform_indices = @transform_5, window_bounds = array<i64: 640, 128>}, {transform_indices = @transform_6, window_bounds = array<i64: 8, 896>}, {transform_indices = @transform_7, window_bounds = array<i64: 8, 128>}]} {
    %c0 = arith.constant 0 : index
    %c0_0 = arith.constant 0 : index
    %0 = vector.load %arg1[%c0, %c0_0] : memref<8x1792xf32, #tpu.memory_space<vmem>>, vector<8x1792xf32>
    %1 = arith.truncf %0 : vector<8x1792xf32> to vector<8x1792xbf16>
    %c0_1 = arith.constant 0 : index
    %c0_2 = arith.constant 0 : index
    %2 = vector.load %arg2[%c0_1, %c0_2] : memref<1792x640xbf16, #tpu.memory_space<vmem>>, vector<1792x640xbf16>
    %cst = arith.constant dense<0.000000e+00> : vector<8x640xf32>
    %3 = tpu.matmul %1, %2, %cst {dimension_numbers = #tpu.dot_dimension_numbers<[1], [0], [0], [1], [0, 0, 1, 1], [], []>} : vector<8x1792xbf16>, vector<1792x640xbf16>, vector<8x640xf32> -> vector<8x640xf32>
    %cst_3 = arith.constant 0.000000e+00 : f32
    %4 = vector.broadcast %cst_3 : f32 to vector<8x640xf32>
    %5 = arith.maximumf %3, %4 : vector<8x640xf32>
    %6 = arith.truncf %5 : vector<8x640xf32> to vector<8x640xbf16>
    %c0_4 = arith.constant 0 : index
    %c0_5 = arith.constant 0 : index
    %7 = vector.load %arg3[%c0_4, %c0_5] : memref<640x896xbf16, #tpu.memory_space<vmem>>, vector<640x896xbf16>
    %cst_6 = arith.constant dense<0.000000e+00> : vector<8x896xf32>
    %8 = tpu.matmul %6, %7, %cst_6 {dimension_numbers = #tpu.dot_dimension_numbers<[1], [0], [0], [1], [0, 0, 1, 1], [], []>} : vector<8x640xbf16>, vector<640x896xbf16>, vector<8x896xf32> -> vector<8x896xf32>
    %cst_7 = arith.constant 0.000000e+00 : f32
    %9 = vector.broadcast %cst_7 : f32 to vector<8x896xf32>
    %10 = arith.maximumf %8, %9 : vector<8x896xf32>
    %c0_8 = arith.constant 0 : index
    %c0_9 = arith.constant 0 : index
    %11 = vector.load %arg7[%c0_8, %c0_9] : memref<8x896xf32, #tpu.memory_space<vmem>>, vector<8x896xf32>
    tpu.vector_store %arg7[%c0_8, %c0_9], %10 {strides = array<i32>} : memref<8x896xf32, #tpu.memory_space<vmem>>, vector<8x896xf32>,
    %c0_10 = arith.constant 0 : index
    %c0_11 = arith.constant 0 : index
    %12 = vector.load %arg4[%c0_10, %c0_11] : memref<8x128xf32, #tpu.memory_space<vmem>>, vector<8x128xf32>
    %13 = arith.truncf %12 : vector<8x128xf32> to vector<8x128xbf16>
    %c0_12 = arith.constant 0 : index
    %c0_13 = arith.constant 0 : index
    %14 = vector.load %arg5[%c0_12, %c0_13] : memref<128x640xbf16, #tpu.memory_space<vmem>>, vector<128x640xbf16>
    %cst_14 = arith.constant dense<0.000000e+00> : vector<8x640xf32>
    %15 = tpu.matmul %13, %14, %cst_14 {dimension_numbers = #tpu.dot_dimension_numbers<[1], [0], [0], [1], [0, 0, 1, 1], [], []>} : vector<8x128xbf16>, vector<128x640xbf16>, vector<8x640xf32> -> vector<8x640xf32>
    %cst_15 = arith.constant 0.000000e+00 : f32
    %16 = vector.broadcast %cst_15 : f32 to vector<8x640xf32>
    %17 = arith.maximumf %15, %16 : vector<8x640xf32>
    %18 = arith.truncf %17 : vector<8x640xf32> to vector<8x640xbf16>
    %c0_16 = arith.constant 0 : index
    %c0_17 = arith.constant 0 : index
    %19 = vector.load %arg6[%c0_16, %c0_17] : memref<640x128xbf16, #tpu.memory_space<vmem>>, vector<640x128xbf16>
    %cst_18 = arith.constant dense<0.000000e+00> : vector<8x128xf32>
    %20 = tpu.matmul %18, %19, %cst_18 {dimension_numbers = #tpu.dot_dimension_numbers<[1], [0], [0], [1], [0, 0, 1, 1], [], []>} : vector<8x640xbf16>, vector<640x128xbf16>, vector<8x128xf32> -> vector<8x128xf32>
    %cst_19 = arith.constant 0.000000e+00 : f32
    %21 = vector.broadcast %cst_19 : f32 to vector<8x128xf32>
    %22 = arith.maximumf %20, %21 : vector<8x128xf32>
    %c0_20 = arith.constant 0 : index
    %c0_21 = arith.constant 0 : index
    %23 = vector.load %arg8[%c0_20, %c0_21] : memref<8x128xf32, #tpu.memory_space<vmem>>, vector<8x128xf32>
    tpu.vector_store %arg8[%c0_20, %c0_21], %22 {strides = array<i32>} : memref<8x128xf32, #tpu.memory_space<vmem>>, vector<8x128xf32>,
    return
  }
  func.func @transform_0(%arg0: i32) -> (i32, i32) {
    %c0_i32 = arith.constant 0 : i32
    %c0_i32_0 = arith.constant 0 : i32
    %c0_i32_1 = arith.constant 0 : i32
    return %c0_i32, %c0_i32_0 : i32, i32
  }
  func.func @transform_1(%arg0: i32) -> (i32, i32) {
    %c0_i32 = arith.constant 0 : i32
    %c0_i32_0 = arith.constant 0 : i32
    %c0_i32_1 = arith.constant 0 : i32
    return %c0_i32, %c0_i32_0 : i32, i32
  }
  func.func @transform_2(%arg0: i32) -> (i32, i32) {
    %c0_i32 = arith.constant 0 : i32
    %c0_i32_0 = arith.constant 0 : i32
    return %c0_i32, %arg0 : i32, i32
  }
  func.func @transform_3(%arg0: i32) -> (i32, i32) {
    %c0_i32 = arith.constant 0 : i32
    %c0_i32_0 = arith.constant 0 : i32
    %c0_i32_1 = arith.constant 0 : i32
    return %c0_i32, %c0_i32_0 : i32, i32
  }
  func.func @transform_4(%arg0: i32) -> (i32, i32) {
    %c0_i32 = arith.constant 0 : i32
    %c0_i32_0 = arith.constant 0 : i32
    %c0_i32_1 = arith.constant 0 : i32
    return %c0_i32, %c0_i32_0 : i32, i32
  }
  func.func @transform_5(%arg0: i32) -> (i32, i32) {
    %c0_i32 = arith.constant 0 : i32
    %c0_i32_0 = arith.constant 0 : i32
    return %c0_i32, %arg0 : i32, i32
  }
  func.func @transform_6(%arg0: i32) -> (i32, i32) {
    %c0_i32 = arith.constant 0 : i32
    %c0_i32_0 = arith.constant 0 : i32
    return %c0_i32, %arg0 : i32, i32
  }
  func.func @transform_7(%arg0: i32) -> (i32, i32) {
    %c0_i32 = arith.constant 0 : i32
    %c0_i32_0 = arith.constant 0 : i32
    return %c0_i32, %arg0 : i32, i32
  }
}

</mosaic_0001>

<bundles_post_ra>
// kernel: tpu_custom_call.1
= control target key start
LH: loop header
LB: loop body
LE: loop exit
PB: predicated region body
PF: predicated region fallthrough
CT: control target
= control target key end

     0   :  { %s14301_s0 = inlined_call_operand.hbm [shape: f32[8,1792], index: 0, kind: input, shape index: {}]   ;;  %s14302_s1 = inlined_call_operand.hbm [shape: bf16[1792,640], index: 1, kind: input, shape index: {}]   ;;  %s14303_s2 = inlined_call_operand.hbm [shape: bf16[640,1792], index: 2, kind: input, shape index: {}]   ;;  %s14304_s3 = inlined_call_operand.hbm [shape: f32[8,128], index: 3, kind: input, shape index: {}]   ;;  %s14305_s4 = inlined_call_operand.hbm [shape: bf16[128,640], index: 4, kind: input, shape index: {}]   ;;  %s14306_s5 = inlined_call_operand.hbm [shape: bf16[640,256], index: 5, kind: input, shape index: {}]   ;;  %s14307_s6 = inlined_call_operand.hbm [shape: f32[8,1792], index: 6, kind: output, shape index: {0}]   ;;  %s14308_s7 = inlined_call_operand.hbm [shape: f32[8,256], index: 7, kind: output, shape index: {1}]  }
   0x1   :  { %14317 = sst [smem:[#allocation27_spill]] %s14301_s0 }
   0x2   :  { %14318 = sst [smem:[#allocation28_spill]] %s14302_s1 }
   0x3   :  { %14319 = sst [smem:[#allocation29_spill]] %s14308_s7 }
   0x4   :  { %13 = vsyncpa [#allocation3], 0 }
   0x5   :  { %14 = vsyncpa [#allocation6], 0 }
   0x6   :  { %15 = vsyncpa [#allocation10], 0 }
   0x7   :  { %16 = vsyncpa [#allocation4], 0 }
   0x8   :  { %18 = vsyncpa [#allocation4 + $0x1], 0 }
   0x9   :  { %19 = vsyncpa [#allocation14], 0 }
   0xa   :  { %21 = vsyncpa [#allocation14 + $0x1], 0  ;;  %s13172_s24 = smov 0   ;;  %s13174_s25 = smov 0  }
   0xb   :  { %s13176_s26 = smov 0   ;;  %s13178_s27 = smov 0  }
   0xc LB: > { %14320 = sst [smem:[#allocation23_spill]] %s13106_s24  ;;  %s13193_s28 = sadd.s32 4294967295, %s13118_s27   ;;  %s13118_s27 = sphi %s13178_s27, %s14347_s27   ;;  %s13114_s26 = sphi %s13176_s26, %s14351_s26   ;;  %s13110_s25 = sphi %s13174_s25, %s14350_s25   ;;  %s13106_s24 = sphi %s13172_s24, %s14349_s24  }
   0xd   : > { %s8088_s29 = sadd.s32 4294967294, %s13118_s27   ;;  %s13197_s30 = sadd.s32 1, %s13118_s27  }
   0xe   : > { %14321 = sst [smem:[#allocation24_spill]] %s13197_s30  ;;  %s76_s8 = sadd.s32 1, %s13114_s26 }
   0xf   : > { %s73_s9 = ssub.s32 %s13118_s27, %s13197_s30  ;;  %p83_p0 = scmp.ne.s32.totalorder %s13114_s26, %s13110_s25 }
  0x10   : > { %p74_p1 = scmp.eq.s32.totalorder %s73_s9, 0  ;;  %p84_p2 = scmp.eq.s32.totalorder %s13118_s27, 0 }
  0x11   : > { %p89_p3 = scmp.ne.s32.totalorder %s13110_s25, %s13106_s24  ;;  %p14315_p4 = scmp.eq.s32.totalorder %s13193_s28, 0 }
  0x12   : > { %s13209_s10 = scalar_select %p74_p1, %s13114_s26, %s76_s8  }
  0x13   : > { %p13211_p5 = por %p84_p2, %p83_p0  ;;  %p13217_p6 = por %p14315_p4, %p89_p3 }
  0x14   : > { %14322 = sst [smem:[#allocation25_spill]] %s13209_s10  ;;  %p181_p7 = scmp.eq.s32.totalorder %s13193_s28, 1 }
  0x15   : > { %p187_p8 = scmp.eq.s32.totalorder %s8088_s29, 1  ;;  %p8089_p9 = scmp.ge.s32.totalorder %s13118_s27, 1 }
  0x16   : > { %p220_p10 = scmp.lt.s32.totalorder %s13118_s27, 3  ;;  %p13224_p11 = por %p181_p7, %p83_p0 }
  0x17   : > { %p13228_p12 = por %p187_p8, %p89_p3  ;;  %s14329_s0 = sld [smem:[#allocation27_spill]] }
  0x18   : > { %p13232_p13 = pnand %p8089_p9, %p220_p10  ;;  %s13120_s19 = smov [#allocation2]  }
  0x19   : > { %s14326_s14 = scalar_select %p13228_p12, 1, 0 }
  0x1a   : > { %p12739_p1 = pneg %p13232_p13  ;;  %s234_s20 = sshll.u32 %s13120_s19, 4  ;;  %s235_s20 = int_to_ptr.vmem [resolvable:$true] %s234_s20 }
  0x1b   : > { %14327 = sst [smem:[#allocation26_spill]] %s14326_s14  ;;  %p12770_p3 = scmp.lt.s32.totalorder %s13118_s27, 2 }
  0x1c   : > { %p13244_p2 = pnand %p12739_p1, %p14315_p4  ;;  %s14331_s1 = sld [smem:[#allocation28_spill]] }
  0x1d   : > { %s232_s18 = sshll.u32 %s14329_s0, 4  ;;  %p13256_p7 = pnand %p12770_p3, %p13211_p5  ;;  %s233_s18 = int_to_ptr.hbm [resolvable:$true] %s232_s18 }
  0x1e   : > { %12742 = dma.hbm_to_vmem [thread:$0]  (!%p13244_p2), %s233_s18, 1792, %s235_s20, [#allocation3]  }
  0x1f   : > { %s13121_s9 = smov [#allocation5]   ;;  %s285_s17 = sand.u32 1, %s13118_s27  }
  0x20   : > { %s245_s16 = sshll.u32 %s13121_s9, 4  ;;  %s14314_s19 = smov 320   ;;  %s246_s16 = int_to_ptr.vmem [resolvable:$true] %s245_s16 }
  0x21   : > { %s14316_s0 = smov 20   ;;  %s287_s22 = sand.u32 1, %s13114_s26  }
  0x22   : > { %s243_s29 = sshll.u32 %s14331_s1, 4  ;;  %s12710_s11 = smul.u32 2240, %s287_s22  ;;  %s244_s29 = int_to_ptr.hbm [resolvable:$true] %s243_s29 }
  0x23   : > { %12745 = dma.hbm_to_vmem [thread:$0]  (!%p13244_p2), %s244_s29, 71680, %s246_s16, [#allocation6], %s14314_s19, %s14314_s19, %s14316_s0  }
  0x24   : > { %s11788_s18 = smul.u32 28, %s13118_s27  ;;  %s289_s9 = scalar_lea.vmem [#allocation7], %s12710_s11 }
  0x25   : > { %s297_s10 = sshll.u32 %s289_s9, 4  ;;  %s258_s7 = sshll.u32 %s14304_s3, 4  ;;  %s298_s10 = int_to_ptr.vmem [resolvable:$true] %s297_s10  ;;  %s259_s7 = int_to_ptr.hbm [resolvable:$true] %s258_s7 }
  0x26   : > { %s294_s1 = scalar_lea.hbm %s14303_s2, %s11788_s18  ;;  %s13276_s29 = scalar_lea.sflag [#allocation3], %s285_s17 }
  0x27   : > { %s295_s30 = sshll.u32 %s294_s1, 4  ;;  %p12884_p8 = pneg %p13256_p7  ;;  %s296_s30 = int_to_ptr.hbm [resolvable:$true] %s295_s30 }
  0x28   : > { %s12880_s16 = sshra.s32 %s296_s30, 4  ;;  %s12887_s18 = scalar_lea.hbm %s14303_s2, 4480  ;;  %s12881_s16 = int_to_ptr.hbm [resolvable:$true] %s12880_s16 }
  0x29   : > { %s12882_s19 = scalar_lea.hbm %s12881_s16, 2240  ;;  %p12888_p1 = scmp.lt.s32.totalorder %s12881_s16, %s14303_s2 }
  0x2a   : > { %p12883_p5 = scmp.ne.s32.totalorder %s12881_s16, %s12882_s19  ;;  %p12889_p3 = scmp.lt.s32.totalorder %s12887_s18, %s12882_s19 }
  0x2c   : > { %p12885_p9 = pnand %p12884_p8, %p12883_p5  ;;  %p12890_p0 = por %p12889_p3, %p12888_p1 }
  0x2e   : > { %p12886_p10 = pneg %p12885_p9 }
  0x30   : > { %p12891_p4 = pnand %p12890_p0, %p12886_p10 }
  0x32   : > { %12894 = shalt.err (!%p12891_p4)
}
  0x33   : > { %s13124_s24 = smov 896   ;;  %s13125_s14 = smov 448  }
  0x34   : > { %s13126_s17 = smov 28   ;;  %s13127_s9 = smov [#allocation8]  }
  0x35   : > { %12755 = dma.hbm_to_vmem [thread:$0]  (!%p13256_p7), %s296_s30, 35840, %s298_s10, %s13276_s29, %s13124_s24, %s13125_s14, %s13126_s17  }
  0x36   : > { %s260_s11 = sshll.u32 %s13127_s9, 4  ;;  %s269_s19 = sshll.u32 %s14305_s4, 4  ;;  %s261_s11 = int_to_ptr.vmem [resolvable:$true] %s260_s11  ;;  %s270_s19 = int_to_ptr.hbm [resolvable:$true] %s269_s19 }
  0x37   : > { %12748 = dma.hbm_to_vmem [thread:$0]  (!%p13244_p2), %s259_s7, 128, %s261_s11, [#allocation6]  }
  0x38   : > { %s12711_s18 = smul.u32 320, %s287_s22  ;;  %s13128_s20 = smov [#allocation9]  }
  0x39   : > { %s271_s23 = sshll.u32 %s13128_s20, 4  ;;  %s8096_s0 = sshll.u32 %s13118_s27, 2  ;;  %s272_s23 = int_to_ptr.vmem [resolvable:$true] %s271_s23 }
  0x3a   : > { %s14333_s30 = smov 20   ;;  %s14334_s10 = smov 320  }
  0x3b   : > { %12751 = dma.hbm_to_vmem [thread:$0]  (!%p13244_p2), %s270_s19, 5120, %s272_s23, [#allocation10], %s14334_s10, %s14334_s10, %s14333_s30  }
  0x3c   : > { %s315_s17 = scalar_lea.hbm %s14306_s5, %s8096_s0  ;;  %s311_s9 = scalar_lea.vmem [#allocation11], %s12711_s18 }
  0x3d   : > { %s318_s1 = sshll.u32 %s311_s9, 4  ;;  %s316_s16 = sshll.u32 %s315_s17, 4  ;;  %s319_s1 = int_to_ptr.vmem [resolvable:$true] %s318_s1  ;;  %s317_s16 = int_to_ptr.hbm [resolvable:$true] %s316_s16 }
  0x3e   : > { %s12970_s7 = sshra.s32 %s317_s16, 4  ;;  %s12977_s19 = scalar_lea.hbm %s14306_s5, 640  ;;  %s12971_s7 = int_to_ptr.hbm [resolvable:$true] %s12970_s7 }
  0x3f   : > { %s12972_s22 = scalar_lea.hbm %s12971_s7, 320  ;;  %p12978_p2 = scmp.lt.s32.totalorder %s12971_s7, %s14306_s5 }
  0x40   : > { %p12973_p4 = scmp.ne.s32.totalorder %s12971_s7, %s12972_s22  ;;  %p12979_p9 = scmp.lt.s32.totalorder %s12977_s19, %s12972_s22 }
  0x42   : > { %p12975_p0 = pnand %p12973_p4, %p12884_p8  ;;  %p12980_p10 = por %p12979_p9, %p12978_p2 }
  0x44   : > { %p12976_p5 = pneg %p12975_p0 }
  0x46   : > { %p12981_p1 = pnand %p12980_p10, %p12976_p5 }
  0x48   : > { %12984 = shalt.err (!%p12981_p1)
}
  0x49   : > { %s13129_s0 = smov 128   ;;  %s13130_s18 = smov 64  }
  0x4a   : > { %s13131_s30 = smov 4   ;;  %330 = sbr.rel (%p13232_p13) target bundleno = 1317 (0x525), region = 44 }
  0x4b   : > { %12758 = dma.hbm_to_vmem [thread:$0]  (!%p13256_p7), %s317_s16, 5120, %s319_s1, %s13276_s29, %s13129_s0, %s13130_s18, %s13131_s30  }
  0x4c   : > { %p14335_p8 = scmp.eq.s32.totalorder (!%p13232_p13), %s13193_s28, 0 }
  0x4f   : > { %13073 = dma.done.wait (%p14335_p8), [#allocation3], 1792   ;;  %p14336_p3 = pmov %p14335_p8 }
  0x51   : > { %13075 = vsyncadd (%p14336_p3), [#allocation3], 4294965504  ;;  %p14337_p4 = pmov %p14336_p3 }
  0x52   : > { %p14338_p0 = pmov %p14336_p3 }
  0x53   : > { %13077 = dma.done.wait (%p14337_p4), [#allocation6], 71680  }
  0x54   : > { %13079 = vsyncadd (%p14338_p0), [#allocation6], 4294895616  ;;  %s342_s8 = sand.u32 1, %s13193_s28   ;;  %s13332_s29 = sand.u32 1, %s13110_s25  }
  0x55   : > { %s12712_s15 = smul.u32 2240, %s13332_s29  ;;  %s343_s10 = scalar_lea.sflag [#allocation3], %s342_s8 }
  0x57   : > { %s13335_s24 = scalar_lea.vmem [#allocation7], %s12712_s15 }
  0x58   : > { %13081 = dma.done.wait (%p13217_p6), %s343_s10, 35840  }
  0x59   : > { %13083 = vsyncadd (%p13217_p6), %s343_s10, 4294931456  ;;  %p14339_p13 = pmov %p14338_p0 }
  0x5a   : > { %p14340_p7 = pmov %p14338_p0 }
  0x5b   : > { %13085 = dma.done.wait (%p14339_p13), [#allocation6], 128  }
  0x5c   : > { %13087 = vsyncadd (%p14340_p7), [#allocation6], 4294967168  ;;  %p14341_p5 = pmov %p14338_p0 }
  0x5d   : > { %p14342_p2 = pmov %p14338_p0 }
  0x5e   : > { %13089 = dma.done.wait (%p14341_p5), [#allocation10], 5120  }
  0x5f   : > { %13091 = vsyncadd (%p14342_p2), [#allocation10], 4294962176  ;;  %s12713_s14 = smul.u32 320, %s13332_s29 }
  0x61   : > { %s13350_s17 = scalar_lea.vmem [#allocation11], %s12713_s14 }
  0x62   : > { %13093 = dma.done.wait (%p13217_p6), %s343_s10, 5120  }
  0x63   : > { %13095 = vsyncadd (%p13217_p6), %s343_s10, 4294962176  ;;  %v8245_v0 = vld [vmem:[#allocation5 + $0x118] sm:$0xf]  ;;  %v11826_v1 = vld [vmem:[#allocation5 + $0x128] sm:$0xf0]  ;;  %s12714_s12 = smul.u32 56, %s13332_s29 }
  0x64   : > { %v8405_v2 = vld [vmem:[#allocation5 + $0x258] sm:$0xf]  ;;  %v8246_v3 = vor.u32 %v11826_v1, %v8245_v0  ;;  %v11866_v4 = vld [vmem:[#allocation5 + $0x268] sm:$0xf0]  ;;  %v8225_v11 = vld [vmem:[#allocation5 + $0xf0] sm:$0xf] }
  0x65   : > { %v8565_v5 = vld [vmem:[#allocation5 + $0x398] sm:$0xf]  ;;  %v11906_v6 = vld [vmem:[#allocation5 + $0x3a8] sm:$0xf0]  ;;  %v8406_v7 = vor.u32 %v11866_v4, %v8405_v2  ;;  %v11821_v13 = vld [vmem:[#allocation5 + $0x100] sm:$0xf0] }
  0x66   : > { %v8566_v8 = vor.u32 %v11906_v6, %v8565_v5  ;;  %v8725_v9 = vld [vmem:[#allocation5 + $0x4d8] sm:$0xf]  ;;  %v11946_v10 = vld [vmem:[#allocation5 + $0x4e8] sm:$0xf0]  ;;  %4022 = vmatpush.bf16.msra.mxu0 %v8246_v3  ;;  %v8385_v14 = vld [vmem:[#allocation5 + $0x230] sm:$0xf]  ;;  %v8226_v16 = vor.u32 %v11821_v13, %v8225_v11 }
  0x67   : > { %v8726_v12 = vor.u32 %v11946_v10, %v8725_v9  ;;  %v11861_v15 = vld [vmem:[#allocation5 + $0x240] sm:$0xf0]  ;;  %4035 = vmatpush.bf16.msra.mxu1 %v8406_v7  ;;  %v8545_v18 = vld [vmem:[#allocation5 + $0x370] sm:$0xf]  ;;  %v8205_v23 = vld [vmem:[#allocation5 + $0xc8] sm:$0xf] }
  0x68   : > { %4048 = vmatpush.bf16.msra.mxu2 %v8566_v8  ;;  %v8386_v17 = vor.u32 %v11861_v15, %v8385_v14  ;;  %v11901_v19 = vld [vmem:[#allocation5 + $0x380] sm:$0xf0]  ;;  %v8705_v20 = vld [vmem:[#allocation5 + $0x4b0] sm:$0xf]  ;;  %v11816_v24 = vld [vmem:[#allocation5 + $0xd8] sm:$0xf0] }
  0x69   : > { %4061 = vmatpush.bf16.msra.mxu3 %v8726_v12  ;;  %v8546_v21 = vor.u32 %v11901_v19, %v8545_v18  ;;  %v11941_v22 = vld [vmem:[#allocation5 + $0x4c0] sm:$0xf0]  ;;  %v8365_v26 = vld [vmem:[#allocation5 + $0x208] sm:$0xf]  ;;  %v11856_v27 = vld [vmem:[#allocation5 + $0x218] sm:$0xf0]  ;;  %v8206_v29 = vor.u32 %v11816_v24, %v8205_v23 }
  0x6a   : > { %v8706_v25 = vor.u32 %v11941_v22, %v8705_v20  ;;  %v8525_v28 = vld [vmem:[#allocation5 + $0x348] sm:$0xf]  ;;  %4023 = vmatpush.bf16.msra.mxu0 %v8226_v16  ;;  %v11896_v30 = vld [vmem:[#allocation5 + $0x358] sm:$0xf0]  ;;  %v8366_v33 = vor.u32 %v11856_v27, %v8365_v26  ;;  %v8185_v35 = vld [vmem:[#allocation5 + $0xa0] sm:$0xf] }
  0x6b   : > { %v8685_v31 = vld [vmem:[#allocation5 + $0x488] sm:$0xf]  ;;  %v11936_v32 = vld [vmem:[#allocation5 + $0x498] sm:$0xf0]  ;;  %4036 = vmatpush.bf16.msra.mxu1 %v8386_v17  ;;  %v8526_v34 = vor.u32 %v11896_v30, %v8525_v28  ;;  %v11811_v36 = vld [vmem:[#allocation5 + $0xb0] sm:$0xf0] }
  0x6c   : > { %4049 = vmatpush.bf16.msra.mxu2 %v8546_v21  ;;  %v8345_v37 = vld [vmem:[#allocation5 + $0x1e0] sm:$0xf]  ;;  %v8686_v38 = vor.u32 %v11936_v32, %v8685_v31  ;;  %v11851_v39 = vld [vmem:[#allocation5 + $0x1f0] sm:$0xf0]  ;;  %v8186_v44 = vor.u32 %v11811_v36, %v8185_v35  ;;  %v8165_v47 = vld [vmem:[#allocation5 + $0x78] sm:$0xf] }
  0x6d   : > { %4062 = vmatpush.bf16.msra.mxu3 %v8706_v25  ;;  %v8505_v40 = vld [vmem:[#allocation5 + $0x320] sm:$0xf]  ;;  %v11891_v41 = vld [vmem:[#allocation5 + $0x330] sm:$0xf0]  ;;  %v8346_v45 = vor.u32 %v11851_v39, %v8345_v37  ;;  %v11806_v48 = vld [vmem:[#allocation5 + $0x88] sm:$0xf0] }
  0x6e   : > { %v8665_v42 = vld [vmem:[#allocation5 + $0x460] sm:$0xf]  ;;  %v11931_v43 = vld [vmem:[#allocation5 + $0x470] sm:$0xf0]  ;;  %4024 = vmatpush.bf16.msra.mxu0 %v8206_v29  ;;  %v8506_v46 = vor.u32 %v11891_v41, %v8505_v40  ;;  %v8325_v49 = vld [vmem:[#allocation5 + $0x1b8] sm:$0xf]  ;;  %v8166_v56 = vor.u32 %v11806_v48, %v8165_v47 }
  0x6f   : > { %4037 = vmatpush.bf16.msra.mxu1 %v8366_v33  ;;  %v8666_v50 = vor.u32 %v11931_v43, %v8665_v42  ;;  %v11846_v51 = vld [vmem:[#allocation5 + $0x1c8] sm:$0xf0]  ;;  %v8485_v52 = vld [vmem:[#allocation5 + $0x2f8] sm:$0xf]  ;;  %v8145_v59 = vld [vmem:[#allocation5 + $0x50] sm:$0xf] }
  0x70   : > { %4050 = vmatpush.bf16.msra.mxu2 %v8526_v34  ;;  %v11886_v53 = vld [vmem:[#allocation5 + $0x308] sm:$0xf0]  ;;  %v8645_v54 = vld [vmem:[#allocation5 + $0x438] sm:$0xf]  ;;  %v8326_v57 = vor.u32 %v11846_v51, %v8325_v49  ;;  %v11801_v60 = vld [vmem:[#allocation5 + $0x60] sm:$0xf0] }
  0x71   : > { %4063 = vmatpush.bf16.msra.mxu3 %v8686_v38  ;;  %v11926_v55 = vld [vmem:[#allocation5 + $0x448] sm:$0xf0]  ;;  %v8486_v58 = vor.u32 %v11886_v53, %v8485_v52  ;;  %v8305_v61 = vld [vmem:[#allocation5 + $0x190] sm:$0xf]  ;;  %v11841_v63 = vld [vmem:[#allocation5 + $0x1a0] sm:$0xf0]  ;;  %v8146_v4 = vor.u32 %v11801_v60, %v8145_v59 }
  0x72   : > { %4025 = vmatpush.bf16.msra.mxu0 %v8186_v44  ;;  %v8646_v62 = vor.u32 %v11926_v55, %v8645_v54  ;;  %v8465_v0 = vld [vmem:[#allocation5 + $0x2d0] sm:$0xf]  ;;  %v11881_v1 = vld [vmem:[#allocation5 + $0x2e0] sm:$0xf0]  ;;  %v8306_v5 = vor.u32 %v11841_v63, %v8305_v61  ;;  %v8125_v7 = vld [vmem:[#allocation5 + $0x28] sm:$0xf] }
  0x73   : > { %4038 = vmatpush.bf16.msra.mxu1 %v8346_v45  ;;  %v8625_v2 = vld [vmem:[#allocation5 + $0x410] sm:$0xf]  ;;  %v11921_v3 = vld [vmem:[#allocation5 + $0x420] sm:$0xf0]  ;;  %v8466_v6 = vor.u32 %v11881_v1, %v8465_v0  ;;  %v11796_v8 = vld [vmem:[#allocation5 + $0x38] sm:$0xf0] }
  0x74   : > { %4051 = vmatpush.bf16.msra.mxu2 %v8506_v46  ;;  %v8285_v9 = vld [vmem:[#allocation5 + $0x168] sm:$0xf]  ;;  %v8626_v10 = vor.u32 %v11921_v3, %v8625_v2  ;;  %v11836_v11 = vld [vmem:[#allocation5 + $0x178] sm:$0xf0]  ;;  %v8126_v16 = vor.u32 %v11796_v8, %v8125_v7  ;;  %v8105_v17 = vld [vmem:[#allocation5] sm:$0xf] }
  0x75   : > { %4064 = vmatpush.bf16.msra.mxu3 %v8666_v50  ;;  %v8445_v12 = vld [vmem:[#allocation5 + $0x2a8] sm:$0xf]  ;;  %v11876_v13 = vld [vmem:[#allocation5 + $0x2b8] sm:$0xf0]  ;;  %v11791_v18 = vld [vmem:[#allocation5 + $0x10] sm:$0xf0]  ;;  %v8286_v19 = vor.u32 %v11836_v11, %v8285_v9 }
  0x76   : > { %4026 = vmatpush.bf16.msra.mxu0 %v8166_v56  ;;  %v8605_v14 = vld [vmem:[#allocation5 + $0x3e8] sm:$0xf]  ;;  %v11916_v15 = vld [vmem:[#allocation5 + $0x3f8] sm:$0xf0]  ;;  %v8446_v20 = vor.u32 %v11876_v13, %v8445_v12  ;;  %v8265_v21 = vld [vmem:[#allocation5 + $0x140] sm:$0xf]  ;;  %v8106_v31 = vor.u32 %v11791_v18, %v8105_v17 }
  0x77   : > { %4039 = vmatpush.bf16.msra.mxu1 %v8326_v57  ;;  %v11831_v22 = vld [vmem:[#allocation5 + $0x150] sm:$0xf0]  ;;  %v8425_v23 = vld [vmem:[#allocation5 + $0x280] sm:$0xf]  ;;  %v8606_v24 = vor.u32 %v11916_v15, %v8605_v14  ;;  %v8885_v28 = vld [vmem:[#allocation5 + $0x618] sm:$0xf] }
  0x78   : > { %4052 = vmatpush.bf16.msra.mxu2 %v8486_v58  ;;  %v11871_v25 = vld [vmem:[#allocation5 + $0x290] sm:$0xf0]  ;;  %v8585_v26 = vld [vmem:[#allocation5 + $0x3c0] sm:$0xf]  ;;  %v11986_v29 = vld [vmem:[#allocation5 + $0x628] sm:$0xf0]  ;;  %v8266_v35 = vor.u32 %v11831_v22, %v8265_v21 }
  0x79   : > { %4065 = vmatpush.bf16.msra.mxu3 %v8646_v62  ;;  %v11911_v27 = vld [vmem:[#allocation5 + $0x3d0] sm:$0xf0]  ;;  %v9045_v30 = vld [vmem:[#allocation5 + $0x758] sm:$0xf]  ;;  %v12026_v32 = vld [vmem:[#allocation5 + $0x768] sm:$0xf0]  ;;  %v8426_v36 = vor.u32 %v11871_v25, %v8425_v23  ;;  %v8886_v40 = vor.u32 %v11986_v29, %v8885_v28 }
  0x7a   : > { %4027 = vmatpush.bf16.msra.mxu0 %v8146_v4  ;;  %v9205_v33 = vld [vmem:[#allocation5 + $0x898] sm:$0xf]  ;;  %v12066_v34 = vld [vmem:[#allocation5 + $0x8a8] sm:$0xf0]  ;;  %v8586_v39 = vor.u32 %v11911_v27, %v8585_v26  ;;  %v9046_v41 = vor.u32 %v12026_v32, %v9045_v30  ;;  %v8865_v43 = vld [vmem:[#allocation5 + $0x5f0] sm:$0xf] }
  0x7b   : > { %4040 = vmatpush.bf16.msra.mxu1 %v8306_v5  ;;  %v9365_v37 = vld [vmem:[#allocation5 + $0x9d8] sm:$0xf]  ;;  %v12106_v38 = vld [vmem:[#allocation5 + $0x9e8] sm:$0xf0]  ;;  %v9206_v42 = vor.u32 %v12066_v34, %v9205_v33  ;;  %v11981_v44 = vld [vmem:[#allocation5 + $0x600] sm:$0xf0] }
  0x7c   : > { %4053 = vmatpush.bf16.msra.mxu2 %v8466_v6  ;;  %v9025_v45 = vld [vmem:[#allocation5 + $0x730] sm:$0xf]  ;;  %v9366_v46 = vor.u32 %v12106_v38, %v9365_v37  ;;  %v12021_v47 = vld [vmem:[#allocation5 + $0x740] sm:$0xf0]  ;;  %v8866_v52 = vor.u32 %v11981_v44, %v8865_v43  ;;  %v8845_v53 = vld [vmem:[#allocation5 + $0x5c8] sm:$0xf] }
  0x7d   : > { %4066 = vmatpush.bf16.msra.mxu3 %v8626_v10  ;;  %v9185_v48 = vld [vmem:[#allocation5 + $0x870] sm:$0xf]  ;;  %v12061_v49 = vld [vmem:[#allocation5 + $0x880] sm:$0xf0]  ;;  %v11976_v54 = vld [vmem:[#allocation5 + $0x5d8] sm:$0xf0]  ;;  %v9026_v56 = vor.u32 %v12021_v47, %v9025_v45 }
  0x7e   : > { %4028 = vmatpush.bf16.msra.mxu0 %v8126_v16  ;;  %v9345_v50 = vld [vmem:[#allocation5 + $0x9b0] sm:$0xf]  ;;  %v12101_v51 = vld [vmem:[#allocation5 + $0x9c0] sm:$0xf0]  ;;  %v9005_v55 = vld [vmem:[#allocation5 + $0x708] sm:$0xf]  ;;  %v9186_v57 = vor.u32 %v12061_v49, %v9185_v48  ;;  %v8846_v6 = vor.u32 %v11976_v54, %v8845_v53 }
  0x7f   : > { %4041 = vmatpush.bf16.msra.mxu1 %v8286_v19  ;;  %v12016_v58 = vld [vmem:[#allocation5 + $0x718] sm:$0xf0]  ;;  %v9165_v59 = vld [vmem:[#allocation5 + $0x848] sm:$0xf]  ;;  %v412_v60 = vld [vmem:[#allocation2 + $0x10] sm:$0xff]  ;;  %v9346_v61 = vor.u32 %v12101_v51, %v9345_v50  ;;  %s14140_s9 = scalar_lea.vmem [#allocation12], %s12714_s12 }
  0x80   : > { %4054 = vmatpush.bf16.msra.mxu2 %v8446_v20  ;;  %v12056_v62 = vld [vmem:[#allocation5 + $0x858] sm:$0xf0]  ;;  %v13356_v63 = vpack.c.bf16 %v412_v60, %v412_v60  ;;  %v410_v0 = vld [vmem:[#allocation2] sm:$0xff]  ;;  %v413_v1 = vld [vmem:[#allocation2 + $0x18] sm:$0xff]  ;;  %v9006_v8 = vor.u32 %v12016_v58, %v9005_v55  ;;  %s12709_s1 = smul.u32 56, %s13193_s28  ;;  %s7910_s16 = sshll.u32 %s14140_s9, 4  ;;  %s7911_s16 = int_to_ptr.vmem [resolvable:$true] %s7910_s16 }
  0x81   : > { %4067 = vmatpush.bf16.msra.mxu3 %v8606_v24  ;;  %v9325_v2 = vld [vmem:[#allocation5 + $0x988] sm:$0xf]  ;;  %v12096_v3 = vld [vmem:[#allocation5 + $0x998] sm:$0xf0]  ;;  %v13358_v4 = vpack.c.bf16 %v410_v0, %v410_v0  ;;  %v13360_v5 = vpack.c.bf16 %v413_v1, %v413_v1  ;;  %v8825_v7 = vld [vmem:[#allocation5 + $0x5a0] sm:$0xf]  ;;  %v9166_v9 = vor.u32 %v12056_v62, %v9165_v59 }
  0x82   : > { %4029 = vmatpush.bf16.msra.mxu0 %v8106_v31  ;;  %v11971_v10 = vld [vmem:[#allocation5 + $0x5b0] sm:$0xf0]  ;;  %v8985_v11 = vld [vmem:[#allocation5 + $0x6e0] sm:$0xf]  ;;  %v411_v12 = vld [vmem:[#allocation2 + $0x8] sm:$0xff]  ;;  %v9326_v13 = vor.u32 %v12096_v3, %v9325_v2  ;;  %s7908_s21 = scalar_lea.hbm %s14307_s6, %s12709_s1  ;;  %s7892_s19 = scalar_lea.sflag [#allocation4], %s13332_s29 }
  0x83   : > { %4042 = vmatpush.bf16.msra.mxu1 %v8266_v35  ;;  %v12011_v14 = vld [vmem:[#allocation5 + $0x6f0] sm:$0xf0]  ;;  %v9145_v15 = vld [vmem:[#allocation5 + $0x820] sm:$0xf]  ;;  %v13364_v17 = vpack.c.bf16 %v411_v12, %v411_v12  ;;  %v8826_v20 = vor.u32 %v11971_v10, %v8825_v7  ;;  %v8805_v23 = vld [vmem:[#allocation5 + $0x578] sm:$0xf] }
  0x84   : > { %4055 = vmatpush.bf16.msra.mxu2 %v8426_v36  ;;  %v12051_v16 = vld [vmem:[#allocation5 + $0x830] sm:$0xf0]  ;;  %v9305_v18 = vld [vmem:[#allocation5 + $0x960] sm:$0xf]  ;;  %v8986_v21 = vor.u32 %v12011_v14, %v8985_v11  ;;  %v11966_v24 = vld [vmem:[#allocation5 + $0x588] sm:$0xf0] }
  0x85   : > { %4068 = vmatpush.bf16.msra.mxu3 %v8586_v39  ;;  %4030 = vmatmul.bf16.vlgmr.msra.gmra.mxu0 %v13358_v4  ;;  %v12091_v19 = vld [vmem:[#allocation5 + $0x970] sm:$0xf0]  ;;  %v9146_v22 = vor.u32 %v12051_v16, %v9145_v15  ;;  %v8965_v25 = vld [vmem:[#allocation5 + $0x6b8] sm:$0xf]  ;;  %v12006_v27 = vld [vmem:[#allocation5 + $0x6c8] sm:$0xf0]  ;;  %v8806_v32 = vor.u32 %v11966_v24, %v8805_v23 }
  0x86   : > { %4074 = vmatpush.bf16.msrb.mxu0 %v8886_v40  ;;  %4043 = vmatmul.bf16.vlgmr.msra.gmra.mxu1 %v13364_v17  ;;  %v9306_v26 = vor.u32 %v12091_v19, %v9305_v18  ;;  %v9125_v28 = vld [vmem:[#allocation5 + $0x7f8] sm:$0xf]  ;;  %v12046_v29 = vld [vmem:[#allocation5 + $0x808] sm:$0xf0]  ;;  %v8966_v33 = vor.u32 %v12006_v27, %v8965_v25  ;;  %v8785_v35 = vld [vmem:[#allocation5 + $0x550] sm:$0xf] }
  0x87   : > { %4087 = vmatpush.bf16.msrb.mxu1 %v9046_v41  ;;  %4056 = vmatmul.bf16.vlgmr.msra.gmra.mxu2 %v13356_v63  ;;  %v9285_v30 = vld [vmem:[#allocation5 + $0x938] sm:$0xf]  ;;  %v12086_v31 = vld [vmem:[#allocation5 + $0x948] sm:$0xf0]  ;;  %v9126_v34 = vor.u32 %v12046_v29, %v9125_v28  ;;  %v11961_v36 = vld [vmem:[#allocation5 + $0x560] sm:$0xf0] }
  0x88   : > { %4100 = vmatpush.bf16.msrb.mxu2 %v9206_v42  ;;  %4069 = vmatmul.bf16.vlgmr.msra.gmra.mxu3 %v13360_v5  ;;  %v8945_v37 = vld [vmem:[#allocation5 + $0x690] sm:$0xf]  ;;  %v9286_v38 = vor.u32 %v12086_v31, %v9285_v30  ;;  %v12001_v39 = vld [vmem:[#allocation5 + $0x6a0] sm:$0xf0]  ;;  %v8786_v44 = vor.u32 %v11961_v36, %v8785_v35  ;;  %v8765_v47 = vld [vmem:[#allocation5 + $0x528] sm:$0xf] }
  0x89   : > { %4113 = vmatpush.bf16.msrb.mxu3 %v9366_v46  ;;  %v9105_v40 = vld [vmem:[#allocation5 + $0x7d0] sm:$0xf]  ;;  %v12041_v41 = vld [vmem:[#allocation5 + $0x7e0] sm:$0xf0]  ;;  %v8946_v45 = vor.u32 %v12001_v39, %v8945_v37  ;;  %v11956_v48 = vld [vmem:[#allocation5 + $0x538] sm:$0xf0] }
  0x8a   : > { %4075 = vmatpush.bf16.msrb.mxu0 %v8866_v52  ;;  %v9265_v42 = vld [vmem:[#allocation5 + $0x910] sm:$0xf]  ;;  %v12081_v43 = vld [vmem:[#allocation5 + $0x920] sm:$0xf0]  ;;  %v9106_v46 = vor.u32 %v12041_v41, %v9105_v40  ;;  %v8925_v49 = vld [vmem:[#allocation5 + $0x668] sm:$0xf] }
  0x8b   : > { %4088 = vmatpush.bf16.msrb.mxu1 %v9026_v56  ;;  %v9266_v50 = vor.u32 %v12081_v43, %v9265_v42  ;;  %v11996_v51 = vld [vmem:[#allocation5 + $0x678] sm:$0xf0]  ;;  %v9085_v52 = vld [vmem:[#allocation5 + $0x7a8] sm:$0xf]  ;;  %v8766_v56 = vor.u32 %v11956_v48, %v8765_v47  ;;  %v11951_v58 = vld [vmem:[#allocation5 + $0x510] sm:$0xf0] }
  0x8c   : > { %4101 = vmatpush.bf16.msrb.mxu2 %v9186_v57  ;;  %v12036_v53 = vld [vmem:[#allocation5 + $0x7b8] sm:$0xf0]  ;;  %v9245_v54 = vld [vmem:[#allocation5 + $0x8e8] sm:$0xf]  ;;  %v8745_v57 = vld [vmem:[#allocation5 + $0x500] sm:$0xf]  ;;  %v8926_v59 = vor.u32 %v11996_v51, %v8925_v49 }
  0x8d   : > { %4114 = vmatpush.bf16.msrb.mxu3 %v9346_v61  ;;  %v12076_v55 = vld [vmem:[#allocation5 + $0x8f8] sm:$0xf0]  ;;  %v9086_v60 = vor.u32 %v12036_v53, %v9085_v52  ;;  %v8905_v61 = vld [vmem:[#allocation5 + $0x640] sm:$0xf]  ;;  %v11991_v62 = vld [vmem:[#allocation5 + $0x650] sm:$0xf0]  ;;  %v8746_v10 = vor.u32 %v11951_v58, %v8745_v57 }
  0x8e   : > { %4076 = vmatpush.bf16.msrb.mxu0 %v8846_v6  ;;  %v9065_v0 = vld [vmem:[#allocation5 + $0x780] sm:$0xf]  ;;  %v9246_v1 = vor.u32 %v12076_v55, %v9245_v54  ;;  %v12031_v2 = vld [vmem:[#allocation5 + $0x790] sm:$0xf0]  ;;  %v9525_v7 = vld [vmem:[#allocation5 + $0xb18] sm:$0xf]  ;;  %v8906_v14 = vor.u32 %v11991_v62, %v8905_v61 }
  0x8f   : > { %4089 = vmatpush.bf16.msrb.mxu1 %v9006_v8  ;;  %v9225_v3 = vld [vmem:[#allocation5 + $0x8c0] sm:$0xf]  ;;  %v12071_v6 = vld [vmem:[#allocation5 + $0x8d0] sm:$0xf0]  ;;  %v12146_v8 = vld [vmem:[#allocation5 + $0xb28] sm:$0xf0]  ;;  %v9066_v15 = vor.u32 %v12031_v2, %v9065_v0 }
  0x90   : > { %4102 = vmatpush.bf16.msrb.mxu2 %v9166_v9  ;;  %v9685_v9 = vld [vmem:[#allocation5 + $0xc58] sm:$0xf]  ;;  %v12186_v11 = vld [vmem:[#allocation5 + $0xc68] sm:$0xf0]  ;;  %v416_v19 = vld [vmem:[#allocation2 + $0x30] sm:$0xff]  ;;  %s7912_s11 = sshll.u32 %s7908_s21, 4  ;;  %s7913_s11 = int_to_ptr.hbm [resolvable:$true] %s7912_s11 }
  0x91   : > { %4115 = vmatpush.bf16.msrb.mxu3 %v9326_v13  ;;  %v9845_v12 = vld [vmem:[#allocation5 + $0xd98] sm:$0xf]  ;;  %v12226_v13 = vld [vmem:[#allocation5 + $0xda8] sm:$0xf0]  ;;  %v414_v23 = vld [vmem:[#allocation2 + $0x20] sm:$0xff]  ;;  %v9686_v25 = vor.u32 %v12186_v11, %v9685_v9  ;;  %v13368_v31 = vpack.c.bf16 %v416_v19, %v416_v19  ;;  %s13014_s20 = sshra.s32 %s7913_s11, 4  ;;  %s13015_s20 = int_to_ptr.hbm [resolvable:$true] %s13014_s20 }
  0x92   : > { %4077 = vmatpush.bf16.msrb.mxu0 %v8826_v20  ;;  %v10005_v16 = vld [vmem:[#allocation5 + $0xed8] sm:$0xf]  ;;  %v12266_v18 = vld [vmem:[#allocation5 + $0xee8] sm:$0xf0]  ;;  %v9226_v20 = vor.u32 %v12071_v6, %v9225_v3  ;;  %v12141_v27 = vld [vmem:[#allocation5 + $0xb00] sm:$0xf0]  ;;  %v13370_v37 = vpack.c.bf16 %v414_v23, %v414_v23  ;;  %p13021_p1 = scmp.lt.s32.totalorder %s13015_s20, %s14307_s6 }
  0x93   : > { %4090 = vmatpush.bf16.msrb.mxu1 %v8986_v21  ;;  %v9526_v21 = vor.u32 %v12146_v8, %v9525_v7  ;;  %v417_v24 = vld [vmem:[#allocation2 + $0x38] sm:$0xff]  ;;  %v9665_v28 = vld [vmem:[#allocation5 + $0xc30] sm:$0xf]  ;;  %v415_v29 = vld [vmem:[#allocation2 + $0x28] sm:$0xff]  ;;  %v10006_v30 = vor.u32 %v12266_v18, %v10005_v16  ;;  %s13016_s23 = scalar_lea.hbm %s13015_s20, 56  ;;  %s13020_s30 = scalar_lea.hbm %s14307_s6, 112 }
  0x94   : > { %4103 = vmatpush.bf16.msrb.mxu2 %v9146_v22  ;;  %v9505_v22 = vld [vmem:[#allocation5 + $0xaf0] sm:$0xf]  ;;  %v12261_v36 = vld [vmem:[#allocation5 + $0xec0] sm:$0xf0]  ;;  %v13374_v40 = vpack.c.bf16 %v415_v29, %v415_v29  ;;  %v9485_v43 = vld [vmem:[#allocation5 + $0xac8] sm:$0xf]  ;;  %p13017_p6 = scmp.ne.s32.totalorder %s13015_s20, %s13016_s23  ;;  %p13022_p8 = scmp.lt.s32.totalorder %s13020_s30, %s13016_s23 }
  0x95   : > { %4116 = vmatpush.bf16.msrb.mxu3 %v9306_v26  ;;  %v9846_v26 = vor.u32 %v12226_v13, %v9845_v12  ;;  %v9985_v35 = vld [vmem:[#allocation5 + $0xeb0] sm:$0xf]  ;;  %v9506_v39 = vor.u32 %v12141_v27, %v9505_v22  ;;  %v12176_v47 = vld [vmem:[#allocation5 + $0xc18] sm:$0xf0]  ;;  %v9805_v48 = vld [vmem:[#allocation5 + $0xd48] sm:$0xf] }
  0x96   : > { %4078 = vmatpush.bf16.msrb.mxu0 %v8806_v32  ;;  %v12181_v32 = vld [vmem:[#allocation5 + $0xc40] sm:$0xf0]  ;;  %v12216_v49 = vld [vmem:[#allocation5 + $0xd58] sm:$0xf0]  ;;  %v9465_v55 = vld [vmem:[#allocation5 + $0xaa0] sm:$0xf]  ;;  %p13018_p9 = pnand %p13017_p6, %p13224_p11  ;;  %p13023_p3 = por %p13022_p8, %p13021_p1 }
  0x97   : > { %4091 = vmatpush.bf16.msrb.mxu1 %v8966_v33  ;;  %v9825_v33 = vld [vmem:[#allocation5 + $0xd70] sm:$0xf]  ;;  %v9666_v41 = vor.u32 %v12181_v32, %v9665_v28  ;;  %v12256_v51 = vld [vmem:[#allocation5 + $0xe98] sm:$0xf0]  ;;  %v9806_v54 = vor.u32 %v12216_v49, %v9805_v48  ;;  %v9625_v57 = vld [vmem:[#allocation5 + $0xbe0] sm:$0xf] }
  0x98   : > { %4104 = vmatpush.bf16.msrb.mxu2 %v9126_v34  ;;  %v12221_v34 = vld [vmem:[#allocation5 + $0xd80] sm:$0xf0]  ;;  %v12211_v61 = vld [vmem:[#allocation5 + $0xd30] sm:$0xf0]  ;;  %v9945_v62 = vld [vmem:[#allocation5 + $0xe60] sm:$0xf]  ;;  %p13019_p10 = pneg %p13018_p9 }
  0x99   : > { %4117 = vmatpush.bf16.msrb.mxu3 %v9286_v38  ;;  %v13372_v38 = vpack.c.bf16 %v417_v24, %v417_v24  ;;  %v9826_v42 = vor.u32 %v12221_v34, %v9825_v33  ;;  %v12251_v0 = vld [vmem:[#allocation5 + $0xe70] sm:$0xf0]  ;;  %v9445_v6 = vld [vmem:[#allocation5 + $0xa78] sm:$0xf]  ;;  %v12126_v7 = vld [vmem:[#allocation5 + $0xa88] sm:$0xf0] }
  0x9a   : > { %4079 = vmatpush.bf16.msrb.mxu0 %v8786_v44  ;;  %v12136_v44 = vld [vmem:[#allocation5 + $0xad8] sm:$0xf0]  ;;  %v9605_v8 = vld [vmem:[#allocation5 + $0xbb8] sm:$0xf]  ;;  %v9946_v9 = vor.u32 %v12251_v0, %v9945_v62  ;;  %v12206_v12 = vld [vmem:[#allocation5 + $0xd08] sm:$0xf0]  ;;  %p13024_p4 = pnand %p13023_p3, %p13019_p10 }
  0x9b   : > { %4092 = vmatpush.bf16.msrb.mxu1 %v8946_v45  ;;  %v9645_v45 = vld [vmem:[#allocation5 + $0xc08] sm:$0xf]  ;;  %v9486_v52 = vor.u32 %v12136_v44, %v9485_v43  ;;  %v9765_v11 = vld [vmem:[#allocation5 + $0xcf8] sm:$0xf]  ;;  %v9425_v19 = vld [vmem:[#allocation5 + $0xa50] sm:$0xf] }
  0x9c   : > { %4105 = vmatpush.bf16.msrb.mxu2 %v9106_v46  ;;  %v9986_v46 = vor.u32 %v12261_v36, %v9985_v35  ;;  %v9646_v53 = vor.u32 %v12176_v47, %v9645_v45  ;;  %v9925_v13 = vld [vmem:[#allocation5 + $0xe38] sm:$0xf]  ;;  %v9766_v18 = vor.u32 %v12206_v12, %v9765_v11  ;;  %v12161_v23 = vld [vmem:[#allocation5 + $0xba0] sm:$0xf0]  ;;  %v9745_v24 = vld [vmem:[#allocation5 + $0xcd0] sm:$0xf] }
  0x9d   : > { %4118 = vmatpush.bf16.msrb.mxu3 %v9266_v50  ;;  %v9965_v50 = vld [vmem:[#allocation5 + $0xe88] sm:$0xf]  ;;  %v12241_v27 = vld [vmem:[#allocation5 + $0xe20] sm:$0xf0]  ;;  %v12116_v33 = vld [vmem:[#allocation5 + $0xa38] sm:$0xf0] }
  0x9e   : > { %4080 = vmatpush.bf16.msrb.mxu0 %v8766_v56  ;;  %v12131_v56 = vld [vmem:[#allocation5 + $0xab0] sm:$0xf0]  ;;  %v9966_v58 = vor.u32 %v12256_v51, %v9965_v50  ;;  %v9405_v32 = vld [vmem:[#allocation5 + $0xa28] sm:$0xf]  ;;  %v12156_v36 = vld [vmem:[#allocation5 + $0xb78] sm:$0xf0] }
  0x9f   : > { %4093 = vmatpush.bf16.msrb.mxu1 %v8926_v59  ;;  %v12171_v59 = vld [vmem:[#allocation5 + $0xbf0] sm:$0xf0]  ;;  %v9565_v34 = vld [vmem:[#allocation5 + $0xb68] sm:$0xf]  ;;  %v12236_v43 = vld [vmem:[#allocation5 + $0xdf8] sm:$0xf0]  ;;  %v9406_v44 = vor.u32 %v12116_v33, %v9405_v32 }
  0xa0   : > { %4106 = vmatpush.bf16.msrb.mxu2 %v9086_v60  ;;  %v9785_v60 = vld [vmem:[#allocation5 + $0xd20] sm:$0xf]  ;;  %v9626_v2 = vor.u32 %v12171_v59, %v9625_v57  ;;  %v9566_v47 = vor.u32 %v12156_v36, %v9565_v34  ;;  %v12151_v50 = vld [vmem:[#allocation5 + $0xb50] sm:$0xf0]  ;;  %v12306_v57 = vld [vmem:[#allocation5 + $0x1028] sm:$0xf0] }
  0xa1   : > { %4119 = vmatpush.bf16.msrb.mxu3 %v9246_v1  ;;  %v9466_v1 = vor.u32 %v12131_v56, %v9465_v55  ;;  %v9786_v3 = vor.u32 %v12211_v61, %v9785_v60  ;;  %v9385_v45 = vld [vmem:[#allocation5 + $0xa00] sm:$0xf]  ;;  %v12231_v55 = vld [vmem:[#allocation5 + $0xdd0] sm:$0xf0]  ;;  %v10165_v56 = vld [vmem:[#allocation5 + $0x1018] sm:$0xf] }
  0xa2   : > { %4081 = vmatpush.bf16.msrb.mxu0 %v8746_v10  ;;  %v12166_v10 = vld [vmem:[#allocation5 + $0xbc8] sm:$0xf0]  ;;  %v9545_v49 = vld [vmem:[#allocation5 + $0xb40] sm:$0xf]  ;;  %v11824_v61 = vld [vmem:[#allocation5 + $0x11c] sm:$0xf] }
  0xa3   : > { %4094 = vmatpush.bf16.msrb.mxu1 %v8906_v14  ;;  %v12246_v14 = vld [vmem:[#allocation5 + $0xe48] sm:$0xf0]  ;;  %v9606_v16 = vor.u32 %v12166_v10, %v9605_v8  ;;  %v9705_v51 = vld [vmem:[#allocation5 + $0xc80] sm:$0xf]  ;;  %v8247_v62 = vld [vmem:[#allocation5 + $0x12c] sm:$0xf0]  ;;  %v9546_v0 = vor.u32 %v12151_v50, %v9545_v49  ;;  %v10166_v8 = vor.u32 %v12306_v57, %v10165_v56 }
  0xa4   : > { %4107 = vmatpush.bf16.msrb.mxu2 %v9066_v15  ;;  %v9446_v15 = vor.u32 %v12126_v7, %v9445_v6  ;;  %v9926_v22 = vor.u32 %v12246_v14, %v9925_v13  ;;  %v12346_v60 = vld [vmem:[#allocation5 + $0x1168] sm:$0xf0]  ;;  %v418_v6 = vld [vmem:[#allocation2 + $0x40] sm:$0xff]  ;;  %v419_v10 = vld [vmem:[#allocation2 + $0x48] sm:$0xff]  ;;  %v8250_v13 = vor.u32 %v11824_v61, %v8247_v62 }
  0xa5   : > { %4120 = vmatpush.bf16.msrb.mxu3 %v9226_v20  ;;  %4082 = vmatmul.bf16.vlgmr.msrb.gmra.mxu0 %v13370_v37  ;;  %v12121_v20 = vld [vmem:[#allocation5 + $0xa60] sm:$0xf0]  ;;  %v421_v11 = vld [vmem:[#allocation2 + $0x58] sm:$0xff]  ;;  %v10145_v14 = vld [vmem:[#allocation5 + $0xff0] sm:$0xf] }
  0xa6   : > { %4126 = vmatpush.bf16.msra.mxu0 %v9526_v21  ;;  %4095 = vmatmul.bf16.vlgmr.msrb.gmra.mxu1 %v13374_v40  ;;  %v9585_v21 = vld [vmem:[#allocation5 + $0xb90] sm:$0xf]  ;;  %v9426_v28 = vor.u32 %v12121_v20, %v9425_v19  ;;  %v13380_v19 = vpack.c.bf16 %v418_v6, %v418_v6  ;;  %v12341_v20 = vld [vmem:[#allocation5 + $0x1140] sm:$0xf0]  ;;  %v10125_v32 = vld [vmem:[#allocation5 + $0xfc8] sm:$0xf] }
  0xa7   : > { %4139 = vmatpush.bf16.msra.mxu1 %v9686_v25  ;;  %4108 = vmatmul.bf16.vlgmr.msrb.gmra.mxu2 %v13368_v31  ;;  %v12201_v25 = vld [vmem:[#allocation5 + $0xce0] sm:$0xf0]  ;;  %v9586_v29 = vor.u32 %v12161_v23, %v9585_v21  ;;  %v11819_v21 = vld [vmem:[#allocation5 + $0xf4] sm:$0xf]  ;;  %v12296_v33 = vld [vmem:[#allocation5 + $0xfd8] sm:$0xf0] }
  0xa8   : > { %4152 = vmatpush.bf16.msra.mxu2 %v9846_v26  ;;  %4121 = vmatmul.bf16.vlgmr.msrb.gmra.mxu3 %v13372_v38  ;;  %v9905_v26 = vld [vmem:[#allocation5 + $0xe10] sm:$0xf]  ;;  %v10285_v34 = vld [vmem:[#allocation5 + $0x1108] sm:$0xf]  ;;  %v12336_v36 = vld [vmem:[#allocation5 + $0x1118] sm:$0xf0] }
  0xa9   : > { %4165 = vmatpush.bf16.msra.mxu3 %v10006_v30  ;;  %v9746_v30 = vor.u32 %v12201_v25, %v9745_v24  ;;  %v9906_v35 = vor.u32 %v12241_v27, %v9905_v26  ;;  %v13384_v24 = vpack.c.bf16 %v419_v10, %v419_v10  ;;  %v11859_v25 = vld [vmem:[#allocation5 + $0x234] sm:$0xf]  ;;  %v8387_v26 = vld [vmem:[#allocation5 + $0x244] sm:$0xf0]  ;;  %v13386_v27 = vpack.c.bf16 %v421_v11, %v421_v11  ;;  %v10265_v49 = vld [vmem:[#allocation5 + $0x10e0] sm:$0xf] }
  0xaa   : > { %4127 = vmatpush.bf16.msra.mxu0 %v9506_v39  ;;  %v9725_v39 = vld [vmem:[#allocation5 + $0xca8] sm:$0xf]  ;;  %v10245_v61 = vld [vmem:[#allocation5 + $0x10b8] sm:$0xf]  ;;  %v8327_v6 = vld [vmem:[#allocation5 + $0x1cc] sm:$0xf0] }
  0xab   : > { %4140 = vmatpush.bf16.msra.mxu1 %v9666_v41  ;;  %v12196_v41 = vld [vmem:[#allocation5 + $0xcb8] sm:$0xf0]  ;;  %v10065_v10 = vld [vmem:[#allocation5 + $0xf50] sm:$0xf]  ;;  %v12281_v11 = vld [vmem:[#allocation5 + $0xf60] sm:$0xf0] }
  0xac   : > { %4153 = vmatpush.bf16.msra.mxu2 %v9826_v42  ;;  %v9885_v42 = vld [vmem:[#allocation5 + $0xde8] sm:$0xf]  ;;  %v9726_v48 = vor.u32 %v12196_v41, %v9725_v39  ;;  %v11814_v39 = vld [vmem:[#allocation5 + $0xcc] sm:$0xf]  ;;  %v8207_v41 = vld [vmem:[#allocation5 + $0xdc] sm:$0xf0] }
  0xad   : > { %4166 = vmatpush.bf16.msra.mxu3 %v9986_v46  ;;  %v12111_v46 = vld [vmem:[#allocation5 + $0xa10] sm:$0xf0] }
  0xae   : > { %4128 = vmatpush.bf16.msra.mxu0 %v9486_v52  ;;  %v9886_v52 = vor.u32 %v12236_v43, %v9885_v42  ;;  %v9386_v59 = vor.u32 %v12111_v46, %v9385_v45  ;;  %v11854_v42 = vld [vmem:[#allocation5 + $0x20c] sm:$0xf]  ;;  %v8367_v43 = vld [vmem:[#allocation5 + $0x21c] sm:$0xf0]  ;;  %v10286_v45 = vor.u32 %v12336_v36, %v10285_v34  ;;  %v8210_v46 = vor.u32 %v11814_v39, %v8207_v41 }
  0xaf   : > { %4141 = vmatpush.bf16.msra.mxu1 %v9646_v53  ;;  %v12191_v53 = vld [vmem:[#allocation5 + $0xc90] sm:$0xf0]  ;;  %v8370_v50 = vor.u32 %v11854_v42, %v8367_v43  ;;  %v8127_v34 = vld [vmem:[#allocation5 + $0x3c] sm:$0xf0] }
  0xb0   : > { %4154 = vmatpush.bf16.msra.mxu2 %v9806_v54  ;;  %v9865_v54 = vld [vmem:[#allocation5 + $0xdc0] sm:$0xf]  ;;  %v12271_v42 = vld [vmem:[#allocation5 + $0xf10] sm:$0xf0] }
  0xb1   : > { %4167 = vmatpush.bf16.msra.mxu3 %v9966_v58  ;;  %v10325_v58 = vld [vmem:[#allocation5 + $0x1158] sm:$0xf]  ;;  %v9866_v7 = vor.u32 %v12231_v55, %v9865_v54  ;;  %v11849_v54 = vld [vmem:[#allocation5 + $0x1e4] sm:$0xf]  ;;  %v8287_v36 = vld [vmem:[#allocation5 + $0x17c] sm:$0xf0] }
  0xb2   : > { %4129 = vmatpush.bf16.msra.mxu0 %v9466_v1  ;;  %v9706_v1 = vor.u32 %v12191_v53, %v9705_v51  ;;  %v10326_v12 = vor.u32 %v12346_v60, %v10325_v58  ;;  %v12331_v51 = vld [vmem:[#allocation5 + $0x10f0] sm:$0xf0]  ;;  %v8187_v53 = vld [vmem:[#allocation5 + $0xb4] sm:$0xf0]  ;;  %v12286_v60 = vld [vmem:[#allocation5 + $0xf88] sm:$0xf0] }
  0xb3   : > { %4142 = vmatpush.bf16.msra.mxu1 %v9626_v2  ;;  %v11864_v2 = vld [vmem:[#allocation5 + $0x25c] sm:$0xf]  ;;  %v8347_v55 = vld [vmem:[#allocation5 + $0x1f4] sm:$0xf0]  ;;  %v10266_v57 = vor.u32 %v12331_v51, %v10265_v49  ;;  %v10025_v41 = vld [vmem:[#allocation5 + $0xf00] sm:$0xf] }
  0xb4   : > { %4155 = vmatpush.bf16.msra.mxu2 %v9786_v3  ;;  %v8407_v3 = vld [vmem:[#allocation5 + $0x26c] sm:$0xf0]  ;;  %v8350_v62 = vor.u32 %v11849_v54, %v8347_v55  ;;  %v8107_v49 = vld [vmem:[#allocation5 + $0x14] sm:$0xf0]  ;;  %v11944_v54 = vld [vmem:[#allocation5 + $0x4dc] sm:$0xf]  ;;  %v10026_v55 = vor.u32 %v12271_v42, %v10025_v41 }
  0xb5   : > { %4168 = vmatpush.bf16.msra.mxu3 %v9946_v9  ;;  %v420_v9 = vld [vmem:[#allocation2 + $0x50] sm:$0xff]  ;;  %v8267_v51 = vld [vmem:[#allocation5 + $0x154] sm:$0xf0] }
  0xb6   : > { %4130 = vmatpush.bf16.msra.mxu0 %v9446_v15  ;;  %v12301_v15 = vld [vmem:[#allocation5 + $0x1000] sm:$0xf0]  ;;  %v13382_v23 = vpack.c.bf16 %v420_v9, %v420_v9 }
  0xb7   : > { %4143 = vmatpush.bf16.msra.mxu1 %v9606_v16  ;;  %v10305_v16 = vld [vmem:[#allocation5 + $0x1130] sm:$0xf] }
  0xb8   : > { %4156 = vmatpush.bf16.msra.mxu2 %v9766_v18  ;;  %v8410_v18 = vor.u32 %v11864_v2, %v8407_v3  ;;  %v8167_v2 = vld [vmem:[#allocation5 + $0x8c] sm:$0xf0]  ;;  %v11844_v3 = vld [vmem:[#allocation5 + $0x1bc] sm:$0xf] }
  0xb9   : > { %4169 = vmatpush.bf16.msra.mxu3 %v9926_v22  ;;  %v8227_v22 = vld [vmem:[#allocation5 + $0x104] sm:$0xf0] }
  0xba   : > { %4131 = vmatpush.bf16.msra.mxu0 %v9426_v28  ;;  %v10146_v28 = vor.u32 %v12301_v15, %v10145_v14  ;;  %v12321_v14 = vld [vmem:[#allocation5 + $0x10a0] sm:$0xf0]  ;;  %v11799_v15 = vld [vmem:[#allocation5 + $0x54] sm:$0xf] }
  0xbb   : > { %4144 = vmatpush.bf16.msra.mxu1 %v9586_v29  ;;  %v10306_v29 = vor.u32 %v12341_v20, %v10305_v16  ;;  %v8147_v16 = vld [vmem:[#allocation5 + $0x64] sm:$0xf0] }
  0xbc   : > { %4157 = vmatpush.bf16.msra.mxu2 %v9746_v30  ;;  %v8230_v30 = vor.u32 %v11819_v21, %v8227_v22  ;;  %v8307_v20 = vld [vmem:[#allocation5 + $0x1a4] sm:$0xf0]  ;;  %v10066_v21 = vor.u32 %v12281_v11, %v10065_v10  ;;  %v11939_v10 = vld [vmem:[#allocation5 + $0x4b4] sm:$0xf] }
  0xbd   : > { %4170 = vmatpush.bf16.msra.mxu3 %v9906_v35  ;;  %v8390_v35 = vor.u32 %v11859_v25, %v8387_v26  ;;  %v8150_v25 = vor.u32 %v11799_v15, %v8147_v16  ;;  %v10045_v26 = vld [vmem:[#allocation5 + $0xf28] sm:$0xf] }
  0xbe   : > { %4132 = vmatpush.bf16.msra.mxu0 %v9406_v44  ;;  %v10126_v44 = vor.u32 %v12296_v33, %v10125_v32  ;;  %v12316_v32 = vld [vmem:[#allocation5 + $0x1078] sm:$0xf0]  ;;  %v11794_v33 = vld [vmem:[#allocation5 + $0x2c] sm:$0xf]  ;;  %v8867_v15 = vld [vmem:[#allocation5 + $0x604] sm:$0xf0] }
  0xbf   : > { %4145 = vmatpush.bf16.msra.mxu1 %v9566_v47  ;;  %v10105_v47 = vld [vmem:[#allocation5 + $0xfa0] sm:$0xf] }
  0xc0   : > { %4158 = vmatpush.bf16.msra.mxu2 %v9726_v48  ;;  %v12291_v48 = vld [vmem:[#allocation5 + $0xfb0] sm:$0xf0] }
  0xc1   : > { %4171 = vmatpush.bf16.msra.mxu3 %v9886_v52  ;;  %v11809_v52 = vld [vmem:[#allocation5 + $0xa4] sm:$0xf]  ;;  %v10106_v56 = vor.u32 %v12291_v48, %v10105_v47 }
  0xc2   : > { %4133 = vmatpush.bf16.msra.mxu0 %v9386_v59  ;;  %v8190_v58 = vor.u32 %v11809_v52, %v8187_v53  ;;  %v10085_v59 = vld [vmem:[#allocation5 + $0xf78] sm:$0xf]  ;;  %v11789_v47 = vld [vmem:[#allocation5 + $0x4] sm:$0xf]  ;;  %v11904_v52 = vld [vmem:[#allocation5 + $0x39c] sm:$0xf] }
  0xc3   : > { %4146 = vmatpush.bf16.msra.mxu1 %v9546_v0  ;;  %v12326_v0 = vld [vmem:[#allocation5 + $0x10c8] sm:$0xf0]  ;;  %v8567_v53 = vld [vmem:[#allocation5 + $0x3ac] sm:$0xf0] }
  0xc4   : > { %4159 = vmatpush.bf16.msra.mxu2 %v9706_v1  ;;  %v11804_v1 = vld [vmem:[#allocation5 + $0x7c] sm:$0xf] }
  0xc5   : > { %4172 = vmatpush.bf16.msra.mxu3 %v9866_v7  ;;  %4134 = vmatmul.bf16.vlgmr.msra.gmra.mxu0 %v13380_v19  ;;  %v10086_v7 = vor.u32 %v12286_v60, %v10085_v59  ;;  %v8170_v9 = vor.u32 %v11804_v1, %v8167_v2  ;;  %v8110_v60 = vor.u32 %v11789_v47, %v8107_v49  ;;  %v8667_v47 = vld [vmem:[#allocation5 + $0x474] sm:$0xf0] }
  0xc6   : > { %4178 = vmatpush.bf16.msrb.mxu0 %v10166_v8  ;;  %4147 = vmatmul.bf16.vlgmr.msra.gmra.mxu1 %v13384_v24  ;;  %v10246_v8 = vor.u32 %v12326_v0, %v10245_v61  ;;  %v12024_v61 = vld [vmem:[#allocation5 + $0x75c] sm:$0xf]  ;;  %v422_v0 = vld [vmem:[#allocation2 + $0x60] sm:$0xff]  ;;  %v8570_v2 = vor.u32 %v11904_v52, %v8567_v53  ;;  %v8827_v49 = vld [vmem:[#allocation5 + $0x5b4] sm:$0xf0] }
  0xc7   : > { %4191 = vmatpush.bf16.msrb.mxu1 %v10326_v12  ;;  %4160 = vmatmul.bf16.vlgmr.msra.gmra.mxu2 %v13382_v23  ;;  %v10225_v12 = vld [vmem:[#allocation5 + $0x1090] sm:$0xf] }
  0xc8   : > { %4204 = vmatpush.bf16.msrb.mxu2 %v8250_v13  ;;  %4173 = vmatmul.bf16.vlgmr.msra.gmra.mxu3 %v13386_v27  ;;  %v8330_v13 = vor.u32 %v11844_v3, %v8327_v6  ;;  %v10226_v22 = vor.u32 %v12321_v14, %v10225_v12  ;;  %v423_v3 = vld [vmem:[#allocation2 + $0x68] sm:$0xff]  ;;  %v13392_v12 = vpack.c.bf16 %v422_v0, %v422_v0  ;;  %v11979_v14 = vld [vmem:[#allocation5 + $0x5f4] sm:$0xf]  ;;  %v8967_v0 = vld [vmem:[#allocation5 + $0x6cc] sm:$0xf0] }
  0xc9   : > { %4217 = vmatpush.bf16.msrb.mxu3 %v8410_v18  ;;  %v11839_v18 = vld [vmem:[#allocation5 + $0x194] sm:$0xf]  ;;  %v13394_v16 = vpack.c.bf16 %v423_v3, %v423_v3 }
  0xca   : > { %4179 = vmatpush.bf16.msrb.mxu0 %v10146_v28  ;;  %v12276_v28 = vld [vmem:[#allocation5 + $0xf38] sm:$0xf0] }
  0xcb   : > { %4192 = vmatpush.bf16.msrb.mxu1 %v10306_v29  ;;  %v10205_v29 = vld [vmem:[#allocation5 + $0x1068] sm:$0xf]  ;;  %v10046_v39 = vor.u32 %v12276_v28, %v10045_v26  ;;  %v11894_v26 = vld [vmem:[#allocation5 + $0x34c] sm:$0xf]  ;;  %v8527_v28 = vld [vmem:[#allocation5 + $0x35c] sm:$0xf0] }
  0xcc   : > { %4205 = vmatpush.bf16.msrb.mxu2 %v8230_v30  ;;  %v8310_v30 = vor.u32 %v11839_v18, %v8307_v20  ;;  %v10206_v43 = vor.u32 %v12316_v32, %v10205_v29  ;;  %v12019_v18 = vld [vmem:[#allocation5 + $0x734] sm:$0xf]  ;;  %v9027_v20 = vld [vmem:[#allocation5 + $0x744] sm:$0xf0]  ;;  %v11934_v29 = vld [vmem:[#allocation5 + $0x48c] sm:$0xf] }
  0xcd   : > { %4218 = vmatpush.bf16.msrb.mxu3 %v8390_v35  ;;  %v11834_v35 = vld [vmem:[#allocation5 + $0x16c] sm:$0xf]  ;;  %v8687_v32 = vld [vmem:[#allocation5 + $0x49c] sm:$0xf0] }
  0xce   : > { %4180 = vmatpush.bf16.msrb.mxu0 %v10126_v44  ;;  %v8130_v44 = vor.u32 %v11794_v33, %v8127_v34  ;;  %v8290_v48 = vor.u32 %v11834_v35, %v8287_v36  ;;  %v11974_v33 = vld [vmem:[#allocation5 + $0x5cc] sm:$0xf]  ;;  %v8847_v34 = vld [vmem:[#allocation5 + $0x5dc] sm:$0xf0]  ;;  %v8690_v41 = vor.u32 %v11934_v29, %v8687_v32 }
  0xcf   : > { %4193 = vmatpush.bf16.msrb.mxu1 %v10286_v45  ;;  %v10185_v45 = vld [vmem:[#allocation5 + $0x1040] sm:$0xf]  ;;  %v12014_v35 = vld [vmem:[#allocation5 + $0x70c] sm:$0xf]  ;;  %v8850_v42 = vor.u32 %v11974_v33, %v8847_v34 }
  0xd0   : > { %4206 = vmatpush.bf16.msrb.mxu2 %v8210_v46  ;;  %v12311_v46 = vld [vmem:[#allocation5 + $0x1050] sm:$0xf0]  ;;  %v9007_v36 = vld [vmem:[#allocation5 + $0x71c] sm:$0xf0]  ;;  %v11994_v33 = vld [vmem:[#allocation5 + $0x66c] sm:$0xf] }
  0xd1   : > { %4219 = vmatpush.bf16.msrb.mxu3 %v8370_v50  ;;  %v11829_v50 = vld [vmem:[#allocation5 + $0x144] sm:$0xf]  ;;  %v10186_v59 = vor.u32 %v12311_v46, %v10185_v45  ;;  %v9010_v46 = vor.u32 %v12014_v35, %v9007_v36  ;;  %v8607_v29 = vld [vmem:[#allocation5 + $0x3fc] sm:$0xf0] }
  0xd2   : > { %4181 = vmatpush.bf16.msrb.mxu0 %v10106_v56  ;;  %v8727_v56 = vld [vmem:[#allocation5 + $0x4ec] sm:$0xf0]  ;;  %v8270_v1 = vor.u32 %v11829_v50, %v8267_v51  ;;  %v11929_v45 = vld [vmem:[#allocation5 + $0x464] sm:$0xf]  ;;  %v8987_v51 = vld [vmem:[#allocation5 + $0x6f4] sm:$0xf0] }
  0xd3   : > { %4194 = vmatpush.bf16.msrb.mxu1 %v10266_v57  ;;  %v11984_v57 = vld [vmem:[#allocation5 + $0x61c] sm:$0xf]  ;;  %v8730_v6 = vor.u32 %v11944_v54, %v8727_v56  ;;  %v12009_v50 = vld [vmem:[#allocation5 + $0x6e4] sm:$0xf]  ;;  %v8670_v53 = vor.u32 %v11929_v45, %v8667_v47  ;;  %v8487_v56 = vld [vmem:[#allocation5 + $0x30c] sm:$0xf0] }
  0xd4   : > { %4207 = vmatpush.bf16.msrb.mxu2 %v8190_v58  ;;  %v8887_v58 = vld [vmem:[#allocation5 + $0x62c] sm:$0xf0]  ;;  %v8767_v32 = vld [vmem:[#allocation5 + $0x53c] sm:$0xf0]  ;;  %v11869_v36 = vld [vmem:[#allocation5 + $0x284] sm:$0xf] }
  0xd5   : > { %4220 = vmatpush.bf16.msrb.mxu3 %v8350_v62  ;;  %v9047_v62 = vld [vmem:[#allocation5 + $0x76c] sm:$0xf0]  ;;  %v8927_v34 = vld [vmem:[#allocation5 + $0x67c] sm:$0xf0]  ;;  %v11949_v45 = vld [vmem:[#allocation5 + $0x504] sm:$0xf] }
  0xd6   : > { %4182 = vmatpush.bf16.msrb.mxu0 %v10086_v7  ;;  %v8890_v7 = vor.u32 %v11984_v57, %v8887_v58  ;;  %v9050_v11 = vor.u32 %v12024_v61, %v9047_v62  ;;  %v11924_v57 = vld [vmem:[#allocation5 + $0x43c] sm:$0xf]  ;;  %v8990_v58 = vor.u32 %v12009_v50, %v8987_v51  ;;  %v8807_v61 = vld [vmem:[#allocation5 + $0x58c] sm:$0xf0]  ;;  %v8747_v47 = vld [vmem:[#allocation5 + $0x514] sm:$0xf0] }
  0xd7   : > { %4195 = vmatpush.bf16.msrb.mxu1 %v10246_v8  ;;  %v11899_v8 = vld [vmem:[#allocation5 + $0x374] sm:$0xf]  ;;  %v12004_v62 = vld [vmem:[#allocation5 + $0x6bc] sm:$0xf]  ;;  %v9207_v51 = vld [vmem:[#allocation5 + $0x8ac] sm:$0xf0] }
  0xd8   : > { %4208 = vmatpush.bf16.msrb.mxu2 %v8170_v9  ;;  %v8547_v9 = vld [vmem:[#allocation5 + $0x384] sm:$0xf0]  ;;  %v12064_v50 = vld [vmem:[#allocation5 + $0x89c] sm:$0xf] }
  0xd9   : > { %4221 = vmatpush.bf16.msrb.mxu3 %v8330_v13  ;;  %v8707_v13 = vld [vmem:[#allocation5 + $0x4c4] sm:$0xf0] }
  0xda   : > { %4183 = vmatpush.bf16.msrb.mxu0 %v10066_v21  ;;  %v8550_v21 = vor.u32 %v11899_v8, %v8547_v9  ;;  %v11919_v8 = vld [vmem:[#allocation5 + $0x414] sm:$0xf]  ;;  %v8970_v9 = vor.u32 %v12004_v62, %v8967_v0  ;;  %v9210_v62 = vor.u32 %v12064_v50, %v9207_v51  ;;  %v12044_v51 = vld [vmem:[#allocation5 + $0x7fc] sm:$0xf] }
  0xdb   : > { %4196 = vmatpush.bf16.msrb.mxu1 %v10226_v22  ;;  %v8710_v22 = vor.u32 %v11939_v10, %v8707_v13  ;;  %v8627_v10 = vld [vmem:[#allocation5 + $0x424] sm:$0xf0] }
  0xdc   : > { %4209 = vmatpush.bf16.msrb.mxu2 %v8150_v25  ;;  %v8870_v25 = vor.u32 %v11979_v14, %v8867_v15  ;;  %v8787_v13 = vld [vmem:[#allocation5 + $0x564] sm:$0xf0]  ;;  %v11999_v14 = vld [vmem:[#allocation5 + $0x694] sm:$0xf] }
  0xdd   : > { %4222 = vmatpush.bf16.msrb.mxu3 %v8310_v30  ;;  %v9030_v30 = vor.u32 %v12019_v18, %v9027_v20  ;;  %v8947_v15 = vld [vmem:[#allocation5 + $0x6a4] sm:$0xf0]  ;;  %v8630_v20 = vor.u32 %v11919_v8, %v8627_v10 }
  0xde   : > { %4184 = vmatpush.bf16.msrb.mxu0 %v10046_v39  ;;  %v8530_v39 = vor.u32 %v11894_v26, %v8527_v28  ;;  %v11914_v26 = vld [vmem:[#allocation5 + $0x3ec] sm:$0xf]  ;;  %v8950_v28 = vor.u32 %v11999_v14, %v8947_v15  ;;  %v9347_v8 = vld [vmem:[#allocation5 + $0x9c4] sm:$0xf0] }
  0xdf   : > { %4197 = vmatpush.bf16.msrb.mxu1 %v10206_v43  ;;  %v11889_v43 = vld [vmem:[#allocation5 + $0x324] sm:$0xf]  ;;  %v9507_v10 = vld [vmem:[#allocation5 + $0xb04] sm:$0xf0] }
  0xe0   : > { %4210 = vmatpush.bf16.msrb.mxu2 %v8130_v44  ;;  %v8507_v44 = vld [vmem:[#allocation5 + $0x334] sm:$0xf0] }
  0xe1   : > { %4223 = vmatpush.bf16.msrb.mxu3 %v8290_v48  ;;  %v11969_v48 = vld [vmem:[#allocation5 + $0x5a4] sm:$0xf]  ;;  %v8510_v52 = vor.u32 %v11889_v43, %v8507_v44  ;;  %v8587_v44 = vld [vmem:[#allocation5 + $0x3d4] sm:$0xf0] }
  0xe2   : > { %4185 = vmatpush.bf16.msrb.mxu0 %v10026_v55  ;;  %v8830_v54 = vor.u32 %v11969_v48, %v8827_v49  ;;  %v11884_v55 = vld [vmem:[#allocation5 + $0x2fc] sm:$0xf]  ;;  %v11909_v43 = vld [vmem:[#allocation5 + $0x3c4] sm:$0xf]  ;;  %v8907_v49 = vld [vmem:[#allocation5 + $0x654] sm:$0xf0] }
  0xe3   : > { %4198 = vmatpush.bf16.msrb.mxu1 %v10186_v59  ;;  %v8647_v59 = vld [vmem:[#allocation5 + $0x44c] sm:$0xf0]  ;;  %v11989_v48 = vld [vmem:[#allocation5 + $0x644] sm:$0xf] }
  0xe4   : > { %4211 = vmatpush.bf16.msrb.mxu2 %v8110_v60  ;;  %v11964_v60 = vld [vmem:[#allocation5 + $0x57c] sm:$0xf] }
  0xe5   : > { %4224 = vmatpush.bf16.msrb.mxu3 %v8270_v1  ;;  %4186 = vmatmul.bf16.vlgmr.msrb.gmra.mxu0 %v13392_v12  ;;  %v8490_v1 = vor.u32 %v11884_v55, %v8487_v56  ;;  %v8810_v3 = vor.u32 %v11964_v60, %v8807_v61  ;;  %v12144_v55 = vld [vmem:[#allocation5 + $0xb1c] sm:$0xf]  ;;  %v9527_v56 = vld [vmem:[#allocation5 + $0xb2c] sm:$0xf0]  ;;  %v8910_v61 = vor.u32 %v11989_v48, %v8907_v49 }
  0xe6   : > { %4230 = vmatpush.bf16.msra.mxu0 %v8570_v2  ;;  %4199 = vmatmul.bf16.vlgmr.msrb.gmra.mxu1 %v13394_v16  ;;  %v8650_v2 = vor.u32 %v11924_v57, %v8647_v59  ;;  %v8590_v57 = vor.u32 %v11909_v43, %v8587_v44  ;;  %v12184_v59 = vld [vmem:[#allocation5 + $0xc5c] sm:$0xf]  ;;  %v9687_v60 = vld [vmem:[#allocation5 + $0xc6c] sm:$0xf0]  ;;  %v9307_v43 = vld [vmem:[#allocation5 + $0x974] sm:$0xf0] }
  0xe7   : > { %4243 = vmatpush.bf16.msra.mxu1 %v8730_v6  ;;  %4212 = vmatmul.bf16.vlgmr.msrb.gmra.mxu2 %v13358_v4  ;;  %v11879_v6 = vld [vmem:[#allocation5 + $0x2d4] sm:$0xf]  ;;  %v12129_v44 = vld [vmem:[#allocation5 + $0xaa4] sm:$0xf] }
  0xe8   : > { %4256 = vmatpush.bf16.msra.mxu2 %v8890_v7  ;;  %4225 = vmatmul.bf16.vlgmr.msrb.gmra.mxu3 %v13364_v17  ;;  %v8467_v7 = vld [vmem:[#allocation5 + $0x2e4] sm:$0xf0] }
  0xe9   : > { %4269 = vmatpush.bf16.msra.mxu3 %v9050_v11  ;;  %v11959_v11 = vld [vmem:[#allocation5 + $0x554] sm:$0xf]  ;;  %v8470_v18 = vor.u32 %v11879_v6, %v8467_v7  ;;  %v9690_v7 = vor.u32 %v12184_v59, %v9687_v60  ;;  %v9607_v59 = vld [vmem:[#allocation5 + $0xbcc] sm:$0xf0] }
  0xea   : > { %4231 = vmatpush.bf16.msra.mxu0 %v8550_v21  ;;  %v8790_v21 = vor.u32 %v11959_v11, %v8787_v13  ;;  %v12099_v6 = vld [vmem:[#allocation5 + $0x9b4] sm:$0xf]  ;;  %v9667_v13 = vld [vmem:[#allocation5 + $0xc44] sm:$0xf0] }
  0xeb   : > { %4244 = vmatpush.bf16.msra.mxu1 %v8710_v22  ;;  %v11874_v22 = vld [vmem:[#allocation5 + $0x2ac] sm:$0xf]  ;;  %v12179_v11 = vld [vmem:[#allocation5 + $0xc34] sm:$0xf]  ;;  %v9350_v15 = vor.u32 %v12099_v6, %v9347_v8  ;;  %v9267_v8 = vld [vmem:[#allocation5 + $0x924] sm:$0xf0] }
  0xec   : > { %4257 = vmatpush.bf16.msra.mxu2 %v8870_v25  ;;  %v8447_v25 = vld [vmem:[#allocation5 + $0x2bc] sm:$0xf0] }
  0xed   : > { %4270 = vmatpush.bf16.msra.mxu3 %v9030_v30  ;;  %v11954_v30 = vld [vmem:[#allocation5 + $0x52c] sm:$0xf]  ;;  %v8450_v35 = vor.u32 %v11874_v22, %v8447_v25  ;;  %v9670_v25 = vor.u32 %v12179_v11, %v9667_v13  ;;  %v12159_v13 = vld [vmem:[#allocation5 + $0xb94] sm:$0xf] }
  0xee   : > { %4232 = vmatpush.bf16.msra.mxu0 %v8530_v39  ;;  %v8427_v39 = vld [vmem:[#allocation5 + $0x294] sm:$0xf0]  ;;  %v12094_v22 = vld [vmem:[#allocation5 + $0x98c] sm:$0xf] }
  0xef   : > { %4245 = vmatpush.bf16.msra.mxu1 %v8690_v41  ;;  %v8610_v41 = vor.u32 %v11914_v26, %v8607_v29  ;;  %v9327_v26 = vld [vmem:[#allocation5 + $0x99c] sm:$0xf0] }
  0xf0   : > { %4258 = vmatpush.bf16.msra.mxu2 %v8850_v42  ;;  %v8770_v42 = vor.u32 %v11954_v30, %v8767_v32  ;;  %v9487_v29 = vld [vmem:[#allocation5 + $0xadc] sm:$0xf0]  ;;  %v12174_v30 = vld [vmem:[#allocation5 + $0xc0c] sm:$0xf] }
  0xf1   : > { %4271 = vmatpush.bf16.msra.mxu3 %v9010_v46  ;;  %v8930_v46 = vor.u32 %v11994_v33, %v8927_v34  ;;  %v9647_v32 = vld [vmem:[#allocation5 + $0xc1c] sm:$0xf0]  ;;  %v9330_v34 = vor.u32 %v12094_v22, %v9327_v26 }
  0xf2   : > { %4233 = vmatpush.bf16.msra.mxu0 %v8510_v52  ;;  %v12104_v52 = vld [vmem:[#allocation5 + $0x9dc] sm:$0xf]  ;;  %v9087_v26 = vld [vmem:[#allocation5 + $0x7bc] sm:$0xf0] }
  0xf3   : > { %4246 = vmatpush.bf16.msra.mxu1 %v8670_v53  ;;  %v8430_v53 = vor.u32 %v11869_v36, %v8427_v39  ;;  %v12049_v36 = vld [vmem:[#allocation5 + $0x824] sm:$0xf]  ;;  %v9147_v39 = vld [vmem:[#allocation5 + $0x834] sm:$0xf0] }
  0xf4   : > { %4259 = vmatpush.bf16.msra.mxu2 %v8830_v54  ;;  %v9367_v54 = vld [vmem:[#allocation5 + $0x9ec] sm:$0xf0]  ;;  %v9150_v48 = vor.u32 %v12049_v36, %v9147_v39  ;;  %v9567_v36 = vld [vmem:[#allocation5 + $0xb7c] sm:$0xf0] }
  0xf5   : > { %4272 = vmatpush.bf16.msra.mxu3 %v8990_v58  ;;  %v8750_v58 = vor.u32 %v11949_v45, %v8747_v47  ;;  %v9370_v0 = vor.u32 %v12104_v52, %v9367_v54  ;;  %v9467_v45 = vld [vmem:[#allocation5 + $0xab4] sm:$0xf0]  ;;  %v9127_v52 = vld [vmem:[#allocation5 + $0x80c] sm:$0xf0] }
  0xf6   : > { %4234 = vmatpush.bf16.msra.mxu0 %v8490_v1  ;;  %v9530_v1 = vor.u32 %v12144_v55, %v9527_v56  ;;  %v9627_v47 = vld [vmem:[#allocation5 + $0xbf4] sm:$0xf0]  ;;  %v9470_v50 = vor.u32 %v12129_v44, %v9467_v45  ;;  %v9287_v55 = vld [vmem:[#allocation5 + $0x94c] sm:$0xf0]  ;;  %v12124_v56 = vld [vmem:[#allocation5 + $0xa7c] sm:$0xf] }
  0xf7   : > { %4247 = vmatpush.bf16.msra.mxu1 %v8650_v2  ;;  %v12059_v2 = vld [vmem:[#allocation5 + $0x874] sm:$0xf]  ;;  %v9067_v44 = vld [vmem:[#allocation5 + $0x794] sm:$0xf0] }
  0xf8   : > { %4260 = vmatpush.bf16.msra.mxu2 %v8810_v3  ;;  %v9187_v3 = vld [vmem:[#allocation5 + $0x884] sm:$0xf0] }
  0xf9   : > { %4273 = vmatpush.bf16.msra.mxu3 %v8970_v9  ;;  %v12139_v9 = vld [vmem:[#allocation5 + $0xaf4] sm:$0xf]  ;;  %v9190_v14 = vor.u32 %v12059_v2, %v9187_v3  ;;  %v9107_v2 = vld [vmem:[#allocation5 + $0x7e4] sm:$0xf0] }
  0xfa   : > { %4235 = vmatpush.bf16.msra.mxu0 %v8470_v18  ;;  %v9510_v18 = vor.u32 %v12139_v9, %v9507_v10  ;;  %v12079_v3 = vld [vmem:[#allocation5 + $0x914] sm:$0xf]  ;;  %v9427_v10 = vld [vmem:[#allocation5 + $0xa64] sm:$0xf0] }
  0xfb   : > { %4248 = vmatpush.bf16.msra.mxu1 %v8630_v20  ;;  %v12054_v20 = vld [vmem:[#allocation5 + $0x84c] sm:$0xf]  ;;  %v12119_v9 = vld [vmem:[#allocation5 + $0xa54] sm:$0xf] }
  0xfc   : > { %4261 = vmatpush.bf16.msra.mxu2 %v8790_v21  ;;  %v9167_v21 = vld [vmem:[#allocation5 + $0x85c] sm:$0xf0]  ;;  %v9430_v22 = vor.u32 %v12119_v9, %v9427_v10 }
  0xfd   : > { %4274 = vmatpush.bf16.msra.mxu3 %v8950_v28  ;;  %v12134_v28 = vld [vmem:[#allocation5 + $0xacc] sm:$0xf]  ;;  %v9170_v33 = vor.u32 %v12054_v20, %v9167_v21  ;;  %v9270_v21 = vor.u32 %v12079_v3, %v9267_v8  ;;  %v10327_v3 = vld [vmem:[#allocation5 + $0x116c] sm:$0xf0] }
  0xfe   : > { %4236 = vmatpush.bf16.msra.mxu0 %v8450_v35  ;;  %v9490_v35 = vor.u32 %v12134_v28, %v9487_v29  ;;  %v12074_v28 = vld [vmem:[#allocation5 + $0x8ec] sm:$0xf] }
  0xff   : > { %4249 = vmatpush.bf16.msra.mxu1 %v8610_v41  ;;  %v12089_v41 = vld [vmem:[#allocation5 + $0x964] sm:$0xf] }
 0x100   : > { %4262 = vmatpush.bf16.msra.mxu2 %v8770_v42  ;;  %v9650_v42 = vor.u32 %v12174_v30, %v9647_v32  ;;  %v9310_v49 = vor.u32 %v12089_v41, %v9307_v43  ;;  %v9247_v30 = vld [vmem:[#allocation5 + $0x8fc] sm:$0xf0]  ;;  %v12114_v32 = vld [vmem:[#allocation5 + $0xa2c] sm:$0xf]  ;;  %v12029_v43 = vld [vmem:[#allocation5 + $0x784] sm:$0xf] }
 0x101   : > { %4275 = vmatpush.bf16.msra.mxu3 %v8930_v46  ;;  %v12169_v46 = vld [vmem:[#allocation5 + $0xbe4] sm:$0xf]  ;;  %v9250_v45 = vor.u32 %v12074_v28, %v9247_v30  ;;  %v12214_v30 = vld [vmem:[#allocation5 + $0xd4c] sm:$0xf] }
 0x102   : > { %4237 = vmatpush.bf16.msra.mxu0 %v8430_v53  ;;  %v12084_v53 = vld [vmem:[#allocation5 + $0x93c] sm:$0xf]  ;;  %v9630_v54 = vor.u32 %v12169_v46, %v9627_v47  ;;  %v4031_v60 = vpop.f32.mrf.mxu0  ;;  %v12069_v47 = vld [vmem:[#allocation5 + $0x8c4] sm:$0xf] }
 0x103   : > { %4250 = vmatpush.bf16.msra.mxu1 %v8590_v57  ;;  %v9447_v57 = vld [vmem:[#allocation5 + $0xa8c] sm:$0xf0]  ;;  %v4044_v6 = vpop.f32.mrf.mxu1 }
 0x104   : > { %4263 = vmatpush.bf16.msra.mxu2 %v8750_v58  ;;  %v12164_v58 = vld [vmem:[#allocation5 + $0xbbc] sm:$0xf]  ;;  %v4045_v11 = vadd.f32 %v4044_v6, %v4031_v60  ;;  %v10007_v60 = vld [vmem:[#allocation5 + $0xeec] sm:$0xf0] }
 0x105   : > { %4276 = vmatpush.bf16.msra.mxu3 %v8910_v61  ;;  %4238 = vmatmul.bf16.vlgmr.msra.gmra.mxu0 %v13356_v63  ;;  %v9130_v61 = vor.u32 %v12044_v51, %v9127_v52  ;;  %v9387_v52 = vld [vmem:[#allocation5 + $0xa14] sm:$0xf0] }
 0x106   : > { %4282 = vmatpush.bf16.msrb.mxu0 %v9210_v62  ;;  %4251 = vmatmul.bf16.vlgmr.msra.gmra.mxu1 %v13360_v5  ;;  %v9290_v62 = vor.u32 %v12084_v53, %v9287_v55  ;;  %v12149_v53 = vld [vmem:[#allocation5 + $0xb44] sm:$0xf]  ;;  %v12224_v55 = vld [vmem:[#allocation5 + $0xd9c] sm:$0xf] }
 0x107   : > { %4295 = vmatpush.bf16.msrb.mxu1 %v9370_v0  ;;  %4264 = vmatmul.bf16.vlgmr.msra.gmra.mxu2 %v13370_v37  ;;  %v9450_v0 = vor.u32 %v12124_v56, %v9447_v57  ;;  %v9847_v56 = vld [vmem:[#allocation5 + $0xdac] sm:$0xf0]  ;;  %v12264_v57 = vld [vmem:[#allocation5 + $0xedc] sm:$0xf] }
 0x108   : > { %4308 = vmatpush.bf16.msrb.mxu2 %v9530_v1  ;;  %4277 = vmatmul.bf16.vlgmr.msra.gmra.mxu3 %v13374_v40  ;;  %v12039_v1 = vld [vmem:[#allocation5 + $0x7d4] sm:$0xf]  ;;  %v10010_v9 = vor.u32 %v12264_v57, %v10007_v60 }
 0x109   : > { %4321 = vmatpush.bf16.msrb.mxu3 %v9690_v7  ;;  %v9610_v7 = vor.u32 %v12164_v58, %v9607_v59  ;;  %v9070_v59 = vor.u32 %v12029_v43, %v9067_v44  ;;  %v10287_v43 = vld [vmem:[#allocation5 + $0x111c] sm:$0xf0] }
 0x10a   : > { %4283 = vmatpush.bf16.msrb.mxu0 %v9190_v14  ;;  %v9587_v14 = vld [vmem:[#allocation5 + $0xba4] sm:$0xf0]  ;;  %v4033_v41 = vpop.f32.mrf.mxu0 }
 0x10b   : > { %4296 = vmatpush.bf16.msrb.mxu1 %v9350_v15  ;;  %v4057_v15 = vpop.f32.mrf.mxu2  ;;  %v9590_v29 = vor.u32 %v12159_v13, %v9587_v14  ;;  %v9827_v13 = vld [vmem:[#allocation5 + $0xd84] sm:$0xf0]  ;;  %v12259_v14 = vld [vmem:[#allocation5 + $0xeb4] sm:$0xf]  ;;  %v10127_v41 = vld [vmem:[#allocation5 + $0xfdc] sm:$0xf0] }
 0x10c   : > { %4309 = vmatpush.bf16.msrb.mxu2 %v9510_v18  ;;  %v9110_v18 = vor.u32 %v12039_v1, %v9107_v2  ;;  %v4058_v20 = vadd.f32 %v4057_v15, %v4045_v11  ;;  %v12344_v2 = vld [vmem:[#allocation5 + $0x115c] sm:$0xf]  ;;  %v12219_v11 = vld [vmem:[#allocation5 + $0xd74] sm:$0xf] }
 0x10d   : > { %4322 = vmatpush.bf16.msrb.mxu3 %v9670_v25  ;;  %v12034_v25 = vld [vmem:[#allocation5 + $0x7ac] sm:$0xf]  ;;  %v10330_v15 = vor.u32 %v12344_v2, %v10327_v3  ;;  %v9927_v3 = vld [vmem:[#allocation5 + $0xe4c] sm:$0xf0] }
 0x10e   : > { %4284 = vmatpush.bf16.msrb.mxu0 %v9170_v33  ;;  %v9407_v33 = vld [vmem:[#allocation5 + $0xa3c] sm:$0xf0] }
 0x10f   : > { %4297 = vmatpush.bf16.msrb.mxu1 %v9330_v34  ;;  %v4070_v34 = vpop.f32.mrf.mxu3  ;;  %v9410_v46 = vor.u32 %v12114_v32, %v9407_v33  ;;  %v9807_v32 = vld [vmem:[#allocation5 + $0xd5c] sm:$0xf0]  ;;  %v12254_v33 = vld [vmem:[#allocation5 + $0xe8c] sm:$0xf] }
 0x110   : > { %4310 = vmatpush.bf16.msrb.mxu2 %v9490_v35  ;;  %v12154_v35 = vld [vmem:[#allocation5 + $0xb6c] sm:$0xf]  ;;  %v13404_v39 = vadd.f32 %v4070_v34, %v4058_v20  ;;  %v12299_v20 = vld [vmem:[#allocation5 + $0xff4] sm:$0xf]  ;;  %v9810_v44 = vor.u32 %v12214_v30, %v9807_v32  ;;  %v10227_v32 = vld [vmem:[#allocation5 + $0x10a4] sm:$0xf0] }
 0x111   : > { %4323 = vmatpush.bf16.msrb.mxu3 %v9650_v42  ;;  %v9090_v42 = vor.u32 %v12034_v25, %v9087_v26  ;;  %v9570_v51 = vor.u32 %v12154_v35, %v9567_v36  ;;  %v10307_v25 = vld [vmem:[#allocation5 + $0x1144] sm:$0xf0]  ;;  %v9830_v26 = vor.u32 %v12219_v11, %v9827_v13  ;;  %v9967_v35 = vld [vmem:[#allocation5 + $0xe9c] sm:$0xf0]  ;;  %v12294_v36 = vld [vmem:[#allocation5 + $0xfcc] sm:$0xf] }
 0x112   : > { %4285 = vmatpush.bf16.msrb.mxu0 %v9150_v48  ;;  %v9227_v48 = vld [vmem:[#allocation5 + $0x8d4] sm:$0xf0]  ;;  %v12319_v30 = vld [vmem:[#allocation5 + $0x1094] sm:$0xf] }
 0x113   : > { %4298 = vmatpush.bf16.msrb.mxu1 %v9310_v49  ;;  %v12109_v49 = vld [vmem:[#allocation5 + $0xa04] sm:$0xf]  ;;  %v4059_v58 = vpop.f32.mrf.mxu2 }
 0x114   : > { %4311 = vmatpush.bf16.msrb.mxu2 %v9470_v50  ;;  %v4046_v50 = vpop.f32.mrf.mxu1  ;;  %v9390_v1 = vor.u32 %v12109_v49, %v9387_v52  ;;  %v12249_v49 = vld [vmem:[#allocation5 + $0xe64] sm:$0xf] }
 0x115   : > { %4324 = vmatpush.bf16.msrb.mxu3 %v9630_v54  ;;  %v9547_v54 = vld [vmem:[#allocation5 + $0xb54] sm:$0xf0]  ;;  %v12289_v52 = vld [vmem:[#allocation5 + $0xfa4] sm:$0xf] }
 0x116   : > { %4286 = vmatpush.bf16.msrb.mxu0 %v9130_v61  ;;  %v12304_v61 = vld [vmem:[#allocation5 + $0x101c] sm:$0xf]  ;;  %v9550_v6 = vor.u32 %v12149_v53, %v9547_v54  ;;  %v10107_v53 = vld [vmem:[#allocation5 + $0xfb4] sm:$0xf0]  ;;  %v12329_v54 = vld [vmem:[#allocation5 + $0x10e4] sm:$0xf] }
 0x117   : > { %4299 = vmatpush.bf16.msrb.mxu1 %v9290_v62  ;;  %v10167_v62 = vld [vmem:[#allocation5 + $0x102c] sm:$0xf0]  ;;  %v4072_v8 = vpop.f32.mrf.mxu3 }
 0x118   : > { %4312 = vmatpush.bf16.msrb.mxu2 %v9450_v0  ;;  %v9230_v0 = vor.u32 %v12069_v47, %v9227_v48  ;;  %v10170_v10 = vor.u32 %v12304_v61, %v10167_v62  ;;  %v12209_v47 = vld [vmem:[#allocation5 + $0xd24] sm:$0xf]  ;;  %v9787_v48 = vld [vmem:[#allocation5 + $0xd34] sm:$0xf0]  ;;  %v12204_v61 = vld [vmem:[#allocation5 + $0xcfc] sm:$0xf] }
 0x119   : > { %4325 = vmatpush.bf16.msrb.mxu3 %v9610_v7  ;;  %v9850_v7 = vor.u32 %v12224_v55, %v9847_v56  ;;  %v10267_v55 = vld [vmem:[#allocation5 + $0x10f4] sm:$0xf0]  ;;  %v9790_v56 = vor.u32 %v12209_v47, %v9787_v48  ;;  %v9767_v62 = vld [vmem:[#allocation5 + $0xd0c] sm:$0xf0]  ;;  %v12324_v8 = vld [vmem:[#allocation5 + $0x10bc] sm:$0xf] }
 0x11a   : > { %4287 = vmatpush.bf16.msrb.mxu0 %v9110_v18  ;;  %v9987_v18 = vld [vmem:[#allocation5 + $0xec4] sm:$0xf0]  ;;  %v10270_v2 = vor.u32 %v12329_v54, %v10267_v55  ;;  %v9770_v11 = vor.u32 %v12204_v61, %v9767_v62  ;;  %v9887_v47 = vld [vmem:[#allocation5 + $0xdfc] sm:$0xf0]  ;;  %v12274_v48 = vld [vmem:[#allocation5 + $0xf2c] sm:$0xf] }
 0x11b   : > { %4300 = vmatpush.bf16.msrb.mxu1 %v9270_v21  ;;  %v10147_v21 = vld [vmem:[#allocation5 + $0x1004] sm:$0xf0]  ;;  %v9990_v28 = vor.u32 %v12259_v14, %v9987_v18  ;;  %v9707_v54 = vld [vmem:[#allocation5 + $0xc94] sm:$0xf0] }
 0x11c   : > { %4313 = vmatpush.bf16.msrb.mxu2 %v9430_v22  ;;  %v12339_v22 = vld [vmem:[#allocation5 + $0x1134] sm:$0xf]  ;;  %v9747_v18 = vld [vmem:[#allocation5 + $0xce4] sm:$0xf0]  ;;  %v10027_v62 = vld [vmem:[#allocation5 + $0xf14] sm:$0xf0] }
 0x11d   : > { %4326 = vmatpush.bf16.msrb.mxu3 %v9590_v29  ;;  %v10150_v29 = vor.u32 %v12299_v20, %v10147_v21  ;;  %v10310_v34 = vor.u32 %v12339_v22, %v10307_v25  ;;  %v12239_v20 = vld [vmem:[#allocation5 + $0xe14] sm:$0xf]  ;;  %v9907_v25 = vld [vmem:[#allocation5 + $0xe24] sm:$0xf0] }
 0x11e   : > { %4288 = vmatpush.bf16.msrb.mxu0 %v9090_v42  ;;  %v12334_v42 = vld [vmem:[#allocation5 + $0x110c] sm:$0xf] }
 0x11f   : > { %4301 = vmatpush.bf16.msrb.mxu1 %v9250_v45  ;;  %v9970_v45 = vor.u32 %v12254_v33, %v9967_v35  ;;  %v10290_v50 = vor.u32 %v12334_v42, %v10287_v43  ;;  %v12194_v42 = vld [vmem:[#allocation5 + $0xcac] sm:$0xf]  ;;  %v9727_v43 = vld [vmem:[#allocation5 + $0xcbc] sm:$0xf0] }
 0x120   : > { %4314 = vmatpush.bf16.msrb.mxu2 %v9410_v46  ;;  %v10130_v46 = vor.u32 %v12294_v36, %v10127_v41  ;;  %v9910_v36 = vor.u32 %v12239_v20, %v9907_v25  ;;  %v8233_v25 = vld [vmem:[#allocation5 + $0xf8] sm:$0xf] }
 0x121   : > { %4327 = vmatpush.bf16.msrb.mxu3 %v9570_v51  ;;  %v9947_v51 = vld [vmem:[#allocation5 + $0xe74] sm:$0xf0] }
 0x122   : > { %4289 = vmatpush.bf16.msrb.mxu0 %v9070_v59  ;;  %v4083_v57 = vpop.f32.mrf.mxu0  ;;  %v9950_v58 = vor.u32 %v12249_v49, %v9947_v51  ;;  %v10110_v59 = vor.u32 %v12289_v52, %v10107_v53  ;;  %v10047_v49 = vld [vmem:[#allocation5 + $0xf3c] sm:$0xf0]  ;;  %v9730_v52 = vor.u32 %v12194_v42, %v9727_v43  ;;  %v12189_v53 = vld [vmem:[#allocation5 + $0xc84] sm:$0xf] }
 0x123   : > { %4302 = vmatpush.bf16.msrb.mxu1 %v9230_v0  ;;  %v4084_v60 = vadd.f32 %v4083_v57, %v13404_v39  ;;  %v12244_v0 = vld [vmem:[#allocation5 + $0xe3c] sm:$0xf]  ;;  %v12199_v39 = vld [vmem:[#allocation5 + $0xcd4] sm:$0xf]  ;;  %v10207_v51 = vld [vmem:[#allocation5 + $0x107c] sm:$0xf0] }
 0x124   : > { %4315 = vmatpush.bf16.msrb.mxu2 %v9390_v1  ;;  %v4096_v1 = vpop.f32.mrf.mxu1  ;;  %v9930_v13 = vor.u32 %v12244_v0, %v9927_v3  ;;  %v9750_v33 = vor.u32 %v12199_v39, %v9747_v18  ;;  %v12229_v57 = vld [vmem:[#allocation5 + $0xdc4] sm:$0xf]  ;;  %v8253_v3 = vld [vmem:[#allocation5 + $0x120] sm:$0xf]  ;;  %v11947_v39 = vld [vmem:[#allocation5 + $0x4f0] sm:$0xf0] }
 0x125   : > { %4328 = vmatpush.bf16.msrb.mxu3 %v9550_v6  ;;  %4290 = vmatmul.bf16.vlgmr.msrb.gmra.mxu0 %v13368_v31  ;;  %v12284_v6 = vld [vmem:[#allocation5 + $0xf7c] sm:$0xf]  ;;  %v12309_v0 = vld [vmem:[#allocation5 + $0x1044] sm:$0xf] }
 0x126   : > { %4334 = vmatpush.bf16.msra.mxu0 %v9850_v7  ;;  %4303 = vmatmul.bf16.vlgmr.msrb.gmra.mxu1 %v13372_v38  ;;  %v10087_v7 = vld [vmem:[#allocation5 + $0xf8c] sm:$0xf0] }
 0x127   : > { %4347 = vmatpush.bf16.msra.mxu1 %v10010_v9  ;;  %4316 = vmatmul.bf16.vlgmr.msrb.gmra.mxu2 %v13380_v19  ;;  %v10247_v9 = vld [vmem:[#allocation5 + $0x10cc] sm:$0xf0]  ;;  %v10090_v14 = vor.u32 %v12284_v6, %v10087_v7  ;;  %v11827_v6 = vld [vmem:[#allocation5 + $0x130] sm:$0xf0]  ;;  %v8413_v7 = vld [vmem:[#allocation5 + $0x260] sm:$0xf] }
 0x128   : > { %4360 = vmatpush.bf16.msra.mxu2 %v10170_v10  ;;  %4329 = vmatmul.bf16.vlgmr.msrb.gmra.mxu3 %v13384_v24  ;;  %v4097_v10 = vadd.f32 %v4096_v1, %v4084_v60  ;;  %v10250_v21 = vor.u32 %v12324_v8, %v10247_v9  ;;  %v10187_v1 = vld [vmem:[#allocation5 + $0x1054] sm:$0xf0]  ;;  %v9710_v8 = vor.u32 %v12189_v53, %v9707_v54  ;;  %v11867_v9 = vld [vmem:[#allocation5 + $0x270] sm:$0xf0] }
 0x129   : > { %4373 = vmatpush.bf16.msra.mxu3 %v10330_v15  ;;  %v10190_v18 = vor.u32 %v12309_v0, %v10187_v1  ;;  %v8254_v20 = vor.u32 %v11827_v6, %v8253_v3  ;;  %v8673_v1 = vld [vmem:[#allocation5 + $0x468] sm:$0xf] }
 0x12a   : > { %4335 = vmatpush.bf16.msra.mxu0 %v9830_v26  ;;  %v4109_v15 = vpop.f32.mrf.mxu2  ;;  %v12279_v26 = vld [vmem:[#allocation5 + $0xf54] sm:$0xf]  ;;  %v4085_v35 = vpop.f32.mrf.mxu0 }
 0x12b   : > { %4348 = vmatpush.bf16.msra.mxu1 %v9990_v28  ;;  %v4110_v22 = vadd.f32 %v4109_v15, %v4097_v10  ;;  %v10067_v28 = vld [vmem:[#allocation5 + $0xf64] sm:$0xf0]  ;;  %v8573_v10 = vld [vmem:[#allocation5 + $0x3a0] sm:$0xf]  ;;  %v8713_v35 = vld [vmem:[#allocation5 + $0x4b8] sm:$0xf] }
 0x12c   : > { %4361 = vmatpush.bf16.msra.mxu2 %v10150_v29  ;;  %v4122_v29 = vpop.f32.mrf.mxu3  ;;  %v10070_v41 = vor.u32 %v12279_v26, %v10067_v28  ;;  %v8733_v15 = vld [vmem:[#allocation5 + $0x4e0] sm:$0xf]  ;;  %v11822_v26 = vld [vmem:[#allocation5 + $0x108] sm:$0xf0]  ;;  %v8393_v28 = vld [vmem:[#allocation5 + $0x238] sm:$0xf] }
 0x12d   : > { %4374 = vmatpush.bf16.msra.mxu3 %v10310_v34  ;;  %v13411_v34 = vadd.f32 %v4122_v29, %v4110_v22  ;;  %v8734_v29 = vor.u32 %v11947_v39, %v8733_v15  ;;  %v11847_v39 = vld [vmem:[#allocation5 + $0x1d0] sm:$0xf0] }
 0x12e   : > { %4336 = vmatpush.bf16.msra.mxu0 %v9810_v44  ;;  %v12234_v44 = vld [vmem:[#allocation5 + $0xdec] sm:$0xf] }
 0x12f   : > { %4349 = vmatpush.bf16.msra.mxu1 %v9970_v45  ;;  %v4098_v45 = vpop.f32.mrf.mxu1  ;;  %v9890_v55 = vor.u32 %v12234_v44, %v9887_v47  ;;  %v8213_v44 = vld [vmem:[#allocation5 + $0xd0] sm:$0xf] }
 0x130   : > { %4362 = vmatpush.bf16.msra.mxu2 %v10130_v46  ;;  %v10230_v46 = vor.u32 %v12319_v30, %v10227_v32  ;;  %v11862_v30 = vld [vmem:[#allocation5 + $0x248] sm:$0xf0]  ;;  %v8553_v32 = vld [vmem:[#allocation5 + $0x378] sm:$0xf]  ;;  %v11817_v45 = vld [vmem:[#allocation5 + $0xe0] sm:$0xf0] }
 0x131   : > { %4375 = vmatpush.bf16.msra.mxu3 %v10290_v50  ;;  %v12314_v50 = vld [vmem:[#allocation5 + $0x106c] sm:$0xf]  ;;  %v8394_v42 = vor.u32 %v11862_v30, %v8393_v28  ;;  %v8214_v53 = vor.u32 %v11817_v45, %v8213_v44  ;;  %v8153_v28 = vld [vmem:[#allocation5 + $0x58] sm:$0xf] }
 0x132   : > { %4337 = vmatpush.bf16.msra.mxu0 %v9790_v56  ;;  %v10050_v56 = vor.u32 %v12274_v48, %v10047_v49  ;;  %v4111_v60 = vpop.f32.mrf.mxu2  ;;  %v10210_v61 = vor.u32 %v12314_v50, %v10207_v51  ;;  %v11857_v48 = vld [vmem:[#allocation5 + $0x220] sm:$0xf0]  ;;  %v8533_v49 = vld [vmem:[#allocation5 + $0x350] sm:$0xf]  ;;  %v8313_v30 = vld [vmem:[#allocation5 + $0x198] sm:$0xf] }
 0x133   : > { %4350 = vmatpush.bf16.msra.mxu1 %v9950_v58  ;;  %v9867_v58 = vld [vmem:[#allocation5 + $0xdd4] sm:$0xf0]  ;;  %v11897_v50 = vld [vmem:[#allocation5 + $0x360] sm:$0xf0]  ;;  %v8693_v51 = vld [vmem:[#allocation5 + $0x490] sm:$0xf] }
 0x134   : > { %4363 = vmatpush.bf16.msra.mxu2 %v10110_v59  ;;  %v12269_v59 = vld [vmem:[#allocation5 + $0xf04] sm:$0xf]  ;;  %v11852_v60 = vld [vmem:[#allocation5 + $0x1f8] sm:$0xf0]  ;;  %v8633_v44 = vld [vmem:[#allocation5 + $0x418] sm:$0xf] }
 0x135   : > { %4376 = vmatpush.bf16.msra.mxu3 %v10270_v2  ;;  %v4124_v2 = vpop.f32.mrf.mxu3  ;;  %v11922_v45 = vld [vmem:[#allocation5 + $0x428] sm:$0xf0] }
 0x136   : > { %4338 = vmatpush.bf16.msra.mxu0 %v9770_v11  ;;  %v11907_v11 = vld [vmem:[#allocation5 + $0x3b0] sm:$0xf0]  ;;  %v11932_v2 = vld [vmem:[#allocation5 + $0x478] sm:$0xf0] }
 0x137   : > { %4351 = vmatpush.bf16.msra.mxu1 %v9930_v13  ;;  %v9870_v13 = vor.u32 %v12229_v57, %v9867_v58  ;;  %v8574_v22 = vor.u32 %v11907_v11, %v8573_v10  ;;  %v11812_v57 = vld [vmem:[#allocation5 + $0xb8] sm:$0xf0]  ;;  %v8353_v58 = vld [vmem:[#allocation5 + $0x1e8] sm:$0xf]  ;;  %v8173_v10 = vld [vmem:[#allocation5 + $0x80] sm:$0xf] }
 0x138   : > { %4364 = vmatpush.bf16.msra.mxu2 %v10090_v14  ;;  %v10030_v14 = vor.u32 %v12269_v59, %v10027_v62  ;;  %v11892_v62 = vld [vmem:[#allocation5 + $0x338] sm:$0xf0]  ;;  %v11807_v11 = vld [vmem:[#allocation5 + $0x90] sm:$0xf0] }
 0x139   : > { %4377 = vmatpush.bf16.msra.mxu3 %v10250_v21  ;;  %v8414_v21 = vor.u32 %v11867_v9, %v8413_v7 }
 0x13a   : > { %4339 = vmatpush.bf16.msra.mxu0 %v9750_v33  ;;  %v11902_v33 = vld [vmem:[#allocation5 + $0x388] sm:$0xf0] }
 0x13b   : > { %4352 = vmatpush.bf16.msra.mxu1 %v9910_v36  ;;  %v11942_v36 = vld [vmem:[#allocation5 + $0x4c8] sm:$0xf0]  ;;  %v8554_v43 = vor.u32 %v11902_v33, %v8553_v32 }
 0x13c   : > { %4365 = vmatpush.bf16.msra.mxu2 %v10070_v41  ;;  %v8234_v41 = vor.u32 %v11822_v26, %v8233_v25  ;;  %v8714_v47 = vor.u32 %v11942_v36, %v8713_v35  ;;  %v8174_v25 = vor.u32 %v11807_v11, %v8173_v10  ;;  %v11842_v35 = vld [vmem:[#allocation5 + $0x1a8] sm:$0xf0]  ;;  %v8473_v36 = vld [vmem:[#allocation5 + $0x2d8] sm:$0xf]  ;;  %v8593_v10 = vld [vmem:[#allocation5 + $0x3c8] sm:$0xf] }
 0x13d   : > { %4378 = vmatpush.bf16.msra.mxu3 %v10230_v46  ;;  %v8373_v46 = vld [vmem:[#allocation5 + $0x210] sm:$0xf]  ;;  %v11912_v11 = vld [vmem:[#allocation5 + $0x3d8] sm:$0xf0] }
 0x13e   : > { %4340 = vmatpush.bf16.msra.mxu0 %v9730_v52  ;;  %v11937_v52 = vld [vmem:[#allocation5 + $0x4a0] sm:$0xf0]  ;;  %v8374_v54 = vor.u32 %v11857_v48, %v8373_v46 }
 0x13f   : > { %4353 = vmatpush.bf16.msra.mxu1 %v9890_v55  ;;  %v8534_v55 = vor.u32 %v11897_v50, %v8533_v49  ;;  %v8694_v59 = vor.u32 %v11937_v52, %v8693_v51  ;;  %v8314_v50 = vor.u32 %v11842_v35, %v8313_v30  ;;  %v8133_v52 = vld [vmem:[#allocation5 + $0x30] sm:$0xf]  ;;  %v8594_v30 = vor.u32 %v11912_v11, %v8593_v10  ;;  %v12052_v10 = vld [vmem:[#allocation5 + $0x838] sm:$0xf0] }
 0x140   : > { %4366 = vmatpush.bf16.msra.mxu2 %v10050_v56  ;;  %v8193_v56 = vld [vmem:[#allocation5 + $0xa8] sm:$0xf] }
 0x141   : > { %4379 = vmatpush.bf16.msra.mxu3 %v10210_v61  ;;  %v8513_v61 = vld [vmem:[#allocation5 + $0x328] sm:$0xf]  ;;  %v8194_v6 = vor.u32 %v11812_v57, %v8193_v56  ;;  %v11837_v56 = vld [vmem:[#allocation5 + $0x180] sm:$0xf0]  ;;  %v8453_v57 = vld [vmem:[#allocation5 + $0x2b0] sm:$0xf] }
 0x142   : > { %4341 = vmatpush.bf16.msra.mxu0 %v9710_v8  ;;  %v4135_v0 = vpop.f32.mrf.mxu0  ;;  %v8354_v8 = vor.u32 %v11852_v60, %v8353_v58  ;;  %v8514_v9 = vor.u32 %v11892_v62, %v8513_v61  ;;  %v11877_v58 = vld [vmem:[#allocation5 + $0x2c0] sm:$0xf0]  ;;  %v8113_v62 = vld [vmem:[#allocation5 + $0x8] sm:$0xf] }
 0x143   : > { %4354 = vmatpush.bf16.msra.mxu1 %v9870_v13  ;;  %v4136_v3 = vadd.f32 %v4135_v0, %v13411_v34  ;;  %v4148_v7 = vpop.f32.mrf.mxu1  ;;  %v8333_v13 = vld [vmem:[#allocation5 + $0x1c0] sm:$0xf]  ;;  %v11917_v60 = vld [vmem:[#allocation5 + $0x400] sm:$0xf0]  ;;  %v11792_v0 = vld [vmem:[#allocation5 + $0x18] sm:$0xf0] }
 0x144   : > { %4367 = vmatpush.bf16.msra.mxu2 %v10030_v14  ;;  %v8674_v14 = vor.u32 %v11932_v2, %v8673_v1  ;;  %v8334_v34 = vor.u32 %v11847_v39, %v8333_v13  ;;  %v8454_v2 = vor.u32 %v11877_v58, %v8453_v57  ;;  %v9053_v39 = vld [vmem:[#allocation5 + $0x760] sm:$0xf]  ;;  %v12017_v57 = vld [vmem:[#allocation5 + $0x720] sm:$0xf0]  ;;  %v9173_v58 = vld [vmem:[#allocation5 + $0x850] sm:$0xf] }
 0x145   : > { %4380 = vmatpush.bf16.msra.mxu3 %v10190_v18  ;;  %4342 = vmatmul.bf16.vlgmr.msra.gmra.mxu0 %v13382_v23  ;;  %v4149_v15 = vadd.f32 %v4148_v7, %v4136_v3  ;;  %v8493_v18 = vld [vmem:[#allocation5 + $0x300] sm:$0xf]  ;;  %v8273_v3 = vld [vmem:[#allocation5 + $0x148] sm:$0xf] }
 0x146   : > { %4386 = vmatpush.bf16.msrb.mxu0 %v8254_v20  ;;  %4355 = vmatmul.bf16.vlgmr.msra.gmra.mxu1 %v13386_v27  ;;  %v11887_v20 = vld [vmem:[#allocation5 + $0x310] sm:$0xf0]  ;;  %v8433_v7 = vld [vmem:[#allocation5 + $0x288] sm:$0xf] }
 0x147   : > { %4399 = vmatpush.bf16.msrb.mxu1 %v8414_v21  ;;  %4368 = vmatmul.bf16.vlgmr.msra.gmra.mxu2 %v13392_v12  ;;  %v8653_v21 = vld [vmem:[#allocation5 + $0x440] sm:$0xf]  ;;  %v8494_v26 = vor.u32 %v11887_v20, %v8493_v18  ;;  %v8114_v20 = vor.u32 %v11792_v0, %v8113_v62 }
 0x148   : > { %4412 = vmatpush.bf16.msrb.mxu2 %v8574_v22  ;;  %4381 = vmatmul.bf16.vlgmr.msra.gmra.mxu3 %v13394_v16  ;;  %v11927_v22 = vld [vmem:[#allocation5 + $0x450] sm:$0xf0] }
 0x149   : > { %4425 = vmatpush.bf16.msrb.mxu3 %v8734_v29  ;;  %v11802_v29 = vld [vmem:[#allocation5 + $0x68] sm:$0xf0]  ;;  %v8654_v32 = vor.u32 %v11927_v22, %v8653_v21  ;;  %v12027_v21 = vld [vmem:[#allocation5 + $0x770] sm:$0xf0]  ;;  %v9213_v22 = vld [vmem:[#allocation5 + $0x8a0] sm:$0xf] }
 0x14a   : > { %4387 = vmatpush.bf16.msrb.mxu0 %v8234_v41  ;;  %v4161_v33 = vpop.f32.mrf.mxu2  ;;  %v11882_v41 = vld [vmem:[#allocation5 + $0x2e8] sm:$0xf0]  ;;  %v4137_v46 = vpop.f32.mrf.mxu0 }
 0x14b   : > { %4400 = vmatpush.bf16.msrb.mxu1 %v8394_v42  ;;  %v4162_v42 = vadd.f32 %v4161_v33, %v4149_v15  ;;  %v4150_v48 = vpop.f32.mrf.mxu1  ;;  %v8474_v51 = vor.u32 %v11882_v41, %v8473_v36  ;;  %v11987_v15 = vld [vmem:[#allocation5 + $0x630] sm:$0xf0]  ;;  %v9054_v33 = vor.u32 %v12027_v21, %v9053_v39  ;;  %v8873_v36 = vld [vmem:[#allocation5 + $0x5f8] sm:$0xf]  ;;  %v11982_v41 = vld [vmem:[#allocation5 + $0x608] sm:$0xf0] }
 0x14c   : > { %4413 = vmatpush.bf16.msrb.mxu2 %v8554_v43  ;;  %v4174_v43 = vpop.f32.mrf.mxu3  ;;  %v12062_v46 = vld [vmem:[#allocation5 + $0x888] sm:$0xf0] }
 0x14d   : > { %4426 = vmatpush.bf16.msrb.mxu3 %v8714_v47  ;;  %v8154_v47 = vor.u32 %v11802_v29, %v8153_v28  ;;  %v13418_v49 = vadd.f32 %v4174_v43, %v4162_v42  ;;  %v9373_v28 = vld [vmem:[#allocation5 + $0x9e0] sm:$0xf]  ;;  %v12107_v29 = vld [vmem:[#allocation5 + $0x9f0] sm:$0xf0]  ;;  %v9033_v42 = vld [vmem:[#allocation5 + $0x738] sm:$0xf] }
 0x14e   : > { %4388 = vmatpush.bf16.msrb.mxu0 %v8214_v53  ;;  %v11797_v53 = vld [vmem:[#allocation5 + $0x40] sm:$0xf0]  ;;  %v9374_v43 = vor.u32 %v12107_v29, %v9373_v28  ;;  %v12102_v48 = vld [vmem:[#allocation5 + $0x9c8] sm:$0xf0]  ;;  %v12007_v29 = vld [vmem:[#allocation5 + $0x6d0] sm:$0xf0] }
 0x14f   : > { %4401 = vmatpush.bf16.msrb.mxu1 %v8374_v54  ;;  %v8293_v54 = vld [vmem:[#allocation5 + $0x170] sm:$0xf]  ;;  %v8134_v61 = vor.u32 %v11797_v53, %v8133_v52 }
 0x150   : > { %4414 = vmatpush.bf16.msrb.mxu2 %v8534_v55  ;;  %v8634_v55 = vor.u32 %v11922_v45, %v8633_v44  ;;  %v8294_v1 = vor.u32 %v11837_v56, %v8293_v54  ;;  %v12022_v44 = vld [vmem:[#allocation5 + $0x748] sm:$0xf0]  ;;  %v9193_v45 = vld [vmem:[#allocation5 + $0x878] sm:$0xf]  ;;  %v8853_v53 = vld [vmem:[#allocation5 + $0x5d0] sm:$0xf] }
 0x151   : > { %4427 = vmatpush.bf16.msrb.mxu3 %v8694_v59  ;;  %v8613_v59 = vld [vmem:[#allocation5 + $0x3f0] sm:$0xf]  ;;  %v9194_v52 = vor.u32 %v12062_v46, %v9193_v45  ;;  %v11977_v54 = vld [vmem:[#allocation5 + $0x5e0] sm:$0xf0]  ;;  %v12002_v46 = vld [vmem:[#allocation5 + $0x6a8] sm:$0xf0] }
 0x152   : > { %4389 = vmatpush.bf16.msrb.mxu0 %v8194_v6  ;;  %v11832_v6 = vld [vmem:[#allocation5 + $0x158] sm:$0xf0]  ;;  %v4163_v13 = vpop.f32.mrf.mxu2  ;;  %v8854_v62 = vor.u32 %v11977_v54, %v8853_v53 }
 0x153   : > { %4402 = vmatpush.bf16.msrb.mxu1 %v8354_v8  ;;  %v8614_v8 = vor.u32 %v11917_v60, %v8613_v59  ;;  %v12057_v59 = vld [vmem:[#allocation5 + $0x860] sm:$0xf0]  ;;  %v9333_v60 = vld [vmem:[#allocation5 + $0x990] sm:$0xf]  ;;  %v9313_v13 = vld [vmem:[#allocation5 + $0x968] sm:$0xf] }
 0x154   : > { %4415 = vmatpush.bf16.msrb.mxu2 %v8514_v9  ;;  %v11872_v9 = vld [vmem:[#allocation5 + $0x298] sm:$0xf0]  ;;  %v4176_v18 = vpop.f32.mrf.mxu3 }
 0x155   : > { %4428 = vmatpush.bf16.msrb.mxu3 %v8674_v14  ;;  %v8893_v14 = vld [vmem:[#allocation5 + $0x620] sm:$0xf] }
 0x156   : > { %4390 = vmatpush.bf16.msrb.mxu0 %v8174_v25  ;;  %v12067_v25 = vld [vmem:[#allocation5 + $0x8b0] sm:$0xf0] }
 0x157   : > { %4403 = vmatpush.bf16.msrb.mxu1 %v8334_v34  ;;  %v8274_v34 = vor.u32 %v11832_v6, %v8273_v3  ;;  %v9214_v35 = vor.u32 %v12067_v25, %v9213_v22  ;;  %v11972_v3 = vld [vmem:[#allocation5 + $0x5b8] sm:$0xf0]  ;;  %v8993_v6 = vld [vmem:[#allocation5 + $0x6e8] sm:$0xf]  ;;  %v8813_v22 = vld [vmem:[#allocation5 + $0x580] sm:$0xf] }
 0x158   : > { %4416 = vmatpush.bf16.msrb.mxu2 %v8494_v26  ;;  %v8434_v26 = vor.u32 %v11872_v9, %v8433_v7  ;;  %v9153_v9 = vld [vmem:[#allocation5 + $0x828] sm:$0xf]  ;;  %v11967_v25 = vld [vmem:[#allocation5 + $0x590] sm:$0xf0] }
 0x159   : > { %4429 = vmatpush.bf16.msrb.mxu3 %v8654_v32  ;;  %v8894_v32 = vor.u32 %v11987_v15, %v8893_v14  ;;  %v12092_v14 = vld [vmem:[#allocation5 + $0x978] sm:$0xf0]  ;;  %v9154_v21 = vor.u32 %v12052_v10, %v9153_v9  ;;  %v8753_v9 = vld [vmem:[#allocation5 + $0x508] sm:$0xf] }
 0x15a   : > { %4391 = vmatpush.bf16.msrb.mxu0 %v8154_v47  ;;  %v9353_v47 = vld [vmem:[#allocation5 + $0x9b8] sm:$0xf]  ;;  %v11952_v10 = vld [vmem:[#allocation5 + $0x518] sm:$0xf0] }
 0x15b   : > { %4404 = vmatpush.bf16.msrb.mxu1 %v8314_v50  ;;  %v8874_v50 = vor.u32 %v11982_v41, %v8873_v36  ;;  %v9354_v56 = vor.u32 %v12102_v48, %v9353_v47  ;;  %v9113_v47 = vld [vmem:[#allocation5 + $0x7d8] sm:$0xf]  ;;  %v12042_v48 = vld [vmem:[#allocation5 + $0x7e8] sm:$0xf0] }
 0x15c   : > { %4417 = vmatpush.bf16.msrb.mxu2 %v8474_v51  ;;  %v9034_v51 = vor.u32 %v12022_v44, %v9033_v42  ;;  %v8793_v42 = vld [vmem:[#allocation5 + $0x558] sm:$0xf] }
 0x15d   : > { %4430 = vmatpush.bf16.msrb.mxu3 %v8634_v55  ;;  %v9013_v55 = vld [vmem:[#allocation5 + $0x710] sm:$0xf]  ;;  %v8953_v44 = vld [vmem:[#allocation5 + $0x698] sm:$0xf] }
 0x15e   : > { %4392 = vmatpush.bf16.msrb.mxu0 %v8134_v61  ;;  %v12097_v61 = vld [vmem:[#allocation5 + $0x9a0] sm:$0xf0]  ;;  %v9014_v0 = vor.u32 %v12017_v57, %v9013_v55  ;;  %v8954_v57 = vor.u32 %v12002_v46, %v8953_v44 }
 0x15f   : > { %4405 = vmatpush.bf16.msrb.mxu1 %v8294_v1  ;;  %v9174_v1 = vor.u32 %v12057_v59, %v9173_v58  ;;  %v9334_v7 = vor.u32 %v12097_v61, %v9333_v60  ;;  %v9114_v58 = vor.u32 %v12042_v48, %v9113_v47  ;;  %v8773_v59 = vld [vmem:[#allocation5 + $0x530] sm:$0xf]  ;;  %v11957_v60 = vld [vmem:[#allocation5 + $0x540] sm:$0xf0]  ;;  %v9513_v48 = vld [vmem:[#allocation5 + $0xaf8] sm:$0xf] }
 0x160   : > { %4418 = vmatpush.bf16.msrb.mxu2 %v8454_v2  ;;  %v8833_v2 = vld [vmem:[#allocation5 + $0x5a8] sm:$0xf]  ;;  %v8933_v61 = vld [vmem:[#allocation5 + $0x670] sm:$0xf] }
 0x161   : > { %4431 = vmatpush.bf16.msrb.mxu3 %v8614_v8  ;;  %v12012_v8 = vld [vmem:[#allocation5 + $0x6f8] sm:$0xf0]  ;;  %v8834_v39 = vor.u32 %v11972_v3, %v8833_v2  ;;  %v9093_v2 = vld [vmem:[#allocation5 + $0x7b0] sm:$0xf]  ;;  %v12037_v3 = vld [vmem:[#allocation5 + $0x7c0] sm:$0xf0] }
 0x162   : > { %4393 = vmatpush.bf16.msrb.mxu0 %v8114_v20  ;;  %v4187_v11 = vpop.f32.mrf.mxu0  ;;  %v8994_v20 = vor.u32 %v12012_v8, %v8993_v6  ;;  %v9253_v6 = vld [vmem:[#allocation5 + $0x8f0] sm:$0xf]  ;;  %v8774_v8 = vor.u32 %v11957_v60, %v8773_v59 }
 0x163   : > { %4406 = vmatpush.bf16.msrb.mxu1 %v8274_v34  ;;  %v4188_v15 = vadd.f32 %v4187_v11, %v13418_v49  ;;  %v4200_v18 = vpop.f32.mrf.mxu1  ;;  %v8973_v34 = vld [vmem:[#allocation5 + $0x6c0] sm:$0xf]  ;;  %v8814_v49 = vor.u32 %v11967_v25, %v8813_v22  ;;  %v12072_v22 = vld [vmem:[#allocation5 + $0x8d8] sm:$0xf0] }
 0x164   : > { %4419 = vmatpush.bf16.msrb.mxu2 %v8434_v26  ;;  %v9314_v26 = vor.u32 %v12092_v14, %v9313_v13  ;;  %v8974_v36 = vor.u32 %v12007_v29, %v8973_v34  ;;  %v9094_v13 = vor.u32 %v12037_v3, %v9093_v2  ;;  %v8913_v14 = vld [vmem:[#allocation5 + $0x648] sm:$0xf]  ;;  %v9533_v34 = vld [vmem:[#allocation5 + $0xb20] sm:$0xf]  ;;  %v12177_v3 = vld [vmem:[#allocation5 + $0xc20] sm:$0xf0] }
 0x165   : > { %4432 = vmatpush.bf16.msrb.mxu3 %v8594_v30  ;;  %4394 = vmatmul.bf16.vlgmr.msrb.gmra.mxu0 %v13358_v4  ;;  %v13425_v28 = vadd.f32 %v4200_v18, %v4188_v15  ;;  %v9133_v30 = vld [vmem:[#allocation5 + $0x800] sm:$0xf]  ;;  %v11992_v15 = vld [vmem:[#allocation5 + $0x658] sm:$0xf0] }
 0x166   : > { %4438 = vmatpush.bf16.msra.mxu0 %v8894_v32  ;;  %4407 = vmatmul.bf16.vlgmr.msrb.gmra.mxu1 %v13364_v17  ;;  %v12047_v32 = vld [vmem:[#allocation5 + $0x810] sm:$0xf0]  ;;  %v9693_v29 = vld [vmem:[#allocation5 + $0xc60] sm:$0xf] }
 0x167   : > { %4451 = vmatpush.bf16.msra.mxu1 %v9054_v33  ;;  %4420 = vmatmul.bf16.vlgmr.msrb.gmra.mxu2 %v13356_v63  ;;  %v9293_v33 = vld [vmem:[#allocation5 + $0x940] sm:$0xf]  ;;  %v9134_v41 = vor.u32 %v12047_v32, %v9133_v30  ;;  %v8754_v30 = vor.u32 %v11952_v10, %v8753_v9  ;;  %v12187_v32 = vld [vmem:[#allocation5 + $0xc70] sm:$0xf0]  ;;  %v12257_v9 = vld [vmem:[#allocation5 + $0xea0] sm:$0xf0] }
 0x168   : > { %4464 = vmatpush.bf16.msra.mxu2 %v9214_v35  ;;  %4433 = vmatmul.bf16.vlgmr.msrb.gmra.mxu3 %v13360_v5  ;;  %v12087_v35 = vld [vmem:[#allocation5 + $0x950] sm:$0xf0]  ;;  %v9694_v46 = vor.u32 %v12187_v32, %v9693_v29 }
 0x169   : > { %4477 = vmatpush.bf16.msra.mxu3 %v9374_v43  ;;  %v11962_v43 = vld [vmem:[#allocation5 + $0x568] sm:$0xf0]  ;;  %v9294_v45 = vor.u32 %v12087_v35, %v9293_v33  ;;  %v9853_v33 = vld [vmem:[#allocation5 + $0xda0] sm:$0xf]  ;;  %v12227_v35 = vld [vmem:[#allocation5 + $0xdb0] sm:$0xf0] }
 0x16a   : > { %4439 = vmatpush.bf16.msra.mxu0 %v8874_v50  ;;  %v4213_v50 = vpop.f32.mrf.mxu2  ;;  %v4189_v53 = vpop.f32.mrf.mxu0  ;;  %v8794_v54 = vor.u32 %v11962_v43, %v8793_v42  ;;  %v10013_v42 = vld [vmem:[#allocation5 + $0xee0] sm:$0xf]  ;;  %v12267_v43 = vld [vmem:[#allocation5 + $0xef0] sm:$0xf0]  ;;  %v9854_v47 = vor.u32 %v12227_v35, %v9853_v33 }
 0x16b   : > { %4452 = vmatpush.bf16.msra.mxu1 %v9034_v51  ;;  %v9273_v51 = vld [vmem:[#allocation5 + $0x918] sm:$0xf]  ;;  %v4202_v55 = vpop.f32.mrf.mxu1  ;;  %v12182_v53 = vld [vmem:[#allocation5 + $0xc48] sm:$0xf0]  ;;  %v9453_v33 = vld [vmem:[#allocation5 + $0xa80] sm:$0xf] }
 0x16c   : > { %4465 = vmatpush.bf16.msra.mxu2 %v9194_v52  ;;  %v12082_v52 = vld [vmem:[#allocation5 + $0x928] sm:$0xf0]  ;;  %v12127_v35 = vld [vmem:[#allocation5 + $0xa90] sm:$0xf0] }
 0x16d   : > { %4478 = vmatpush.bf16.msra.mxu3 %v9354_v56  ;;  %v4226_v56 = vpop.f32.mrf.mxu3  ;;  %v12222_v55 = vld [vmem:[#allocation5 + $0xd88] sm:$0xf0] }
 0x16e   : > { %4440 = vmatpush.bf16.msra.mxu0 %v8854_v62  ;;  %v13427_v62 = vadd.f32 %v4226_v56, %v4213_v50  ;;  %v12142_v50 = vld [vmem:[#allocation5 + $0xb08] sm:$0xf0]  ;;  %v9993_v56 = vld [vmem:[#allocation5 + $0xeb8] sm:$0xf] }
 0x16f   : > { %4453 = vmatpush.bf16.msra.mxu1 %v9014_v0  ;;  %v9274_v0 = vor.u32 %v12082_v52, %v9273_v51  ;;  %v9673_v51 = vld [vmem:[#allocation5 + $0xc38] sm:$0xf]  ;;  %v10014_v52 = vor.u32 %v12267_v43, %v10013_v42  ;;  %v12167_v43 = vld [vmem:[#allocation5 + $0xbd0] sm:$0xf0] }
 0x170   : > { %4466 = vmatpush.bf16.msra.mxu2 %v9174_v1  ;;  %v11997_v1 = vld [vmem:[#allocation5 + $0x680] sm:$0xf0]  ;;  %v9674_v59 = vor.u32 %v12182_v53, %v9673_v51  ;;  %v9433_v53 = vld [vmem:[#allocation5 + $0xa58] sm:$0xf] }
 0x171   : > { %4479 = vmatpush.bf16.msra.mxu3 %v9334_v7  ;;  %v12077_v7 = vld [vmem:[#allocation5 + $0x900] sm:$0xf0]  ;;  %v8934_v11 = vor.u32 %v11997_v1, %v8933_v61  ;;  %v9493_v61 = vld [vmem:[#allocation5 + $0xad0] sm:$0xf] }
 0x172   : > { %4441 = vmatpush.bf16.msra.mxu0 %v8834_v39  ;;  %v9073_v39 = vld [vmem:[#allocation5 + $0x788] sm:$0xf]  ;;  %v9254_v18 = vor.u32 %v12077_v7, %v9253_v6  ;;  %v4215_v25 = vpop.f32.mrf.mxu2  ;;  %v9653_v1 = vld [vmem:[#allocation5 + $0xc10] sm:$0xf]  ;;  %v12217_v7 = vld [vmem:[#allocation5 + $0xd60] sm:$0xf0] }
 0x173   : > { %4454 = vmatpush.bf16.msra.mxu1 %v8994_v20  ;;  %v12032_v20 = vld [vmem:[#allocation5 + $0x798] sm:$0xf0]  ;;  %v9813_v6 = vld [vmem:[#allocation5 + $0xd50] sm:$0xf]  ;;  %v9953_v25 = vld [vmem:[#allocation5 + $0xe68] sm:$0xf] }
 0x174   : > { %4467 = vmatpush.bf16.msra.mxu2 %v9154_v21  ;;  %v9233_v21 = vld [vmem:[#allocation5 + $0x8c8] sm:$0xf] }
 0x175   : > { %4480 = vmatpush.bf16.msra.mxu3 %v9314_v26  ;;  %v12147_v26 = vld [vmem:[#allocation5 + $0xb30] sm:$0xf0]  ;;  %v9234_v44 = vor.u32 %v12072_v22, %v9233_v21  ;;  %v9793_v21 = vld [vmem:[#allocation5 + $0xd28] sm:$0xf]  ;;  %v12212_v22 = vld [vmem:[#allocation5 + $0xd38] sm:$0xf0] }
 0x176   : > { %4442 = vmatpush.bf16.msra.mxu0 %v8814_v49  ;;  %v4228_v49 = vpop.f32.mrf.mxu3  ;;  %v9794_v32 = vor.u32 %v12212_v22, %v9793_v21  ;;  %v12237_v21 = vld [vmem:[#allocation5 + $0xe00] sm:$0xf0] }
 0x177   : > { %4455 = vmatpush.bf16.msra.mxu1 %v8974_v36  ;;  %v8914_v36 = vor.u32 %v11992_v15, %v8913_v14  ;;  %v9473_v14 = vld [vmem:[#allocation5 + $0xaa8] sm:$0xf]  ;;  %v12132_v15 = vld [vmem:[#allocation5 + $0xab8] sm:$0xf0]  ;;  %v9613_v49 = vld [vmem:[#allocation5 + $0xbc0] sm:$0xf] }
 0x178   : > { %4468 = vmatpush.bf16.msra.mxu2 %v9134_v41  ;;  %v9074_v41 = vor.u32 %v12032_v20, %v9073_v39  ;;  %v9633_v39 = vld [vmem:[#allocation5 + $0xbe8] sm:$0xf]  ;;  %v12172_v20 = vld [vmem:[#allocation5 + $0xbf8] sm:$0xf0]  ;;  %v9614_v51 = vor.u32 %v12167_v43, %v9613_v49 }
 0x179   : > { %4481 = vmatpush.bf16.msra.mxu3 %v9294_v45  ;;  %v9534_v45 = vor.u32 %v12147_v26, %v9533_v34  ;;  %v12252_v34 = vld [vmem:[#allocation5 + $0xe78] sm:$0xf0]  ;;  %v9474_v26 = vor.u32 %v12132_v15, %v9473_v14  ;;  %v12157_v15 = vld [vmem:[#allocation5 + $0xb80] sm:$0xf0] }
 0x17a   : > { %4443 = vmatpush.bf16.msra.mxu0 %v8794_v54  ;;  %v9833_v54 = vld [vmem:[#allocation5 + $0xd78] sm:$0xf]  ;;  %v9954_v42 = vor.u32 %v12252_v34, %v9953_v25  ;;  %v9393_v25 = vld [vmem:[#allocation5 + $0xa08] sm:$0xf]  ;;  %v12112_v34 = vld [vmem:[#allocation5 + $0xa18] sm:$0xf0] }
 0x17b   : > { %4456 = vmatpush.bf16.msra.mxu1 %v8954_v57  ;;  %v12262_v57 = vld [vmem:[#allocation5 + $0xec8] sm:$0xf0]  ;;  %v9834_v60 = vor.u32 %v12222_v55, %v9833_v54  ;;  %v9593_v55 = vld [vmem:[#allocation5 + $0xb98] sm:$0xf] }
 0x17c   : > { %4469 = vmatpush.bf16.msra.mxu2 %v9114_v58  ;;  %v9514_v58 = vor.u32 %v12142_v50, %v9513_v48  ;;  %v9994_v2 = vor.u32 %v12262_v57, %v9993_v56  ;;  %v9454_v50 = vor.u32 %v12127_v35, %v9453_v33  ;;  %v12122_v54 = vld [vmem:[#allocation5 + $0xa68] sm:$0xf0]  ;;  %v9713_v33 = vld [vmem:[#allocation5 + $0xc88] sm:$0xf] }
 0x17d   : > { %4482 = vmatpush.bf16.msra.mxu3 %v9274_v0  ;;  %v12137_v0 = vld [vmem:[#allocation5 + $0xae0] sm:$0xf0]  ;;  %v12162_v57 = vld [vmem:[#allocation5 + $0xba8] sm:$0xf0] }
 0x17e   : > { %4444 = vmatpush.bf16.msra.mxu0 %v8774_v8  ;;  %v9973_v8 = vld [vmem:[#allocation5 + $0xe90] sm:$0xf]  ;;  %v9494_v10 = vor.u32 %v12137_v0, %v9493_v61  ;;  %v9913_v0 = vld [vmem:[#allocation5 + $0xe18] sm:$0xf] }
 0x17f   : > { %4457 = vmatpush.bf16.msra.mxu1 %v8934_v11  ;;  %v9654_v11 = vor.u32 %v12177_v3, %v9653_v1  ;;  %v12242_v1 = vld [vmem:[#allocation5 + $0xe28] sm:$0xf0] }
 0x180   : > { %4470 = vmatpush.bf16.msra.mxu2 %v9094_v13  ;;  %v9814_v13 = vor.u32 %v12217_v7, %v9813_v6  ;;  %v9594_v7 = vor.u32 %v12162_v57, %v9593_v55  ;;  %v9914_v14 = vor.u32 %v12242_v1, %v9913_v0  ;;  %v8415_v55 = vld [vmem:[#allocation5 + $0x274] sm:$0xf0]  ;;  %v12342_v1 = vld [vmem:[#allocation5 + $0x1148] sm:$0xf0] }
 0x181   : > { %4483 = vmatpush.bf16.msra.mxu3 %v9254_v18  ;;  %v9974_v18 = vor.u32 %v12257_v9, %v9973_v8  ;;  %v9413_v9 = vld [vmem:[#allocation5 + $0xa30] sm:$0xf] }
 0x182   : > { %4445 = vmatpush.bf16.msra.mxu0 %v8754_v30  ;;  %v4239_v29 = vpop.f32.mrf.mxu0  ;;  %v9634_v30 = vor.u32 %v12172_v20, %v9633_v39  ;;  %v9733_v39 = vld [vmem:[#allocation5 + $0xcb0] sm:$0xf] }
 0x183   : > { %4458 = vmatpush.bf16.msra.mxu1 %v8914_v36  ;;  %v4240_v36 = vadd.f32 %v4239_v29, %v13427_v62  ;;  %v9893_v20 = vld [vmem:[#allocation5 + $0xdf0] sm:$0xf] }
 0x184   : > { %4471 = vmatpush.bf16.msra.mxu2 %v9074_v41  ;;  %v4252_v41 = vpop.f32.mrf.mxu1  ;;  %v9894_v49 = vor.u32 %v12237_v21, %v9893_v20  ;;  %v11815_v20 = vld [vmem:[#allocation5 + $0xd4] sm:$0xf]  ;;  %v8215_v21 = vld [vmem:[#allocation5 + $0xe4] sm:$0xf0] }
 0x185   : > { %4484 = vmatpush.bf16.msra.mxu3 %v9234_v44  ;;  %4446 = vmatmul.bf16.vlgmr.msra.gmra.mxu0 %v13370_v37  ;;  %v9773_v44 = vld [vmem:[#allocation5 + $0xd00] sm:$0xf]  ;;  %v4253_v48 = vadd.f32 %v4252_v41, %v4240_v36  ;;  %v12192_v36 = vld [vmem:[#allocation5 + $0xc98] sm:$0xf0]  ;;  %v9873_v41 = vld [vmem:[#allocation5 + $0xdc8] sm:$0xf] }
 0x186   : > { %4490 = vmatpush.bf16.msrb.mxu0 %v9534_v45  ;;  %4459 = vmatmul.bf16.vlgmr.msra.gmra.mxu1 %v13374_v40  ;;  %v12207_v45 = vld [vmem:[#allocation5 + $0xd10] sm:$0xf0] }
 0x187   : > { %4503 = vmatpush.bf16.msrb.mxu1 %v9694_v46  ;;  %4472 = vmatmul.bf16.vlgmr.msra.gmra.mxu2 %v13368_v31  ;;  %v9933_v46 = vld [vmem:[#allocation5 + $0xe40] sm:$0xf] }
 0x188   : > { %4516 = vmatpush.bf16.msrb.mxu2 %v9854_v47  ;;  %4485 = vmatmul.bf16.vlgmr.msra.gmra.mxu3 %v13372_v38  ;;  %v12247_v47 = vld [vmem:[#allocation5 + $0xe50] sm:$0xf0] }
 0x189   : > { %4529 = vmatpush.bf16.msrb.mxu3 %v10014_v52  ;;  %v9774_v52 = vor.u32 %v12207_v45, %v9773_v44  ;;  %v9934_v62 = vor.u32 %v12247_v47, %v9933_v46  ;;  %v10173_v44 = vld [vmem:[#allocation5 + $0x1020] sm:$0xf]  ;;  %v12307_v45 = vld [vmem:[#allocation5 + $0x1030] sm:$0xf0]  ;;  %v9394_v47 = vor.u32 %v12112_v34, %v9393_v25  ;;  %v8375_v25 = vld [vmem:[#allocation5 + $0x224] sm:$0xf0] }
 0x18a   : > { %4491 = vmatpush.bf16.msrb.mxu0 %v9514_v58  ;;  %v4265_v56 = vpop.f32.mrf.mxu2  ;;  %v9753_v58 = vld [vmem:[#allocation5 + $0xcd8] sm:$0xf]  ;;  %v4241_v6 = vpop.f32.mrf.mxu0  ;;  %v10333_v46 = vld [vmem:[#allocation5 + $0x1160] sm:$0xf] }
 0x18b   : > { %4504 = vmatpush.bf16.msrb.mxu1 %v9674_v59  ;;  %v12202_v59 = vld [vmem:[#allocation5 + $0xce8] sm:$0xf0]  ;;  %v4278_v61 = vpop.f32.mrf.mxu3  ;;  %v8235_v6 = vld [vmem:[#allocation5 + $0x10c] sm:$0xf0] }
 0x18c   : > { %4517 = vmatpush.bf16.msrb.mxu2 %v9834_v60  ;;  %v4266_v60 = vadd.f32 %v4265_v56, %v4253_v48  ;;  %v9754_v8 = vor.u32 %v12202_v59, %v9753_v58  ;;  %v12347_v48 = vld [vmem:[#allocation5 + $0x1170] sm:$0xf0]  ;;  %v10153_v59 = vld [vmem:[#allocation5 + $0xff8] sm:$0xf] }
 0x18d   : > { %4530 = vmatpush.bf16.msrb.mxu3 %v9994_v2  ;;  %v9434_v2 = vor.u32 %v12122_v54, %v9433_v53  ;;  %v9714_v53 = vor.u32 %v12192_v36, %v9713_v33  ;;  %v11865_v54 = vld [vmem:[#allocation5 + $0x264] sm:$0xf]  ;;  %v10334_v57 = vor.u32 %v12347_v48, %v10333_v46  ;;  %v10273_v33 = vld [vmem:[#allocation5 + $0x10e8] sm:$0xf]  ;;  %v11810_v36 = vld [vmem:[#allocation5 + $0xac] sm:$0xf] }
 0x18e   : > { %4492 = vmatpush.bf16.msrb.mxu0 %v9494_v10  ;;  %v13434_v3 = vadd.f32 %v4278_v61, %v4266_v60  ;;  %v12117_v10 = vld [vmem:[#allocation5 + $0xa40] sm:$0xf0]  ;;  %v12302_v60 = vld [vmem:[#allocation5 + $0x1008] sm:$0xf0]  ;;  %v10313_v61 = vld [vmem:[#allocation5 + $0x1138] sm:$0xf]  ;;  %v8418_v0 = vor.u32 %v11865_v54, %v8415_v55 }
 0x18f   : > { %4505 = vmatpush.bf16.msrb.mxu1 %v9654_v11  ;;  %v9573_v11 = vld [vmem:[#allocation5 + $0xb70] sm:$0xf]  ;;  %v9414_v22 = vor.u32 %v12117_v10, %v9413_v9  ;;  %v10154_v9 = vor.u32 %v12302_v60, %v10153_v59  ;;  %v10314_v10 = vor.u32 %v12342_v1, %v10313_v61  ;;  %v12327_v55 = vld [vmem:[#allocation5 + $0x10d0] sm:$0xf0] }
 0x190   : > { %4518 = vmatpush.bf16.msrb.mxu2 %v9814_v13  ;;  %v4254_v13 = vpop.f32.mrf.mxu1 }
 0x191   : > { %4531 = vmatpush.bf16.msrb.mxu3 %v9974_v18  ;;  %v12197_v18 = vld [vmem:[#allocation5 + $0xcc0] sm:$0xf0]  ;;  %v10133_v13 = vld [vmem:[#allocation5 + $0xfd0] sm:$0xf] }
 0x192   : > { %4493 = vmatpush.bf16.msrb.mxu0 %v9474_v26  ;;  %v9574_v26 = vor.u32 %v12157_v15, %v9573_v11  ;;  %v9734_v29 = vor.u32 %v12197_v18, %v9733_v39  ;;  %v4267_v35 = vpop.f32.mrf.mxu2  ;;  %v10293_v15 = vld [vmem:[#allocation5 + $0x1110] sm:$0xf]  ;;  %v12337_v18 = vld [vmem:[#allocation5 + $0x1120] sm:$0xf0] }
 0x193   : > { %4506 = vmatpush.bf16.msrb.mxu1 %v9634_v30  ;;  %v9553_v30 = vld [vmem:[#allocation5 + $0xb48] sm:$0xf]  ;;  %v4280_v43 = vpop.f32.mrf.mxu3 }
 0x194   : > { %4519 = vmatpush.bf16.msrb.mxu2 %v9794_v32  ;;  %v12152_v32 = vld [vmem:[#allocation5 + $0xb58] sm:$0xf0]  ;;  %v8355_v43 = vld [vmem:[#allocation5 + $0x1fc] sm:$0xf0] }
 0x195   : > { %4532 = vmatpush.bf16.msrb.mxu3 %v9954_v42  ;;  %v12232_v42 = vld [vmem:[#allocation5 + $0xdd8] sm:$0xf0] }
 0x196   : > { %4494 = vmatpush.bf16.msrb.mxu0 %v9454_v50  ;;  %v11825_v50 = vld [vmem:[#allocation5 + $0x124] sm:$0xf]  ;;  %v9874_v56 = vor.u32 %v12232_v42, %v9873_v41  ;;  %v8195_v41 = vld [vmem:[#allocation5 + $0xbc] sm:$0xf0]  ;;  %v11850_v42 = vld [vmem:[#allocation5 + $0x1ec] sm:$0xf] }
 0x197   : > { %4507 = vmatpush.bf16.msrb.mxu1 %v9614_v51  ;;  %v8255_v51 = vld [vmem:[#allocation5 + $0x134] sm:$0xf0]  ;;  %v8358_v54 = vor.u32 %v11850_v42, %v8355_v43  ;;  %v10033_v42 = vld [vmem:[#allocation5 + $0xf08] sm:$0xf]  ;;  %v12272_v43 = vld [vmem:[#allocation5 + $0xf18] sm:$0xf0] }
 0x198   : > { %4520 = vmatpush.bf16.msrb.mxu2 %v9774_v52  ;;  %v9554_v52 = vor.u32 %v12152_v32, %v9553_v30  ;;  %v8258_v58 = vor.u32 %v11825_v50, %v8255_v51  ;;  %v10113_v30 = vld [vmem:[#allocation5 + $0xfa8] sm:$0xf]  ;;  %v12292_v32 = vld [vmem:[#allocation5 + $0xfb8] sm:$0xf0]  ;;  %v10093_v50 = vld [vmem:[#allocation5 + $0xf80] sm:$0xf] }
 0x199   : > { %4533 = vmatpush.bf16.msrb.mxu3 %v9934_v62  ;;  %v10174_v62 = vor.u32 %v12307_v45, %v10173_v44  ;;  %v10114_v44 = vor.u32 %v12292_v32, %v10113_v30  ;;  %v12287_v51 = vld [vmem:[#allocation5 + $0xf90] sm:$0xf0]  ;;  %v12317_v32 = vld [vmem:[#allocation5 + $0x1080] sm:$0xf0] }
 0x19a   : > { %4495 = vmatpush.bf16.msrb.mxu0 %v9434_v2  ;;  %v11820_v2 = vld [vmem:[#allocation5 + $0xfc] sm:$0xf]  ;;  %v10094_v60 = vor.u32 %v12287_v51, %v10093_v50 }
 0x19b   : > { %4508 = vmatpush.bf16.msrb.mxu1 %v9594_v7  ;;  %v11860_v7 = vld [vmem:[#allocation5 + $0x23c] sm:$0xf]  ;;  %v8238_v11 = vor.u32 %v11820_v2, %v8235_v6  ;;  %v12282_v2 = vld [vmem:[#allocation5 + $0xf68] sm:$0xf0]  ;;  %v10233_v6 = vld [vmem:[#allocation5 + $0x1098] sm:$0xf] }
 0x19c   : > { %4521 = vmatpush.bf16.msrb.mxu2 %v9754_v8  ;;  %v8395_v8 = vld [vmem:[#allocation5 + $0x24c] sm:$0xf0] }
 0x19d   : > { %4534 = vmatpush.bf16.msrb.mxu3 %v9914_v14  ;;  %v12297_v14 = vld [vmem:[#allocation5 + $0xfe0] sm:$0xf0]  ;;  %v8398_v39 = vor.u32 %v11860_v7, %v8395_v8 }
 0x19e   : > { %4496 = vmatpush.bf16.msrb.mxu0 %v9414_v22  ;;  %v11855_v22 = vld [vmem:[#allocation5 + $0x214] sm:$0xf]  ;;  %v10134_v34 = vor.u32 %v12297_v14, %v10133_v13  ;;  %v11840_v14 = vld [vmem:[#allocation5 + $0x19c] sm:$0xf] }
 0x19f   : > { %4509 = vmatpush.bf16.msrb.mxu1 %v9574_v26  ;;  %v10294_v26 = vor.u32 %v12337_v18, %v10293_v15  ;;  %v8378_v35 = vor.u32 %v11855_v22, %v8375_v25  ;;  %v8315_v15 = vld [vmem:[#allocation5 + $0x1ac] sm:$0xf0] }
 0x1a0   : > { %4522 = vmatpush.bf16.msrb.mxu2 %v9734_v29  ;;  %v8218_v29 = vor.u32 %v11815_v20, %v8215_v21  ;;  %v10053_v25 = vld [vmem:[#allocation5 + $0xf30] sm:$0xf]  ;;  %v8318_v30 = vor.u32 %v11840_v14, %v8315_v15 }
 0x1a1   : > { %4535 = vmatpush.bf16.msrb.mxu3 %v9894_v49  ;;  %v12332_v49 = vld [vmem:[#allocation5 + $0x10f8] sm:$0xf0]  ;;  %v8715_v15 = vld [vmem:[#allocation5 + $0x4cc] sm:$0xf0] }
 0x1a2   : > { %4497 = vmatpush.bf16.msrb.mxu0 %v9394_v47  ;;  %v4291_v45 = vpop.f32.mrf.mxu0  ;;  %v10274_v46 = vor.u32 %v12332_v49, %v10273_v33  ;;  %v8198_v47 = vor.u32 %v11810_v36, %v8195_v41  ;;  %v11795_v33 = vld [vmem:[#allocation5 + $0x34] sm:$0xf]  ;;  %v8295_v36 = vld [vmem:[#allocation5 + $0x184] sm:$0xf0] }
 0x1a3   : > { %4510 = vmatpush.bf16.msrb.mxu1 %v9554_v52  ;;  %v4292_v48 = vadd.f32 %v4291_v45, %v13434_v3  ;;  %v10253_v52 = vld [vmem:[#allocation5 + $0x10c0] sm:$0xf]  ;;  %v10073_v3 = vld [vmem:[#allocation5 + $0xf58] sm:$0xf]  ;;  %v11835_v49 = vld [vmem:[#allocation5 + $0x174] sm:$0xf] }
 0x1a4   : > { %4523 = vmatpush.bf16.msrb.mxu2 %v9714_v53  ;;  %v4304_v53 = vpop.f32.mrf.mxu1  ;;  %v10254_v61 = vor.u32 %v12327_v55, %v10253_v52  ;;  %v8298_v51 = vor.u32 %v11835_v49, %v8295_v36  ;;  %v8115_v52 = vld [vmem:[#allocation5 + $0x1c] sm:$0xf0]  ;;  %v11975_v49 = vld [vmem:[#allocation5 + $0x5d4] sm:$0xf]  ;;  %v8855_v36 = vld [vmem:[#allocation5 + $0x5e4] sm:$0xf0] }
 0x1a5   : > { %4536 = vmatpush.bf16.msrb.mxu3 %v9874_v56  ;;  %4498 = vmatmul.bf16.vlgmr.msrb.gmra.mxu0 %v13380_v19  ;;  %v11805_v56 = vld [vmem:[#allocation5 + $0x84] sm:$0xf]  ;;  %v4305_v59 = vadd.f32 %v4304_v53, %v4292_v48  ;;  %v11790_v48 = vld [vmem:[#allocation5 + $0xc] sm:$0xf] }
 0x1a6   : > { %4542 = vmatpush.bf16.msra.mxu0 %v10174_v62  ;;  %4511 = vmatmul.bf16.vlgmr.msrb.gmra.mxu1 %v13384_v24  ;;  %v8175_v62 = vld [vmem:[#allocation5 + $0x94] sm:$0xf0]  ;;  %v11830_v53 = vld [vmem:[#allocation5 + $0x14c] sm:$0xf] }
 0x1a7   : > { %4555 = vmatpush.bf16.msra.mxu1 %v10334_v57  ;;  %4524 = vmatmul.bf16.vlgmr.msrb.gmra.mxu2 %v13382_v23  ;;  %v11845_v57 = vld [vmem:[#allocation5 + $0x1c4] sm:$0xf] }
 0x1a8   : > { %4568 = vmatpush.bf16.msra.mxu2 %v8258_v58  ;;  %4537 = vmatmul.bf16.vlgmr.msrb.gmra.mxu3 %v13386_v27  ;;  %v8335_v58 = vld [vmem:[#allocation5 + $0x1d4] sm:$0xf0] }
 0x1a9   : > { %4581 = vmatpush.bf16.msra.mxu3 %v8418_v0  ;;  %v8178_v0 = vor.u32 %v11805_v56, %v8175_v62  ;;  %v8338_v7 = vor.u32 %v11845_v57, %v8335_v58  ;;  %v11905_v56 = vld [vmem:[#allocation5 + $0x3a4] sm:$0xf]  ;;  %v8575_v62 = vld [vmem:[#allocation5 + $0x3b4] sm:$0xf0]  ;;  %v10034_v58 = vor.u32 %v12272_v43, %v10033_v42  ;;  %v9015_v42 = vld [vmem:[#allocation5 + $0x724] sm:$0xf0] }
 0x1aa   : > { %4543 = vmatpush.bf16.msra.mxu0 %v10154_v9  ;;  %v4317_v1 = vpop.f32.mrf.mxu2  ;;  %v12322_v9 = vld [vmem:[#allocation5 + $0x10a8] sm:$0xf0]  ;;  %v4293_v20 = vpop.f32.mrf.mxu0  ;;  %v11945_v57 = vld [vmem:[#allocation5 + $0x4e4] sm:$0xf] }
 0x1ab   : > { %4556 = vmatpush.bf16.msra.mxu1 %v10314_v10  ;;  %v4318_v8 = vadd.f32 %v4317_v1, %v4305_v59  ;;  %v11800_v10 = vld [vmem:[#allocation5 + $0x5c] sm:$0xf]  ;;  %v4330_v13 = vpop.f32.mrf.mxu3  ;;  %v10234_v21 = vor.u32 %v12322_v9, %v10233_v6  ;;  %v8735_v59 = vld [vmem:[#allocation5 + $0x4f4] sm:$0xf0]  ;;  %v8118_v1 = vor.u32 %v11790_v48, %v8115_v52  ;;  %v8875_v20 = vld [vmem:[#allocation5 + $0x60c] sm:$0xf0] }
 0x1ac   : > { %4569 = vmatpush.bf16.msra.mxu2 %v8238_v11  ;;  %v8155_v11 = vld [vmem:[#allocation5 + $0x6c] sm:$0xf0]  ;;  %v11930_v48 = vld [vmem:[#allocation5 + $0x46c] sm:$0xf] }
 0x1ad   : > { %4582 = vmatpush.bf16.msra.mxu3 %v8398_v39  ;;  %v10074_v39 = vor.u32 %v12282_v2, %v10073_v3  ;;  %v13441_v18 = vadd.f32 %v4330_v13, %v4318_v8  ;;  %v8158_v22 = vor.u32 %v11800_v10, %v8155_v11  ;;  %v12025_v3 = vld [vmem:[#allocation5 + $0x764] sm:$0xf]  ;;  %v9055_v2 = vld [vmem:[#allocation5 + $0x774] sm:$0xf0]  ;;  %v8738_v8 = vor.u32 %v11945_v57, %v8735_v59  ;;  %v11900_v10 = vld [vmem:[#allocation5 + $0x37c] sm:$0xf] }
 0x1ae   : > { %4544 = vmatpush.bf16.msra.mxu0 %v10134_v34  ;;  %v12277_v34 = vld [vmem:[#allocation5 + $0xf40] sm:$0xf0]  ;;  %v8555_v11 = vld [vmem:[#allocation5 + $0x38c] sm:$0xf0]  ;;  %v11940_v13 = vld [vmem:[#allocation5 + $0x4bc] sm:$0xf]  ;;  %v9058_v14 = vor.u32 %v12025_v3, %v9055_v2 }
 0x1af   : > { %4557 = vmatpush.bf16.msra.mxu1 %v10294_v26  ;;  %v10213_v26 = vld [vmem:[#allocation5 + $0x1070] sm:$0xf]  ;;  %v10054_v41 = vor.u32 %v12277_v34, %v10053_v25  ;;  %v8558_v25 = vor.u32 %v11900_v10, %v8555_v11  ;;  %v8718_v34 = vor.u32 %v11940_v13, %v8715_v15  ;;  %v11970_v52 = vld [vmem:[#allocation5 + $0x5ac] sm:$0xf]  ;;  %v8975_v10 = vld [vmem:[#allocation5 + $0x6d4] sm:$0xf0] }
 0x1b0   : > { %4570 = vmatpush.bf16.msra.mxu2 %v8218_v29  ;;  %v4306_v29 = vpop.f32.mrf.mxu1  ;;  %v8475_v15 = vld [vmem:[#allocation5 + $0x2ec] sm:$0xf0] }
 0x1b1   : > { %4583 = vmatpush.bf16.msra.mxu3 %v8378_v35  ;;  %v8135_v35 = vld [vmem:[#allocation5 + $0x44] sm:$0xf0]  ;;  %v11895_v29 = vld [vmem:[#allocation5 + $0x354] sm:$0xf] }
 0x1b2   : > { %4545 = vmatpush.bf16.msra.mxu0 %v10114_v44  ;;  %v10214_v44 = vor.u32 %v12317_v32, %v10213_v26  ;;  %v8138_v45 = vor.u32 %v11795_v33, %v8135_v35  ;;  %v4319_v50 = vpop.f32.mrf.mxu2  ;;  %v11935_v32 = vld [vmem:[#allocation5 + $0x494] sm:$0xf]  ;;  %v8695_v35 = vld [vmem:[#allocation5 + $0x4a4] sm:$0xf0] }
 0x1b3   : > { %4558 = vmatpush.bf16.msra.mxu1 %v10274_v46  ;;  %v10193_v46 = vld [vmem:[#allocation5 + $0x1048] sm:$0xf]  ;;  %v4332_v55 = vpop.f32.mrf.mxu3 }
 0x1b4   : > { %4571 = vmatpush.bf16.msra.mxu2 %v8198_v47  ;;  %v12312_v47 = vld [vmem:[#allocation5 + $0x1058] sm:$0xf0]  ;;  %v12010_v55 = vld [vmem:[#allocation5 + $0x6ec] sm:$0xf] }
 0x1b5   : > { %4584 = vmatpush.bf16.msra.mxu3 %v8358_v54  ;;  %v8275_v54 = vld [vmem:[#allocation5 + $0x15c] sm:$0xf0] }
 0x1b6   : > { %4546 = vmatpush.bf16.msra.mxu0 %v10094_v60  ;;  %v11985_v60 = vld [vmem:[#allocation5 + $0x624] sm:$0xf]  ;;  %v8278_v6 = vor.u32 %v11830_v53, %v8275_v54  ;;  %v8835_v53 = vld [vmem:[#allocation5 + $0x5bc] sm:$0xf0] }
 0x1b7   : > { %4559 = vmatpush.bf16.msra.mxu1 %v10254_v61  ;;  %v8895_v61 = vld [vmem:[#allocation5 + $0x634] sm:$0xf0] }
 0x1b8   : > { %4572 = vmatpush.bf16.msra.mxu2 %v8178_v0  ;;  %v10194_v0 = vor.u32 %v12312_v47, %v10193_v46  ;;  %v8898_v9 = vor.u32 %v11985_v60, %v8895_v61  ;;  %v11890_v46 = vld [vmem:[#allocation5 + $0x32c] sm:$0xf]  ;;  %v8515_v47 = vld [vmem:[#allocation5 + $0x33c] sm:$0xf0]  ;;  %v8838_v60 = vor.u32 %v11970_v52, %v8835_v53  ;;  %v11885_v61 = vld [vmem:[#allocation5 + $0x304] sm:$0xf] }
 0x1b9   : > { %4585 = vmatpush.bf16.msra.mxu3 %v8338_v7  ;;  %v8578_v7 = vor.u32 %v11905_v56, %v8575_v62  ;;  %v8995_v56 = vld [vmem:[#allocation5 + $0x6fc] sm:$0xf0]  ;;  %v8518_v57 = vor.u32 %v11890_v46, %v8515_v47  ;;  %v8615_v47 = vld [vmem:[#allocation5 + $0x404] sm:$0xf0] }
 0x1ba   : > { %4547 = vmatpush.bf16.msra.mxu0 %v10074_v39  ;;  %v11980_v39 = vld [vmem:[#allocation5 + $0x5fc] sm:$0xf]  ;;  %v8998_v3 = vor.u32 %v12010_v55, %v8995_v56  ;;  %v8935_v52 = vld [vmem:[#allocation5 + $0x684] sm:$0xf0]  ;;  %v8435_v55 = vld [vmem:[#allocation5 + $0x29c] sm:$0xf0] }
 0x1bb   : > { %4560 = vmatpush.bf16.msra.mxu1 %v10234_v21  ;;  %v12020_v21 = vld [vmem:[#allocation5 + $0x73c] sm:$0xf]  ;;  %v8878_v26 = vor.u32 %v11980_v39, %v8875_v20 }
 0x1bc   : > { %4573 = vmatpush.bf16.msra.mxu2 %v8158_v22  ;;  %v9035_v22 = vld [vmem:[#allocation5 + $0x74c] sm:$0xf0]  ;;  %v11920_v39 = vld [vmem:[#allocation5 + $0x41c] sm:$0xf] }
 0x1bd   : > { %4586 = vmatpush.bf16.msra.mxu3 %v8318_v30  ;;  %v8535_v30 = vld [vmem:[#allocation5 + $0x364] sm:$0xf0]  ;;  %v9038_v33 = vor.u32 %v12020_v21, %v9035_v22  ;;  %v8635_v22 = vld [vmem:[#allocation5 + $0x42c] sm:$0xf0] }
 0x1be   : > { %4548 = vmatpush.bf16.msra.mxu0 %v10054_v41  ;;  %v12015_v41 = vld [vmem:[#allocation5 + $0x714] sm:$0xf]  ;;  %v8538_v43 = vor.u32 %v11895_v29, %v8535_v30  ;;  %v12000_v30 = vld [vmem:[#allocation5 + $0x69c] sm:$0xf] }
 0x1bf   : > { %4561 = vmatpush.bf16.msra.mxu1 %v10214_v44  ;;  %v8698_v44 = vor.u32 %v11935_v32, %v8695_v35  ;;  %v9018_v50 = vor.u32 %v12015_v41, %v9015_v42  ;;  %v8955_v32 = vld [vmem:[#allocation5 + $0x6ac] sm:$0xf0]  ;;  %v8638_v41 = vor.u32 %v11920_v39, %v8635_v22  ;;  %v9695_v39 = vld [vmem:[#allocation5 + $0xc74] sm:$0xf0] }
 0x1c0   : > { %4574 = vmatpush.bf16.msra.mxu2 %v8138_v45  ;;  %v8858_v45 = vor.u32 %v11975_v49, %v8855_v36  ;;  %v8958_v46 = vor.u32 %v12000_v30, %v8955_v32  ;;  %v9355_v32 = vld [vmem:[#allocation5 + $0x9cc] sm:$0xf0] }
 0x1c1   : > { %4587 = vmatpush.bf16.msra.mxu3 %v8298_v51  ;;  %v8675_v51 = vld [vmem:[#allocation5 + $0x47c] sm:$0xf0] }
 0x1c2   : > { %4549 = vmatpush.bf16.msra.mxu0 %v10034_v58  ;;  %v4343_v54 = vpop.f32.mrf.mxu0  ;;  %v8678_v59 = vor.u32 %v11930_v48, %v8675_v51  ;;  %v11955_v48 = vld [vmem:[#allocation5 + $0x534] sm:$0xf] }
 0x1c3   : > { %4562 = vmatpush.bf16.msra.mxu1 %v10194_v0  ;;  %v4344_v62 = vadd.f32 %v4343_v54, %v13441_v18  ;;  %v4356_v58 = vpop.f32.mrf.mxu1  ;;  %v8495_v0 = vld [vmem:[#allocation5 + $0x314] sm:$0xf0]  ;;  %v11995_v51 = vld [vmem:[#allocation5 + $0x674] sm:$0xf]  ;;  %v11870_v54 = vld [vmem:[#allocation5 + $0x28c] sm:$0xf] }
 0x1c4   : > { %4575 = vmatpush.bf16.msra.mxu2 %v8118_v1  ;;  %v11925_v1 = vld [vmem:[#allocation5 + $0x444] sm:$0xf]  ;;  %v8498_v11 = vor.u32 %v11885_v61, %v8495_v0  ;;  %v8755_v61 = vld [vmem:[#allocation5 + $0x51c] sm:$0xf0]  ;;  %v11990_v0 = vld [vmem:[#allocation5 + $0x64c] sm:$0xf] }
 0x1c5   : > { %4588 = vmatpush.bf16.msra.mxu3 %v8278_v6  ;;  %4550 = vmatmul.bf16.vlgmr.msra.gmra.mxu0 %v13392_v12  ;;  %v4357_v2 = vadd.f32 %v4356_v58, %v4344_v62  ;;  %v8655_v6 = vld [vmem:[#allocation5 + $0x454] sm:$0xf0]  ;;  %v8595_v58 = vld [vmem:[#allocation5 + $0x3dc] sm:$0xf0] }
 0x1c6   : > { %4594 = vmatpush.bf16.msrb.mxu0 %v8578_v7  ;;  %4563 = vmatmul.bf16.vlgmr.msra.gmra.mxu1 %v13394_v16  ;;  %v11965_v7 = vld [vmem:[#allocation5 + $0x584] sm:$0xf]  ;;  %v8658_v18 = vor.u32 %v11925_v1, %v8655_v6  ;;  %v8915_v1 = vld [vmem:[#allocation5 + $0x65c] sm:$0xf0]  ;;  %v9215_v6 = vld [vmem:[#allocation5 + $0x8b4] sm:$0xf0] }
 0x1c7   : > { %4607 = vmatpush.bf16.msrb.mxu1 %v8738_v8  ;;  %4576 = vmatmul.bf16.vlgmr.msra.gmra.mxu2 %v13358_v4  ;;  %v8815_v8 = vld [vmem:[#allocation5 + $0x594] sm:$0xf0] }
 0x1c8   : > { %4620 = vmatpush.bf16.msrb.mxu2 %v8898_v9  ;;  %4589 = vmatmul.bf16.vlgmr.msra.gmra.mxu3 %v13364_v17  ;;  %v12005_v9 = vld [vmem:[#allocation5 + $0x6c4] sm:$0xf]  ;;  %v8818_v13 = vor.u32 %v11965_v7, %v8815_v8 }
 0x1c9   : > { %4633 = vmatpush.bf16.msrb.mxu3 %v9058_v14  ;;  %v11880_v14 = vld [vmem:[#allocation5 + $0x2dc] sm:$0xf]  ;;  %v8978_v20 = vor.u32 %v12005_v9, %v8975_v10  ;;  %v12105_v7 = vld [vmem:[#allocation5 + $0x9e4] sm:$0xf]  ;;  %v8438_v9 = vor.u32 %v11870_v54, %v8435_v55  ;;  %v9375_v10 = vld [vmem:[#allocation5 + $0x9f4] sm:$0xf0] }
 0x1ca   : > { %4595 = vmatpush.bf16.msrb.mxu0 %v8558_v25  ;;  %v4369_v21 = vpop.f32.mrf.mxu2  ;;  %v11960_v25 = vld [vmem:[#allocation5 + $0x55c] sm:$0xf]  ;;  %v8478_v35 = vor.u32 %v11880_v14, %v8475_v15  ;;  %v12185_v15 = vld [vmem:[#allocation5 + $0xc64] sm:$0xf]  ;;  %v9378_v22 = vor.u32 %v12105_v7, %v9375_v10  ;;  %v9655_v54 = vld [vmem:[#allocation5 + $0xc24] sm:$0xf0] }
 0x1cb   : > { %4608 = vmatpush.bf16.msrb.mxu1 %v8718_v34  ;;  %v8795_v34 = vld [vmem:[#allocation5 + $0x56c] sm:$0xf0]  ;;  %v4382_v29 = vpop.f32.mrf.mxu3  ;;  %v4358_v49 = vpop.f32.mrf.mxu1  ;;  %v9698_v30 = vor.u32 %v12185_v15, %v9695_v39  ;;  %v12045_v10 = vld [vmem:[#allocation5 + $0x804] sm:$0xf]  ;;  %v9295_v15 = vld [vmem:[#allocation5 + $0x954] sm:$0xf0] }
 0x1cc   : > { %4621 = vmatpush.bf16.msrb.mxu2 %v8878_v26  ;;  %v4370_v26 = vadd.f32 %v4369_v21, %v4357_v2  ;;  %v8798_v42 = vor.u32 %v11960_v25, %v8795_v34  ;;  %v12065_v2 = vld [vmem:[#allocation5 + $0x8a4] sm:$0xf]  ;;  %v12060_v34 = vld [vmem:[#allocation5 + $0x87c] sm:$0xf] }
 0x1cd   : > { %4634 = vmatpush.bf16.msrb.mxu3 %v9038_v33  ;;  %v4345_v33 = vpop.f32.mrf.mxu0  ;;  %v9218_v21 = vor.u32 %v12065_v2, %v9215_v6  ;;  %v12180_v49 = vld [vmem:[#allocation5 + $0xc3c] sm:$0xf]  ;;  %v9635_v2 = vld [vmem:[#allocation5 + $0xbfc] sm:$0xf0]  ;;  %v12125_v39 = vld [vmem:[#allocation5 + $0xa84] sm:$0xf] }
 0x1ce   : > { %4596 = vmatpush.bf16.msrb.mxu0 %v8538_v43  ;;  %v13448_v36 = vadd.f32 %v4382_v29, %v4370_v26  ;;  %v11875_v43 = vld [vmem:[#allocation5 + $0x2b4] sm:$0xf]  ;;  %v9195_v26 = vld [vmem:[#allocation5 + $0x88c] sm:$0xf0]  ;;  %v12100_v29 = vld [vmem:[#allocation5 + $0x9bc] sm:$0xf] }
 0x1cf   : > { %4609 = vmatpush.bf16.msrb.mxu1 %v8698_v44  ;;  %v8455_v44 = vld [vmem:[#allocation5 + $0x2c4] sm:$0xf0]  ;;  %v12140_v33 = vld [vmem:[#allocation5 + $0xafc] sm:$0xf] }
 0x1d0   : > { %4622 = vmatpush.bf16.msrb.mxu2 %v8858_v45  ;;  %v11915_v45 = vld [vmem:[#allocation5 + $0x3f4] sm:$0xf]  ;;  %v8458_v53 = vor.u32 %v11875_v43, %v8455_v44  ;;  %v9358_v43 = vor.u32 %v12100_v29, %v9355_v32  ;;  %v9115_v32 = vld [vmem:[#allocation5 + $0x7ec] sm:$0xf0] }
 0x1d1   : > { %4635 = vmatpush.bf16.msrb.mxu3 %v9018_v50  ;;  %v8775_v50 = vld [vmem:[#allocation5 + $0x544] sm:$0xf0]  ;;  %v8618_v56 = vor.u32 %v11915_v45, %v8615_v47  ;;  %v12055_v45 = vld [vmem:[#allocation5 + $0x854] sm:$0xf] }
 0x1d2   : > { %4597 = vmatpush.bf16.msrb.mxu0 %v8518_v57  ;;  %v8778_v62 = vor.u32 %v11955_v48, %v8775_v50  ;;  %v11910_v57 = vld [vmem:[#allocation5 + $0x3cc] sm:$0xf]  ;;  %v12095_v47 = vld [vmem:[#allocation5 + $0x994] sm:$0xf]  ;;  %v9335_v50 = vld [vmem:[#allocation5 + $0x9a4] sm:$0xf0] }
 0x1d3   : > { %4610 = vmatpush.bf16.msrb.mxu1 %v8678_v59  ;;  %v11950_v59 = vld [vmem:[#allocation5 + $0x50c] sm:$0xf]  ;;  %v4384_v8 = vpop.f32.mrf.mxu3 }
 0x1d4   : > { %4623 = vmatpush.bf16.msrb.mxu2 %v8838_v60  ;;  %v8938_v60 = vor.u32 %v11995_v51, %v8935_v52  ;;  %v8758_v14 = vor.u32 %v11950_v59, %v8755_v61  ;;  %v12135_v51 = vld [vmem:[#allocation5 + $0xad4] sm:$0xf]  ;;  %v9495_v52 = vld [vmem:[#allocation5 + $0xae4] sm:$0xf0]  ;;  %v12090_v59 = vld [vmem:[#allocation5 + $0x96c] sm:$0xf] }
 0x1d5   : > { %4636 = vmatpush.bf16.msrb.mxu3 %v8998_v3  ;;  %v4371_v3 = vpop.f32.mrf.mxu2  ;;  %v9315_v61 = vld [vmem:[#allocation5 + $0x97c] sm:$0xf0] }
 0x1d6   : > { %4598 = vmatpush.bf16.msrb.mxu0 %v8498_v11  ;;  %v12145_v11 = vld [vmem:[#allocation5 + $0xb24] sm:$0xf]  ;;  %v12170_v3 = vld [vmem:[#allocation5 + $0xbec] sm:$0xf]  ;;  %v9318_v8 = vor.u32 %v12090_v59, %v9315_v61  ;;  %v12115_v59 = vld [vmem:[#allocation5 + $0xa34] sm:$0xf] }
 0x1d7   : > { %4611 = vmatpush.bf16.msrb.mxu1 %v8658_v18  ;;  %v9535_v18 = vld [vmem:[#allocation5 + $0xb34] sm:$0xf0]  ;;  %v12155_v61 = vld [vmem:[#allocation5 + $0xb74] sm:$0xf] }
 0x1d8   : > { %4624 = vmatpush.bf16.msrb.mxu2 %v8818_v13  ;;  %v8598_v13 = vor.u32 %v11910_v57, %v8595_v58  ;;  %v9538_v25 = vor.u32 %v12145_v11, %v9535_v18  ;;  %v12050_v57 = vld [vmem:[#allocation5 + $0x82c] sm:$0xf]  ;;  %v9155_v58 = vld [vmem:[#allocation5 + $0x83c] sm:$0xf0]  ;;  %v9135_v11 = vld [vmem:[#allocation5 + $0x814] sm:$0xf0] }
 0x1d9   : > { %4637 = vmatpush.bf16.msrb.mxu3 %v8978_v20  ;;  %v8918_v20 = vor.u32 %v11990_v0, %v8915_v1  ;;  %v12130_v0 = vld [vmem:[#allocation5 + $0xaac] sm:$0xf]  ;;  %v9475_v1 = vld [vmem:[#allocation5 + $0xabc] sm:$0xf0]  ;;  %v9158_v6 = vor.u32 %v12050_v57, %v9155_v58  ;;  %v12085_v18 = vld [vmem:[#allocation5 + $0x944] sm:$0xf] }
 0x1da   : > { %4599 = vmatpush.bf16.msrb.mxu0 %v8478_v35  ;;  %v9515_v35 = vld [vmem:[#allocation5 + $0xb0c] sm:$0xf0]  ;;  %v9255_v58 = vld [vmem:[#allocation5 + $0x904] sm:$0xf0] }
 0x1db   : > { %4612 = vmatpush.bf16.msrb.mxu1 %v8638_v41  ;;  %v9675_v41 = vld [vmem:[#allocation5 + $0xc4c] sm:$0xf0]  ;;  %v9518_v44 = vor.u32 %v12140_v33, %v9515_v35  ;;  %v12080_v33 = vld [vmem:[#allocation5 + $0x91c] sm:$0xf] }
 0x1dc   : > { %4625 = vmatpush.bf16.msrb.mxu2 %v8798_v42  ;;  %v9198_v42 = vor.u32 %v12060_v34, %v9195_v26  ;;  %v9678_v48 = vor.u32 %v12180_v49, %v9675_v41  ;;  %v9138_v34 = vor.u32 %v12045_v10, %v9135_v11  ;;  %v9298_v26 = vor.u32 %v12085_v18, %v9295_v15  ;;  %v9275_v41 = vld [vmem:[#allocation5 + $0x92c] sm:$0xf0]  ;;  %v12110_v10 = vld [vmem:[#allocation5 + $0xa0c] sm:$0xf]  ;;  %v9555_v15 = vld [vmem:[#allocation5 + $0xb5c] sm:$0xf0] }
 0x1dd   : > { %4638 = vmatpush.bf16.msrb.mxu3 %v8958_v46  ;;  %v9175_v46 = vld [vmem:[#allocation5 + $0x864] sm:$0xf0] }
 0x1de   : > { %4600 = vmatpush.bf16.msrb.mxu0 %v8458_v53  ;;  %v12175_v53 = vld [vmem:[#allocation5 + $0xc14] sm:$0xf]  ;;  %v9178_v55 = vor.u32 %v12055_v45, %v9175_v46  ;;  %v12160_v46 = vld [vmem:[#allocation5 + $0xb9c] sm:$0xf] }
 0x1df   : > { %4613 = vmatpush.bf16.msrb.mxu1 %v8618_v56  ;;  %v9338_v56 = vor.u32 %v12095_v47, %v9335_v50  ;;  %v9595_v47 = vld [vmem:[#allocation5 + $0xbac] sm:$0xf0] }
 0x1e0   : > { %4626 = vmatpush.bf16.msrb.mxu2 %v8778_v62  ;;  %v9498_v62 = vor.u32 %v12135_v51, %v9495_v52  ;;  %v9278_v52 = vor.u32 %v12080_v33, %v9275_v41  ;;  %v9598_v57 = vor.u32 %v12160_v46, %v9595_v47  ;;  %v12345_v33 = vld [vmem:[#allocation5 + $0x1164] sm:$0xf]  ;;  %v12260_v46 = vld [vmem:[#allocation5 + $0xebc] sm:$0xf] }
 0x1e1   : > { %4639 = vmatpush.bf16.msrb.mxu3 %v8938_v60  ;;  %v9658_v60 = vor.u32 %v12175_v53, %v9655_v54  ;;  %v12035_v54 = vld [vmem:[#allocation5 + $0x7b4] sm:$0xf] }
 0x1e2   : > { %4601 = vmatpush.bf16.msrb.mxu0 %v8438_v9  ;;  %v4395_v7 = vpop.f32.mrf.mxu0  ;;  %v9478_v9 = vor.u32 %v12130_v0, %v9475_v1  ;;  %v9575_v0 = vld [vmem:[#allocation5 + $0xb84] sm:$0xf0] }
 0x1e3   : > { %4614 = vmatpush.bf16.msrb.mxu1 %v8598_v13  ;;  %v4408_v13 = vpop.f32.mrf.mxu1  ;;  %v9578_v18 = vor.u32 %v12155_v61, %v9575_v0  ;;  %v9975_v61 = vld [vmem:[#allocation5 + $0xea4] sm:$0xf0]  ;;  %v12295_v0 = vld [vmem:[#allocation5 + $0xfd4] sm:$0xf] }
 0x1e4   : > { %4627 = vmatpush.bf16.msrb.mxu2 %v8758_v14  ;;  %v9638_v14 = vor.u32 %v12170_v3, %v9635_v2  ;;  %v12030_v3 = vld [vmem:[#allocation5 + $0x78c] sm:$0xf]  ;;  %v9075_v2 = vld [vmem:[#allocation5 + $0x79c] sm:$0xf0] }
 0x1e5   : > { %4640 = vmatpush.bf16.msrb.mxu3 %v8918_v20  ;;  %4602 = vmatmul.bf16.vlgmr.msrb.gmra.mxu0 %v13356_v63  ;;  %v9455_v20 = vld [vmem:[#allocation5 + $0xa94] sm:$0xf0] }
 0x1e6   : > { %4646 = vmatpush.bf16.msra.mxu0 %v9218_v21  ;;  %4615 = vmatmul.bf16.vlgmr.msrb.gmra.mxu1 %v13360_v5  ;;  %v4409_v21 = vadd.f32 %v4408_v13, %v4395_v7  ;;  %v9458_v29 = vor.u32 %v12125_v39, %v9455_v20  ;;  %v9395_v13 = vld [vmem:[#allocation5 + $0xa1c] sm:$0xf0]  ;;  %v12225_v20 = vld [vmem:[#allocation5 + $0xda4] sm:$0xf] }
 0x1e7   : > { %4659 = vmatpush.bf16.msra.mxu1 %v9378_v22  ;;  %4628 = vmatmul.bf16.vlgmr.msrb.gmra.mxu2 %v13370_v37  ;;  %v12165_v22 = vld [vmem:[#allocation5 + $0xbc4] sm:$0xf] }
 0x1e8   : > { %4672 = vmatpush.bf16.msra.mxu2 %v9538_v25  ;;  %4641 = vmatmul.bf16.vlgmr.msrb.gmra.mxu3 %v13374_v40  ;;  %v9615_v25 = vld [vmem:[#allocation5 + $0xbd4] sm:$0xf0] }
 0x1e9   : > { %4685 = vmatpush.bf16.msra.mxu3 %v9698_v30  ;;  %v12040_v30 = vld [vmem:[#allocation5 + $0x7dc] sm:$0xf]  ;;  %v9618_v49 = vor.u32 %v12165_v22, %v9615_v25  ;;  %v12265_v22 = vld [vmem:[#allocation5 + $0xee4] sm:$0xf]  ;;  %v9078_v25 = vor.u32 %v12030_v3, %v9075_v2  ;;  %v12335_v3 = vld [vmem:[#allocation5 + $0x1114] sm:$0xf] }
 0x1ea   : > { %4647 = vmatpush.bf16.msra.mxu0 %v9198_v42  ;;  %v4421_v35 = vpop.f32.mrf.mxu2  ;;  %v12120_v42 = vld [vmem:[#allocation5 + $0xa5c] sm:$0xf]  ;;  %v4397_v51 = vpop.f32.mrf.mxu0  ;;  %v10295_v2 = vld [vmem:[#allocation5 + $0x1124] sm:$0xf0] }
 0x1eb   : > { %4660 = vmatpush.bf16.msra.mxu1 %v9358_v43  ;;  %v9435_v43 = vld [vmem:[#allocation5 + $0xa6c] sm:$0xf0]  ;;  %v4434_v45 = vpop.f32.mrf.mxu3  ;;  %v12300_v51 = vld [vmem:[#allocation5 + $0xffc] sm:$0xf] }
 0x1ec   : > { %4673 = vmatpush.bf16.msra.mxu2 %v9518_v44  ;;  %v4422_v44 = vadd.f32 %v4421_v35, %v4409_v21  ;;  %v9438_v53 = vor.u32 %v12120_v42, %v9435_v43  ;;  %v9855_v21 = vld [vmem:[#allocation5 + $0xdb4] sm:$0xf0] }
 0x1ed   : > { %4686 = vmatpush.bf16.msra.mxu3 %v9678_v48  ;;  %v9118_v48 = vor.u32 %v12040_v30, %v9115_v32  ;;  %v9398_v32 = vor.u32 %v12110_v10, %v9395_v13  ;;  %v10335_v35 = vld [vmem:[#allocation5 + $0x1174] sm:$0xf0]  ;;  %v9858_v41 = vor.u32 %v12225_v20, %v9855_v21  ;;  %v9795_v10 = vld [vmem:[#allocation5 + $0xd3c] sm:$0xf0] }
 0x1ee   : > { %4648 = vmatpush.bf16.msra.mxu0 %v9178_v55  ;;  %v13454_v50 = vadd.f32 %v4434_v45, %v4422_v44  ;;  %v9095_v55 = vld [vmem:[#allocation5 + $0x7c4] sm:$0xf0]  ;;  %v12220_v44 = vld [vmem:[#allocation5 + $0xd7c] sm:$0xf]  ;;  %v9835_v45 = vld [vmem:[#allocation5 + $0xd8c] sm:$0xf0]  ;;  %v10338_v47 = vor.u32 %v12345_v33, %v10335_v35 }
 0x1ef   : > { %4661 = vmatpush.bf16.msra.mxu1 %v9338_v56  ;;  %v12075_v56 = vld [vmem:[#allocation5 + $0x8f4] sm:$0xf]  ;;  %v9098_v1 = vor.u32 %v12035_v54, %v9095_v55  ;;  %v10315_v54 = vld [vmem:[#allocation5 + $0x114c] sm:$0xf0]  ;;  %v9838_v55 = vor.u32 %v12220_v44, %v9835_v45  ;;  %v9955_v13 = vld [vmem:[#allocation5 + $0xe7c] sm:$0xf0] }
 0x1f0   : > { %4674 = vmatpush.bf16.msra.mxu2 %v9498_v62  ;;  %v4410_v62 = vpop.f32.mrf.mxu1  ;;  %v10275_v20 = vld [vmem:[#allocation5 + $0x10fc] sm:$0xf0]  ;;  %v10255_v44 = vld [vmem:[#allocation5 + $0x10d4] sm:$0xf0] }
 0x1f1   : > { %4687 = vmatpush.bf16.msra.mxu3 %v9658_v60  ;;  %v9415_v60 = vld [vmem:[#allocation5 + $0xa44] sm:$0xf0] }
 0x1f2   : > { %4649 = vmatpush.bf16.msra.mxu0 %v9158_v6  ;;  %v9258_v6 = vor.u32 %v12075_v56, %v9255_v58  ;;  %v9418_v7 = vor.u32 %v12115_v59, %v9415_v60  ;;  %v4423_v11 = vpop.f32.mrf.mxu2  ;;  %v9815_v58 = vld [vmem:[#allocation5 + $0xd64] sm:$0xf0]  ;;  %v12255_v59 = vld [vmem:[#allocation5 + $0xe94] sm:$0xf] }
 0x1f3   : > { %4662 = vmatpush.bf16.msra.mxu1 %v9318_v8  ;;  %v12070_v8 = vld [vmem:[#allocation5 + $0x8cc] sm:$0xf]  ;;  %v4436_v39 = vpop.f32.mrf.mxu3 }
 0x1f4   : > { %4675 = vmatpush.bf16.msra.mxu2 %v9478_v9  ;;  %v9235_v9 = vld [vmem:[#allocation5 + $0x8dc] sm:$0xf0]  ;;  %v12250_v11 = vld [vmem:[#allocation5 + $0xe6c] sm:$0xf] }
 0x1f5   : > { %4688 = vmatpush.bf16.msra.mxu3 %v9638_v14  ;;  %v12150_v14 = vld [vmem:[#allocation5 + $0xb4c] sm:$0xf]  ;;  %v9238_v30 = vor.u32 %v12070_v8, %v9235_v9 }
 0x1f6   : > { %4650 = vmatpush.bf16.msra.mxu0 %v9138_v34  ;;  %v10015_v34 = vld [vmem:[#allocation5 + $0xef4] sm:$0xf0]  ;;  %v12210_v9 = vld [vmem:[#allocation5 + $0xd2c] sm:$0xf] }
 0x1f7   : > { %4663 = vmatpush.bf16.msra.mxu1 %v9298_v26  ;;  %v12305_v26 = vld [vmem:[#allocation5 + $0x1024] sm:$0xf]  ;;  %v10018_v42 = vor.u32 %v12265_v22, %v10015_v34  ;;  %v12330_v39 = vld [vmem:[#allocation5 + $0x10ec] sm:$0xf]  ;;  %v9798_v21 = vor.u32 %v12210_v9, %v9795_v10 }
 0x1f8   : > { %4676 = vmatpush.bf16.msra.mxu2 %v9458_v29  ;;  %v10175_v29 = vld [vmem:[#allocation5 + $0x1034] sm:$0xf0]  ;;  %v10278_v35 = vor.u32 %v12330_v39, %v10275_v20  ;;  %v12190_v20 = vld [vmem:[#allocation5 + $0xc8c] sm:$0xf] }
 0x1f9   : > { %4689 = vmatpush.bf16.msra.mxu3 %v9618_v49  ;;  %v9558_v49 = vor.u32 %v12150_v14, %v9555_v15  ;;  %v10178_v43 = vor.u32 %v12305_v26, %v10175_v29  ;;  %v12290_v14 = vld [vmem:[#allocation5 + $0xfac] sm:$0xf]  ;;  %v10115_v15 = vld [vmem:[#allocation5 + $0xfbc] sm:$0xf0]  ;;  %v12205_v29 = vld [vmem:[#allocation5 + $0xd04] sm:$0xf] }
 0x1fa   : > { %4651 = vmatpush.bf16.msra.mxu0 %v9118_v48  ;;  %v9995_v48 = vld [vmem:[#allocation5 + $0xecc] sm:$0xf0]  ;;  %v10118_v34 = vor.u32 %v12290_v14, %v10115_v15  ;;  %v12315_v14 = vld [vmem:[#allocation5 + $0x1074] sm:$0xf]  ;;  %v10215_v15 = vld [vmem:[#allocation5 + $0x1084] sm:$0xf0] }
 0x1fb   : > { %4664 = vmatpush.bf16.msra.mxu1 %v9278_v52  ;;  %v10155_v52 = vld [vmem:[#allocation5 + $0x100c] sm:$0xf0]  ;;  %v9998_v56 = vor.u32 %v12260_v46, %v9995_v48 }
 0x1fc   : > { %4677 = vmatpush.bf16.msra.mxu2 %v9438_v53  ;;  %v12340_v53 = vld [vmem:[#allocation5 + $0x113c] sm:$0xf]  ;;  %v10158_v62 = vor.u32 %v12300_v51, %v10155_v52  ;;  %v9755_v52 = vld [vmem:[#allocation5 + $0xcec] sm:$0xf0] }
 0x1fd   : > { %4690 = vmatpush.bf16.msra.mxu3 %v9598_v57  ;;  %v12215_v57 = vld [vmem:[#allocation5 + $0xd54] sm:$0xf]  ;;  %v10318_v60 = vor.u32 %v12340_v53, %v10315_v54  ;;  %v12240_v53 = vld [vmem:[#allocation5 + $0xe1c] sm:$0xf] }
 0x1fe   : > { %4652 = vmatpush.bf16.msra.mxu0 %v9098_v1  ;;  %v10135_v1 = vld [vmem:[#allocation5 + $0xfe4] sm:$0xf0] }
 0x1ff   : > { %4665 = vmatpush.bf16.msra.mxu1 %v9258_v6  ;;  %v9818_v6 = vor.u32 %v12215_v57, %v9815_v58  ;;  %v10138_v8 = vor.u32 %v12295_v0, %v10135_v1  ;;  %v10075_v57 = vld [vmem:[#allocation5 + $0xf6c] sm:$0xf0] }
 0x200   : > { %4678 = vmatpush.bf16.msra.mxu2 %v9418_v7  ;;  %v9978_v7 = vor.u32 %v12255_v59, %v9975_v61  ;;  %v12320_v59 = vld [vmem:[#allocation5 + $0x109c] sm:$0xf] }
 0x201   : > { %4691 = vmatpush.bf16.msra.mxu3 %v9578_v18  ;;  %v10298_v18 = vor.u32 %v12335_v3, %v10295_v2 }
 0x202   : > { %4653 = vmatpush.bf16.msra.mxu0 %v9078_v25  ;;  %v4447_v22 = vpop.f32.mrf.mxu0  ;;  %v9958_v25 = vor.u32 %v12250_v11, %v9955_v13  ;;  %v9895_v11 = vld [vmem:[#allocation5 + $0xe04] sm:$0xf0] }
 0x203   : > { %4666 = vmatpush.bf16.msra.mxu1 %v9238_v30  ;;  %v4448_v26 = vadd.f32 %v4447_v22, %v13454_v50  ;;  %v9775_v30 = vld [vmem:[#allocation5 + $0xd14] sm:$0xf0]  ;;  %v4460_v33 = vpop.f32.mrf.mxu1  ;;  %v12200_v50 = vld [vmem:[#allocation5 + $0xcdc] sm:$0xf]  ;;  %v10055_v13 = vld [vmem:[#allocation5 + $0xf44] sm:$0xf0] }
 0x204   : > { %4679 = vmatpush.bf16.msra.mxu2 %v9398_v32  ;;  %v12245_v32 = vld [vmem:[#allocation5 + $0xe44] sm:$0xf]  ;;  %v9778_v46 = vor.u32 %v12205_v29, %v9775_v30  ;;  %v9758_v61 = vor.u32 %v12200_v50, %v9755_v52  ;;  %v12270_v29 = vld [vmem:[#allocation5 + $0xf0c] sm:$0xf]  ;;  %v8741_v52 = vld [vmem:[#allocation5 + $0x4e8] sm:$0xf] }
 0x205   : > { %4692 = vmatpush.bf16.msra.mxu3 %v9558_v49  ;;  %4654 = vmatmul.bf16.vlgmr.msra.gmra.mxu0 %v13368_v31  ;;  %v9935_v49 = vld [vmem:[#allocation5 + $0xe54] sm:$0xf0]  ;;  %v4461_v45 = vadd.f32 %v4460_v33, %v4448_v26  ;;  %v9875_v26 = vld [vmem:[#allocation5 + $0xddc] sm:$0xf0] }
 0x206   : > { %4698 = vmatpush.bf16.msrb.mxu0 %v9858_v41  ;;  %4667 = vmatmul.bf16.vlgmr.msra.gmra.mxu1 %v13372_v38  ;;  %v12285_v41 = vld [vmem:[#allocation5 + $0xf84] sm:$0xf]  ;;  %v10035_v33 = vld [vmem:[#allocation5 + $0xf1c] sm:$0xf0] }
 0x207   : > { %4711 = vmatpush.bf16.msrb.mxu1 %v10018_v42  ;;  %4680 = vmatmul.bf16.vlgmr.msra.gmra.mxu2 %v13380_v19  ;;  %v10095_v42 = vld [vmem:[#allocation5 + $0xf94] sm:$0xf0]  ;;  %v10038_v50 = vor.u32 %v12270_v29, %v10035_v33  ;;  %v11813_v29 = vld [vmem:[#allocation5 + $0xc0] sm:$0xf0] }
 0x208   : > { %4724 = vmatpush.bf16.msrb.mxu2 %v10178_v43  ;;  %4693 = vmatmul.bf16.vlgmr.msra.gmra.mxu3 %v13384_v24  ;;  %v12325_v43 = vld [vmem:[#allocation5 + $0x10c4] sm:$0xf]  ;;  %v10098_v48 = vor.u32 %v12285_v41, %v10095_v42  ;;  %v8261_v42 = vld [vmem:[#allocation5 + $0x128] sm:$0xf] }
 0x209   : > { %4737 = vmatpush.bf16.msrb.mxu3 %v10338_v47  ;;  %v9938_v47 = vor.u32 %v12245_v32, %v9935_v49  ;;  %v10258_v54 = vor.u32 %v12325_v43, %v10255_v44  ;;  %v10218_v32 = vor.u32 %v12315_v14, %v10215_v15  ;;  %v10195_v49 = vld [vmem:[#allocation5 + $0x105c] sm:$0xf0]  ;;  %v11828_v43 = vld [vmem:[#allocation5 + $0x138] sm:$0xf0]  ;;  %v8421_v44 = vld [vmem:[#allocation5 + $0x268] sm:$0xf] }
 0x20a   : > { %4699 = vmatpush.bf16.msrb.mxu0 %v9838_v55  ;;  %v4473_v51 = vpop.f32.mrf.mxu2  ;;  %v4449_v1 = vpop.f32.mrf.mxu0  ;;  %v11858_v14 = vld [vmem:[#allocation5 + $0x228] sm:$0xf0]  ;;  %v8541_v15 = vld [vmem:[#allocation5 + $0x358] sm:$0xf]  ;;  %v11853_v33 = vld [vmem:[#allocation5 + $0x200] sm:$0xf0] }
 0x20b   : > { %4712 = vmatpush.bf16.msrb.mxu1 %v9998_v56  ;;  %v4474_v55 = vadd.f32 %v4473_v51, %v4461_v45  ;;  %v9915_v56 = vld [vmem:[#allocation5 + $0xe2c] sm:$0xf0]  ;;  %v4486_v58 = vpop.f32.mrf.mxu3  ;;  %v4462_v9 = vpop.f32.mrf.mxu1  ;;  %v8561_v1 = vld [vmem:[#allocation5 + $0x380] sm:$0xf] }
 0x20c   : > { %4725 = vmatpush.bf16.msrb.mxu2 %v10158_v62  ;;  %v12280_v62 = vld [vmem:[#allocation5 + $0xf5c] sm:$0xf]  ;;  %v9918_v3 = vor.u32 %v12240_v53, %v9915_v56 }
 0x20d   : > { %4738 = vmatpush.bf16.msrb.mxu3 %v10318_v60  ;;  %v10235_v60 = vld [vmem:[#allocation5 + $0x10ac] sm:$0xf0]  ;;  %v13461_v0 = vadd.f32 %v4486_v58, %v4474_v55  ;;  %v10078_v2 = vor.u32 %v12280_v62, %v10075_v57  ;;  %v11948_v53 = vld [vmem:[#allocation5 + $0x4f8] sm:$0xf0]  ;;  %v8262_v55 = vor.u32 %v11828_v43, %v8261_v42  ;;  %v8241_v57 = vld [vmem:[#allocation5 + $0x100] sm:$0xf] }
 0x20e   : > { %4700 = vmatpush.bf16.msrb.mxu0 %v9818_v6  ;;  %v12195_v6 = vld [vmem:[#allocation5 + $0xcb4] sm:$0xf]  ;;  %v10238_v10 = vor.u32 %v12320_v59, %v10235_v60  ;;  %v8401_v59 = vld [vmem:[#allocation5 + $0x240] sm:$0xf]  ;;  %v8742_v60 = vor.u32 %v11948_v53, %v8741_v52  ;;  %v8681_v42 = vld [vmem:[#allocation5 + $0x470] sm:$0xf] }
 0x20f   : > { %4713 = vmatpush.bf16.msrb.mxu1 %v9978_v7  ;;  %v9735_v7 = vld [vmem:[#allocation5 + $0xcc4] sm:$0xf0]  ;;  %v11823_v58 = vld [vmem:[#allocation5 + $0x110] sm:$0xf0]  ;;  %v11933_v43 = vld [vmem:[#allocation5 + $0x480] sm:$0xf0] }
 0x210   : > { %4726 = vmatpush.bf16.msrb.mxu2 %v10138_v8  ;;  %v12235_v8 = vld [vmem:[#allocation5 + $0xdf4] sm:$0xf]  ;;  %v9738_v39 = vor.u32 %v12195_v6, %v9735_v7  ;;  %v8242_v7 = vor.u32 %v11823_v58, %v8241_v57  ;;  %v8341_v52 = vld [vmem:[#allocation5 + $0x1c8] sm:$0xf]  ;;  %v8682_v53 = vor.u32 %v11933_v43, %v8681_v42  ;;  %v11928_v58 = vld [vmem:[#allocation5 + $0x458] sm:$0xf0] }
 0x211   : > { %4739 = vmatpush.bf16.msrb.mxu3 %v10298_v18  ;;  %v12275_v18 = vld [vmem:[#allocation5 + $0xf34] sm:$0xf]  ;;  %v9898_v22 = vor.u32 %v12235_v8, %v9895_v11  ;;  %v11818_v11 = vld [vmem:[#allocation5 + $0xe8] sm:$0xf0]  ;;  %v8661_v57 = vld [vmem:[#allocation5 + $0x448] sm:$0xf] }
 0x212   : > { %4701 = vmatpush.bf16.msrb.mxu0 %v9798_v21  ;;  %v9715_v21 = vld [vmem:[#allocation5 + $0xc9c] sm:$0xf0]  ;;  %v4475_v30 = vpop.f32.mrf.mxu2  ;;  %v11943_v6 = vld [vmem:[#allocation5 + $0x4d0] sm:$0xf0]  ;;  %v8121_v42 = vld [vmem:[#allocation5 + $0x10] sm:$0xf] }
 0x213   : > { %4714 = vmatpush.bf16.msrb.mxu1 %v9958_v25  ;;  %v10058_v25 = vor.u32 %v12275_v18, %v10055_v13  ;;  %v4488_v41 = vpop.f32.mrf.mxu3  ;;  %v9718_v45 = vor.u32 %v12190_v20, %v9715_v21  ;;  %v8381_v18 = vld [vmem:[#allocation5 + $0x218] sm:$0xf]  ;;  %v11938_v21 = vld [vmem:[#allocation5 + $0x4a8] sm:$0xf0]  ;;  %v8361_v30 = vld [vmem:[#allocation5 + $0x1f0] sm:$0xf] }
 0x214   : > { %4727 = vmatpush.bf16.msrb.mxu2 %v10118_v34  ;;  %v12230_v34 = vld [vmem:[#allocation5 + $0xdcc] sm:$0xf]  ;;  %v8701_v20 = vld [vmem:[#allocation5 + $0x498] sm:$0xf]  ;;  %v11793_v43 = vld [vmem:[#allocation5 + $0x20] sm:$0xf0] }
 0x215   : > { %4740 = vmatpush.bf16.msrb.mxu3 %v10278_v35  ;;  %v12310_v35 = vld [vmem:[#allocation5 + $0x104c] sm:$0xf]  ;;  %v9878_v51 = vor.u32 %v12230_v34, %v9875_v26  ;;  %v8201_v26 = vld [vmem:[#allocation5 + $0xb0] sm:$0xf] }
 0x216   : > { %4702 = vmatpush.bf16.msrb.mxu0 %v9778_v46  ;;  %v11868_v46 = vld [vmem:[#allocation5 + $0x278] sm:$0xf0] }
 0x217   : > { %4715 = vmatpush.bf16.msrb.mxu1 %v9938_v47  ;;  %v8581_v47 = vld [vmem:[#allocation5 + $0x3a8] sm:$0xf]  ;;  %v8422_v56 = vor.u32 %v11868_v46, %v8421_v44 }
 0x218   : > { %4728 = vmatpush.bf16.msrb.mxu2 %v10098_v48  ;;  %v11908_v48 = vld [vmem:[#allocation5 + $0x3b8] sm:$0xf0] }
 0x219   : > { %4741 = vmatpush.bf16.msrb.mxu3 %v10258_v54  ;;  %v10198_v54 = vor.u32 %v12310_v35, %v10195_v49  ;;  %v8582_v62 = vor.u32 %v11908_v48, %v8581_v47  ;;  %v8521_v35 = vld [vmem:[#allocation5 + $0x330] sm:$0xf]  ;;  %v11893_v49 = vld [vmem:[#allocation5 + $0x340] sm:$0xf0]  ;;  %v8362_v47 = vor.u32 %v11853_v33, %v8361_v30  ;;  %v11838_v30 = vld [vmem:[#allocation5 + $0x188] sm:$0xf0] }
 0x21a   : > { %4703 = vmatpush.bf16.msrb.mxu0 %v9758_v61  ;;  %v11863_v61 = vld [vmem:[#allocation5 + $0x250] sm:$0xf0]  ;;  %v8522_v48 = vor.u32 %v11893_v49, %v8521_v35  ;;  %v11878_v33 = vld [vmem:[#allocation5 + $0x2c8] sm:$0xf0]  ;;  %v8621_v35 = vld [vmem:[#allocation5 + $0x3f8] sm:$0xf] }
 0x21b   : > { %4716 = vmatpush.bf16.msrb.mxu1 %v9918_v3  ;;  %v11903_v3 = vld [vmem:[#allocation5 + $0x390] sm:$0xf0]  ;;  %v8402_v8 = vor.u32 %v11863_v61, %v8401_v59  ;;  %v8161_v61 = vld [vmem:[#allocation5 + $0x60] sm:$0xf]  ;;  %v11918_v49 = vld [vmem:[#allocation5 + $0x408] sm:$0xf0] }
 0x21c   : > { %4729 = vmatpush.bf16.msrb.mxu2 %v10078_v2  ;;  %v8721_v2 = vld [vmem:[#allocation5 + $0x4c0] sm:$0xf]  ;;  %v8562_v9 = vor.u32 %v11903_v3, %v8561_v1  ;;  %v11803_v1 = vld [vmem:[#allocation5 + $0x70] sm:$0xf0] }
 0x21d   : > { %4742 = vmatpush.bf16.msrb.mxu3 %v10238_v10  ;;  %v8221_v10 = vld [vmem:[#allocation5 + $0xd8] sm:$0xf]  ;;  %v8722_v13 = vor.u32 %v11943_v6, %v8721_v2  ;;  %v8321_v3 = vld [vmem:[#allocation5 + $0x1a0] sm:$0xf]  ;;  %v8662_v2 = vor.u32 %v11928_v58, %v8661_v57  ;;  %v8122_v58 = vor.u32 %v11793_v43, %v8121_v42  ;;  %v12098_v43 = vld [vmem:[#allocation5 + $0x9a8] sm:$0xf0] }
 0x21e   : > { %4704 = vmatpush.bf16.msrb.mxu0 %v9738_v39  ;;  %v11898_v39 = vld [vmem:[#allocation5 + $0x368] sm:$0xf0]  ;;  %v9341_v42 = vld [vmem:[#allocation5 + $0x998] sm:$0xf] }
 0x21f   : > { %4717 = vmatpush.bf16.msrb.mxu1 %v9898_v22  ;;  %v8222_v22 = vor.u32 %v11818_v11, %v8221_v10  ;;  %v8542_v34 = vor.u32 %v11898_v39, %v8541_v15  ;;  %v8162_v15 = vor.u32 %v11803_v1, %v8161_v61 }
 0x220   : > { %4730 = vmatpush.bf16.msrb.mxu2 %v10058_v25  ;;  %v8382_v25 = vor.u32 %v11858_v14, %v8381_v18  ;;  %v8641_v18 = vld [vmem:[#allocation5 + $0x420] sm:$0xf] }
 0x221   : > { %4743 = vmatpush.bf16.msrb.mxu3 %v10218_v32  ;;  %v8702_v32 = vor.u32 %v11938_v21, %v8701_v20 }
 0x222   : > { %4705 = vmatpush.bf16.msrb.mxu0 %v9718_v45  ;;  %v4499_v41 = vpop.f32.mrf.mxu0  ;;  %v8202_v45 = vor.u32 %v11813_v29, %v8201_v26  ;;  %v8301_v26 = vld [vmem:[#allocation5 + $0x178] sm:$0xf] }
 0x223   : > { %4718 = vmatpush.bf16.msrb.mxu1 %v9878_v51  ;;  %v4500_v44 = vadd.f32 %v4499_v41, %v13461_v0  ;;  %v4512_v46 = vpop.f32.mrf.mxu1  ;;  %v8181_v51 = vld [vmem:[#allocation5 + $0x88] sm:$0xf] }
 0x224   : > { %4731 = vmatpush.bf16.msrb.mxu2 %v10038_v50  ;;  %v11808_v50 = vld [vmem:[#allocation5 + $0x98] sm:$0xf0] }
 0x225   : > { %4744 = vmatpush.bf16.msrb.mxu3 %v10198_v54  ;;  %4706 = vmatmul.bf16.vlgmr.msrb.gmra.mxu0 %v13382_v23  ;;  %v4513_v54 = vadd.f32 %v4512_v46, %v4500_v44  ;;  %v8182_v59 = vor.u32 %v11808_v50, %v8181_v51  ;;  %v8302_v44 = vor.u32 %v11838_v30, %v8301_v26  ;;  %v8281_v46 = vld [vmem:[#allocation5 + $0x150] sm:$0xf]  ;;  %v11873_v50 = vld [vmem:[#allocation5 + $0x2a0] sm:$0xf0]  ;;  %v11978_v30 = vld [vmem:[#allocation5 + $0x5e8] sm:$0xf0] }
 0x226   : > { %4750 = vmatpush.bf16.msra.mxu0 %v8262_v55  ;;  %4719 = vmatmul.bf16.vlgmr.msrb.gmra.mxu1 %v13386_v27  ;;  %v11848_v55 = vld [vmem:[#allocation5 + $0x1d8] sm:$0xf0]  ;;  %v8622_v51 = vor.u32 %v11918_v49, %v8621_v35  ;;  %v12018_v35 = vld [vmem:[#allocation5 + $0x728] sm:$0xf0]  ;;  %v9181_v49 = vld [vmem:[#allocation5 + $0x858] sm:$0xf] }
 0x227   : > { %4763 = vmatpush.bf16.msra.mxu1 %v8422_v56  ;;  %4732 = vmatmul.bf16.vlgmr.msrb.gmra.mxu2 %v13392_v12  ;;  %v8501_v56 = vld [vmem:[#allocation5 + $0x308] sm:$0xf]  ;;  %v8342_v0 = vor.u32 %v11848_v55, %v8341_v52  ;;  %v8601_v52 = vld [vmem:[#allocation5 + $0x3d0] sm:$0xf] }
 0x228   : > { %4776 = vmatpush.bf16.msra.mxu2 %v8582_v62  ;;  %4745 = vmatmul.bf16.vlgmr.msrb.gmra.mxu3 %v13394_v16  ;;  %v11888_v62 = vld [vmem:[#allocation5 + $0x318] sm:$0xf0]  ;;  %v8901_v55 = vld [vmem:[#allocation5 + $0x628] sm:$0xf] }
 0x229   : > { %4789 = vmatpush.bf16.msra.mxu3 %v8742_v60  ;;  %v8502_v60 = vor.u32 %v11888_v62, %v8501_v56  ;;  %v11988_v56 = vld [vmem:[#allocation5 + $0x638] sm:$0xf0]  ;;  %v9061_v62 = vld [vmem:[#allocation5 + $0x768] sm:$0xf] }
 0x22a   : > { %4751 = vmatpush.bf16.msra.mxu0 %v8242_v7  ;;  %v4525_v6 = vpop.f32.mrf.mxu2  ;;  %v11843_v7 = vld [vmem:[#allocation5 + $0x1b0] sm:$0xf0]  ;;  %v4501_v14 = vpop.f32.mrf.mxu0 }
 0x22b   : > { %4764 = vmatpush.bf16.msra.mxu1 %v8402_v8  ;;  %v8481_v8 = vld [vmem:[#allocation5 + $0x2e0] sm:$0xf]  ;;  %v4526_v10 = vadd.f32 %v4525_v6, %v4513_v54  ;;  %v4538_v11 = vpop.f32.mrf.mxu3  ;;  %v4514_v39 = vpop.f32.mrf.mxu1  ;;  %v8322_v21 = vor.u32 %v11843_v7, %v8321_v3  ;;  %v9381_v3 = vld [vmem:[#allocation5 + $0x9e8] sm:$0xf]  ;;  %v8902_v7 = vor.u32 %v11988_v56, %v8901_v55  ;;  %v12023_v14 = vld [vmem:[#allocation5 + $0x750] sm:$0xf0] }
 0x22c   : > { %4777 = vmatpush.bf16.msra.mxu2 %v8562_v9  ;;  %v11883_v9 = vld [vmem:[#allocation5 + $0x2f0] sm:$0xf0]  ;;  %v12093_v55 = vld [vmem:[#allocation5 + $0x980] sm:$0xf0] }
 0x22d   : > { %4790 = vmatpush.bf16.msra.mxu3 %v8722_v13  ;;  %v11923_v13 = vld [vmem:[#allocation5 + $0x430] sm:$0xf0]  ;;  %v13468_v20 = vadd.f32 %v4538_v11, %v4526_v10  ;;  %v8881_v10 = vld [vmem:[#allocation5 + $0x600] sm:$0xf] }
 0x22e   : > { %4752 = vmatpush.bf16.msra.mxu0 %v8222_v22  ;;  %v8482_v22 = vor.u32 %v11883_v9, %v8481_v8  ;;  %v8642_v29 = vor.u32 %v11923_v13, %v8641_v18  ;;  %v11983_v11 = vld [vmem:[#allocation5 + $0x610] sm:$0xf0]  ;;  %v9041_v18 = vld [vmem:[#allocation5 + $0x740] sm:$0xf] }
 0x22f   : > { %4765 = vmatpush.bf16.msra.mxu1 %v8382_v25  ;;  %v8141_v25 = vld [vmem:[#allocation5 + $0x38] sm:$0xf]  ;;  %v12063_v39 = vld [vmem:[#allocation5 + $0x890] sm:$0xf0] }
 0x230   : > { %4778 = vmatpush.bf16.msra.mxu2 %v8542_v34  ;;  %v11798_v34 = vld [vmem:[#allocation5 + $0x48] sm:$0xf0] }
 0x231   : > { %4791 = vmatpush.bf16.msra.mxu3 %v8702_v32  ;;  %v8461_v32 = vld [vmem:[#allocation5 + $0x2b8] sm:$0xf]  ;;  %v8142_v41 = vor.u32 %v11798_v34, %v8141_v25  ;;  %v8882_v25 = vor.u32 %v11983_v11, %v8881_v10  ;;  %v9042_v34 = vor.u32 %v12023_v14, %v9041_v18  ;;  %v8801_v10 = vld [vmem:[#allocation5 + $0x560] sm:$0xf]  ;;  %v11963_v11 = vld [vmem:[#allocation5 + $0x570] sm:$0xf0] }
 0x232   : > { %4753 = vmatpush.bf16.msra.mxu0 %v8202_v45  ;;  %v8462_v45 = vor.u32 %v11878_v33, %v8461_v32  ;;  %v4527_v54 = vpop.f32.mrf.mxu2  ;;  %v9021_v32 = vld [vmem:[#allocation5 + $0x718] sm:$0xf]  ;;  %v8961_v18 = vld [vmem:[#allocation5 + $0x6a0] sm:$0xf]  ;;  %v12003_v14 = vld [vmem:[#allocation5 + $0x6b0] sm:$0xf0] }
 0x233   : > { %4766 = vmatpush.bf16.msra.mxu1 %v8362_v47  ;;  %v11833_v47 = vld [vmem:[#allocation5 + $0x160] sm:$0xf0]  ;;  %v4540_v57 = vpop.f32.mrf.mxu3 }
 0x234   : > { %4779 = vmatpush.bf16.msra.mxu2 %v8522_v48  ;;  %v8441_v48 = vld [vmem:[#allocation5 + $0x290] sm:$0xf]  ;;  %v8282_v61 = vor.u32 %v11833_v47, %v8281_v46 }
 0x235   : > { %4792 = vmatpush.bf16.msra.mxu3 %v8682_v53  ;;  %v11913_v53 = vld [vmem:[#allocation5 + $0x3e0] sm:$0xf0]  ;;  %v8442_v1 = vor.u32 %v11873_v50, %v8441_v48  ;;  %v8841_v47 = vld [vmem:[#allocation5 + $0x5b0] sm:$0xf]  ;;  %v9342_v50 = vor.u32 %v12098_v43, %v9341_v42 }
 0x236   : > { %4754 = vmatpush.bf16.msra.mxu0 %v8182_v59  ;;  %v12028_v59 = vld [vmem:[#allocation5 + $0x778] sm:$0xf0]  ;;  %v8602_v6 = vor.u32 %v11913_v53, %v8601_v52  ;;  %v11973_v48 = vld [vmem:[#allocation5 + $0x5c0] sm:$0xf0]  ;;  %v9161_v52 = vld [vmem:[#allocation5 + $0x830] sm:$0xf] }
 0x237   : > { %4767 = vmatpush.bf16.msra.mxu1 %v8342_v0  ;;  %v9221_v0 = vld [vmem:[#allocation5 + $0x8a8] sm:$0xf]  ;;  %v9062_v8 = vor.u32 %v12028_v59, %v9061_v62  ;;  %v12053_v53 = vld [vmem:[#allocation5 + $0x840] sm:$0xf0]  ;;  %v8842_v56 = vor.u32 %v11973_v48, %v8841_v47  ;;  %v11968_v59 = vld [vmem:[#allocation5 + $0x598] sm:$0xf0] }
 0x238   : > { %4780 = vmatpush.bf16.msra.mxu2 %v8502_v60  ;;  %v12068_v60 = vld [vmem:[#allocation5 + $0x8b8] sm:$0xf0]  ;;  %v9162_v57 = vor.u32 %v12053_v53, %v9161_v52  ;;  %v9261_v47 = vld [vmem:[#allocation5 + $0x8f8] sm:$0xf]  ;;  %v12078_v48 = vld [vmem:[#allocation5 + $0x908] sm:$0xf0] }
 0x239   : > { %4793 = vmatpush.bf16.msra.mxu3 %v8662_v2  ;;  %v12108_v2 = vld [vmem:[#allocation5 + $0x9f8] sm:$0xf0]  ;;  %v9222_v9 = vor.u32 %v12068_v60, %v9221_v0  ;;  %v8981_v0 = vld [vmem:[#allocation5 + $0x6c8] sm:$0xf] }
 0x23a   : > { %4755 = vmatpush.bf16.msra.mxu0 %v8162_v15  ;;  %v9382_v13 = vor.u32 %v12108_v2, %v9381_v3  ;;  %v9201_v15 = vld [vmem:[#allocation5 + $0x880] sm:$0xf]  ;;  %v9141_v3 = vld [vmem:[#allocation5 + $0x808] sm:$0xf]  ;;  %v12048_v2 = vld [vmem:[#allocation5 + $0x818] sm:$0xf0] }
 0x23b   : > { %4768 = vmatpush.bf16.msra.mxu1 %v8322_v21  ;;  %v9361_v21 = vld [vmem:[#allocation5 + $0x9c0] sm:$0xf]  ;;  %v9202_v26 = vor.u32 %v12063_v39, %v9201_v15  ;;  %v12043_v39 = vld [vmem:[#allocation5 + $0x7f0] sm:$0xf0] }
 0x23c   : > { %4781 = vmatpush.bf16.msra.mxu2 %v8482_v22  ;;  %v12103_v22 = vld [vmem:[#allocation5 + $0x9d0] sm:$0xf0]  ;;  %v9121_v15 = vld [vmem:[#allocation5 + $0x7e0] sm:$0xf] }
 0x23d   : > { %4794 = vmatpush.bf16.msra.mxu3 %v8642_v29  ;;  %v8861_v29 = vld [vmem:[#allocation5 + $0x5d8] sm:$0xf]  ;;  %v9362_v33 = vor.u32 %v12103_v22, %v9361_v21  ;;  %v9281_v22 = vld [vmem:[#allocation5 + $0x920] sm:$0xf] }
 0x23e   : > { %4756 = vmatpush.bf16.msra.mxu0 %v8142_v41  ;;  %v12058_v41 = vld [vmem:[#allocation5 + $0x868] sm:$0xf0] }
 0x23f   : > { %4769 = vmatpush.bf16.msra.mxu1 %v8302_v44  ;;  %v8862_v44 = vor.u32 %v11978_v30, %v8861_v29  ;;  %v9182_v46 = vor.u32 %v12058_v41, %v9181_v49  ;;  %v11958_v49 = vld [vmem:[#allocation5 + $0x548] sm:$0xf0]  ;;  %v8941_v41 = vld [vmem:[#allocation5 + $0x678] sm:$0xf] }
 0x240   : > { %4782 = vmatpush.bf16.msra.mxu2 %v8462_v45  ;;  %v9022_v45 = vor.u32 %v12018_v35, %v9021_v32  ;;  %v8962_v32 = vor.u32 %v12003_v14, %v8961_v18  ;;  %v8781_v35 = vld [vmem:[#allocation5 + $0x538] sm:$0xf]  ;;  %v9521_v14 = vld [vmem:[#allocation5 + $0xb00] sm:$0xf] }
 0x241   : > { %4795 = vmatpush.bf16.msra.mxu3 %v8622_v51  ;;  %v9001_v51 = vld [vmem:[#allocation5 + $0x6f0] sm:$0xf] }
 0x242   : > { %4757 = vmatpush.bf16.msra.mxu0 %v8122_v58  ;;  %v4551_v54 = vpop.f32.mrf.mxu0  ;;  %v8821_v58 = vld [vmem:[#allocation5 + $0x588] sm:$0xf] }
 0x243   : > { %4770 = vmatpush.bf16.msra.mxu1 %v8282_v61 }
 0x244   : > { %4783 = vmatpush.bf16.msra.mxu2 %v8442_v1  ;;  %v12008_v1 = vld [vmem:[#allocation5 + $0x6d8] sm:$0xf0] }
 0x245   : > { %4796 = vmatpush.bf16.msra.mxu3 %v8602_v6  ;;  %4758 = vmatmul.bf16.vlgmr.msra.gmra.mxu0 %v13358_v4  ;;  %v9321_v4 = vld [vmem:[#allocation5 + $0x970] sm:$0xf]  ;;  %v9301_v6 = vld [vmem:[#allocation5 + $0x948] sm:$0xf] }
 0x246   : > { %4802 = vmatpush.bf16.msrb.mxu0 %v8902_v7  ;;  %4771 = vmatmul.bf16.vlgmr.msra.gmra.mxu1 %v13364_v17  ;;  %v4564_v17 = vpop.f32.mrf.mxu1  ;;  %v9322_v60 = vor.u32 %v12093_v55, %v9321_v4  ;;  %v12088_v7 = vld [vmem:[#allocation5 + $0x958] sm:$0xf0]  ;;  %v11993_v4 = vld [vmem:[#allocation5 + $0x660] sm:$0xf0]  ;;  %v9081_v55 = vld [vmem:[#allocation5 + $0x790] sm:$0xf] }
 0x247   : > { %4815 = vmatpush.bf16.msrb.mxu1 %v9062_v8  ;;  %4784 = vmatmul.bf16.vlgmr.msra.gmra.mxu2 %v13356_v63  ;;  %v12013_v63 = vld [vmem:[#allocation5 + $0x700] sm:$0xf0]  ;;  %v8982_v8 = vor.u32 %v12008_v1, %v8981_v0  ;;  %v9701_v0 = vld [vmem:[#allocation5 + $0xc68] sm:$0xf]  ;;  %v12188_v1 = vld [vmem:[#allocation5 + $0xc78] sm:$0xf0] }
 0x248   : > { %4828 = vmatpush.bf16.msrb.mxu2 %v9222_v9  ;;  %4797 = vmatmul.bf16.vlgmr.msra.gmra.mxu3 %v13360_v5  ;;  %v4552_v5 = vadd.f32 %v4551_v54, %v13468_v20  ;;  %v9002_v62 = vor.u32 %v12013_v63, %v9001_v51  ;;  %v8822_v20 = vor.u32 %v11968_v59, %v8821_v58  ;;  %v11953_v63 = vld [vmem:[#allocation5 + $0x520] sm:$0xf0]  ;;  %v8921_v54 = vld [vmem:[#allocation5 + $0x650] sm:$0xf]  ;;  %v9541_v58 = vld [vmem:[#allocation5 + $0xb28] sm:$0xf] }
 0x249   : > { %4841 = vmatpush.bf16.msrb.mxu3 %v9382_v13  ;;  %v9142_v9 = vor.u32 %v12048_v2, %v9141_v3  ;;  %v9302_v13 = vor.u32 %v12088_v7, %v9301_v6  ;;  %v8782_v51 = vor.u32 %v11958_v49, %v8781_v35  ;;  %v12148_v59 = vld [vmem:[#allocation5 + $0xb38] sm:$0xf0]  ;;  %v9861_v3 = vld [vmem:[#allocation5 + $0xda8] sm:$0xf]  ;;  %v8922_v7 = vor.u32 %v11993_v4, %v8921_v54  ;;  %v9501_v35 = vld [vmem:[#allocation5 + $0xad8] sm:$0xf] }
 0x24a   : > { %4803 = vmatpush.bf16.msrb.mxu0 %v8882_v25  ;;  %v13475_v61 = vadd.f32 %v4564_v17, %v4552_v5  ;;  %v4577_v21 = vpop.f32.mrf.mxu2  ;;  %v12083_v25 = vld [vmem:[#allocation5 + $0x930] sm:$0xf0]  ;;  %v9262_v5 = vor.u32 %v12078_v48, %v9261_v47  ;;  %v9241_v17 = vld [vmem:[#allocation5 + $0x8d0] sm:$0xf]  ;;  %v12228_v2 = vld [vmem:[#allocation5 + $0xdb8] sm:$0xf0]  ;;  %v9702_v18 = vor.u32 %v12188_v1, %v9701_v0 }
 0x24b   : > { %4816 = vmatpush.bf16.msrb.mxu1 %v9042_v34  ;;  %v4553_v34 = vpop.f32.mrf.mxu0  ;;  %v4590_v30 = vpop.f32.mrf.mxu3  ;;  %v9282_v43 = vor.u32 %v12083_v25, %v9281_v22  ;;  %v12183_v22 = vld [vmem:[#allocation5 + $0xc50] sm:$0xf0]  ;;  %v9841_v25 = vld [vmem:[#allocation5 + $0xd80] sm:$0xf]  ;;  %v12138_v49 = vld [vmem:[#allocation5 + $0xae8] sm:$0xf0] }
 0x24c   : > { %4829 = vmatpush.bf16.msrb.mxu2 %v9202_v26  ;;  %v8802_v26 = vor.u32 %v11963_v11, %v8801_v10  ;;  %v13477_v42 = vadd.f32 %v4590_v30, %v4577_v21  ;;  %v9542_v11 = vor.u32 %v12148_v59, %v9541_v58  ;;  %v12223_v34 = vld [vmem:[#allocation5 + $0xd90] sm:$0xf0]  ;;  %v9981_v47 = vld [vmem:[#allocation5 + $0xe98] sm:$0xf]  ;;  %v12258_v48 = vld [vmem:[#allocation5 + $0xea8] sm:$0xf0] }
 0x24d   : > { %4842 = vmatpush.bf16.msrb.mxu3 %v9362_v33  ;;  %v9122_v33 = vor.u32 %v12043_v39, %v9121_v15  ;;  %v12143_v15 = vld [vmem:[#allocation5 + $0xb10] sm:$0xf0]  ;;  %v9681_v39 = vld [vmem:[#allocation5 + $0xc40] sm:$0xf]  ;;  %v9982_v54 = vor.u32 %v12258_v48, %v9981_v47  ;;  %v12173_v4 = vld [vmem:[#allocation5 + $0xc00] sm:$0xf0] }
 0x24e   : > { %4804 = vmatpush.bf16.msrb.mxu0 %v8862_v44  ;;  %v4566_v29 = vpop.f32.mrf.mxu1  ;;  %v11998_v44 = vld [vmem:[#allocation5 + $0x688] sm:$0xf0]  ;;  %v9522_v30 = vor.u32 %v12143_v15, %v9521_v14  ;;  %v12128_v58 = vld [vmem:[#allocation5 + $0xa98] sm:$0xf0]  ;;  %v9621_v59 = vld [vmem:[#allocation5 + $0xbc8] sm:$0xf] }
 0x24f   : > { %4817 = vmatpush.bf16.msrb.mxu1 %v9022_v45  ;;  %v9101_v45 = vld [vmem:[#allocation5 + $0x7b8] sm:$0xf]  ;;  %v8942_v52 = vor.u32 %v11998_v44, %v8941_v41  ;;  %v12263_v29 = vld [vmem:[#allocation5 + $0xed0] sm:$0xf0]  ;;  %v12178_v44 = vld [vmem:[#allocation5 + $0xc28] sm:$0xf0] }
 0x250   : > { %4830 = vmatpush.bf16.msrb.mxu2 %v9182_v46  ;;  %v12038_v46 = vld [vmem:[#allocation5 + $0x7c8] sm:$0xf0]  ;;  %v9661_v41 = vld [vmem:[#allocation5 + $0xc18] sm:$0xf]  ;;  %v12168_v1 = vld [vmem:[#allocation5 + $0xbd8] sm:$0xf0] }
 0x251   : > { %4843 = vmatpush.bf16.msrb.mxu3 %v9342_v50  ;;  %v8761_v50 = vld [vmem:[#allocation5 + $0x510] sm:$0xf]  ;;  %v9102_v53 = vor.u32 %v12038_v46, %v9101_v45  ;;  %v9821_v45 = vld [vmem:[#allocation5 + $0xd58] sm:$0xf]  ;;  %v12218_v46 = vld [vmem:[#allocation5 + $0xd68] sm:$0xf0] }
 0x252   : > { %4805 = vmatpush.bf16.msrb.mxu0 %v8842_v56  ;;  %v12033_v56 = vld [vmem:[#allocation5 + $0x7a0] sm:$0xf0]  ;;  %v12163_v15 = vld [vmem:[#allocation5 + $0xbb0] sm:$0xf0]  ;;  %v9901_v47 = vld [vmem:[#allocation5 + $0xdf8] sm:$0xf] }
 0x253   : > { %4818 = vmatpush.bf16.msrb.mxu1 %v9002_v62  ;;  %v12073_v62 = vld [vmem:[#allocation5 + $0x8e0] sm:$0xf0]  ;;  %v4592_v6 = vpop.f32.mrf.mxu3  ;;  %v12238_v48 = vld [vmem:[#allocation5 + $0xe08] sm:$0xf0] }
 0x254   : > { %4831 = vmatpush.bf16.msrb.mxu2 %v9162_v57  ;;  %v4579_v57 = vpop.f32.mrf.mxu2  ;;  %v9242_v10 = vor.u32 %v12073_v62, %v9241_v17  ;;  %v9941_v6 = vld [vmem:[#allocation5 + $0xe48] sm:$0xf] }
 0x255   : > { %4844 = vmatpush.bf16.msrb.mxu3 %v9322_v60  ;;  %v8762_v60 = vor.u32 %v11953_v63, %v8761_v50  ;;  %v9662_v50 = vor.u32 %v12178_v44, %v9661_v41  ;;  %v9822_v63 = vor.u32 %v12218_v46, %v9821_v45  ;;  %v9461_v57 = vld [vmem:[#allocation5 + $0xa88] sm:$0xf]  ;;  %v12158_v44 = vld [vmem:[#allocation5 + $0xb88] sm:$0xf0]  ;;  %v9741_v45 = vld [vmem:[#allocation5 + $0xcb8] sm:$0xf] }
 0x256   : > { %4806 = vmatpush.bf16.msrb.mxu0 %v8822_v20  ;;  %v9082_v20 = vor.u32 %v12033_v56, %v9081_v55  ;;  %v9801_v55 = vld [vmem:[#allocation5 + $0xd30] sm:$0xf]  ;;  %v12198_v46 = vld [vmem:[#allocation5 + $0xcc8] sm:$0xf0] }
 0x257   : > { %4819 = vmatpush.bf16.msrb.mxu1 %v8982_v8  ;;  %v10021_v8 = vld [vmem:[#allocation5 + $0xee8] sm:$0xf] }
 0x258   : > { %4832 = vmatpush.bf16.msrb.mxu2 %v9142_v9  ;;  %v12268_v9 = vld [vmem:[#allocation5 + $0xef8] sm:$0xf0] }
 0x259   : > { %4845 = vmatpush.bf16.msrb.mxu3 %v9302_v13  ;;  %v9862_v13 = vor.u32 %v12228_v2, %v9861_v3  ;;  %v10022_v21 = vor.u32 %v12268_v9, %v10021_v8  ;;  %v9781_v3 = vld [vmem:[#allocation5 + $0xd08] sm:$0xf]  ;;  %v12208_v2 = vld [vmem:[#allocation5 + $0xd18] sm:$0xf0]  ;;  %v9622_v8 = vor.u32 %v12168_v1, %v9621_v59 }
 0x25a   : > { %4807 = vmatpush.bf16.msrb.mxu0 %v8802_v26  ;;  %v10001_v26 = vld [vmem:[#allocation5 + $0xec0] sm:$0xf]  ;;  %v9782_v9 = vor.u32 %v12208_v2, %v9781_v3  ;;  %v10541_v1 = vld [vmem:[%s13335_s24 + $0x188] sm:$0xf]  ;;  %v12401_v3 = vld [vmem:[%s13335_s24 + $0x1a0] sm:$0xf0] }
 0x25b   : > { %4820 = vmatpush.bf16.msrb.mxu1 %v8962_v32  ;;  %v9682_v32 = vor.u32 %v12183_v22, %v9681_v39  ;;  %v9761_v39 = vld [vmem:[#allocation5 + $0xce0] sm:$0xf] }
 0x25c   : > { %4833 = vmatpush.bf16.msrb.mxu2 %v9122_v33  ;;  %v9842_v33 = vor.u32 %v12223_v34, %v9841_v25  ;;  %v9921_v25 = vld [vmem:[#allocation5 + $0xe20] sm:$0xf]  ;;  %v12243_v34 = vld [vmem:[#allocation5 + $0xe30] sm:$0xf0] }
 0x25d   : > { %4846 = vmatpush.bf16.msrb.mxu3 %v9282_v43  ;;  %v10002_v43 = vor.u32 %v12263_v29, %v10001_v26 }
 0x25e   : > { %4808 = vmatpush.bf16.msrb.mxu0 %v8782_v51  ;;  %v9502_v51 = vor.u32 %v12138_v49, %v9501_v35  ;;  %v12118_v35 = vld [vmem:[#allocation5 + $0xa48] sm:$0xf0]  ;;  %v9581_v49 = vld [vmem:[#allocation5 + $0xb78] sm:$0xf] }
 0x25f   : > { %4821 = vmatpush.bf16.msrb.mxu1 %v8942_v52  ;;  %v9481_v52 = vld [vmem:[#allocation5 + $0xab0] sm:$0xf] }
 0x260   : > { %4834 = vmatpush.bf16.msrb.mxu2 %v9102_v53  ;;  %v9641_v53 = vld [vmem:[#allocation5 + $0xbf0] sm:$0xf] }
 0x261   : > { %4847 = vmatpush.bf16.msrb.mxu3 %v9262_v5  ;;  %v9961_v5 = vld [vmem:[#allocation5 + $0xe70] sm:$0xf] }
 0x262   : > { %4809 = vmatpush.bf16.msrb.mxu0 %v8762_v60  ;;  %v13483_v17 = vpop.f32.mrf.mxu0 }
 0x263   : > { %4822 = vmatpush.bf16.msrb.mxu1 %v8922_v7  ;;  %v13485_v0 = vpop.f32.mrf.mxu1  ;;  %v12248_v7 = vld [vmem:[#allocation5 + $0xe58] sm:$0xf0] }
 0x264   : > { %4835 = vmatpush.bf16.msrb.mxu2 %v9082_v20  ;;  %v9462_v20 = vor.u32 %v12128_v58, %v9461_v57  ;;  %v9942_v14 = vor.u32 %v12248_v7, %v9941_v6  ;;  %v12308_v57 = vld [vmem:[#allocation5 + $0x1038] sm:$0xf0]  ;;  %v10341_v58 = vld [vmem:[#allocation5 + $0x1168] sm:$0xf] }
 0x265   : > { %4848 = vmatpush.bf16.msrb.mxu3 %v9242_v10  ;;  %4810 = vmatmul.bf16.vlgmr.msrb.gmra.mxu0 %v13370_v37  ;;  %v12213_v37 = vld [vmem:[#allocation5 + $0xd40] sm:$0xf0]  ;;  %v9441_v10 = vld [vmem:[#allocation5 + $0xa60] sm:$0xf]  ;;  %v10765_v7 = vld [vmem:[%s13335_s24 + $0x348] sm:$0xf] }
 0x266   : > { %4854 = vmatpush.bf16.msra.mxu0 %v9542_v11  ;;  %4823 = vmatmul.bf16.vlgmr.msrb.gmra.mxu1 %v13374_v40  ;;  %v9642_v40 = vor.u32 %v12173_v4, %v9641_v53  ;;  %v9802_v62 = vor.u32 %v12213_v37, %v9801_v55  ;;  %v12123_v11 = vld [vmem:[#allocation5 + $0xa70] sm:$0xf0]  ;;  %v9561_v53 = vld [vmem:[#allocation5 + $0xb50] sm:$0xf]  ;;  %v9902_v37 = vor.u32 %v12238_v48, %v9901_v47  ;;  %v10709_v47 = vld [vmem:[%s13335_s24 + $0x2d8] sm:$0xf] }
 0x267   : > { %4867 = vmatpush.bf16.msra.mxu1 %v9702_v18  ;;  %4836 = vmatmul.bf16.vlgmr.msrb.gmra.mxu2 %v13368_v31  ;;  %v12133_v31 = vld [vmem:[#allocation5 + $0xac0] sm:$0xf0]  ;;  %v9601_v18 = vld [vmem:[#allocation5 + $0xba0] sm:$0xf]  ;;  %v9442_v26 = vor.u32 %v12123_v11, %v9441_v10  ;;  %v9721_v4 = vld [vmem:[#allocation5 + $0xc90] sm:$0xf]  ;;  %v10542_v11 = vor.u32 %v12401_v3, %v10541_v1 }
 0x268   : > { %4880 = vmatpush.bf16.msra.mxu2 %v9862_v13  ;;  %4849 = vmatmul.bf16.vlgmr.msrb.gmra.mxu3 %v13372_v38  ;;  %v12253_v38 = vld [vmem:[#allocation5 + $0xe80] sm:$0xf0]  ;;  %v9482_v56 = vor.u32 %v12133_v31, %v9481_v52  ;;  %v9582_v52 = vor.u32 %v12158_v44, %v9581_v49  ;;  %v9742_v31 = vor.u32 %v12198_v46, %v9741_v45  ;;  %v12298_v49 = vld [vmem:[#allocation5 + $0xfe8] sm:$0xf0]  ;;  %v10485_v45 = vld [vmem:[%s13335_s24 + $0x118] sm:$0xf] }
 0x269   : > { %4893 = vmatpush.bf16.msra.mxu3 %v10022_v21  ;;  %v9962_v60 = vor.u32 %v12253_v38, %v9961_v5  ;;  %v12203_v21 = vld [vmem:[#allocation5 + $0xcf0] sm:$0xf0]  ;;  %v12193_v5 = vld [vmem:[#allocation5 + $0xca0] sm:$0xf0]  ;;  %v9881_v38 = vld [vmem:[#allocation5 + $0xdd0] sm:$0xf] }
 0x26a   : > { %4855 = vmatpush.bf16.msra.mxu0 %v9522_v30  ;;  %v13487_v13 = vpop.f32.mrf.mxu2  ;;  %v4605_v29 = vpop.f32.mrf.mxu0  ;;  %v9602_v30 = vor.u32 %v12163_v15, %v9601_v18  ;;  %v9722_v6 = vor.u32 %v12193_v5, %v9721_v4  ;;  %v10161_v18 = vld [vmem:[#allocation5 + $0x1000] sm:$0xf]  ;;  %v12338_v44 = vld [vmem:[#allocation5 + $0x1128] sm:$0xf0]  ;;  %v12387_v46 = vld [vmem:[%s13335_s24 + $0x130] sm:$0xf0] }
 0x26b   : > { %4868 = vmatpush.bf16.msra.mxu1 %v9682_v32  ;;  %v13489_v22 = vpop.f32.mrf.mxu3  ;;  %v9762_v32 = vor.u32 %v12203_v21, %v9761_v39  ;;  %v4618_v41 = vpop.f32.mrf.mxu1  ;;  %v10321_v15 = vld [vmem:[#allocation5 + $0x1140] sm:$0xf]  ;;  %v12343_v21 = vld [vmem:[#allocation5 + $0x1150] sm:$0xf0]  ;;  %v12450_v29 = vld [vmem:[%s13335_s24 + $0x328] sm:$0xf0] }
 0x26c   : > { %4881 = vmatpush.bf16.msra.mxu2 %v9842_v33  ;;  %v9421_v33 = vld [vmem:[#allocation5 + $0xa38] sm:$0xf]  ;;  %v12443_v48 = vld [vmem:[%s13335_s24 + $0x2f0] sm:$0xf0]  ;;  %v10681_v4 = vld [vmem:[%s13335_s24 + $0x2a0] sm:$0xf] }
 0x26d   : > { %4894 = vmatpush.bf16.msra.mxu3 %v10002_v43  ;;  %v9922_v43 = vor.u32 %v12243_v34, %v9921_v25  ;;  %v10513_v25 = vld [vmem:[%s13335_s24 + $0x150] sm:$0xf]  ;;  %v12394_v34 = vld [vmem:[%s13335_s24 + $0x168] sm:$0xf0]  ;;  %v10301_v41 = vld [vmem:[#allocation5 + $0x1118] sm:$0xf] }
 0x26e   : > { %4856 = vmatpush.bf16.msra.mxu0 %v9502_v51  ;;  %v9422_v51 = vor.u32 %v12118_v35, %v9421_v33  ;;  %v10514_v33 = vor.u32 %v12394_v34, %v10513_v25  ;;  %v10141_v35 = vld [vmem:[#allocation5 + $0xfd8] sm:$0xf]  ;;  %v12373_v1 = vld [vmem:[%s13335_s24 + $0xc0] sm:$0xf0]  ;;  %v10653_v3 = vld [vmem:[%s13335_s24 + $0x268] sm:$0xf] }
 0x26f   : > { %4869 = vmatpush.bf16.msra.mxu1 %v9662_v50  ;;  %v9401_v50 = vld [vmem:[#allocation5 + $0xa10] sm:$0xf] }
 0x270   : > { %4882 = vmatpush.bf16.msra.mxu2 %v9822_v63  ;;  %v12113_v63 = vld [vmem:[#allocation5 + $0xa20] sm:$0xf0] }
 0x271   : > { %4895 = vmatpush.bf16.msra.mxu3 %v9982_v54  ;;  %v12153_v54 = vld [vmem:[#allocation5 + $0xb60] sm:$0xf0]  ;;  %v9402_v59 = vor.u32 %v12113_v63, %v9401_v50  ;;  %v10486_v50 = vor.u32 %v12387_v46, %v10485_v45  ;;  %v10121_v63 = vld [vmem:[#allocation5 + $0xfb0] sm:$0xf]  ;;  %v10373_v45 = vld [vmem:[%s13335_s24 + $0x38] sm:$0xf] }
 0x272   : > { %4857 = vmatpush.bf16.msra.mxu0 %v9482_v56  ;;  %v4631_v55 = vpop.f32.mrf.mxu2  ;;  %v12233_v56 = vld [vmem:[#allocation5 + $0xde0] sm:$0xf0]  ;;  %v9562_v2 = vor.u32 %v12153_v54, %v9561_v53  ;;  %v10457_v53 = vld [vmem:[%s13335_s24 + $0xe0] sm:$0xf]  ;;  %v12380_v54 = vld [vmem:[%s13335_s24 + $0xf8] sm:$0xf0] }
 0x273   : > { %4870 = vmatpush.bf16.msra.mxu1 %v9642_v40  ;;  %v4644_v40 = vpop.f32.mrf.mxu3  ;;  %v12436_v55 = vld [vmem:[%s13335_s24 + $0x2b8] sm:$0xf0]  ;;  %v10597_v46 = vld [vmem:[%s13335_s24 + $0x1f8] sm:$0xf] }
 0x274   : > { %4883 = vmatpush.bf16.msra.mxu2 %v9802_v62  ;;  %v10181_v62 = vld [vmem:[#allocation5 + $0x1028] sm:$0xf]  ;;  %v12288_v40 = vld [vmem:[#allocation5 + $0xf98] sm:$0xf0] }
 0x275   : > { %4896 = vmatpush.bf16.msra.mxu3 %v9962_v60  ;;  %v12348_v60 = vld [vmem:[#allocation5 + $0x1178] sm:$0xf0] }
 0x276   : > { %4858 = vmatpush.bf16.msra.mxu0 %v9462_v20  ;;  %v12457_v20 = vld [vmem:[%s13335_s24 + $0x360] sm:$0xf0]  ;;  %v10342_v10 = vor.u32 %v12348_v60, %v10341_v58  ;;  %v10682_v58 = vor.u32 %v12436_v55, %v10681_v4  ;;  %v10429_v60 = vld [vmem:[%s13335_s24 + $0xa8] sm:$0xf]  ;;  %v10569_v4 = vld [vmem:[%s13335_s24 + $0x1c0] sm:$0xf] }
 0x277   : > { %4871 = vmatpush.bf16.msra.mxu1 %v9622_v8  ;;  %v9882_v8 = vor.u32 %v12233_v56, %v9881_v38  ;;  %v10766_v39 = vor.u32 %v12457_v20, %v10765_v7  ;;  %v10458_v38 = vor.u32 %v12380_v54, %v10457_v53  ;;  %v10101_v56 = vld [vmem:[#allocation5 + $0xf88] sm:$0xf]  ;;  %v12352_v54 = vld [vmem:[%s13335_s24 + $0x18] sm:$0xf0] }
 0x278   : > { %4884 = vmatpush.bf16.msra.mxu2 %v9782_v9  ;;  %v10182_v9 = vor.u32 %v12308_v57, %v10181_v62  ;;  %v10261_v62 = vld [vmem:[#allocation5 + $0x10c8] sm:$0xf]  ;;  %v10102_v7 = vor.u32 %v12288_v40, %v10101_v56  ;;  %v12408_v55 = vld [vmem:[%s13335_s24 + $0x1d8] sm:$0xf0] }
 0x279   : > { %4897 = vmatpush.bf16.msra.mxu3 %v9942_v14  ;;  %v12303_v14 = vld [vmem:[#allocation5 + $0x1010] sm:$0xf0]  ;;  %v11213_v56 = vld [vmem:[%s13335_s24 + $0x6c8] sm:$0xf] }
 0x27a   : > { %4859 = vmatpush.bf16.msra.mxu0 %v9442_v26  ;;  %v10737_v26 = vld [vmem:[%s13335_s24 + $0x310] sm:$0xf] }
 0x27b   : > { %4872 = vmatpush.bf16.msra.mxu1 %v9602_v30  ;;  %v10162_v30 = vor.u32 %v12303_v14, %v10161_v18  ;;  %v10241_v18 = vld [vmem:[#allocation5 + $0x10a0] sm:$0xf] }
 0x27c   : > { %4885 = vmatpush.bf16.msra.mxu2 %v9762_v32  ;;  %v10322_v32 = vor.u32 %v12343_v21, %v10321_v15  ;;  %v12323_v15 = vld [vmem:[#allocation5 + $0x10b0] sm:$0xf0]  ;;  %v12366_v21 = vld [vmem:[%s13335_s24 + $0x88] sm:$0xf0] }
 0x27d   : > { %4898 = vmatpush.bf16.msra.mxu3 %v9922_v43  ;;  %v10738_v43 = vor.u32 %v12450_v29, %v10737_v26 }
 0x27e   : > { %4860 = vmatpush.bf16.msra.mxu0 %v9422_v51  ;;  %v10142_v51 = vor.u32 %v12298_v49, %v10141_v35  ;;  %v12278_v35 = vld [vmem:[#allocation5 + $0xf48] sm:$0xf0]  ;;  %v10221_v49 = vld [vmem:[#allocation5 + $0x1078] sm:$0xf] }
 0x27f   : > { %4873 = vmatpush.bf16.msra.mxu1 %v9582_v52  ;;  %v12293_v52 = vld [vmem:[#allocation5 + $0xfc0] sm:$0xf0] }
 0x280   : > { %4886 = vmatpush.bf16.msra.mxu2 %v9742_v31  ;;  %v10281_v31 = vld [vmem:[#allocation5 + $0x10f0] sm:$0xf] }
 0x281   : > { %4899 = vmatpush.bf16.msra.mxu3 %v9902_v37 }
 0x282   : > { %4861 = vmatpush.bf16.msra.mxu0 %v9402_v59  ;;  %v13511_v37 = vpop.f32.mrf.mxu0  ;;  %v12328_v59 = vld [vmem:[#allocation5 + $0x10d8] sm:$0xf0] }
 0x283   : > { %4874 = vmatpush.bf16.msra.mxu1 %v9562_v2  ;;  %v13513_v57 = vpop.f32.mrf.mxu1  ;;  %v12429_v2 = vld [vmem:[%s13335_s24 + $0x280] sm:$0xf0]  ;;  %v10262_v20 = vor.u32 %v12328_v59, %v10261_v62  ;;  %v12398_v59 = vld [vmem:[%s13335_s24 + $0x18c] sm:$0xf] }
 0x284   : > { %4887 = vmatpush.bf16.msra.mxu2 %v9722_v6  ;;  %v4604_v6 = vadd.f32 %v13483_v17, %v13477_v42  ;;  %v10654_v14 = vor.u32 %v12429_v2, %v10653_v3  ;;  %v10625_v42 = vld [vmem:[%s13335_s24 + $0x230] sm:$0xf]  ;;  %v12422_v17 = vld [vmem:[%s13335_s24 + $0x248] sm:$0xf0]  ;;  %v4932_v2 = vmax.f32 %v13425_v28, 0.0 }
 0x285   : > { %4900 = vmatpush.bf16.msra.mxu3 %v9882_v8  ;;  %4862 = vmatmul.bf16.vlgmr.msra.gmra.mxu0 %v13380_v19  ;;  %v10302_v19 = vor.u32 %v12338_v44, %v10301_v41  ;;  %v10430_v8 = vor.u32 %v12373_v1, %v10429_v60  ;;  %v12318_v44 = vld [vmem:[#allocation5 + $0x1088] sm:$0xf0]  ;;  %v10543_v60 = vld [vmem:[%s13335_s24 + $0x1a4] sm:$0xf0] }
 0x286   : > { %4906 = vmatpush.bf16.msrb.mxu0 %v10182_v9  ;;  %4875 = vmatmul.bf16.vlgmr.msra.gmra.mxu1 %v13384_v24  ;;  %v12333_v24 = vld [vmem:[#allocation5 + $0x1100] sm:$0xf0]  ;;  %v4617_v34 = vadd.f32 %v13485_v0, %v4604_v6  ;;  %v12359_v0 = vld [vmem:[%s13335_s24 + $0x50] sm:$0xf0]  ;;  %v4933_v6 = vmax.f32 %v13448_v36, 0.0  ;;  %v13555_v28 = vpack.c.bf16 %v4932_v2, %v4932_v2 }
 0x287   : > { %4919 = vmatpush.bf16.msrb.mxu1 %v10342_v10  ;;  %4888 = vmatmul.bf16.vlgmr.msra.gmra.mxu2 %v13382_v23  ;;  %v10710_v23 = vor.u32 %v12443_v48, %v10709_v47  ;;  %v10282_v5 = vor.u32 %v12333_v24, %v10281_v31  ;;  %v10081_v10 = vld [vmem:[#allocation5 + $0xf60] sm:$0xf]  ;;  %v12415_v47 = vld [vmem:[%s13335_s24 + $0x210] sm:$0xf0]  ;;  %v10201_v31 = vld [vmem:[#allocation5 + $0x1050] sm:$0xf] }
 0x288   : > { %6702 = vmatpush.bf16.msrb.mxu2 %v10542_v11  ;;  %4901 = vmatmul.bf16.vlgmr.msra.gmra.mxu3 %v13386_v27  ;;  %v10122_v27 = vor.u32 %v12293_v52, %v10121_v63  ;;  %v12283_v11 = vld [vmem:[#allocation5 + $0xf70] sm:$0xf0]  ;;  %v4630_v48 = vadd.f32 %v13487_v13, %v4617_v34  ;;  %v10222_v63 = vor.u32 %v12318_v44, %v10221_v49  ;;  %v10345_v24 = vld [vmem:[%s13335_s24] sm:$0xf]  ;;  %v10933_v34 = vld [vmem:[%s13335_s24 + $0x498] sm:$0xf] }
 0x289   : > { %6715 = vmatpush.bf16.msrb.mxu3 %v10766_v39  ;;  %v10401_v39 = vld [vmem:[%s13335_s24 + $0x70] sm:$0xf]  ;;  %v10082_v26 = vor.u32 %v12283_v11, %v10081_v10  ;;  %v10374_v52 = vor.u32 %v12359_v0, %v10373_v45  ;;  %v10598_v53 = vor.u32 %v12415_v47, %v10597_v46  ;;  %v10346_v3 = vor.u32 %v12352_v54, %v10345_v24  ;;  %v12506_v11 = vld [vmem:[%s13335_s24 + $0x4e8] sm:$0xf0]  ;;  %v12548_v45 = vld [vmem:[%s13335_s24 + $0x638] sm:$0xf0] }
 0x28a   : > { %4907 = vmatpush.bf16.msrb.mxu0 %v10162_v30  ;;  %v13521_v9 = vpop.f32.mrf.mxu2  ;;  %v4657_v29 = vpop.f32.mrf.mxu0  ;;  %v10242_v30 = vor.u32 %v12323_v15, %v10241_v18  ;;  %v4643_v40 = vadd.f32 %v13489_v22, %v4630_v48  ;;  %v10570_v22 = vor.u32 %v12408_v55, %v10569_v4  ;;  %v10961_v10 = vld [vmem:[%s13335_s24 + $0x4d0] sm:$0xf]  ;;  %v12562_v15 = vld [vmem:[%s13335_s24 + $0x6a8] sm:$0xf0]  ;;  %v12377_v0 = vld [vmem:[%s13335_s24 + $0xe4] sm:$0xf] }
 0x28b   : > { %4920 = vmatpush.bf16.msrb.mxu1 %v10322_v32  ;;  %v13525_v25 = vpop.f32.mrf.mxu3  ;;  %v10402_v32 = vor.u32 %v12366_v21, %v10401_v39  ;;  %v4670_v41 = vpop.f32.mrf.mxu1  ;;  %v11185_v18 = vld [vmem:[%s13335_s24 + $0x690] sm:$0xf]  ;;  %v12391_v39 = vld [vmem:[%s13335_s24 + $0x154] sm:$0xf]  ;;  %v10962_v36 = vor.u32 %v12506_v11, %v10961_v10  ;;  %v11157_v29 = vld [vmem:[%s13335_s24 + $0x658] sm:$0xf] }
 0x28c   : > { %6703 = vmatpush.bf16.msrb.mxu2 %v10514_v33  ;;  %v10061_v33 = vld [vmem:[#allocation5 + $0xf38] sm:$0xf]  ;;  %v10515_v21 = vld [vmem:[%s13335_s24 + $0x16c] sm:$0xf0]  ;;  %v10459_v46 = vld [vmem:[%s13335_s24 + $0xfc] sm:$0xf0] }
 0x28d   : > { %6716 = vmatpush.bf16.msrb.mxu3 %v10738_v43  ;;  %v10626_v43 = vor.u32 %v12422_v17, %v10625_v42  ;;  %v13557_v42 = vpack.c.bf16 %v4933_v6, %v4933_v6  ;;  %v10518_v17 = vor.u32 %v12391_v39, %v10515_v21  ;;  %v12370_v24 = vld [vmem:[%s13335_s24 + $0xac] sm:$0xf]  ;;  %v12527_v10 = vld [vmem:[%s13335_s24 + $0x590] sm:$0xf0]  ;;  %v12356_v11 = vld [vmem:[%s13335_s24 + $0x3c] sm:$0xf] }
 0x28e   : > { %4908 = vmatpush.bf16.msrb.mxu0 %v10142_v51  ;;  %v10062_v51 = vor.u32 %v12278_v35, %v10061_v33  ;;  %v12384_v33 = vld [vmem:[%s13335_s24 + $0x11c] sm:$0xf]  ;;  %v10487_v35 = vld [vmem:[%s13335_s24 + $0x134] sm:$0xf0] }
 0x28f   : > { %4921 = vmatpush.bf16.msrb.mxu1 %v10302_v19  ;;  %v10041_v19 = vld [vmem:[#allocation5 + $0xf10] sm:$0xf]  ;;  %v10490_v41 = vor.u32 %v12384_v33, %v10487_v35  ;;  %v10767_v33 = vld [vmem:[%s13335_s24 + $0x364] sm:$0xf0]  ;;  %v12510_v35 = vld [vmem:[%s13335_s24 + $0x50c] sm:$0xf] }
 0x290   : > { %6704 = vmatpush.bf16.msrb.mxu2 %v10486_v50  ;;  %v12273_v50 = vld [vmem:[#allocation5 + $0xf20] sm:$0xf0] }
 0x291   : > { %6717 = vmatpush.bf16.msrb.mxu3 %v10710_v23  ;;  %v12313_v23 = vld [vmem:[#allocation5 + $0x1060] sm:$0xf0]  ;;  %v10042_v62 = vor.u32 %v12273_v50, %v10041_v19  ;;  %v10462_v50 = vor.u32 %v12377_v0, %v10459_v46  ;;  %v12447_v46 = vld [vmem:[%s13335_s24 + $0x314] sm:$0xf] }
 0x292   : > { %4909 = vmatpush.bf16.msrb.mxu0 %v10122_v27  ;;  %v4683_v13 = vpop.f32.mrf.mxu2  ;;  %v10202_v1 = vor.u32 %v12313_v23, %v10201_v31  ;;  %v12541_v23 = vld [vmem:[%s13335_s24 + $0x600] sm:$0xf0] }
 0x293   : > { %4922 = vmatpush.bf16.msrb.mxu1 %v10282_v5  ;;  %v4696_v27 = vpop.f32.mrf.mxu3  ;;  %v10989_v5 = vld [vmem:[%s13335_s24 + $0x508] sm:$0xf] }
 0x294   : > { %6705 = vmatpush.bf16.msrb.mxu2 %v10458_v38  ;;  %v12513_v38 = vld [vmem:[%s13335_s24 + $0x520] sm:$0xf0]  ;;  %v10431_v13 = vld [vmem:[%s13335_s24 + $0xc4] sm:$0xf0]  ;;  %v10849_v27 = vld [vmem:[%s13335_s24 + $0x3f0] sm:$0xf] }
 0x295   : > { %6718 = vmatpush.bf16.msrb.mxu3 %v10682_v58  ;;  %v12569_v58 = vld [vmem:[%s13335_s24 + $0x6e0] sm:$0xf0]  ;;  %v10434_v55 = vor.u32 %v12370_v24, %v10431_v13 }
 0x296   : > { %4910 = vmatpush.bf16.msrb.mxu0 %v10102_v7  ;;  %v10990_v7 = vor.u32 %v12513_v38, %v10989_v5  ;;  %v12478_v5 = vld [vmem:[%s13335_s24 + $0x408] sm:$0xf0]  ;;  %v11073_v38 = vld [vmem:[%s13335_s24 + $0x5b0] sm:$0xf] }
 0x297   : > { %4923 = vmatpush.bf16.msrb.mxu1 %v10262_v20  ;;  %v11214_v20 = vor.u32 %v12569_v58, %v11213_v56 }
 0x298   : > { %6706 = vmatpush.bf16.msrb.mxu2 %v10430_v8  ;;  %v10546_v8 = vor.u32 %v12398_v59, %v10543_v60 }
 0x299   : > { %6719 = vmatpush.bf16.msrb.mxu3 %v10654_v14  ;;  %v4656_v14 = vadd.f32 %v13511_v37, %v4643_v40  ;;  %v11186_v37 = vor.u32 %v12562_v15, %v11185_v18  ;;  %v12363_v40 = vld [vmem:[%s13335_s24 + $0x74] sm:$0xf]  ;;  %v10375_v18 = vld [vmem:[%s13335_s24 + $0x54] sm:$0xf0]  ;;  %v10793_v15 = vld [vmem:[%s13335_s24 + $0x380] sm:$0xf] }
 0x29a   : > { %4911 = vmatpush.bf16.msrb.mxu0 %v10082_v26  ;;  %v12499_v26 = vld [vmem:[%s13335_s24 + $0x4b0] sm:$0xf0]  ;;  %v10378_v21 = vor.u32 %v12356_v11, %v10375_v18 }
 0x29b   : > { %4924 = vmatpush.bf16.msrb.mxu1 %v10242_v30  ;;  %v4669_v30 = vadd.f32 %v13513_v57, %v4656_v14  ;;  %v10934_v49 = vor.u32 %v12499_v26, %v10933_v34  ;;  %v12349_v26 = vld [vmem:[%s13335_s24 + $0x4] sm:$0xf] }
 0x29c   : > { %6707 = vmatpush.bf16.msrb.mxu2 %v10402_v32  ;;  %v12555_v32 = vld [vmem:[%s13335_s24 + $0x670] sm:$0xf0] }
 0x29d   : > { %6720 = vmatpush.bf16.msrb.mxu3 %v10626_v43  ;;  %v11158_v57 = vor.u32 %v12555_v32, %v11157_v29  ;;  %v11129_v43 = vld [vmem:[%s13335_s24 + $0x620] sm:$0xf]  ;;  %v4682_v44 = vadd.f32 %v13521_v9, %v4669_v30  ;;  %v11101_v9 = vld [vmem:[%s13335_s24 + $0x5e8] sm:$0xf]  ;;  %v12454_v30 = vld [vmem:[%s13335_s24 + $0x34c] sm:$0xf] }
 0x29e   : > { %4912 = vmatpush.bf16.msrb.mxu0 %v10062_v51  ;;  %v11130_v19 = vor.u32 %v12548_v45, %v11129_v43  ;;  %v11102_v4 = vor.u32 %v12541_v23, %v11101_v9  ;;  %v10347_v29 = vld [vmem:[%s13335_s24 + $0x1c] sm:$0xf0]  ;;  %v10770_v45 = vor.u32 %v12454_v30, %v10767_v33  ;;  %v10711_v9 = vld [vmem:[%s13335_s24 + $0x2f4] sm:$0xf0]  ;;  %v11409_v33 = vld [vmem:[%s13335_s24 + $0x850] sm:$0xf] }
 0x29f   : > { %4925 = vmatpush.bf16.msrb.mxu1 %v10222_v63  ;;  %v10877_v63 = vld [vmem:[%s13335_s24 + $0x428] sm:$0xf]  ;;  %v4695_v31 = vadd.f32 %v13525_v25, %v4682_v44  ;;  %v12534_v25 = vld [vmem:[%s13335_s24 + $0x5c8] sm:$0xf0]  ;;  %v10350_v43 = vor.u32 %v12349_v26, %v10347_v29  ;;  %v10935_v23 = vld [vmem:[%s13335_s24 + $0x4b4] sm:$0xf0] }
 0x2a0   : > { %6708 = vmatpush.bf16.msrb.mxu2 %v10374_v52  ;;  %v12485_v52 = vld [vmem:[%s13335_s24 + $0x440] sm:$0xf0]  ;;  %v11074_v2 = vor.u32 %v12534_v25, %v11073_v38  ;;  %v12426_v38 = vld [vmem:[%s13335_s24 + $0x26c] sm:$0xf]  ;;  %v10655_v25 = vld [vmem:[%s13335_s24 + $0x284] sm:$0xf0] }
 0x2a1   : > { %6721 = vmatpush.bf16.msrb.mxu3 %v10598_v53  ;;  %v10878_v54 = vor.u32 %v12485_v52, %v10877_v63  ;;  %v12440_v52 = vld [vmem:[%s13335_s24 + $0x2dc] sm:$0xf]  ;;  %v10823_v26 = vld [vmem:[%s13335_s24 + $0x3d4] sm:$0xf0] }
 0x2a2   : > { %4913 = vmatpush.bf16.msrb.mxu0 %v10042_v62  ;;  %v4707_v47 = vpop.f32.mrf.mxu0  ;;  %v10403_v62 = vld [vmem:[%s13335_s24 + $0x8c] sm:$0xf0]  ;;  %v10714_v24 = vor.u32 %v12440_v52, %v10711_v9  ;;  %v12608_v52 = vld [vmem:[%s13335_s24 + $0x81c] sm:$0xf] }
 0x2a3   : > { %4926 = vmatpush.bf16.msrb.mxu1 %v10202_v1  ;;  %v4720_v51 = vpop.f32.mrf.mxu1  ;;  %v4708_v53 = vadd.f32 %v4707_v47, %v4695_v31  ;;  %v10850_v1 = vor.u32 %v12478_v5, %v10849_v27  ;;  %v10406_v6 = vor.u32 %v12363_v40, %v10403_v62  ;;  %v10739_v47 = vld [vmem:[%s13335_s24 + $0x32c] sm:$0xf0]  ;;  %v12496_v31 = vld [vmem:[%s13335_s24 + $0x49c] sm:$0xf]  ;;  %v12482_v40 = vld [vmem:[%s13335_s24 + $0x42c] sm:$0xf] }
 0x2a4   : > { %6709 = vmatpush.bf16.msrb.mxu2 %v10346_v3  ;;  %v10938_v13 = vor.u32 %v12496_v31, %v10935_v23  ;;  %v10879_v62 = vld [vmem:[%s13335_s24 + $0x444] sm:$0xf0]  ;;  %v10773_v9 = vld [vmem:[%s13335_s24 + $0x350] sm:$0xf]  ;;  %v12458_v31 = vld [vmem:[%s13335_s24 + $0x368] sm:$0xf0] }
 0x2a5   : > { %6722 = vmatpush.bf16.msrb.mxu3 %v10570_v22  ;;  %4914 = vmatmul.bf16.vlgmr.msrb.gmra.mxu0 %v13392_v12  ;;  %v10905_v12 = vld [vmem:[%s13335_s24 + $0x460] sm:$0xf]  ;;  %v4721_v60 = vadd.f32 %v4720_v51, %v4708_v53  ;;  %v10821_v22 = vld [vmem:[%s13335_s24 + $0x3b8] sm:$0xf]  ;;  %v10963_v51 = vld [vmem:[%s13335_s24 + $0x4ec] sm:$0xf0] }
 0x2a6   : > { %6728 = vmatpush.bf16.msra.mxu0 %v10990_v7  ;;  %4927 = vmatmul.bf16.vlgmr.msrb.gmra.mxu1 %v13394_v16  ;;  %v12492_v16 = vld [vmem:[%s13335_s24 + $0x478] sm:$0xf0]  ;;  %v12471_v7 = vld [vmem:[%s13335_s24 + $0x3d0] sm:$0xf0]  ;;  %v12433_v53 = vld [vmem:[%s13335_s24 + $0x2a4] sm:$0xf] }
 0x2a7   : > { %6741 = vmatpush.bf16.msra.mxu1 %v11214_v20  ;;  %6710 = vmatmul.bf16.vlgmr.msrb.gmra.mxu2 %v13555_v28  ;;  %v10906_v48 = vor.u32 %v12492_v16, %v10905_v12  ;;  %v11045_v20 = vld [vmem:[%s13335_s24 + $0x578] sm:$0xf]  ;;  %v10822_v14 = vor.u32 %v12471_v7, %v10821_v22  ;;  %v4934_v12 = vmax.f32 %v13475_v61, 0.0  ;;  %v10851_v22 = vld [vmem:[%s13335_s24 + $0x40c] sm:$0xf0] }
 0x2a8   : > { %6723 = vmatmul.bf16.vlgmr.msrb.gmra.mxu3 %v13557_v42  ;;  %v11046_v39 = vor.u32 %v12527_v10, %v11045_v20  ;;  %v11437_v20 = vld [vmem:[%s13335_s24 + $0x888] sm:$0xf]  ;;  %v12622_v10 = vld [vmem:[%s13335_s24 + $0x88c] sm:$0xf] }
 0x2a9   : > { %6767 = vmatpush.bf16.msra.mxu3 %v10546_v8 }
 0x2aa   : > { %6729 = vmatpush.bf16.msra.mxu0 %v10962_v36  ;;  %v4733_v56 = vpop.f32.mrf.mxu2  ;;  %v4709_v59 = vpop.f32.mrf.mxu0  ;;  %v12464_v36 = vld [vmem:[%s13335_s24 + $0x398] sm:$0xf0] }
 0x2ab   : > { %6742 = vmatpush.bf16.msra.mxu1 %v11186_v37  ;;  %v4746_v58 = vpop.f32.mrf.mxu3  ;;  %v4722_v3 = vpop.f32.mrf.mxu1  ;;  %v4734_v8 = vadd.f32 %v4733_v56, %v4721_v60  ;;  %v11017_v37 = vld [vmem:[%s13335_s24 + $0x540] sm:$0xf]  ;;  %v12419_v60 = vld [vmem:[%s13335_s24 + $0x234] sm:$0xf] }
 0x2ac   : > { %v10882_v3 = vor.u32 %v12482_v40, %v10879_v62  ;;  %v11353_v40 = vld [vmem:[%s13335_s24 + $0x7e0] sm:$0xf]  ;;  %v12604_v62 = vld [vmem:[%s13335_s24 + $0x7f8] sm:$0xf0] }
 0x2ad   : > { %6768 = vmatpush.bf16.msra.mxu3 %v10518_v17  ;;  %v12520_v17 = vld [vmem:[%s13335_s24 + $0x558] sm:$0xf0]  ;;  %v4747_v34 = vadd.f32 %v4746_v58, %v4734_v8  ;;  %v12625_v8 = vld [vmem:[%s13335_s24 + $0x8a0] sm:$0xf0] }
 0x2ae   : > { %6730 = vmatpush.bf16.msra.mxu0 %v10934_v49  ;;  %v10991_v49 = vld [vmem:[%s13335_s24 + $0x524] sm:$0xf0]  ;;  %v11018_v16 = vor.u32 %v12520_v17, %v11017_v37  ;;  %v10599_v17 = vld [vmem:[%s13335_s24 + $0x214] sm:$0xf0] }
 0x2af   : > { %6743 = vmatpush.bf16.msra.mxu1 %v11158_v57  ;;  %v4935_v44 = vmax.f32 %v4747_v34, 0.0  ;;  %v10994_v0 = vor.u32 %v12510_v35, %v10991_v49  ;;  %v12468_v34 = vld [vmem:[%s13335_s24 + $0x3bc] sm:$0xf]  ;;  %v12618_v35 = vld [vmem:[%s13335_s24 + $0x868] sm:$0xf0] }
 0x2b0   : > { %v12615_v49 = vld [vmem:[%s13335_s24 + $0x854] sm:$0xf] }
 0x2b1   : > { %6769 = vmatpush.bf16.msra.mxu3 %v10490_v41  ;;  %v10794_v41 = vor.u32 %v12464_v36, %v10793_v15  ;;  %v13613_v61 = vpack.c.bf16 %v4935_v44, %v4935_v44  ;;  %v11439_v15 = vld [vmem:[%s13335_s24 + $0x8a4] sm:$0xf0] }
 0x2b2   : > { %6731 = vmatpush.bf16.msra.mxu0 %v10906_v48  ;;  %v4735_v32 = vpop.f32.mrf.mxu2  ;;  %v12503_v48 = vld [vmem:[%s13335_s24 + $0x4d4] sm:$0xf] }
 0x2b3   : > { %6744 = vmatpush.bf16.msra.mxu1 %v11130_v19  ;;  %v4748_v57 = vpop.f32.mrf.mxu3  ;;  %v13611_v19 = vpack.c.bf16 %v4934_v12, %v4934_v12  ;;  %v10966_v63 = vor.u32 %v12503_v48, %v10963_v51  ;;  %v12405_v12 = vld [vmem:[%s13335_s24 + $0x1c4] sm:$0xf]  ;;  %v12402_v48 = vld [vmem:[%s13335_s24 + $0x1a8] sm:$0xf0] }
 0x2b4   : > { %v11410_v57 = vor.u32 %v12618_v35, %v11409_v33  ;;  %v11299_v35 = vld [vmem:[%s13335_s24 + $0x78c] sm:$0xf0] }
 0x2b5   : > { %6770 = vmatpush.bf16.msra.mxu3 %v10462_v50  ;;  %v10742_v50 = vor.u32 %v12447_v46, %v10739_v47  ;;  %v10795_v46 = vld [vmem:[%s13335_s24 + $0x39c] sm:$0xf0]  ;;  %v10549_v47 = vld [vmem:[%s13335_s24 + $0x190] sm:$0xf] }
 0x2b6   : > { %6732 = vmatpush.bf16.msra.mxu0 %v10878_v54  ;;  %v10683_v54 = vld [vmem:[%s13335_s24 + $0x2bc] sm:$0xf0] }
 0x2b7   : > { %6745 = vmatpush.bf16.msra.mxu1 %v11102_v4  ;;  %v12489_v4 = vld [vmem:[%s13335_s24 + $0x464] sm:$0xf]  ;;  %v10686_v27 = vor.u32 %v12433_v53, %v10683_v54 }
 0x2b9   : > { %6771 = vmatpush.bf16.msra.mxu3 %v10434_v55  ;;  %v10907_v55 = vld [vmem:[%s13335_s24 + $0x47c] sm:$0xf0] }
 0x2ba   : > { %6733 = vmatpush.bf16.msra.mxu0 %v10850_v1  ;;  %v10910_v5 = vor.u32 %v12489_v4, %v10907_v55  ;;  %v10658_v1 = vor.u32 %v12426_v38, %v10655_v25  ;;  %v10521_v55 = vld [vmem:[%s13335_s24 + $0x158] sm:$0xf]  ;;  %v12395_v38 = vld [vmem:[%s13335_s24 + $0x170] sm:$0xf0] }
 0x2bb   : > { %6746 = vmatpush.bf16.msra.mxu1 %v11074_v2  ;;  %v10627_v2 = vld [vmem:[%s13335_s24 + $0x24c] sm:$0xf0]  ;;  %v12451_v25 = vld [vmem:[%s13335_s24 + $0x330] sm:$0xf0] }
 0x2bc   : > { %v10630_v36 = vor.u32 %v12419_v60, %v10627_v2  ;;  %v11355_v60 = vld [vmem:[%s13335_s24 + $0x7fc] sm:$0xf0]  ;;  %v10522_v2 = vor.u32 %v12395_v38, %v10521_v55  ;;  %v12566_v38 = vld [vmem:[%s13335_s24 + $0x6cc] sm:$0xf] }
 0x2bd   : > { %6772 = vmatpush.bf16.msra.mxu3 %v10406_v6  ;;  %v12475_v6 = vld [vmem:[%s13335_s24 + $0x3f4] sm:$0xf] }
 0x2be   : > { %6734 = vmatpush.bf16.msra.mxu0 %v10822_v14  ;;  %v11438_v14 = vor.u32 %v12625_v8, %v11437_v20  ;;  %v10854_v37 = vor.u32 %v12475_v6, %v10851_v22  ;;  %v12388_v22 = vld [vmem:[%s13335_s24 + $0x138] sm:$0xf0]  ;;  %v11325_v8 = vld [vmem:[%s13335_s24 + $0x7a8] sm:$0xf] }
 0x2bf   : > { %6747 = vmatpush.bf16.msra.mxu1 %v11046_v39  ;;  %v12412_v39 = vld [vmem:[%s13335_s24 + $0x1fc] sm:$0xf] }
 0x2c0   : > { %6754 = vmatpush.bf16.msra.mxu2 %v11438_v14  ;;  %v12444_v20 = vld [vmem:[%s13335_s24 + $0x2f8] sm:$0xf0]  ;;  %v11327_v14 = vld [vmem:[%s13335_s24 + $0x7c4] sm:$0xf0] }
 0x2c1   : > { %6773 = vmatpush.bf16.msra.mxu3 %v10378_v21  ;;  %v11442_v21 = vor.u32 %v12622_v10, %v11439_v15  ;;  %v12597_v10 = vld [vmem:[%s13335_s24 + $0x7c0] sm:$0xf0]  ;;  %v10465_v15 = vld [vmem:[%s13335_s24 + $0xe8] sm:$0xf] }
 0x2c2   : > { %6735 = vmatpush.bf16.msra.mxu0 %v10794_v41  ;;  %v4759_v56 = vpop.f32.mrf.mxu0  ;;  %v11411_v41 = vld [vmem:[%s13335_s24 + $0x86c] sm:$0xf0] }
 0x2c3   : > { %6748 = vmatpush.bf16.msra.mxu1 %v11018_v16  ;;  %v4772_v58 = vpop.f32.mrf.mxu1  ;;  %v10571_v16 = vld [vmem:[%s13335_s24 + $0x1dc] sm:$0xf0]  ;;  %v11414_v44 = vor.u32 %v12615_v49, %v11411_v41  ;;  %v10437_v49 = vld [vmem:[%s13335_s24 + $0xb0] sm:$0xf] }
 0x2c4   : > { %v4773_v59 = vadd.f32 %v4772_v58, %v4759_v56  ;;  %6755 = vmatpush.bf16.msra.mxu2 %v11410_v57  ;;  %v10574_v54 = vor.u32 %v12405_v12, %v10571_v16  ;;  %v10745_v56 = vld [vmem:[%s13335_s24 + $0x318] sm:$0xf]  ;;  %v12601_v58 = vld [vmem:[%s13335_s24 + $0x7e4] sm:$0xf]  ;;  %v12374_v16 = vld [vmem:[%s13335_s24 + $0xc8] sm:$0xf0] }
 0x2c5   : > { %6774 = vmatpush.bf16.msra.mxu3 %v10350_v43  ;;  %6736 = vmatmul.bf16.vlgmr.msra.gmra.mxu0 %v13611_v19  ;;  %v12461_v43 = vld [vmem:[%s13335_s24 + $0x384] sm:$0xf]  ;;  %v10746_v6 = vor.u32 %v12451_v25, %v10745_v56  ;;  %v11215_v56 = vld [vmem:[%s13335_s24 + $0x6e4] sm:$0xf0] }
 0x2c6   : > { %6780 = vmatpush.bf16.msrb.mxu0 %v10770_v45  ;;  %6749 = vmatmul.bf16.vlgmr.msra.gmra.mxu1 %v13613_v61  ;;  %v10602_v45 = vor.u32 %v12412_v39, %v10599_v17  ;;  %v10798_v4 = vor.u32 %v12461_v43, %v10795_v46  ;;  %v10689_v17 = vld [vmem:[%s13335_s24 + $0x2a8] sm:$0xf]  ;;  %v10661_v43 = vld [vmem:[%s13335_s24 + $0x270] sm:$0xf]  ;;  %v12583_v46 = vld [vmem:[%s13335_s24 + $0x750] sm:$0xf0] }
 0x2c7   : > { %6793 = vmatpush.bf16.msrb.mxu1 %v10994_v0  ;;  %v10826_v0 = vor.u32 %v12468_v34, %v10823_v26  ;;  %v12437_v34 = vld [vmem:[%s13335_s24 + $0x2c0] sm:$0xf0]  ;;  %v11297_v26 = vld [vmem:[%s13335_s24 + $0x770] sm:$0xf] }
 0x2c8   : > { %6775 = vmatmul.bf16.vlgmr.msra.gmra.mxu3 %v13555_v28  ;;  %v10690_v12 = vor.u32 %v12437_v34, %v10689_v17 }
 0x2c9   : > { %6819 = vmatpush.bf16.msrb.mxu3 %v11442_v21 }
 0x2ca   : > { %6781 = vmatpush.bf16.msrb.mxu0 %v10742_v50  ;;  %v4785_v7 = vpop.f32.mrf.mxu2  ;;  %v4761_v30 = vpop.f32.mrf.mxu0  ;;  %v11381_v50 = vld [vmem:[%s13335_s24 + $0x818] sm:$0xf] }
 0x2cb   : > { %6794 = vmatpush.bf16.msrb.mxu1 %v10966_v63  ;;  %v4786_v11 = vadd.f32 %v4785_v7, %v4773_v59  ;;  %v4798_v18 = vpop.f32.mrf.mxu3  ;;  %v4774_v32 = vpop.f32.mrf.mxu1  ;;  %v12611_v63 = vld [vmem:[%s13335_s24 + $0x830] sm:$0xf0]  ;;  %v11354_v59 = vor.u32 %v12604_v62, %v11353_v40  ;;  %v10717_v7 = vld [vmem:[%s13335_s24 + $0x2e0] sm:$0xf]  ;;  %v12590_v30 = vld [vmem:[%s13335_s24 + $0x788] sm:$0xf0] }
 0x2cc   : > { %v12587_v32 = vld [vmem:[%s13335_s24 + $0x774] sm:$0xf]  ;;  %v11298_v33 = vor.u32 %v12590_v30, %v11297_v26  ;;  %v10381_v40 = vld [vmem:[%s13335_s24 + $0x40] sm:$0xf]  ;;  %v12409_v26 = vld [vmem:[%s13335_s24 + $0x1e0] sm:$0xf0] }
 0x2cd   : > { %v13642_v29 = vadd.f32 %v4798_v18, %v4786_v11  ;;  %6820 = vmatpush.bf16.msrb.mxu3 %v11414_v44  ;;  %v12594_v11 = vld [vmem:[%s13335_s24 + $0x7ac] sm:$0xf]  ;;  %v11326_v18 = vor.u32 %v12597_v10, %v11325_v8  ;;  %v11302_v57 = vor.u32 %v12587_v32, %v11299_v35  ;;  %v12559_v8 = vld [vmem:[%s13335_s24 + $0x694] sm:$0xf]  ;;  %v11187_v10 = vld [vmem:[%s13335_s24 + $0x6ac] sm:$0xf0] }
 0x2ce   : > { %6782 = vmatpush.bf16.msrb.mxu0 %v10714_v24  ;;  %v11382_v24 = vor.u32 %v12611_v63, %v11381_v50  ;;  %v11330_v39 = vor.u32 %v12594_v11, %v11327_v14  ;;  %v12430_v44 = vld [vmem:[%s13335_s24 + $0x288] sm:$0xf0]  ;;  %v11271_v50 = vld [vmem:[%s13335_s24 + $0x754] sm:$0xf0]  ;;  %v11190_v14 = vor.u32 %v12559_v8, %v11187_v10  ;;  %v11445_v30 = vld [vmem:[%s13335_s24 + $0x890] sm:$0xf] }
 0x2cf   : > { %6795 = vmatpush.bf16.msrb.mxu1 %v10938_v13  ;;  %v11383_v13 = vld [vmem:[%s13335_s24 + $0x834] sm:$0xf0]  ;;  %v12626_v32 = vld [vmem:[%s13335_s24 + $0x8a8] sm:$0xf0]  ;;  %v10467_v10 = vld [vmem:[%s13335_s24 + $0x104] sm:$0xf0] }
 0x2d0   : > { %v11386_v53 = vor.u32 %v12608_v52, %v11383_v13  ;;  %6756 = vmatpush.bf16.msra.mxu2 %v11382_v24  ;;  %v10409_v63 = vld [vmem:[%s13335_s24 + $0x78] sm:$0xf]  ;;  %v12423_v13 = vld [vmem:[%s13335_s24 + $0x250] sm:$0xf0]  ;;  %v12378_v8 = vld [vmem:[%s13335_s24 + $0xec] sm:$0xf] }
 0x2d1   : > { %v10633_v24 = vld [vmem:[%s13335_s24 + $0x238] sm:$0xf] }
 0x2d2   : > { %6783 = vmatpush.bf16.msrb.mxu0 %v10686_v27  ;;  %v4787_v51 = vpop.f32.mrf.mxu2  ;;  %v10550_v27 = vor.u32 %v12402_v48, %v10549_v47  ;;  %6821 = vmatpush.bf16.msrb.mxu3 %v11386_v53  ;;  %v12580_v47 = vld [vmem:[%s13335_s24 + $0x73c] sm:$0xf]  ;;  %v11241_v53 = vld [vmem:[%s13335_s24 + $0x700] sm:$0xf]  ;;  %v11193_v11 = vld [vmem:[%s13335_s24 + $0x698] sm:$0xf] }
 0x2d3   : > { %6796 = vmatpush.bf16.msrb.mxu1 %v10910_v5  ;;  %v4800_v23 = vpop.f32.mrf.mxu3  ;;  %v10774_v5 = vor.u32 %v12458_v31, %v10773_v9  ;;  %v11274_v52 = vor.u32 %v12580_v47, %v11271_v50  ;;  %v10438_v9 = vor.u32 %v12374_v16, %v10437_v49  ;;  %v10662_v31 = vor.u32 %v12430_v44, %v10661_v43  ;;  %v11159_v35 = vld [vmem:[%s13335_s24 + $0x674] sm:$0xf0]  ;;  %v11165_v49 = vld [vmem:[%s13335_s24 + $0x660] sm:$0xf]  ;;  %v12556_v43 = vld [vmem:[%s13335_s24 + $0x678] sm:$0xf0] }
 0x2d4   : > { %6757 = vmatpush.bf16.msra.mxu2 %v11354_v59  ;;  %v12367_v23 = vld [vmem:[%s13335_s24 + $0x90] sm:$0xf0]  ;;  %v11221_v59 = vld [vmem:[%s13335_s24 + $0x6d0] sm:$0xf]  ;;  %v11446_v50 = vor.u32 %v12626_v32, %v11445_v30 }
 0x2d5   : > { %v10439_v30 = vld [vmem:[%s13335_s24 + $0xcc] sm:$0xf0] }
 0x2d6   : > { %6784 = vmatpush.bf16.msrb.mxu0 %v10658_v1  ;;  %v10493_v1 = vld [vmem:[%s13335_s24 + $0x120] sm:$0xf] }
 0x2d7   : > { %6797 = vmatpush.bf16.msrb.mxu1 %v10882_v3  ;;  %v11358_v3 = vor.u32 %v12601_v58, %v11355_v60  ;;  %v10494_v21 = vor.u32 %v12388_v22, %v10493_v1  ;;  %v11218_v58 = vor.u32 %v12566_v38, %v11215_v56  ;;  %v12570_v60 = vld [vmem:[%s13335_s24 + $0x6e8] sm:$0xf0]  ;;  %v10410_v1 = vor.u32 %v12367_v23, %v10409_v63  ;;  %v12416_v22 = vld [vmem:[%s13335_s24 + $0x218] sm:$0xf0]  ;;  %v12545_v23 = vld [vmem:[%s13335_s24 + $0x624] sm:$0xf] }
 0x2d8   : > { %6758 = vmatpush.bf16.msra.mxu2 %v11326_v18  ;;  %v12612_v56 = vld [vmem:[%s13335_s24 + $0x838] sm:$0xf0] }
 0x2d9   : > { %6822 = vmatpush.bf16.msrb.mxu3 %v11358_v3  ;;  %v10634_v3 = vor.u32 %v12423_v13, %v10633_v24  ;;  %v11131_v24 = vld [vmem:[%s13335_s24 + $0x63c] sm:$0xf0]  ;;  %v11137_v13 = vld [vmem:[%s13335_s24 + $0x628] sm:$0xf] }
 0x2da   : > { %6785 = vmatpush.bf16.msrb.mxu0 %v10630_v36  ;;  %v10718_v36 = vor.u32 %v12444_v20, %v10717_v7  ;;  %v11222_v7 = vor.u32 %v12570_v60, %v11221_v59  ;;  %v11103_v59 = vld [vmem:[%s13335_s24 + $0x604] sm:$0xf0]  ;;  %v11109_v60 = vld [vmem:[%s13335_s24 + $0x5f0] sm:$0xf] }
 0x2db   : > { %6798 = vmatpush.bf16.msrb.mxu1 %v10854_v37  ;;  %v12381_v37 = vld [vmem:[%s13335_s24 + $0x100] sm:$0xf0] }
 0x2dc   : > { %v10466_v41 = vor.u32 %v12381_v37, %v10465_v15  ;;  %6759 = vmatpush.bf16.msra.mxu2 %v11298_v33  ;;  %v12563_v15 = vld [vmem:[%s13335_s24 + $0x6b0] sm:$0xf0]  ;;  %v12552_v33 = vld [vmem:[%s13335_s24 + $0x65c] sm:$0xf] }
 0x2dd   : > { %6823 = vmatpush.bf16.msrb.mxu3 %v11330_v39  ;;  %v10353_v39 = vld [vmem:[%s13335_s24 + $0x8] sm:$0xf]  ;;  %v11194_v37 = vor.u32 %v12563_v15, %v11193_v11  ;;  %v11162_v16 = vor.u32 %v12552_v33, %v11159_v35  ;;  %v12531_v11 = vld [vmem:[%s13335_s24 + $0x5b4] sm:$0xf]  ;;  %v12524_v33 = vld [vmem:[%s13335_s24 + $0x57c] sm:$0xf] }
 0x2de   : > { %6786 = vmatpush.bf16.msrb.mxu0 %v10602_v45  ;;  %v11047_v35 = vld [vmem:[%s13335_s24 + $0x594] sm:$0xf0] }
 0x2df   : > { %6799 = vmatpush.bf16.msrb.mxu1 %v10826_v0  ;;  %v11269_v0 = vld [vmem:[%s13335_s24 + $0x738] sm:$0xf] }
 0x2e0   : > { %v11270_v51 = vor.u32 %v12583_v46, %v11269_v0  ;;  %v11166_v0 = vor.u32 %v12556_v43, %v11165_v49  ;;  %v11053_v49 = vld [vmem:[%s13335_s24 + $0x580] sm:$0xf] }
 0x2e1   : > { %6824 = vmatpush.bf16.msrb.mxu3 %v11302_v57  ;;  %v12399_v57 = vld [vmem:[%s13335_s24 + $0x194] sm:$0xf] }
 0x2e2   : > { %6787 = vmatpush.bf16.msrb.mxu0 %v10574_v54  ;;  %v13690_v45 = vpop.f32.mrf.mxu0  ;;  %6760 = vmatpush.bf16.msra.mxu2 %v11270_v51  ;;  %v12576_v54 = vld [vmem:[%s13335_s24 + $0x718] sm:$0xf0]  ;;  %v11417_v51 = vld [vmem:[%s13335_s24 + $0x858] sm:$0xf] }
 0x2e3   : > { %6800 = vmatpush.bf16.msrb.mxu1 %v10798_v4  ;;  %v13695_v48 = vpop.f32.mrf.mxu1  ;;  %v12573_v4 = vld [vmem:[%s13335_s24 + $0x704] sm:$0xf] }
 0x2e5   : > { %6788 = vmatmul.bf16.vlgmr.msrb.gmra.mxu0 %v13557_v42  ;;  %6825 = vmatpush.bf16.msrb.mxu3 %v11274_v52  ;;  %v12619_v52 = vld [vmem:[%s13335_s24 + $0x870] sm:$0xf0] }
 0x2e6   : > { %6832 = vmatpush.bf16.msra.mxu0 %v10550_v27  ;;  %6801 = vmatmul.bf16.vlgmr.msrb.gmra.mxu1 %v13611_v19  ;;  %v11242_v27 = vor.u32 %v12576_v54, %v11241_v53  ;;  %v11134_v53 = vor.u32 %v12545_v23, %v11131_v24  ;;  %v12549_v54 = vld [vmem:[%s13335_s24 + $0x640] sm:$0xf0] }
 0x2e7   : > { %6845 = vmatpush.bf16.msra.mxu1 %v10774_v5  ;;  %v11243_v5 = vld [vmem:[%s13335_s24 + $0x71c] sm:$0xf0]  ;;  %v12521_v23 = vld [vmem:[%s13335_s24 + $0x560] sm:$0xf0] }
 0x2e8   : > { %v11246_v62 = vor.u32 %v12573_v4, %v11243_v5  ;;  %6761 = vmatpush.bf16.msra.mxu2 %v11242_v27  ;;  %v11389_v4 = vld [vmem:[%s13335_s24 + $0x820] sm:$0xf]  ;;  %v11138_v27 = vor.u32 %v12549_v54, %v11137_v13  ;;  %v11418_v5 = vor.u32 %v12619_v52, %v11417_v51  ;;  %v10411_v51 = vld [vmem:[%s13335_s24 + $0x94] sm:$0xf0]  ;;  %v11025_v52 = vld [vmem:[%s13335_s24 + $0x548] sm:$0xf] }
 0x2e9   : > { %v11026_v24 = vor.u32 %v12521_v23, %v11025_v52 }
 0x2ea   : > { %6833 = vmatpush.bf16.msra.mxu0 %v10522_v2  ;;  %v13705_v55 = vpop.f32.mrf.mxu2  ;;  %v12360_v2 = vld [vmem:[%s13335_s24 + $0x58] sm:$0xf0]  ;;  %v4813_v20 = vpop.f32.mrf.mxu0  ;;  %6826 = vmatpush.bf16.msrb.mxu3 %v11246_v62  ;;  %v10495_v62 = vld [vmem:[%s13335_s24 + $0x13c] sm:$0xf0] }
 0x2eb   : > { %6846 = vmatpush.bf16.msra.mxu1 %v10746_v6  ;;  %v13710_v25 = vpop.f32.mrf.mxu3  ;;  %v10605_v6 = vld [vmem:[%s13335_s24 + $0x200] sm:$0xf]  ;;  %v4826_v18 = vpop.f32.mrf.mxu1  ;;  %v10382_v17 = vor.u32 %v12360_v2, %v10381_v40  ;;  %v12385_v40 = vld [vmem:[%s13335_s24 + $0x124] sm:$0xf]  ;;  %v11361_v2 = vld [vmem:[%s13335_s24 + $0x7e8] sm:$0xf] }
 0x2ec   : > { %6806 = vmatpush.bf16.msrb.mxu2 %v11218_v58  ;;  %v10606_v34 = vor.u32 %v12416_v22, %v10605_v6  ;;  %v12538_v58 = vld [vmem:[%s13335_s24 + $0x5ec] sm:$0xf]  ;;  %v11390_v22 = vor.u32 %v12612_v56, %v11389_v4  ;;  %v12605_v20 = vld [vmem:[%s13335_s24 + $0x800] sm:$0xf0]  ;;  %v11075_v18 = vld [vmem:[%s13335_s24 + $0x5cc] sm:$0xf0] }
 0x2ed   : > { %v11078_v15 = vor.u32 %v12531_v11, %v11075_v18  ;;  %v11277_v4 = vld [vmem:[%s13335_s24 + $0x740] sm:$0xf]  ;;  %v12357_v56 = vld [vmem:[%s13335_s24 + $0x44] sm:$0xf] }
 0x2ee   : > { %6834 = vmatpush.bf16.msra.mxu0 %v10494_v21  ;;  %6871 = vmatpush.bf16.msra.mxu3 %v11222_v7  ;;  %v12353_v21 = vld [vmem:[%s13335_s24 + $0x20] sm:$0xf0]  ;;  %v10498_v7 = vor.u32 %v12385_v40, %v10495_v62 }
 0x2ef   : > { %6847 = vmatpush.bf16.msra.mxu1 %v10718_v36  ;;  %v10577_v36 = vld [vmem:[%s13335_s24 + $0x1c8] sm:$0xf]  ;;  %v10354_v46 = vor.u32 %v12353_v21, %v10353_v39  ;;  %v12535_v39 = vld [vmem:[%s13335_s24 + $0x5d0] sm:$0xf0]  ;;  %v11333_v21 = vld [vmem:[%s13335_s24 + $0x7b0] sm:$0xf] }
 0x2f0   : > { %6807 = vmatpush.bf16.msrb.mxu2 %v11190_v14  ;;  %v10578_v47 = vor.u32 %v12409_v26, %v10577_v36  ;;  %v11081_v14 = vld [vmem:[%s13335_s24 + $0x5b8] sm:$0xf]  ;;  %v12371_v26 = vld [vmem:[%s13335_s24 + $0xb4] sm:$0xf] }
 0x2f1   : > { %v11082_v36 = vor.u32 %v12535_v39, %v11081_v14  ;;  %v12560_v14 = vld [vmem:[%s13335_s24 + $0x69c] sm:$0xf] }
 0x2f2   : > { %6835 = vmatpush.bf16.msra.mxu0 %v10466_v41  ;;  %v10551_v41 = vld [vmem:[%s13335_s24 + $0x1ac] sm:$0xf0]  ;;  %6872 = vmatpush.bf16.msra.mxu3 %v11194_v37  ;;  %v11362_v37 = vor.u32 %v12605_v20, %v11361_v2  ;;  %v12567_v2 = vld [vmem:[%s13335_s24 + $0x6d4] sm:$0xf] }
 0x2f3   : > { %6848 = vmatpush.bf16.msra.mxu1 %v10690_v12  ;;  %v4839_v12 = vpop.f32.mrf.mxu2  ;;  %v4852_v44 = vpop.f32.mrf.mxu3  ;;  %v10554_v63 = vor.u32 %v12399_v57, %v10551_v41  ;;  %v11050_v41 = vor.u32 %v12524_v33, %v11047_v35  ;;  %v11447_v20 = vld [vmem:[%s13335_s24 + $0x8ac] sm:$0xf0]  ;;  %v12609_v33 = vld [vmem:[%s13335_s24 + $0x824] sm:$0xf]  ;;  %v11391_v35 = vld [vmem:[%s13335_s24 + $0x83c] sm:$0xf0] }
 0x2f4   : > { %6808 = vmatpush.bf16.msrb.mxu2 %v11162_v16  ;;  %v12528_v12 = vld [vmem:[%s13335_s24 + $0x598] sm:$0xf0]  ;;  %v11305_v16 = vld [vmem:[%s13335_s24 + $0x778] sm:$0xf] }
 0x2f5   : > { %v11054_v43 = vor.u32 %v12528_v12, %v11053_v49  ;;  %v11394_v49 = vor.u32 %v12609_v33, %v11391_v35  ;;  %v12574_v33 = vld [vmem:[%s13335_s24 + $0x70c] sm:$0xf]  ;;  %v11251_v35 = vld [vmem:[%s13335_s24 + $0x724] sm:$0xf0] }
 0x2f6   : > { %6836 = vmatpush.bf16.msra.mxu0 %v10438_v9  ;;  %v12392_v9 = vld [vmem:[%s13335_s24 + $0x15c] sm:$0xf]  ;;  %6873 = vmatpush.bf16.msra.mxu3 %v11166_v0  ;;  %v10442_v0 = vor.u32 %v12371_v26, %v10439_v30  ;;  %v12553_v26 = vld [vmem:[%s13335_s24 + $0x664] sm:$0xf]  ;;  %v11167_v30 = vld [vmem:[%s13335_s24 + $0x67c] sm:$0xf0] }
 0x2f7   : > { %6849 = vmatpush.bf16.msra.mxu1 %v10662_v31  ;;  %v10523_v31 = vld [vmem:[%s13335_s24 + $0x174] sm:$0xf0] }
 0x2f8   : > { %v10526_v38 = vor.u32 %v12392_v9, %v10523_v31  ;;  %6809 = vmatpush.bf16.msrb.mxu2 %v11134_v53  ;;  %v4812_v9 = vadd.f32 %v13690_v45, %v13642_v29  ;;  %v10383_v29 = vld [vmem:[%s13335_s24 + $0x5c] sm:$0xf0] }
 0x2fa   : > { %6837 = vmatpush.bf16.msra.mxu0 %v10410_v1  ;;  %6874 = vmatpush.bf16.msra.mxu3 %v11138_v27  ;;  %v11106_v1 = vor.u32 %v12538_v58, %v11103_v59  ;;  %v4825_v45 = vadd.f32 %v13695_v48, %v4812_v9  ;;  %v10386_v58 = vor.u32 %v12357_v56, %v10383_v29  ;;  %v11249_v59 = vld [vmem:[%s13335_s24 + $0x708] sm:$0xf]  ;;  %v12588_v29 = vld [vmem:[%s13335_s24 + $0x77c] sm:$0xf] }
 0x2fb   : > { %6850 = vmatpush.bf16.msra.mxu1 %v10634_v3  ;;  %v12542_v3 = vld [vmem:[%s13335_s24 + $0x608] sm:$0xf0] }
 0x2fc   : > { %v11110_v6 = vor.u32 %v12542_v3, %v11109_v60  ;;  %6810 = vmatpush.bf16.msrb.mxu2 %v11106_v1  ;;  %v12577_v60 = vld [vmem:[%s13335_s24 + $0x720] sm:$0xf0]  ;;  %v12350_v1 = vld [vmem:[%s13335_s24 + $0xc] sm:$0xf]  ;;  %v10355_v3 = vld [vmem:[%s13335_s24 + $0x24] sm:$0xf0] }
 0x2fd   : > { %v11250_v48 = vor.u32 %v12577_v60, %v11249_v59 }
 0x2fe   : > { %6838 = vmatpush.bf16.msra.mxu0 %v10382_v17  ;;  %6875 = vmatpush.bf16.msra.mxu3 %v11110_v6  ;;  %v10470_v17 = vor.u32 %v12378_v8, %v10467_v10  ;;  %v4838_v6 = vadd.f32 %v13705_v55, %v4825_v45  ;;  %v10358_v8 = vor.u32 %v12350_v1, %v10355_v3  ;;  %v11195_v55 = vld [vmem:[%s13335_s24 + $0x6b4] sm:$0xf0] }
 0x2ff   : > { %6851 = vmatpush.bf16.msra.mxu1 %v10606_v34  ;;  %v12598_v34 = vld [vmem:[%s13335_s24 + $0x7c8] sm:$0xf0]  ;;  %v11307_v45 = vld [vmem:[%s13335_s24 + $0x794] sm:$0xf0] }
 0x300   : > { %6811 = vmatpush.bf16.msrb.mxu2 %v11078_v15  ;;  %v11334_v44 = vor.u32 %v12598_v34, %v11333_v21  ;;  %v4851_v39 = vadd.f32 %v13710_v25, %v4838_v6  ;;  %v12616_v21 = vld [vmem:[%s13335_s24 + $0x85c] sm:$0xf]  ;;  %v10969_v3 = vld [vmem:[%s13335_s24 + $0x4d8] sm:$0xf] }
 0x301   : > { %v12504_v6 = vld [vmem:[%s13335_s24 + $0x4dc] sm:$0xf] }
 0x302   : > { %6839 = vmatpush.bf16.msra.mxu0 %v10354_v46  ;;  %v13764_v32 = vpop.f32.mrf.mxu0  ;;  %6876 = vmatpush.bf16.msra.mxu3 %v11082_v36  ;;  %v12591_v46 = vld [vmem:[%s13335_s24 + $0x790] sm:$0xf0]  ;;  %v11419_v36 = vld [vmem:[%s13335_s24 + $0x874] sm:$0xf0] }
 0x303   : > { %6852 = vmatpush.bf16.msra.mxu1 %v10578_v47  ;;  %v13769_v57 = vpop.f32.mrf.mxu1  ;;  %v12364_v47 = vld [vmem:[%s13335_s24 + $0x7c] sm:$0xf]  ;;  %v11306_v53 = vor.u32 %v12591_v46, %v11305_v16  ;;  %v11422_v34 = vor.u32 %v12616_v21, %v11419_v36  ;;  %v11139_v16 = vld [vmem:[%s13335_s24 + $0x644] sm:$0xf0] }
 0x304   : > { %6812 = vmatpush.bf16.msrb.mxu2 %v11050_v41  ;;  %v10414_v54 = vor.u32 %v12364_v47, %v10411_v51  ;;  %v12546_v41 = vld [vmem:[%s13335_s24 + $0x62c] sm:$0xf]  ;;  %v11111_v51 = vld [vmem:[%s13335_s24 + $0x60c] sm:$0xf0]  ;;  %v12500_v36 = vld [vmem:[%s13335_s24 + $0x4b8] sm:$0xf0] }
 0x305   : > { %6840 = vmatmul.bf16.vlgmr.msra.gmra.mxu0 %v13555_v28 }
 0x306   : > { %6884 = vmatpush.bf16.msrb.mxu0 %v11446_v50  ;;  %6853 = vmatmul.bf16.vlgmr.msra.gmra.mxu1 %v13557_v42  ;;  %v12517_v50 = vld [vmem:[%s13335_s24 + $0x544] sm:$0xf] }
 0x307   : > { %6897 = vmatpush.bf16.msrb.mxu1 %v10554_v63  ;;  %6877 = vmatpush.bf16.msra.mxu3 %v11054_v43  ;;  %v11019_v63 = vld [vmem:[%s13335_s24 + $0x55c] sm:$0xf0]  ;;  %v12602_v43 = vld [vmem:[%s13335_s24 + $0x7ec] sm:$0xf] }
 0x308   : > { %v11022_v31 = vor.u32 %v12517_v50, %v11019_v63  ;;  %v12595_v50 = vld [vmem:[%s13335_s24 + $0x7b4] sm:$0xf]  ;;  %v11335_v63 = vld [vmem:[%s13335_s24 + $0x7cc] sm:$0xf0] }
 0x30a   : > { %6885 = vmatpush.bf16.msrb.mxu0 %v11418_v5  ;;  %v4889_v13 = vpop.f32.mrf.mxu2  ;;  %v4865_v5 = vpop.f32.mrf.mxu0  ;;  %6813 = vmatpush.bf16.msrb.mxu2 %v11022_v31 }
 0x30b   : > { %6898 = vmatpush.bf16.msrb.mxu1 %v10526_v38  ;;  %v4902_v27 = vpop.f32.mrf.mxu3  ;;  %v12584_v38 = vld [vmem:[%s13335_s24 + $0x758] sm:$0xf0]  ;;  %6878 = vmatpush.bf16.msra.mxu3 %v11026_v24  ;;  %v4878_v40 = vpop.f32.mrf.mxu1  ;;  %v11338_v24 = vor.u32 %v12595_v50, %v11335_v63  ;;  %v12490_v50 = vld [vmem:[%s13335_s24 + $0x46c] sm:$0xf]  ;;  %v10915_v63 = vld [vmem:[%s13335_s24 + $0x484] sm:$0xf0] }
 0x30c   : > { %v11278_v62 = vor.u32 %v12584_v38, %v11277_v4  ;;  %v12511_v4 = vld [vmem:[%s13335_s24 + $0x514] sm:$0xf]  ;;  %v12532_v5 = vld [vmem:[%s13335_s24 + $0x5bc] sm:$0xf]  ;;  %v11083_v38 = vld [vmem:[%s13335_s24 + $0x5d4] sm:$0xf0] }
 0x30d   : > { %v11086_v1 = vor.u32 %v12532_v5, %v11083_v38  ;;  %v12483_v5 = vld [vmem:[%s13335_s24 + $0x434] sm:$0xf]  ;;  %v10887_v38 = vld [vmem:[%s13335_s24 + $0x44c] sm:$0xf0] }
 0x30e   : > { %6886 = vmatpush.bf16.msrb.mxu0 %v11390_v22  ;;  %v11223_v22 = vld [vmem:[%s13335_s24 + $0x6ec] sm:$0xf0] }
 0x30f   : > { %6899 = vmatpush.bf16.msrb.mxu1 %v10498_v7  ;;  %v12623_v7 = vld [vmem:[%s13335_s24 + $0x894] sm:$0xf]  ;;  %v11226_v11 = vor.u32 %v12567_v2, %v11223_v22 }
 0x310   : > { %v11450_v18 = vor.u32 %v12623_v7, %v11447_v20  ;;  %v12507_v2 = vld [vmem:[%s13335_s24 + $0x4f0] sm:$0xf0] }
 0x312   : > { %6887 = vmatpush.bf16.msrb.mxu0 %v11362_v37  ;;  %v4891_v10 = vpop.f32.mrf.mxu2  ;;  %v4864_v37 = vadd.f32 %v13764_v32, %v4851_v39  ;;  %v11170_v32 = vor.u32 %v12553_v26, %v11167_v30  ;;  %v10941_v39 = vld [vmem:[%s13335_s24 + $0x4a0] sm:$0xf]  ;;  %v12518_v26 = vld [vmem:[%s13335_s24 + $0x54c] sm:$0xf]  ;;  %v11027_v30 = vld [vmem:[%s13335_s24 + $0x564] sm:$0xf0] }
 0x313   : > { %6900 = vmatpush.bf16.msrb.mxu1 %v10470_v17  ;;  %v4904_v15 = vpop.f32.mrf.mxu3  ;;  %v11198_v17 = vor.u32 %v12560_v14, %v11195_v55  ;;  %v12525_v10 = vld [vmem:[%s13335_s24 + $0x584] sm:$0xf]  ;;  %v11279_v14 = vld [vmem:[%s13335_s24 + $0x75c] sm:$0xf0] }
 0x314   : > { %v4877_v25 = vadd.f32 %v13769_v57, %v4864_v37  ;;  %v12539_v57 = vld [vmem:[%s13335_s24 + $0x5f4] sm:$0xf]  ;;  %v10970_v15 = vor.u32 %v12507_v2, %v10969_v3  ;;  %v12497_v37 = vld [vmem:[%s13335_s24 + $0x4a4] sm:$0xf] }
 0x315   : > { %v11114_v23 = vor.u32 %v12539_v57, %v11111_v51  ;;  %v12493_v57 = vld [vmem:[%s13335_s24 + $0x480] sm:$0xf0]  ;;  %v12479_v3 = vld [vmem:[%s13335_s24 + $0x410] sm:$0xf0] }
 0x316   : > { %6888 = vmatpush.bf16.msrb.mxu0 %v11334_v44  ;;  %v4890_v12 = vadd.f32 %v4889_v13, %v4877_v25  ;;  %v11363_v44 = vld [vmem:[%s13335_s24 + $0x804] sm:$0xf0]  ;;  %v11005_v25 = vld [vmem:[%s13335_s24 + $0x518] sm:$0xf] }
 0x317   : > { %6901 = vmatpush.bf16.msrb.mxu1 %v10442_v0  ;;  %v11142_v0 = vor.u32 %v12546_v41, %v11139_v16  ;;  %v11366_v46 = vor.u32 %v12602_v43, %v11363_v44  ;;  %v11229_v41 = vld [vmem:[%s13335_s24 + $0x6d8] sm:$0xf] }
 0x318   : > { %v4903_v47 = vadd.f32 %v4902_v27, %v4890_v12  ;;  %v10999_v27 = vld [vmem:[%s13335_s24 + $0x52c] sm:$0xf0]  ;;  %v12571_v12 = vld [vmem:[%s13335_s24 + $0x6f0] sm:$0xf0] }
 0x319   : > { %v11002_v60 = vor.u32 %v12511_v4, %v10999_v27  ;;  %v12486_v4 = vld [vmem:[%s13335_s24 + $0x448] sm:$0xf0] }
 0x31a   : > { %6889 = vmatpush.bf16.msrb.mxu0 %v11306_v53  ;;  %v10997_v53 = vld [vmem:[%s13335_s24 + $0x510] sm:$0xf] }
 0x31b   : > { %6902 = vmatpush.bf16.msrb.mxu1 %v10414_v54  ;;  %v12514_v54 = vld [vmem:[%s13335_s24 + $0x528] sm:$0xf0] }
 0x31c   : > { %v10998_v40 = vor.u32 %v12514_v54, %v10997_v53  ;;  %v10918_v53 = vor.u32 %v12490_v50, %v10915_v63  ;;  %v10885_v54 = vld [vmem:[%s13335_s24 + $0x430] sm:$0xf]  ;;  %v10865_v50 = vld [vmem:[%s13335_s24 + $0x400] sm:$0xf]  ;;  %v12480_v63 = vld [vmem:[%s13335_s24 + $0x418] sm:$0xf0] }
 0x31e   : > { %6890 = vmatpush.bf16.msrb.mxu0 %v11278_v62 }
 0x31f   : > { %6903 = vmatpush.bf16.msrb.mxu1 %v10386_v58 }
 0x322   : > { %6891 = vmatpush.bf16.msrb.mxu0 %v11250_v48  ;;  %v4915_v52 = vpop.f32.mrf.mxu0  ;;  %v11310_v48 = vor.u32 %v12588_v29, %v11307_v45  ;;  %v10949_v29 = vld [vmem:[%s13335_s24 + $0x4a8] sm:$0xf]  ;;  %v12501_v45 = vld [vmem:[%s13335_s24 + $0x4c0] sm:$0xf0] }
 0x323   : > { %6904 = vmatpush.bf16.msrb.mxu1 %v10358_v8  ;;  %v4928_v9 = vpop.f32.mrf.mxu1  ;;  %v4916_v31 = vadd.f32 %v4915_v52, %v4903_v47  ;;  %v10971_v8 = vld [vmem:[%s13335_s24 + $0x4f4] sm:$0xf0]  ;;  %v11254_v47 = vor.u32 %v12574_v33, %v11251_v35  ;;  %v11230_v52 = vor.u32 %v12571_v12, %v11229_v41  ;;  %v10950_v2 = vor.u32 %v12501_v45, %v10949_v29  ;;  %v12465_v12 = vld [vmem:[%s13335_s24 + $0x3a0] sm:$0xf0]  ;;  %v12452_v29 = vld [vmem:[%s13335_s24 + $0x338] sm:$0xf0] }
 0x324   : > { %v10974_v55 = vor.u32 %v12504_v6, %v10971_v8  ;;  %v12476_v6 = vld [vmem:[%s13335_s24 + $0x3fc] sm:$0xf]  ;;  %v12494_v8 = vld [vmem:[%s13335_s24 + $0x488] sm:$0xf0]  ;;  %v10837_v45 = vld [vmem:[%s13335_s24 + $0x3c8] sm:$0xf] }
 0x325   : > { %v4929_v13 = vadd.f32 %v4928_v9, %v4916_v31  ;;  %v10977_v9 = vld [vmem:[%s13335_s24 + $0x4e0] sm:$0xf]  ;;  %v12508_v31 = vld [vmem:[%s13335_s24 + $0x4f8] sm:$0xf0] }
 0x326   : > { %6936 = vmatpush.bf16.msra.mxu0 %v11226_v11  ;;  %6905 = vmatmul.bf16.vlgmr.msrb.gmra.mxu1 %v13555_v28  ;;  %v11055_v11 = vld [vmem:[%s13335_s24 + $0x59c] sm:$0xf0]  ;;  %v10978_v27 = vor.u32 %v12508_v31, %v10977_v9  ;;  %v12536_v31 = vld [vmem:[%s13335_s24 + $0x5d8] sm:$0xf0] }
 0x327   : > { %6949 = vmatpush.bf16.msra.mxu1 %v11450_v18  ;;  %v4936_v56 = vmax.f32 %v4929_v13, 0.0  ;;  %v12581_v18 = vld [vmem:[%s13335_s24 + $0x744] sm:$0xf]  ;;  %v11058_v21 = vor.u32 %v12525_v10, %v11055_v11  ;;  %v12564_v13 = vld [vmem:[%s13335_s24 + $0x6b8] sm:$0xf0] }
 0x328   : > { %v11145_v11 = vld [vmem:[%s13335_s24 + $0x630] sm:$0xf]  ;;  %v11089_v9 = vld [vmem:[%s13335_s24 + $0x5c0] sm:$0xf] }
 0x329   : > { %v13824_v62 = vpack.c.bf16 %v4936_v56, %v4936_v56 }
 0x32a   : > { %6937 = vmatpush.bf16.msra.mxu0 %v11198_v17  ;;  %v6711_v58 = vpop.f32.mrf.mxu2  ;;  %v4917_v7 = vpop.f32.mrf.mxu0  ;;  %v10943_v17 = vld [vmem:[%s13335_s24 + $0x4bc] sm:$0xf0] }
 0x32b   : > { %6950 = vmatpush.bf16.msra.mxu1 %v11422_v34  ;;  %v6724_v59 = vpop.f32.mrf.mxu3  ;;  %v4930_v20 = vpop.f32.mrf.mxu1  ;;  %6762 = vmatmul.bf16.vlgmr.msra.gmra.mxu2 %v13824_v62  ;;  %v11282_v34 = vor.u32 %v12581_v18, %v11279_v14  ;;  %v10946_v44 = vor.u32 %v12497_v37, %v10943_v17  ;;  %v10859_v7 = vld [vmem:[%s13335_s24 + $0x414] sm:$0xf0]  ;;  %v12550_v18 = vld [vmem:[%s13335_s24 + $0x648] sm:$0xf0] }
 0x32c   : > { %v13829_v22 = vadd.f32 %v6724_v59, %v6711_v58  ;;  %6827 = vmatmul.bf16.vlgmr.msrb.gmra.mxu3 %v13824_v62  ;;  %6858 = vmatpush.bf16.msra.mxu2 %v10998_v40  ;;  %v10886_v40 = vor.u32 %v12486_v4, %v10885_v54  ;;  %v11173_v58 = vld [vmem:[%s13335_s24 + $0x668] sm:$0xf]  ;;  %v12557_v59 = vld [vmem:[%s13335_s24 + $0x680] sm:$0xf0]  ;;  %v10862_v14 = vor.u32 %v12476_v6, %v10859_v7  ;;  %v12448_v4 = vld [vmem:[%s13335_s24 + $0x31c] sm:$0xf] }
 0x32d   : > { %6892 = vmatmul.bf16.vlgmr.msrb.gmra.mxu0 %v13824_v62  ;;  %6923 = vmatpush.bf16.msrb.mxu3 %v11002_v60  ;;  %v10890_v60 = vor.u32 %v12483_v5, %v10887_v38  ;;  %v11174_v20 = vor.u32 %v12557_v59, %v11173_v58  ;;  %v11146_v17 = vor.u32 %v12550_v18, %v11145_v11  ;;  %v10753_v5 = vld [vmem:[%s13335_s24 + $0x320] sm:$0xf]  ;;  %v11061_v59 = vld [vmem:[%s13335_s24 + $0x588] sm:$0xf]  ;;  %v12466_v11 = vld [vmem:[%s13335_s24 + $0x3a8] sm:$0xf0] }
 0x32e   : > { %6938 = vmatpush.bf16.msra.mxu0 %v11170_v32  ;;  %v12515_v32 = vld [vmem:[%s13335_s24 + $0x530] sm:$0xf0]  ;;  %v10866_v54 = vor.u32 %v12480_v63, %v10865_v50  ;;  %v10719_v7 = vld [vmem:[%s13335_s24 + $0x2fc] sm:$0xf0]  ;;  %v11033_v18 = vld [vmem:[%s13335_s24 + $0x550] sm:$0xf] }
 0x32f   : > { %6951 = vmatpush.bf16.msra.mxu1 %v11394_v49  ;;  %v10942_v49 = vor.u32 %v12500_v36, %v10941_v39  ;;  %v11006_v51 = vor.u32 %v12515_v32, %v11005_v25  ;;  %v12472_v39 = vld [vmem:[%s13335_s24 + $0x3d8] sm:$0xf0]  ;;  %v10831_v36 = vld [vmem:[%s13335_s24 + $0x3dc] sm:$0xf0]  ;;  %v11117_v25 = vld [vmem:[%s13335_s24 + $0x5f8] sm:$0xf] }
 0x330   : > { %6859 = vmatpush.bf16.msra.mxu2 %v10970_v15  ;;  %v10829_v15 = vld [vmem:[%s13335_s24 + $0x3c0] sm:$0xf]  ;;  %v12543_v32 = vld [vmem:[%s13335_s24 + $0x610] sm:$0xf0] }
 0x331   : > { %6924 = vmatpush.bf16.msrb.mxu3 %v10974_v55  ;;  %v10830_v35 = vor.u32 %v12472_v39, %v10829_v15  ;;  %v12456_v15 = vld [vmem:[%s13335_s24 + $0x35c] sm:$0xf]  ;;  %v10783_v39 = vld [vmem:[%s13335_s24 + $0x374] sm:$0xf0]  ;;  %v12431_v50 = vld [vmem:[%s13335_s24 + $0x290] sm:$0xf0] }
 0x332   : > { %6939 = vmatpush.bf16.msra.mxu0 %v11142_v0  ;;  %v6713_v16 = vpop.f32.mrf.mxu2  ;;  %v11030_v0 = vor.u32 %v12518_v26, %v11027_v30  ;;  %v12487_v26 = vld [vmem:[%s13335_s24 + $0x450] sm:$0xf0] }
 0x333   : > { %6952 = vmatpush.bf16.msra.mxu1 %v11366_v46  ;;  %v6726_v43 = vpop.f32.mrf.mxu3  ;;  %v10913_v46 = vld [vmem:[%s13335_s24 + $0x468] sm:$0xf]  ;;  %v12462_v16 = vld [vmem:[%s13335_s24 + $0x38c] sm:$0xf] }
 0x334   : > { %6860 = vmatpush.bf16.msra.mxu2 %v10942_v49  ;;  %v10801_v49 = vld [vmem:[%s13335_s24 + $0x388] sm:$0xf] }
 0x335   : > { %6925 = vmatpush.bf16.msrb.mxu3 %v10946_v44  ;;  %v10803_v43 = vld [vmem:[%s13335_s24 + $0x3a4] sm:$0xf0] }
 0x336   : > { %6940 = vmatpush.bf16.msra.mxu0 %v11114_v23  ;;  %v10914_v23 = vor.u32 %v12493_v57, %v10913_v46  ;;  %v10775_v46 = vld [vmem:[%s13335_s24 + $0x36c] sm:$0xf0]  ;;  %v10781_v57 = vld [vmem:[%s13335_s24 + $0x358] sm:$0xf] }
 0x337   : > { %6953 = vmatpush.bf16.msra.mxu1 %v11338_v24  ;;  %v11201_v24 = vld [vmem:[%s13335_s24 + $0x6a0] sm:$0xf] }
 0x338   : > { %v11202_v56 = vor.u32 %v12564_v13, %v11201_v24  ;;  %6861 = vmatpush.bf16.msra.mxu2 %v10914_v23  ;;  %v10806_v23 = vor.u32 %v12462_v16, %v10803_v43  ;;  %v12505_v43 = vld [vmem:[%s13335_s24 + $0x4e4] sm:$0xf] }
 0x339   : > { %6926 = vmatpush.bf16.msrb.mxu3 %v10918_v53 }
 0x33a   : > { %6941 = vmatpush.bf16.msra.mxu0 %v11086_v1  ;;  %v10857_v1 = vld [vmem:[%s13335_s24 + $0x3f8] sm:$0xf] }
 0x33b   : > { %6954 = vmatpush.bf16.msra.mxu1 %v11310_v48  ;;  %6814 = vmatmul.bf16.vlgmr.msrb.gmra.mxu2 %v13613_v61  ;;  %v10921_v48 = vld [vmem:[%s13335_s24 + $0x470] sm:$0xf]  ;;  %v10858_v10 = vor.u32 %v12479_v3, %v10857_v1  ;;  %v12441_v3 = vld [vmem:[%s13335_s24 + $0x2e4] sm:$0xf] }
 0x33c   : > { %6862 = vmatpush.bf16.msra.mxu2 %v10886_v40  ;;  %6879 = vmatmul.bf16.vlgmr.msra.gmra.mxu3 %v13613_v61  ;;  %v10922_v55 = vor.u32 %v12494_v8, %v10921_v48  ;;  %v12473_v40 = vld [vmem:[%s13335_s24 + $0x3e0] sm:$0xf0] }
 0x33d   : > { %6927 = vmatpush.bf16.msrb.mxu3 %v10890_v60  ;;  %v12529_v60 = vld [vmem:[%s13335_s24 + $0x5a0] sm:$0xf0]  ;;  %v10838_v6 = vor.u32 %v12473_v40, %v10837_v45  ;;  %v10699_v45 = vld [vmem:[%s13335_s24 + $0x2cc] sm:$0xf0] }
 0x33e   : > { %6942 = vmatpush.bf16.msra.mxu0 %v11058_v21  ;;  %v12469_v21 = vld [vmem:[%s13335_s24 + $0x3c4] sm:$0xf]  ;;  %v11062_v8 = vor.u32 %v12529_v60, %v11061_v59  ;;  %v10923_v59 = vld [vmem:[%s13335_s24 + $0x48c] sm:$0xf0] }
 0x33f   : > { %6955 = vmatpush.bf16.msra.mxu1 %v11282_v34  ;;  %v10893_v34 = vld [vmem:[%s13335_s24 + $0x438] sm:$0xf]  ;;  %v10834_v41 = vor.u32 %v12469_v21, %v10831_v36  ;;  %v12445_v48 = vld [vmem:[%s13335_s24 + $0x300] sm:$0xf0]  ;;  %v12512_v21 = vld [vmem:[%s13335_s24 + $0x51c] sm:$0xf] }
 0x340   : > { %6863 = vmatpush.bf16.msra.mxu2 %v10858_v10  ;;  %v10809_v10 = vld [vmem:[%s13335_s24 + $0x390] sm:$0xf]  ;;  %v11007_v36 = vld [vmem:[%s13335_s24 + $0x534] sm:$0xf0] }
 0x341   : > { %6928 = vmatpush.bf16.msrb.mxu3 %v10862_v14  ;;  %v12522_v14 = vld [vmem:[%s13335_s24 + $0x568] sm:$0xf0] }
 0x342   : > { %6943 = vmatpush.bf16.msra.mxu0 %v11030_v0  ;;  %v6737_v37 = vpop.f32.mrf.mxu0  ;;  %v12455_v0 = vld [vmem:[%s13335_s24 + $0x354] sm:$0xf] }
 0x343   : > { %6956 = vmatpush.bf16.msra.mxu1 %v11254_v47  ;;  %v6738_v30 = vadd.f32 %v6737_v37, %v13829_v22  ;;  %v6750_v33 = vpop.f32.mrf.mxu1  ;;  %v10894_v22 = vor.u32 %v12487_v26, %v10893_v34  ;;  %v11118_v47 = vor.u32 %v12543_v32, %v11117_v25  ;;  %v10778_v24 = vor.u32 %v12455_v0, %v10775_v46  ;;  %v12434_v26 = vld [vmem:[%s13335_s24 + $0x2ac] sm:$0xf]  ;;  %v10697_v25 = vld [vmem:[%s13335_s24 + $0x2b0] sm:$0xf]  ;;  %v12427_v46 = vld [vmem:[%s13335_s24 + $0x274] sm:$0xf] }
 0x344   : > { %6864 = vmatpush.bf16.msra.mxu2 %v10830_v35  ;;  %v10810_v34 = vor.u32 %v12466_v11, %v10809_v10  ;;  %v10786_v35 = vor.u32 %v12456_v15, %v10783_v39  ;;  %v12438_v32 = vld [vmem:[%s13335_s24 + $0x2c8] sm:$0xf0]  ;;  %v10895_v15 = vld [vmem:[%s13335_s24 + $0x454] sm:$0xf0] }
 0x345   : > { %6944 = vmatmul.bf16.vlgmr.msra.gmra.mxu0 %v13613_v61  ;;  %v13892_v44 = vadd.f32 %v6750_v33, %v6738_v30  ;;  %6929 = vmatpush.bf16.msrb.mxu3 %v10834_v41  ;;  %v10691_v30 = vld [vmem:[%s13335_s24 + $0x2c4] sm:$0xf0]  ;;  %v11034_v33 = vor.u32 %v12522_v14, %v11033_v18  ;;  %v12449_v41 = vld [vmem:[%s13335_s24 + $0x324] sm:$0xf]  ;;  %v10698_v0 = vor.u32 %v12438_v32, %v10697_v25  ;;  %v12484_v14 = vld [vmem:[%s13335_s24 + $0x43c] sm:$0xf] }
 0x346   : > { %6988 = vmatpush.bf16.msrb.mxu0 %v11006_v51  ;;  %6957 = vmatmul.bf16.vlgmr.msra.gmra.mxu1 %v13824_v62  ;;  %v12459_v51 = vld [vmem:[%s13335_s24 + $0x370] sm:$0xf0]  ;;  %v10694_v16 = vor.u32 %v12434_v26, %v10691_v30  ;;  %v12406_v39 = vld [vmem:[%s13335_s24 + $0x1cc] sm:$0xf]  ;;  %v10557_v26 = vld [vmem:[%s13335_s24 + $0x198] sm:$0xf]  ;;  %v10898_v25 = vor.u32 %v12484_v14, %v10895_v15 }
 0x347   : > { %7001 = vmatpush.bf16.msrb.mxu1 %v11230_v52  ;;  %v10802_v52 = vor.u32 %v12465_v12, %v10801_v49  ;;  %v10782_v53 = vor.u32 %v12459_v51, %v10781_v57  ;;  %v11010_v49 = vor.u32 %v12512_v21, %v11007_v36  ;;  %v10755_v12 = vld [vmem:[%s13335_s24 + $0x33c] sm:$0xf0]  ;;  %v10663_v57 = vld [vmem:[%s13335_s24 + $0x28c] sm:$0xf0]  ;;  %v10669_v51 = vld [vmem:[%s13335_s24 + $0x278] sm:$0xf] }
 0x348   : > { %v10579_v36 = vld [vmem:[%s13335_s24 + $0x1e4] sm:$0xf0]  ;;  %v12403_v30 = vld [vmem:[%s13335_s24 + $0x1b0] sm:$0xf0]  ;;  %v12421_v32 = vld [vmem:[%s13335_s24 + $0x244] sm:$0xf] }
 0x349   : > { %6865 = vmatpush.bf16.msra.mxu2 %v10802_v52  ;;  %6930 = vmatpush.bf16.msrb.mxu3 %v10806_v23  ;;  %v12442_v52 = vld [vmem:[%s13335_s24 + $0x2ec] sm:$0xf]  ;;  %v12379_v14 = vld [vmem:[%s13335_s24 + $0xf4] sm:$0xf]  ;;  %v10475_v15 = vld [vmem:[%s13335_s24 + $0x10c] sm:$0xf0] }
 0x34a   : > { %6989 = vmatpush.bf16.msrb.mxu0 %v10978_v27  ;;  %v10747_v27 = vld [vmem:[%s13335_s24 + $0x334] sm:$0xf0]  ;;  %v6739_v38 = vpop.f32.mrf.mxu0  ;;  %v12498_v23 = vld [vmem:[%s13335_s24 + $0x4ac] sm:$0xf] }
 0x34b   : > { %7002 = vmatpush.bf16.msrb.mxu1 %v11202_v56  ;;  %v13902_v13 = vpop.f32.mrf.mxu3  ;;  %v11090_v56 = vor.u32 %v12536_v31, %v11089_v9  ;;  %v6752_v58 = vpop.f32.mrf.mxu1  ;;  %v10750_v1 = vor.u32 %v12448_v4, %v10747_v27  ;;  %v10727_v9 = vld [vmem:[%s13335_s24 + $0x304] sm:$0xf0]  ;;  %v10666_v31 = vor.u32 %v12427_v46, %v10663_v57  ;;  %v10635_v4 = vld [vmem:[%s13335_s24 + $0x254] sm:$0xf0]  ;;  %v12424_v38 = vld [vmem:[%s13335_s24 + $0x258] sm:$0xf0] }
 0x34c   : > { %6866 = vmatmul.bf16.vlgmr.msra.gmra.mxu2 %v13611_v19  ;;  %6931 = vmatmul.bf16.vlgmr.msrb.gmra.mxu3 %v13611_v19  ;;  %v10730_v27 = vor.u32 %v12442_v52, %v10727_v9  ;;  %v12491_v58 = vld [vmem:[%s13335_s24 + $0x474] sm:$0xf]  ;;  %v10529_v57 = vld [vmem:[%s13335_s24 + $0x160] sm:$0xf]  ;;  %v12414_v52 = vld [vmem:[%s13335_s24 + $0x20c] sm:$0xf] }
 0x34d   : > { %6910 = vmatpush.bf16.msrb.mxu2 %v10778_v24  ;;  %6975 = vmatpush.bf16.msra.mxu3 %v10782_v53  ;;  %v10951_v24 = vld [vmem:[%s13335_s24 + $0x4c4] sm:$0xf0]  ;;  %v10670_v53 = vor.u32 %v12431_v50, %v10669_v51  ;;  %v12393_v51 = vld [vmem:[%s13335_s24 + $0x164] sm:$0xf] }
 0x34e   : > { %6990 = vmatpush.bf16.msrb.mxu0 %v10950_v2  ;;  %v10754_v2 = vor.u32 %v12452_v29, %v10753_v5  ;;  %v10641_v5 = vld [vmem:[%s13335_s24 + $0x240] sm:$0xf]  ;;  %v12435_v29 = vld [vmem:[%s13335_s24 + $0x2b4] sm:$0xf]  ;;  %v10615_v9 = vld [vmem:[%s13335_s24 + $0x224] sm:$0xf0] }
 0x34f   : > { %7003 = vmatpush.bf16.msrb.mxu1 %v11174_v20  ;;  %v10725_v20 = vld [vmem:[%s13335_s24 + $0x2e8] sm:$0xf]  ;;  %v10642_v60 = vor.u32 %v12424_v38, %v10641_v5  ;;  %v10618_v5 = vor.u32 %v12414_v52, %v10615_v9  ;;  %v12389_v38 = vld [vmem:[%s13335_s24 + $0x140] sm:$0xf0]  ;;  %v12383_v52 = vld [vmem:[%s13335_s24 + $0x110] sm:$0xf0] }
 0x351   : > { %6911 = vmatpush.bf16.msrb.mxu2 %v10750_v1  ;;  %6976 = vmatpush.bf16.msra.mxu3 %v10754_v2  ;;  %v12413_v1 = vld [vmem:[%s13335_s24 + $0x204] sm:$0xf]  ;;  %v10702_v2 = vor.u32 %v12435_v29, %v10699_v45  ;;  %v10503_v29 = vld [vmem:[%s13335_s24 + $0x144] sm:$0xf0] }
 0x352   : > { %6991 = vmatpush.bf16.msrb.mxu0 %v10922_v55  ;;  %v10722_v55 = vor.u32 %v12441_v3, %v10719_v7  ;;  %v10607_v3 = vld [vmem:[%s13335_s24 + $0x21c] sm:$0xf0]  ;;  %v12417_v7 = vld [vmem:[%s13335_s24 + $0x220] sm:$0xf0] }
 0x353   : > { %7004 = vmatpush.bf16.msrb.mxu1 %v11146_v17  ;;  %v6778_v37 = vpop.f32.mrf.mxu3  ;;  %v10726_v17 = vor.u32 %v12445_v48, %v10725_v20  ;;  %v10926_v20 = vor.u32 %v12491_v58, %v10923_v59  ;;  %v12428_v48 = vld [vmem:[%s13335_s24 + $0x27c] sm:$0xf]  ;;  %v10610_v18 = vor.u32 %v12413_v1, %v10607_v3  ;;  %v10587_v58 = vld [vmem:[%s13335_s24 + $0x1ec] sm:$0xf0]  ;;  %v12463_v59 = vld [vmem:[%s13335_s24 + $0x394] sm:$0xf] }
 0x354   : > { %v10585_v37 = vld [vmem:[%s13335_s24 + $0x1d0] sm:$0xf]  ;;  %v10565_v1 = vld [vmem:[%s13335_s24 + $0x1a0] sm:$0xf]  ;;  %v12404_v3 = vld [vmem:[%s13335_s24 + $0x1b8] sm:$0xf0] }
 0x355   : > { %6912 = vmatpush.bf16.msrb.mxu2 %v10722_v55  ;;  %6977 = vmatpush.bf16.msra.mxu3 %v10726_v17  ;;  %v12410_v17 = vld [vmem:[%s13335_s24 + $0x1e8] sm:$0xf0] }
 0x356   : > { %6992 = vmatpush.bf16.msrb.mxu0 %v10894_v22  ;;  %v10979_v22 = vld [vmem:[%s13335_s24 + $0x4fc] sm:$0xf0] }
 0x357   : > { %7005 = vmatpush.bf16.msrb.mxu1 %v11118_v47  ;;  %v10758_v47 = vor.u32 %v12449_v41, %v10755_v12  ;;  %v10982_v63 = vor.u32 %v12505_v43, %v10979_v22  ;;  %v10582_v41 = vor.u32 %v12406_v39, %v10579_v36  ;;  %v12477_v12 = vld [vmem:[%s13335_s24 + $0x404] sm:$0xf]  ;;  %v10586_v43 = vor.u32 %v12410_v17, %v10585_v37  ;;  %v10761_v37 = vld [vmem:[%s13335_s24 + $0x328] sm:$0xf] }
 0x358   : > { %v10558_v22 = vor.u32 %v12403_v30, %v10557_v26  ;;  %v12453_v17 = vld [vmem:[%s13335_s24 + $0x340] sm:$0xf0]  ;;  %v10445_v26 = vld [vmem:[%s13335_s24 + $0xb8] sm:$0xf]  ;;  %v12375_v30 = vld [vmem:[%s13335_s24 + $0xd0] sm:$0xf0] }
 0x359   : > { %6913 = vmatpush.bf16.msrb.mxu2 %v10694_v16  ;;  %6978 = vmatpush.bf16.msra.mxu3 %v10698_v0  ;;  %v10867_v16 = vld [vmem:[%s13335_s24 + $0x41c] sm:$0xf0] }
 0x35a   : > { %6993 = vmatpush.bf16.msrb.mxu0 %v10866_v54  ;;  %v12420_v54 = vld [vmem:[%s13335_s24 + $0x23c] sm:$0xf]  ;;  %v10870_v50 = vor.u32 %v12477_v12, %v10867_v16  ;;  %v10446_v12 = vor.u32 %v12375_v30, %v10445_v26  ;;  %v10733_v16 = vld [vmem:[%s13335_s24 + $0x2f0] sm:$0xf]  ;;  %v11425_v30 = vld [vmem:[%s13335_s24 + $0x860] sm:$0xf] }
 0x35b   : > { %7006 = vmatpush.bf16.msrb.mxu1 %v11090_v56  ;;  %v10954_v56 = vor.u32 %v12498_v23, %v10951_v24  ;;  %v10638_v40 = vor.u32 %v12420_v54, %v10635_v4  ;;  %v12470_v24 = vld [vmem:[%s13335_s24 + $0x3cc] sm:$0xf]  ;;  %v10501_v4 = vld [vmem:[%s13335_s24 + $0x128] sm:$0xf] }
 0x35d   : > { %6914 = vmatpush.bf16.msrb.mxu2 %v10666_v31  ;;  %6979 = vmatpush.bf16.msra.mxu3 %v10670_v53  ;;  %v10839_v53 = vld [vmem:[%s13335_s24 + $0x3e4] sm:$0xf0] }
 0x35e   : > { %6994 = vmatpush.bf16.msrb.mxu0 %v10838_v6  ;;  %v10613_v6 = vld [vmem:[%s13335_s24 + $0x208] sm:$0xf]  ;;  %v10842_v45 = vor.u32 %v12470_v24, %v10839_v53 }
 0x35f   : > { %7007 = vmatpush.bf16.msrb.mxu1 %v11062_v8  ;;  %v10671_v8 = vld [vmem:[%s13335_s24 + $0x294] sm:$0xf0]  ;;  %v10614_v21 = vor.u32 %v12417_v7, %v10613_v6  ;;  %v10789_v6 = vld [vmem:[%s13335_s24 + $0x360] sm:$0xf]  ;;  %v12460_v7 = vld [vmem:[%s13335_s24 + $0x378] sm:$0xf0] }
 0x360   : > { %v10790_v39 = vor.u32 %v12460_v7, %v10789_v6  ;;  %v10389_v53 = vld [vmem:[%s13335_s24 + $0x48] sm:$0xf]  ;;  %v12354_v6 = vld [vmem:[%s13335_s24 + $0x28] sm:$0xf0]  ;;  %v12351_v7 = vld [vmem:[%s13335_s24 + $0x14] sm:$0xf] }
 0x361   : > { %6915 = vmatpush.bf16.msrb.mxu2 %v10638_v40  ;;  %6980 = vmatpush.bf16.msra.mxu3 %v10642_v60  ;;  %v12407_v40 = vld [vmem:[%s13335_s24 + $0x1d4] sm:$0xf]  ;;  %v10811_v60 = vld [vmem:[%s13335_s24 + $0x3ac] sm:$0xf0] }
 0x362   : > { %6995 = vmatpush.bf16.msrb.mxu0 %v10810_v34  ;;  %v6789_v10 = vpop.f32.mrf.mxu0  ;;  %v10674_v34 = vor.u32 %v12428_v48, %v10671_v8  ;;  %v10590_v48 = vor.u32 %v12407_v40, %v10587_v58  ;;  %v10473_v8 = vld [vmem:[%s13335_s24 + $0xf0] sm:$0xf] }
 0x363   : > { %7008 = vmatpush.bf16.msrb.mxu1 %v11034_v33  ;;  %v6802_v11 = vpop.f32.mrf.mxu1  ;;  %v6790_v55 = vadd.f32 %v6789_v10, %v13902_v13  ;;  %v12400_v33 = vld [vmem:[%s13335_s24 + $0x19c] sm:$0xf]  ;;  %v10559_v13 = vld [vmem:[%s13335_s24 + $0x1b4] sm:$0xf0]  ;;  %v12382_v10 = vld [vmem:[%s13335_s24 + $0x108] sm:$0xf0] }
 0x364   : > { %v10562_v0 = vor.u32 %v12400_v33, %v10559_v13  ;;  %v10474_v36 = vor.u32 %v12382_v10, %v10473_v8  ;;  %v10447_v13 = vld [vmem:[%s13335_s24 + $0xd4] sm:$0xf0]  ;;  %v12627_v10 = vld [vmem:[%s13335_s24 + $0x8b0] sm:$0xf0] }
 0x365   : > { %6996 = vmatmul.bf16.vlgmr.msrb.gmra.mxu0 %v13611_v19  ;;  %6916 = vmatpush.bf16.msrb.mxu2 %v10610_v18  ;;  %v10566_v18 = vor.u32 %v12404_v3, %v10565_v1  ;;  %v10361_v1 = vld [vmem:[%s13335_s24 + $0x10] sm:$0xf]  ;;  %v11453_v8 = vld [vmem:[%s13335_s24 + $0x898] sm:$0xf] }
 0x366   : > { %7040 = vmatpush.bf16.msra.mxu0 %v10786_v35  ;;  %7009 = vmatmul.bf16.vlgmr.msrb.gmra.mxu1 %v13613_v61  ;;  %v13968_v35 = vadd.f32 %v6802_v11, %v6790_v55  ;;  %v10814_v11 = vor.u32 %v12463_v59, %v10811_v60  ;;  %v10537_v55 = vld [vmem:[%s13335_s24 + $0x168] sm:$0xf]  ;;  %v10677_v59 = vld [vmem:[%s13335_s24 + $0x280] sm:$0xf]  ;;  %v12432_v60 = vld [vmem:[%s13335_s24 + $0x298] sm:$0xf0] }
 0x367   : > { %7053 = vmatpush.bf16.msra.mxu1 %v11010_v49  ;;  %v10643_v49 = vld [vmem:[%s13335_s24 + $0x25c] sm:$0xf0]  ;;  %6981 = vmatpush.bf16.msra.mxu3 %v10614_v21  ;;  %v12397_v21 = vld [vmem:[%s13335_s24 + $0x180] sm:$0xf0] }
 0x368   : > { %v10646_v46 = vor.u32 %v12421_v32, %v10643_v49  ;;  %v10538_v33 = vor.u32 %v12397_v21, %v10537_v55  ;;  %v10762_v32 = vor.u32 %v12453_v17, %v10761_v37  ;;  %v10509_v49 = vld [vmem:[%s13335_s24 + $0x130] sm:$0xf]  ;;  %v10362_v55 = vor.u32 %v12354_v6, %v10361_v1  ;;  %v10649_v21 = vld [vmem:[%s13335_s24 + $0x248] sm:$0xf]  ;;  %v11341_v6 = vld [vmem:[%s13335_s24 + $0x7b8] sm:$0xf] }
 0x369   : > { %6917 = vmatpush.bf16.msrb.mxu2 %v10582_v41  ;;  %v12390_v41 = vld [vmem:[%s13335_s24 + $0x148] sm:$0xf0]  ;;  %v11454_v17 = vor.u32 %v12627_v10, %v11453_v8  ;;  %v11343_v8 = vld [vmem:[%s13335_s24 + $0x7d4] sm:$0xf0]  ;;  %v11405_v10 = vld [vmem:[%s13335_s24 + $0x830] sm:$0xf] }
 0x36a   : > { %7041 = vmatpush.bf16.msra.mxu0 %v10758_v47  ;;  %v12396_v47 = vld [vmem:[%s13335_s24 + $0x178] sm:$0xf0]  ;;  %v6791_v31 = vpop.f32.mrf.mxu0 }
 0x36b   : > { %7054 = vmatpush.bf16.msra.mxu1 %v10982_v63  ;;  %v10531_v63 = vld [vmem:[%s13335_s24 + $0x17c] sm:$0xf0]  ;;  %v6804_v23 = vpop.f32.mrf.mxu1  ;;  %6982 = vmatpush.bf16.msra.mxu3 %v10586_v43  ;;  %v10530_v54 = vor.u32 %v12396_v47, %v10529_v57  ;;  %v12446_v43 = vld [vmem:[%s13335_s24 + $0x308] sm:$0xf0]  ;;  %v10510_v57 = vor.u32 %v12390_v41, %v10509_v49  ;;  %v12365_v47 = vld [vmem:[%s13335_s24 + $0x84] sm:$0xf] }
 0x36c   : > { %6918 = vmatmul.bf16.vlgmr.msrb.gmra.mxu2 %v13557_v42  ;;  %v10705_v31 = vld [vmem:[%s13335_s24 + $0x2b8] sm:$0xf]  ;;  %v12439_v23 = vld [vmem:[%s13335_s24 + $0x2d0] sm:$0xf0]  ;;  %v10397_v49 = vld [vmem:[%s13335_s24 + $0x50] sm:$0xf] }
 0x36d   : > { %6962 = vmatpush.bf16.msra.mxu2 %v10558_v22  ;;  %v12362_v41 = vld [vmem:[%s13335_s24 + $0x68] sm:$0xf0] }
 0x36e   : > { %7042 = vmatpush.bf16.msra.mxu0 %v10730_v27  ;;  %v10534_v27 = vor.u32 %v12393_v51, %v10531_v63  ;;  %6983 = vmatmul.bf16.vlgmr.msra.gmra.mxu3 %v13557_v42  ;;  %v10419_v51 = vld [vmem:[%s13335_s24 + $0x9c] sm:$0xf0]  ;;  %v10481_v63 = vld [vmem:[%s13335_s24 + $0xf8] sm:$0xf] }
 0x36f   : > { %7055 = vmatpush.bf16.msra.mxu1 %v10954_v56  ;;  %7027 = vmatpush.bf16.msrb.mxu3 %v10562_v0  ;;  %v12386_v56 = vld [vmem:[%s13335_s24 + $0x12c] sm:$0xf]  ;;  %v10417_v0 = vld [vmem:[%s13335_s24 + $0x80] sm:$0xf]  ;;  %v10422_v24 = vor.u32 %v12365_v47, %v10419_v51  ;;  %v10398_v47 = vor.u32 %v12362_v41, %v10397_v49  ;;  %v12613_v51 = vld [vmem:[%s13335_s24 + $0x840] sm:$0xf0] }
 0x371   : > { %6963 = vmatpush.bf16.msra.mxu2 %v10530_v54  ;;  %v12361_v54 = vld [vmem:[%s13335_s24 + $0x60] sm:$0xf0] }
 0x372   : > { %7043 = vmatpush.bf16.msra.mxu0 %v10702_v2  ;;  %v10502_v2 = vor.u32 %v12389_v38, %v10501_v4  ;;  %v10482_v4 = vor.u32 %v12383_v52, %v10481_v63  ;;  %v10706_v38 = vor.u32 %v12439_v23, %v10705_v31  ;;  %v10390_v58 = vor.u32 %v12361_v54, %v10389_v53  ;;  %v11399_v63 = vld [vmem:[%s13335_s24 + $0x844] sm:$0xf0]  ;;  %v12355_v31 = vld [vmem:[%s13335_s24 + $0x30] sm:$0xf0]  ;;  %v10593_v23 = vld [vmem:[%s13335_s24 + $0x1d8] sm:$0xf] }
 0x373   : > { %7056 = vmatpush.bf16.msra.mxu1 %v10926_v20  ;;  %7028 = vmatpush.bf16.msrb.mxu3 %v10534_v27  ;;  %v10506_v20 = vor.u32 %v12386_v56, %v10503_v29  ;;  %v12358_v27 = vld [vmem:[%s13335_s24 + $0x4c] sm:$0xf]  ;;  %v10453_v56 = vld [vmem:[%s13335_s24 + $0xc0] sm:$0xf]  ;;  %v12376_v29 = vld [vmem:[%s13335_s24 + $0xd8] sm:$0xf0] }
 0x374   : > { %v11461_v53 = vld [vmem:[%s13335_s24 + $0x8a0] sm:$0xf]  ;;  %v12628_v54 = vld [vmem:[%s13335_s24 + $0x8b8] sm:$0xf0] }
 0x375   : > { %6964 = vmatpush.bf16.msra.mxu2 %v10502_v2 }
 0x376   : > { %7044 = vmatpush.bf16.msra.mxu0 %v10674_v34  ;;  %v10478_v34 = vor.u32 %v12379_v14, %v10475_v15  ;;  %v11455_v14 = vld [vmem:[%s13335_s24 + $0x8b4] sm:$0xf0]  ;;  %v10425_v15 = vld [vmem:[%s13335_s24 + $0x88] sm:$0xf] }
 0x377   : > { %7057 = vmatpush.bf16.msra.mxu1 %v10898_v25  ;;  %7029 = vmatpush.bf16.msrb.mxu3 %v10506_v20  ;;  %v12372_v25 = vld [vmem:[%s13335_s24 + $0xbc] sm:$0xf]  ;;  %v10363_v20 = vld [vmem:[%s13335_s24 + $0x2c] sm:$0xf0] }
 0x378   : > { %v10450_v22 = vor.u32 %v12372_v25, %v10447_v13  ;;  %v10366_v37 = vor.u32 %v12351_v7, %v10363_v20  ;;  %v12617_v25 = vld [vmem:[%s13335_s24 + $0x864] sm:$0xf]  ;;  %v12599_v7 = vld [vmem:[%s13335_s24 + $0x7d0] sm:$0xf0] }
 0x379   : > { %6965 = vmatpush.bf16.msra.mxu2 %v10474_v36  ;;  %v12425_v36 = vld [vmem:[%s13335_s24 + $0x260] sm:$0xf0] }
 0x37a   : > { %7045 = vmatpush.bf16.msra.mxu0 %v10646_v46  ;;  %v12368_v46 = vld [vmem:[%s13335_s24 + $0x98] sm:$0xf0]  ;;  %v10650_v13 = vor.u32 %v12425_v36, %v10649_v21  ;;  %v12589_v21 = vld [vmem:[%s13335_s24 + $0x784] sm:$0xf]  ;;  %v11315_v36 = vld [vmem:[%s13335_s24 + $0x79c] sm:$0xf0] }
 0x37b   : > { %7058 = vmatpush.bf16.msra.mxu1 %v10870_v50  ;;  %7030 = vmatpush.bf16.msrb.mxu3 %v10478_v34  ;;  %v10734_v50 = vor.u32 %v12446_v43, %v10733_v16  ;;  %v10418_v9 = vor.u32 %v12368_v46, %v10417_v0  ;;  %v10621_v43 = vld [vmem:[%s13335_s24 + $0x210] sm:$0xf]  ;;  %v11397_v46 = vld [vmem:[%s13335_s24 + $0x828] sm:$0xf] }
 0x37d   : > { %6966 = vmatpush.bf16.msra.mxu2 %v10446_v12 }
 0x37e   : > { %7046 = vmatpush.bf16.msra.mxu0 %v10618_v5  ;;  %v10391_v5 = vld [vmem:[%s13335_s24 + $0x64] sm:$0xf0] }
 0x37f   : > { %7059 = vmatpush.bf16.msra.mxu1 %v10842_v45  ;;  %7031 = vmatpush.bf16.msrb.mxu3 %v10450_v22  ;;  %v10394_v2 = vor.u32 %v12358_v27, %v10391_v5  ;;  %v12418_v22 = vld [vmem:[%s13335_s24 + $0x228] sm:$0xf0] }
 0x380   : > { %v10622_v52 = vor.u32 %v12418_v22, %v10621_v43  ;;  %v12578_v43 = vld [vmem:[%s13335_s24 + $0x728] sm:$0xf0]  ;;  %v12575_v22 = vld [vmem:[%s13335_s24 + $0x714] sm:$0xf] }
 0x381   : > { %6967 = vmatpush.bf16.msra.mxu2 %v10418_v9  ;;  %v10369_v9 = vld [vmem:[%s13335_s24 + $0x18] sm:$0xf] }
 0x382   : > { %7047 = vmatpush.bf16.msra.mxu0 %v10590_v48  ;;  %v6841_v45 = vpop.f32.mrf.mxu0  ;;  %v10454_v48 = vor.u32 %v12376_v29, %v10453_v56  ;;  %v10370_v5 = vor.u32 %v12355_v31, %v10369_v9  ;;  %v12606_v56 = vld [vmem:[%s13335_s24 + $0x808] sm:$0xf0] }
 0x383   : > { %7060 = vmatpush.bf16.msra.mxu1 %v10814_v11  ;;  %v6854_v40 = vpop.f32.mrf.mxu1  ;;  %7032 = vmatpush.bf16.msrb.mxu3 %v10422_v24  ;;  %v12624_v11 = vld [vmem:[%s13335_s24 + $0x89c] sm:$0xf]  ;;  %v12411_v24 = vld [vmem:[%s13335_s24 + $0x1f0] sm:$0xf0] }
 0x384   : > { %v14032_v3 = vadd.f32 %v6854_v40, %v6841_v45  ;;  %v11458_v34 = vor.u32 %v12624_v11, %v11455_v14  ;;  %v10594_v29 = vor.u32 %v12411_v24, %v10593_v23  ;;  %v11462_v45 = vor.u32 %v12628_v54, %v11461_v53  ;;  %v12603_v40 = vld [vmem:[%s13335_s24 + $0x7f4] sm:$0xf]  ;;  %v12614_v11 = vld [vmem:[%s13335_s24 + $0x848] sm:$0xf0]  ;;  %v12561_v24 = vld [vmem:[%s13335_s24 + $0x6a4] sm:$0xf] }
 0x385   : > { %7048 = vmatmul.bf16.vlgmr.msra.gmra.mxu0 %v13557_v42  ;;  %6968 = vmatpush.bf16.msra.mxu2 %v10390_v58  ;;  %v11371_v58 = vld [vmem:[%s13335_s24 + $0x80c] sm:$0xf0]  ;;  %v11203_v53 = vld [vmem:[%s13335_s24 + $0x6bc] sm:$0xf0] }
 0x386   : > { %7092 = vmatpush.bf16.msrb.mxu0 %v10566_v18  ;;  %7061 = vmatmul.bf16.vlgmr.msra.gmra.mxu1 %v13611_v19  ;;  %v10678_v18 = vor.u32 %v12432_v60, %v10677_v59  ;;  %v11433_v59 = vld [vmem:[%s13335_s24 + $0x868] sm:$0xf]  ;;  %v12621_v60 = vld [vmem:[%s13335_s24 + $0x880] sm:$0xf0] }
 0x387   : > { %7105 = vmatpush.bf16.msrb.mxu1 %v10790_v39  ;;  %v12369_v39 = vld [vmem:[%s13335_s24 + $0xa0] sm:$0xf0]  ;;  %7033 = vmatpush.bf16.msrb.mxu3 %v10394_v2  ;;  %v11374_v2 = vor.u32 %v12603_v40, %v11371_v58  ;;  %v11434_v20 = vor.u32 %v12621_v60, %v11433_v59  ;;  %v11206_v59 = vor.u32 %v12561_v24, %v11203_v53  ;;  %v12554_v60 = vld [vmem:[%s13335_s24 + $0x66c] sm:$0xf] }
 0x388   : > { %v10426_v26 = vor.u32 %v12369_v39, %v10425_v15  ;;  %v11313_v15 = vld [vmem:[%s13335_s24 + $0x780] sm:$0xf]  ;;  %v12592_v39 = vld [vmem:[%s13335_s24 + $0x798] sm:$0xf0] }
 0x389   : > { %6969 = vmatpush.bf16.msra.mxu2 %v10362_v55  ;;  %v11406_v55 = vor.u32 %v12614_v11, %v11405_v10  ;;  %v11585_v10 = vld [vmem:[#allocation9 + $0xf0] sm:$0xf]  ;;  %v12661_v11 = vld [vmem:[#allocation9 + $0x100] sm:$0xf0] }
 0x38a   : > { %7093 = vmatpush.bf16.msrb.mxu0 %v10538_v33  ;;  %v12620_v33 = vld [vmem:[%s13335_s24 + $0x878] sm:$0xf0]  ;;  %v6843_v12 = vpop.f32.mrf.mxu0 }
 0x38b   : > { %7106 = vmatpush.bf16.msrb.mxu1 %v10762_v32  ;;  %v11427_v32 = vld [vmem:[%s13335_s24 + $0x87c] sm:$0xf0]  ;;  %v6856_v16 = vpop.f32.mrf.mxu1  ;;  %7034 = vmatpush.bf16.msrb.mxu3 %v10366_v37  ;;  %v11426_v0 = vor.u32 %v12620_v33, %v11425_v30  ;;  %v11377_v37 = vld [vmem:[%s13335_s24 + $0x7f8] sm:$0xf]  ;;  %v12582_v33 = vld [vmem:[%s13335_s24 + $0x74c] sm:$0xf] }
 0x38c   : > { %6970 = vmatmul.bf16.vlgmr.msra.gmra.mxu2 %v13555_v28  ;;  %v11257_v12 = vld [vmem:[%s13335_s24 + $0x710] sm:$0xf] }
 0x38d   : > { %7014 = vmatpush.bf16.msrb.mxu2 %v11454_v17  ;;  %v11314_v17 = vor.u32 %v12592_v39, %v11313_v15  ;;  %v11258_v9 = vor.u32 %v12578_v43, %v11257_v12  ;;  %v12544_v12 = vld [vmem:[%s13335_s24 + $0x618] sm:$0xf0] }
 0x38e   : > { %7094 = vmatpush.bf16.msrb.mxu0 %v10510_v57  ;;  %v11430_v57 = vor.u32 %v12617_v25, %v11427_v32  ;;  %7035 = vmatmul.bf16.vlgmr.msrb.gmra.mxu3 %v13555_v28  ;;  %v11287_v25 = vld [vmem:[%s13335_s24 + $0x764] sm:$0xf0]  ;;  %v12600_v32 = vld [vmem:[%s13335_s24 + $0x7d8] sm:$0xf0] }
 0x38f   : > { %7107 = vmatpush.bf16.msrb.mxu1 %v10734_v50  ;;  %7079 = vmatpush.bf16.msra.mxu3 %v11458_v34  ;;  %v12610_v50 = vld [vmem:[%s13335_s24 + $0x82c] sm:$0xf]  ;;  %v11285_v34 = vld [vmem:[%s13335_s24 + $0x748] sm:$0xf]  ;;  %v11290_v16 = vor.u32 %v12582_v33, %v11287_v25  ;;  %v11119_v25 = vld [vmem:[%s13335_s24 + $0x614] sm:$0xf0] }
 0x390   : > { %v11402_v27 = vor.u32 %v12610_v50, %v11399_v63  ;;  %v12572_v50 = vld [vmem:[%s13335_s24 + $0x6f8] sm:$0xf0]  ;;  %v11321_v63 = vld [vmem:[%s13335_s24 + $0x788] sm:$0xf] }
 0x391   : > { %7015 = vmatpush.bf16.msrb.mxu2 %v11426_v0  ;;  %v11259_v0 = vld [vmem:[%s13335_s24 + $0x72c] sm:$0xf0] }
 0x392   : > { %7095 = vmatpush.bf16.msrb.mxu0 %v10482_v4  ;;  %v11398_v4 = vor.u32 %v12613_v51, %v11397_v46  ;;  %v11237_v51 = vld [vmem:[%s13335_s24 + $0x6e0] sm:$0xf]  ;;  %v11262_v31 = vor.u32 %v12575_v22, %v11259_v0  ;;  %v12533_v0 = vld [vmem:[%s13335_s24 + $0x5c4] sm:$0xf] }
 0x393   : > { %7108 = vmatpush.bf16.msrb.mxu1 %v10706_v38  ;;  %7080 = vmatpush.bf16.msra.mxu3 %v11430_v57  ;;  %v11369_v38 = vld [vmem:[%s13335_s24 + $0x7f0] sm:$0xf]  ;;  %v12568_v57 = vld [vmem:[%s13335_s24 + $0x6dc] sm:$0xf]  ;;  %v11238_v54 = vor.u32 %v12572_v50, %v11237_v51  ;;  %v12537_v50 = vld [vmem:[%s13335_s24 + $0x5e0] sm:$0xf0] }
 0x394   : > { %v11370_v1 = vor.u32 %v12606_v56, %v11369_v38  ;;  %v11293_v38 = vld [vmem:[%s13335_s24 + $0x750] sm:$0xf]  ;;  %v12586_v56 = vld [vmem:[%s13335_s24 + $0x768] sm:$0xf0] }
 0x395   : > { %7016 = vmatpush.bf16.msrb.mxu2 %v11398_v4 }
 0x396   : > { %7096 = vmatpush.bf16.msrb.mxu0 %v10454_v48  ;;  %v12596_v48 = vld [vmem:[%s13335_s24 + $0x7bc] sm:$0xf] }
 0x397   : > { %7109 = vmatpush.bf16.msrb.mxu1 %v10678_v18  ;;  %7081 = vmatpush.bf16.msra.mxu3 %v11402_v27  ;;  %v11342_v18 = vor.u32 %v12599_v7, %v11341_v6  ;;  %v11346_v14 = vor.u32 %v12596_v48, %v11343_v8  ;;  %v11209_v27 = vld [vmem:[%s13335_s24 + $0x6a8] sm:$0xf]  ;;  %v11294_v6 = vor.u32 %v12586_v56, %v11293_v38  ;;  %v11181_v7 = vld [vmem:[%s13335_s24 + $0x670] sm:$0xf]  ;;  %v11265_v48 = vld [vmem:[%s13335_s24 + $0x718] sm:$0xf] }
 0x398   : > { %v12579_v8 = vld [vmem:[%s13335_s24 + $0x730] sm:$0xf0]  ;;  %v11505_v38 = vld [vmem:[#allocation9 + $0x50] sm:$0xf] }
 0x399   : > { %7017 = vmatpush.bf16.msrb.mxu2 %v11370_v1  ;;  %v11175_v1 = vld [vmem:[%s13335_s24 + $0x684] sm:$0xf0]  ;;  %v11266_v39 = vor.u32 %v12579_v8, %v11265_v48  ;;  %v12636_v48 = vld [vmem:[#allocation9 + $0x38] sm:$0xf0] }
 0x39a   : > { %7097 = vmatpush.bf16.msrb.mxu0 %v10426_v26  ;;  %v12585_v26 = vld [vmem:[%s13335_s24 + $0x760] sm:$0xf0] }
 0x39b   : > { %7110 = vmatpush.bf16.msrb.mxu1 %v10650_v13  ;;  %7082 = vmatpush.bf16.msra.mxu3 %v11374_v2  ;;  %v11349_v13 = vld [vmem:[%s13335_s24 + $0x7c0] sm:$0xf]  ;;  %v11286_v41 = vor.u32 %v12585_v26, %v11285_v34  ;;  %v12540_v26 = vld [vmem:[%s13335_s24 + $0x5fc] sm:$0xf] }
 0x39c   : > { %v11350_v46 = vor.u32 %v12600_v32, %v11349_v13  ;;  %v11545_v13 = vld [vmem:[#allocation9 + $0xa0] sm:$0xf]  ;;  %v12651_v32 = vld [vmem:[#allocation9 + $0xb0] sm:$0xf0]  ;;  %v11122_v43 = vor.u32 %v12540_v26, %v11119_v25  ;;  %v12668_v26 = vld [vmem:[#allocation9 + $0x138] sm:$0xf0] }
 0x39d   : > { %7018 = vmatpush.bf16.msrb.mxu2 %v11342_v18  ;;  %v11586_v18 = vor.u32 %v12661_v11, %v11585_v10 }
 0x39e   : > { %7098 = vmatpush.bf16.msrb.mxu0 %v10398_v47  ;;  %v11231_v47 = vld [vmem:[%s13335_s24 + $0x6f4] sm:$0xf0] }
 0x39f   : > { %7111 = vmatpush.bf16.msrb.mxu1 %v10622_v52  ;;  %7083 = vmatpush.bf16.msra.mxu3 %v11346_v14  ;;  %v12593_v52 = vld [vmem:[%s13335_s24 + $0x7a0] sm:$0xf0]  ;;  %v11234_v23 = vor.u32 %v12568_v57, %v11231_v47  ;;  %v11178_v14 = vor.u32 %v12554_v60, %v11175_v1  ;;  %v11097_v57 = vld [vmem:[%s13335_s24 + $0x5c8] sm:$0xf]  ;;  %v12523_v60 = vld [vmem:[%s13335_s24 + $0x570] sm:$0xf0] }
 0x3a0   : > { %v11322_v4 = vor.u32 %v12593_v52, %v11321_v63  ;;  %v11525_v63 = vld [vmem:[#allocation9 + $0x78] sm:$0xf]  ;;  %v12646_v52 = vld [vmem:[#allocation9 + $0x88] sm:$0xf0] }
 0x3a1   : > { %7019 = vmatpush.bf16.msrb.mxu2 %v11314_v17  ;;  %v12656_v17 = vld [vmem:[#allocation9 + $0xd8] sm:$0xf0]  ;;  %v11013_v1 = vld [vmem:[%s13335_s24 + $0x520] sm:$0xf] }
 0x3a2   : > { %7099 = vmatpush.bf16.msrb.mxu0 %v10370_v5  ;;  %v12565_v5 = vld [vmem:[%s13335_s24 + $0x6c0] sm:$0xf0] }
 0x3a3   : > { %7112 = vmatpush.bf16.msrb.mxu1 %v10594_v29  ;;  %v14091_v49 = vpop.f32.mrf.mxu1  ;;  %v11605_v29 = vld [vmem:[#allocation9 + $0x118] sm:$0xf]  ;;  %v11210_v2 = vor.u32 %v12565_v5, %v11209_v27  ;;  %v11069_v27 = vld [vmem:[%s13335_s24 + $0x590] sm:$0xf]  ;;  %v12530_v5 = vld [vmem:[%s13335_s24 + $0x5a8] sm:$0xf0] }
 0x3a5   : > { %7100 = vmatmul.bf16.vlgmr.msrb.gmra.mxu0 %v13555_v28  ;;  %v12607_v28 = vld [vmem:[%s13335_s24 + $0x810] sm:$0xf0]  ;;  %7020 = vmatpush.bf16.msrb.mxu2 %v11286_v41  ;;  %v11125_v41 = vld [vmem:[%s13335_s24 + $0x600] sm:$0xf] }
 0x3a6   : > { %7144 = vmatpush.bf16.msra.mxu0 %v11462_v45  ;;  %7113 = vmatmul.bf16.vlgmr.msrb.gmra.mxu1 %v13557_v42  ;;  %v11318_v42 = vor.u32 %v12589_v21, %v11315_v36  ;;  %v11378_v30 = vor.u32 %v12607_v28, %v11377_v37  ;;  %v12666_v45 = vld [vmem:[#allocation9 + $0x128] sm:$0xf0]  ;;  %v11147_v21 = vld [vmem:[%s13335_s24 + $0x64c] sm:$0xf0]  ;;  %v11153_v36 = vld [vmem:[%s13335_s24 + $0x638] sm:$0xf]  ;;  %v11126_v22 = vor.u32 %v12544_v12, %v11125_v41 }
 0x3a7   : > { %v11606_v58 = vor.u32 %v12666_v45, %v11605_v29  ;;  %v12551_v37 = vld [vmem:[%s13335_s24 + $0x650] sm:$0xf0]  ;;  %v11565_v28 = vld [vmem:[#allocation9 + $0xc8] sm:$0xf] }
 0x3a8   : > { %7084 = vmatpush.bf16.msra.mxu3 %v11318_v42  ;;  %v11566_v42 = vor.u32 %v12656_v17, %v11565_v28  ;;  %v11154_v33 = vor.u32 %v12551_v37, %v11153_v36  ;;  %v12519_v45 = vld [vmem:[%s13335_s24 + $0x554] sm:$0xf]  ;;  %v12667_v36 = vld [vmem:[#allocation9 + $0x130] sm:$0xf0]  ;;  %v11465_v37 = vld [vmem:[#allocation9] sm:$0xf] }
 0x3a9   : > { %7021 = vmatpush.bf16.msrb.mxu2 %v11258_v9  ;;  %7429 = vmatpush.bf16.msra.mxu1 %v11606_v58  ;;  %v11526_v9 = vor.u32 %v12646_v52, %v11525_v63  ;;  %v11070_v58 = vor.u32 %v12530_v5, %v11069_v27  ;;  %v12631_v28 = vld [vmem:[#allocation9 + $0x10] sm:$0xf0]  ;;  %v12662_v41 = vld [vmem:[#allocation9 + $0x108] sm:$0xf0]  ;;  %v10929_v63 = vld [vmem:[%s13335_s24 + $0x478] sm:$0xf] }
 0x3aa   : > { %7145 = vmatpush.bf16.msra.mxu0 %v11434_v20  ;;  %v12558_v20 = vld [vmem:[%s13335_s24 + $0x688] sm:$0xf0]  ;;  %v12495_v52 = vld [vmem:[%s13335_s24 + $0x490] sm:$0xf0] }
 0x3ab   : > { %v6908_v40 = vpop.f32.mrf.mxu1  ;;  %v11182_v15 = vor.u32 %v12558_v20, %v11181_v7  ;;  %v12516_v7 = vld [vmem:[%s13335_s24 + $0x538] sm:$0xf0]  ;;  %v11485_v20 = vld [vmem:[#allocation9 + $0x28] sm:$0xf]  ;;  %v12658_v27 = vld [vmem:[#allocation9 + $0xe8] sm:$0xf0] }
 0x3ac   : > { %7085 = vmatpush.bf16.msra.mxu3 %v11290_v16  ;;  %7022 = vmatmul.bf16.vlgmr.msrb.gmra.mxu2 %v13824_v62  ;;  %v11546_v16 = vor.u32 %v12651_v32, %v11545_v13  ;;  %v11035_v40 = vld [vmem:[%s13335_s24 + $0x56c] sm:$0xf0]  ;;  %v11486_v10 = vor.u32 %v12636_v48, %v11485_v20  ;;  %v11593_v32 = vld [vmem:[#allocation9 + $0xf8] sm:$0xf]  ;;  %v12653_v20 = vld [vmem:[#allocation9 + $0xc0] sm:$0xf0] }
 0x3ad   : > { %7066 = vmatpush.bf16.msra.mxu2 %v11234_v23  ;;  %7430 = vmatpush.bf16.msra.mxu1 %v11586_v18  ;;  %v12526_v23 = vld [vmem:[%s13335_s24 + $0x58c] sm:$0xf]  ;;  %v11038_v11 = vor.u32 %v12519_v45, %v11035_v40  ;;  %v10957_v13 = vld [vmem:[%s13335_s24 + $0x4b0] sm:$0xf]  ;;  %v12652_v45 = vld [vmem:[#allocation9 + $0xb8] sm:$0xf0] }
 0x3ae   : > { %7146 = vmatpush.bf16.msra.mxu0 %v11406_v55  ;;  %v12547_v55 = vld [vmem:[%s13335_s24 + $0x634] sm:$0xf]  ;;  %v6763_v47 = vpop.f32.mrf.mxu2  ;;  %v10873_v48 = vld [vmem:[%s13335_s24 + $0x408] sm:$0xf] }
 0x3af   : > { %v11150_v34 = vor.u32 %v12547_v55, %v11147_v21  ;;  %v14132_v51 = vpop.f32.mrf.mxu3  ;;  %v11613_v55 = vld [vmem:[#allocation9 + $0x120] sm:$0xf] }
 0x3b0   : > { %7086 = vmatpush.bf16.msra.mxu3 %v11262_v31  ;;  %v11614_v17 = vor.u32 %v12667_v36, %v11613_v55  ;;  %v11575_v55 = vld [vmem:[#allocation9 + $0xe4] sm:$0xf0]  ;;  %v7171_v36 = vld [vmem:[#allocation8] sm:$0xff] }
 0x3b1   : > { %7067 = vmatpush.bf16.msra.mxu2 %v11206_v59  ;;  %7431 = vmatpush.bf16.msra.mxu1 %v11566_v42  ;;  %v11041_v59 = vld [vmem:[%s13335_s24 + $0x558] sm:$0xf]  ;;  %v11466_v42 = vor.u32 %v12631_v28, %v11465_v37  ;;  %v14170_v28 = vpack.c.bf16 %v7171_v36, %v7171_v36  ;;  %v12654_v36 = vld [vmem:[#allocation9 + $0xcc] sm:$0xf] }
 0x3b2   : > { %7147 = vmatpush.bf16.msra.mxu0 %v11378_v30  ;;  %v14122_v30 = vpop.f32.mrf.mxu0  ;;  %v11042_v18 = vor.u32 %v12523_v60, %v11041_v59  ;;  %v12660_v59 = vld [vmem:[#allocation9 + $0xfc] sm:$0xf]  ;;  %v11595_v60 = vld [vmem:[#allocation9 + $0x10c] sm:$0xf0] }
 0x3b3   : > { %7087 = vmatmul.bf16.vlgmr.msra.gmra.mxu3 %v13824_v62 }
 0x3b4   : > { %7131 = vmatpush.bf16.msrb.mxu3 %v11238_v54  ;;  %v11098_v54 = vor.u32 %v12537_v50, %v11097_v57 }
 0x3b5   : > { %7068 = vmatpush.bf16.msra.mxu2 %v11178_v14  ;;  %7432 = vmatpush.bf16.msra.mxu1 %v11546_v16  ;;  %v11014_v14 = vor.u32 %v12516_v7, %v11013_v1  ;;  %v11561_v1 = vld [vmem:[#allocation9 + $0xb0] sm:$0xf]  ;;  %v11598_v7 = vor.u32 %v12660_v59, %v11595_v60  ;;  %v12632_v60 = vld [vmem:[#allocation9 + $0x18] sm:$0xf0] }
 0x3b6   : > { %7148 = vmatpush.bf16.msra.mxu0 %v11350_v46  ;;  %v11091_v46 = vld [vmem:[%s13335_s24 + $0x5dc] sm:$0xf0] }
 0x3b7   : > { %v11094_v31 = vor.u32 %v12533_v0, %v11091_v46  ;;  %v6830_v8 = vpop.f32.mrf.mxu3  ;;  %v11601_v0 = vld [vmem:[#allocation9 + $0x100] sm:$0xf]  ;;  %v12663_v46 = vld [vmem:[#allocation9 + $0x110] sm:$0xf0] }
 0x3b8   : > { %7132 = vmatpush.bf16.msrb.mxu3 %v11210_v2  ;;  %v11602_v50 = vor.u32 %v12663_v46, %v11601_v0  ;;  %v11562_v8 = vor.u32 %v12653_v20, %v11561_v1  ;;  %v12640_v1 = vld [vmem:[#allocation9 + $0x5c] sm:$0xf]  ;;  %v11515_v20 = vld [vmem:[#allocation9 + $0x6c] sm:$0xf0] }
 0x3b9   : > { %7069 = vmatpush.bf16.msra.mxu2 %v11150_v34  ;;  %7433 = vmatpush.bf16.msra.mxu1 %v11526_v9  ;;  %v11621_v34 = vld [vmem:[#allocation9 + $0x128] sm:$0xf] }
 0x3ba   : > { %7149 = vmatpush.bf16.msra.mxu0 %v11322_v4  ;;  %v6895_v53 = vpop.f32.mrf.mxu0  ;;  %v11063_v4 = vld [vmem:[%s13335_s24 + $0x5a4] sm:$0xf0] }
 0x3bb   : > { %v11066_v29 = vor.u32 %v12526_v23, %v11063_v4  ;;  %v12657_v23 = vld [vmem:[#allocation9 + $0xe0] sm:$0xf0]  ;;  %v11581_v4 = vld [vmem:[#allocation9 + $0xd8] sm:$0xf] }
 0x3bc   : > { %7133 = vmatpush.bf16.msrb.mxu3 %v11182_v15  ;;  %v10985_v15 = vld [vmem:[%s13335_s24 + $0x4e8] sm:$0xf] }
 0x3bd   : > { %7070 = vmatpush.bf16.msra.mxu2 %v11122_v43  ;;  %v12502_v43 = vld [vmem:[%s13335_s24 + $0x4c8] sm:$0xf0] }
 0x3be   : > { %7150 = vmatpush.bf16.msra.mxu0 %v11294_v6  ;;  %v6765_v6 = vpop.f32.mrf.mxu2  ;;  %v10958_v9 = vor.u32 %v12502_v43, %v10957_v13  ;;  %v11513_v13 = vld [vmem:[#allocation9 + $0x58] sm:$0xf] }
 0x3c0   : > { %7134 = vmatpush.bf16.msrb.mxu3 %v11154_v33  ;;  %v11622_v33 = vor.u32 %v12668_v26, %v11621_v34 }
 0x3c1   : > { %7071 = vmatpush.bf16.msra.mxu2 %v11094_v31  ;;  %v11573_v31 = vld [vmem:[#allocation9 + $0xd0] sm:$0xf] }
 0x3c2   : > { %7151 = vmatpush.bf16.msra.mxu0 %v11266_v39  ;;  %v12509_v39 = vld [vmem:[%s13335_s24 + $0x500] sm:$0xf0]  ;;  %v14153_v21 = vpop.f32.mrf.mxu0  ;;  %v11574_v53 = vor.u32 %v12657_v23, %v11573_v31  ;;  %v12467_v31 = vld [vmem:[%s13335_s24 + $0x3b0] sm:$0xf0] }
 0x3c3   : > { %v14148_v2 = vpop.f32.mrf.mxu1  ;;  %v10986_v25 = vor.u32 %v12509_v39, %v10985_v15  ;;  %v12481_v15 = vld [vmem:[%s13335_s24 + $0x420] sm:$0xf0] }
 0x3c4   : > { %7135 = vmatpush.bf16.msrb.mxu3 %v11126_v22  ;;  %v11594_v22 = vor.u32 %v12662_v41, %v11593_v32  ;;  %v10874_v26 = vor.u32 %v12481_v15, %v10873_v48  ;;  %v12642_v41 = vld [vmem:[#allocation9 + $0x68] sm:$0xf0]  ;;  %v12664_v23 = vld [vmem:[#allocation9 + $0x11c] sm:$0xf]  ;;  %v11481_v48 = vld [vmem:[#allocation9 + $0x10] sm:$0xf] }
 0x3c5   : > { %7152 = vmatmul.bf16.vlgmr.msra.gmra.mxu0 %v13824_v62  ;;  %v6764_v62 = vadd.f32 %v6763_v47, %v13892_v44  ;;  %v12641_v44 = vld [vmem:[#allocation9 + $0x60] sm:$0xf0]  ;;  %7072 = vmatpush.bf16.msra.mxu2 %v11066_v29  ;;  %v14158_v47 = vpop.f32.mrf.mxu3  ;;  %v11553_v29 = vld [vmem:[#allocation9 + $0xa8] sm:$0xf]  ;;  %v11514_v0 = vor.u32 %v12642_v41, %v11513_v13  ;;  %v12644_v41 = vld [vmem:[#allocation9 + $0x7c] sm:$0xf] }
 0x3c6   : > { %v11506_v56 = vor.u32 %v12641_v44, %v11505_v38  ;;  %v6815_v16 = vpop.f32.mrf.mxu2  ;;  %v11582_v38 = vor.u32 %v12658_v27, %v11581_v4  ;;  %v10901_v44 = vld [vmem:[%s13335_s24 + $0x440] sm:$0xf] }
 0x3c7   : > { %v7157_v24 = vmax.f32 %v6764_v62, 0.0  ;;  %v6816_v57 = vadd.f32 %v6815_v16, %v13968_v35  ;;  %v12665_v35 = vld [vmem:[#allocation9 + $0x124] sm:$0xf]  ;;  %v11555_v16 = vld [vmem:[#allocation9 + $0xbc] sm:$0xf0] }
 0x3c8   : > { %7136 = vmatpush.bf16.msrb.mxu3 %v11098_v54  ;;  %7434 = vmatpush.bf16.msra.mxu1 %v11506_v56  ;;  %v11615_v54 = vld [vmem:[#allocation9 + $0x134] sm:$0xf0]  ;;  %v10930_v56 = vor.u32 %v12495_v52, %v10929_v63  ;;  %v10817_v63 = vld [vmem:[%s13335_s24 + $0x398] sm:$0xf] }
 0x3c9   : > { %7164 = vst [vmem:[%s14140_s9] sm:$0xff] %v7157_v24  ;;  %7073 = vmatpush.bf16.msra.mxu2 %v11038_v11  ;;  %v6829_v62 = vadd.f32 %v14132_v51, %v6816_v57  ;;  %v12488_v51 = vld [vmem:[%s13335_s24 + $0x458] sm:$0xf0]  ;;  %v11533_v11 = vld [vmem:[#allocation9 + $0x80] sm:$0xf] }
 0x3ca   : > { %v6947_v24 = vpop.f32.mrf.mxu0  ;;  %v11521_v57 = vld [vmem:[#allocation9 + $0x60] sm:$0xf] }
 0x3cb   : > { %v6960_v12 = vpop.f32.mrf.mxu1  ;;  %v7158_v5 = vmax.f32 %v6829_v62, 0.0 }
 0x3cc   : > { %7137 = vmatpush.bf16.msrb.mxu3 %v11070_v58  ;;  %7435 = vmatpush.bf16.msra.mxu1 %v11486_v10  ;;  %v11554_v58 = vor.u32 %v12652_v45, %v11553_v29  ;;  %v10902_v10 = vor.u32 %v12488_v51, %v10901_v44  ;;  %v12650_v12 = vld [vmem:[#allocation9 + $0xac] sm:$0xf]  ;;  %v10818_v29 = vor.u32 %v12467_v31, %v10817_v63  ;;  %v12659_v45 = vld [vmem:[#allocation9 + $0xf4] sm:$0xf] }
 0x3cd   : > { %7118 = vmatpush.bf16.msrb.mxu2 %v11014_v14  ;;  %7165 = vst [vmem:[%s14140_s9 + $0x8] sm:$0xff] %v7158_v5  ;;  %v6882_v6 = vpop.f32.mrf.mxu3  ;;  %v12655_v14 = vld [vmem:[#allocation9 + $0xd4] sm:$0xf]  ;;  %v11558_v46 = vor.u32 %v12650_v12, %v11555_v16  ;;  %v11607_v5 = vld [vmem:[#allocation9 + $0x12c] sm:$0xf0] }
 0x3ce   : > { %7074 = vmatmul.bf16.vlgmr.msra.gmra.mxu2 %v13613_v61  ;;  %v6817_v40 = vpop.f32.mrf.mxu2  ;;  %v11578_v37 = vor.u32 %v12655_v14, %v11575_v55  ;;  %v12638_v44 = vld [vmem:[#allocation9 + $0x48] sm:$0xf0]  ;;  %v11610_v59 = vor.u32 %v12664_v23, %v11607_v5  ;;  %v11495_v14 = vld [vmem:[#allocation9 + $0x44] sm:$0xf0]  ;;  %v11527_v12 = vld [vmem:[#allocation9 + $0x8c] sm:$0xf0] }
 0x3cf   : > { %v11587_v40 = vld [vmem:[#allocation9 + $0x104] sm:$0xf0]  ;;  %v11530_v16 = vor.u32 %v12644_v41, %v11527_v12  ;;  %v12629_v23 = vld [vmem:[#allocation9 + $0x4] sm:$0xf]  ;;  %v12683_v41 = vld [vmem:[%s13350_s17 + $0x70] sm:$0xff] }
 0x3d0   : > { %7138 = vmatpush.bf16.msrb.mxu3 %v11042_v18  ;;  %7436 = vmatpush.bf16.msra.mxu1 %v11466_v42  ;;  %v12647_v18 = vld [vmem:[#allocation9 + $0x90] sm:$0xf0]  ;;  %v12648_v42 = vld [vmem:[#allocation9 + $0x98] sm:$0xf0] }
 0x3d1   : > { %7119 = vmatpush.bf16.msrb.mxu2 %v10986_v25  ;;  %v11534_v39 = vor.u32 %v12647_v18, %v11533_v11  ;;  %v12474_v25 = vld [vmem:[%s13335_s24 + $0x3e8] sm:$0xf0]  ;;  %v12635_v18 = vld [vmem:[#allocation9 + $0x34] sm:$0xf] }
 0x3d2   : > { %v12691_v12 = vld [vmem:[%s13350_s17 + $0xb0] sm:$0xff] }
 0x3d3   : > { %7139 = vmatmul.bf16.vlgmr.msrb.gmra.mxu3 %v13613_v61  ;;  %v11618_v61 = vor.u32 %v12665_v35, %v11615_v54  ;;  %7437 = vmatmul.bf16.vlgmr.msra.gmra.mxu1 %v14170_v28  ;;  %v11493_v35 = vld [vmem:[#allocation9 + $0x30] sm:$0xf]  ;;  %v11535_v54 = vld [vmem:[#allocation9 + $0x94] sm:$0xf0] }
 0x3d4   : > { %7455 = vmatpush.bf16.msra.mxu3 %v11614_v17  ;;  %7481 = vmatpush.bf16.msrb.mxu1 %v11622_v33  ;;  %v11541_v17 = vld [vmem:[#allocation9 + $0x88] sm:$0xf] }
 0x3d5   : > { %7120 = vmatpush.bf16.msrb.mxu2 %v10958_v9  ;;  %7468 = vmatpush.bf16.msrb.mxu0 %v11618_v61  ;;  %v11542_v34 = vor.u32 %v12648_v42, %v11541_v17  ;;  %v10845_v33 = vld [vmem:[%s13335_s24 + $0x3d0] sm:$0xf]  ;;  %v11498_v17 = vor.u32 %v12635_v18, %v11495_v14  ;;  %v12630_v42 = vld [vmem:[#allocation9 + $0xc] sm:$0xf]  ;;  %v12672_v14 = vld [vmem:[%s13350_s17 + $0x18] sm:$0xff] }
 0x3d6   : > { %v6867_v32 = vpop.f32.mrf.mxu2  ;;  %v10846_v9 = vor.u32 %v12474_v25, %v10845_v33  ;;  %v12649_v33 = vld [vmem:[#allocation9 + $0xa4] sm:$0xf]  ;;  %v11547_v25 = vld [vmem:[#allocation9 + $0xb4] sm:$0xf0] }
 0x3d7   : > { %v6868_v43 = vadd.f32 %v6867_v32, %v14032_v3  ;;  %v12637_v3 = vld [vmem:[#allocation9 + $0x40] sm:$0xf0]  ;;  %v11550_v32 = vor.u32 %v12649_v33, %v11547_v25 }
 0x3d8   : > { %7456 = vmatpush.bf16.msra.mxu3 %v11594_v22  ;;  %7482 = vmatpush.bf16.msrb.mxu1 %v11602_v50  ;;  %v14176_v22 = vpop.f32.mrf.mxu3  ;;  %v12643_v50 = vld [vmem:[#allocation9 + $0x70] sm:$0xf0]  ;;  %v11494_v61 = vor.u32 %v12637_v3, %v11493_v35  ;;  %v11467_v35 = vld [vmem:[#allocation9 + $0x14] sm:$0xf0] }
 0x3d9   : > { %7121 = vmatpush.bf16.msrb.mxu2 %v10930_v56  ;;  %7469 = vmatpush.bf16.msrb.mxu0 %v11598_v7  ;;  %v11522_v52 = vor.u32 %v12643_v50, %v11521_v57  ;;  %v6881_v62 = vadd.f32 %v14158_v47, %v6868_v43  ;;  %v11507_v43 = vld [vmem:[#allocation9 + $0x64] sm:$0xf0]  ;;  %v12634_v57 = vld [vmem:[#allocation9 + $0x2c] sm:$0xf]  ;;  %v11487_v50 = vld [vmem:[#allocation9 + $0x3c] sm:$0xf0] }
 0x3db   : > { %v6894_v4 = vadd.f32 %v14122_v30, %v6881_v62  ;;  %v11473_v30 = vld [vmem:[#allocation9 + $0x8] sm:$0xf] }
 0x3dc   : > { %7457 = vmatpush.bf16.msra.mxu3 %v11574_v53  ;;  %7483 = vmatpush.bf16.msrb.mxu1 %v11582_v38  ;;  %v12645_v53 = vld [vmem:[#allocation9 + $0x84] sm:$0xf]  ;;  %v11501_v38 = vld [vmem:[#allocation9 + $0x38] sm:$0xf]  ;;  %v11474_v7 = vor.u32 %v12632_v60, %v11473_v30 }
 0x3dd   : > { %7122 = vmatpush.bf16.msrb.mxu2 %v10902_v10  ;;  %7470 = vmatpush.bf16.msrb.mxu0 %v11578_v37  ;;  %v11538_v47 = vor.u32 %v12645_v53, %v11535_v54  ;;  %v11502_v51 = vor.u32 %v12638_v44, %v11501_v38  ;;  %v7159_v56 = vmax.f32 %v6894_v4, 0.0  ;;  %v12633_v10 = vld [vmem:[#allocation9 + $0x20] sm:$0xf0]  ;;  %v11567_v37 = vld [vmem:[#allocation9 + $0xdc] sm:$0xf0]  ;;  %v11470_v4 = vor.u32 %v12629_v23, %v11467_v35  ;;  %v12704_v35 = vld [vmem:[%s13350_s17 + $0x118] sm:$0xff] }
 0x3de   : > { %v11482_v11 = vor.u32 %v12633_v10, %v11481_v48  ;;  %v12673_v10 = vld [vmem:[%s13350_s17 + $0x20] sm:$0xff] }
 0x3df   : > { %7166 = vst [vmem:[%s14140_s9 + $0x10] sm:$0xff] %v7159_v56  ;;  %v12689_v23 = vld [vmem:[%s13350_s17 + $0xa0] sm:$0xff] }
 0x3e0   : > { %7458 = vmatpush.bf16.msra.mxu3 %v11554_v58  ;;  %7484 = vmatpush.bf16.msrb.mxu1 %v11562_v8  ;;  %v6869_v58 = vpop.f32.mrf.mxu2  ;;  %v6934_v6 = vpop.f32.mrf.mxu3  ;;  %v11518_v8 = vor.u32 %v12640_v1, %v11515_v20 }
 0x3e1   : > { %7123 = vmatpush.bf16.msrb.mxu2 %v10874_v26  ;;  %7471 = vmatpush.bf16.msrb.mxu0 %v11558_v46  ;;  %v11570_v26 = vor.u32 %v12654_v36, %v11567_v37  ;;  %v12669_v36 = vld [vmem:[%s13350_s17] sm:$0xff]  ;;  %v12708_v37 = vld [vmem:[%s13350_s17 + $0x138] sm:$0xff] }
 0x3e2   : > { %v14181_v24 = vpop.f32.mrf.mxu0 }
 0x3e3   : > { %v14184_v27 = vpop.f32.mrf.mxu1 }
 0x3e4   : > { %7459 = vmatpush.bf16.msra.mxu3 %v11534_v39  ;;  %7485 = vmatpush.bf16.msrb.mxu1 %v11542_v34  ;;  %v11590_v39 = vor.u32 %v12659_v45, %v11587_v40  ;;  %v11475_v34 = vld [vmem:[#allocation9 + $0x1c] sm:$0xf0] }
 0x3e5   : > { %7124 = vmatpush.bf16.msrb.mxu2 %v10846_v9  ;;  %7472 = vmatpush.bf16.msrb.mxu0 %v11538_v47  ;;  %v11478_v13 = vor.u32 %v12630_v42, %v11475_v34  ;;  %v11490_v9 = vor.u32 %v12634_v57, %v11487_v50  ;;  %v12684_v42 = vld [vmem:[%s13350_s17 + $0x78] sm:$0xff]  ;;  %v12705_v57 = vld [vmem:[%s13350_s17 + $0x120] sm:$0xff] }
 0x3e6   : > { %v12692_v34 = vld [vmem:[%s13350_s17 + $0xb8] sm:$0xff] }
 0x3e8   : > { %7460 = vmatpush.bf16.msra.mxu3 %v11514_v0  ;;  %7486 = vmatpush.bf16.msrb.mxu1 %v11522_v52 }
 0x3e9   : > { %7125 = vmatpush.bf16.msrb.mxu2 %v10818_v29  ;;  %7473 = vmatpush.bf16.msrb.mxu0 %v11518_v8  ;;  %v12674_v8 = vld [vmem:[%s13350_s17 + $0x28] sm:$0xff] }
 0x3ea   : > { %v6999_v15 = vpop.f32.mrf.mxu0 }
 0x3eb   : > { %v7012_v55 = vpop.f32.mrf.mxu1 }
 0x3ec   : > { %7461 = vmatpush.bf16.msra.mxu3 %v11494_v61  ;;  %7487 = vmatpush.bf16.msrb.mxu1 %v11502_v51  ;;  %v12670_v55 = vld [vmem:[%s13350_s17 + $0x8] sm:$0xff] }
 0x3ed   : > { %7442 = vmatpush.bf16.msra.mxu2 %v11610_v59  ;;  %7474 = vmatpush.bf16.msrb.mxu0 %v11498_v17 }
 0x3ee   : > { %7126 = vmatmul.bf16.vlgmr.msrb.gmra.mxu2 %v13611_v19  ;;  %v12639_v19 = vld [vmem:[#allocation9 + $0x54] sm:$0xf] }
 0x3ef   : > { %v11510_v0 = vor.u32 %v12639_v19, %v11507_v43  ;;  %v6919_v46 = vpop.f32.mrf.mxu2  ;;  %v12699_v43 = vld [vmem:[%s13350_s17 + $0xf0] sm:$0xff] }
 0x3f0   : > { %7462 = vmatpush.bf16.msra.mxu3 %v11474_v7  ;;  %7488 = vmatpush.bf16.msrb.mxu1 %v11482_v11  ;;  %v6920_v63 = vadd.f32 %v6919_v46, %v14091_v49  ;;  %v12675_v7 = vld [vmem:[%s13350_s17 + $0x30] sm:$0xff]  ;;  %v12690_v46 = vld [vmem:[%s13350_s17 + $0xa8] sm:$0xff] }
 0x3f1   : > { %7443 = vmatpush.bf16.msra.mxu2 %v11590_v39  ;;  %7475 = vmatpush.bf16.msrb.mxu0 %v11478_v13  ;;  %v6984_v52 = vpop.f32.mrf.mxu3  ;;  %v12671_v39 = vld [vmem:[%s13350_s17 + $0x10] sm:$0xff]  ;;  %v12700_v13 = vld [vmem:[%s13350_s17 + $0xf8] sm:$0xff] }
 0x3f2   : > { %v6933_v62 = vadd.f32 %v14176_v22, %v6920_v63  ;;  %v12698_v63 = vld [vmem:[%s13350_s17 + $0xe8] sm:$0xff] }
 0x3f3   : > { %7463 = vmatmul.bf16.vlgmr.msra.gmra.mxu3 %v14170_v28  ;;  %7489 = vmatmul.bf16.vlgmr.msrb.gmra.mxu1 %v14170_v28 }
 0x3f4   : > { %7476 = vmatmul.bf16.vlgmr.msrb.gmra.mxu0 %v14170_v28  ;;  %v6946_v3 = vadd.f32 %v14153_v21, %v6933_v62  ;;  %7837 = vmatpush.bf16.msrb.mxu3 %v12684_v42 }
 0x3f5   : > { %7444 = vmatpush.bf16.msra.mxu2 %v11570_v26  ;;  %v12707_v26 = vld [vmem:[%s13350_s17 + $0x130] sm:$0xff]  ;;  %7850 = vmatpush.bf16.msra.mxu0 %v12692_v34 }
 0x3f6   : > { %v6959_v54 = vadd.f32 %v14148_v2, %v6946_v3  ;;  %7863 = vmatpush.bf16.msra.mxu1 %v12700_v13 }
 0x3f7   : > { %v6921_v5 = vpop.f32.mrf.mxu2 }
 0x3f8   : > { %v7160_v61 = vmax.f32 %v6959_v54, 0.0  ;;  %7838 = vmatpush.bf16.msrb.mxu3 %v12683_v41  ;;  %v12680_v54 = vld [vmem:[%s13350_s17 + $0x58] sm:$0xff]  ;;  %v12703_v5 = vld [vmem:[%s13350_s17 + $0x110] sm:$0xff] }
 0x3f9   : > { %7445 = vmatpush.bf16.msra.mxu2 %v11550_v32  ;;  %v6986_v47 = vpop.f32.mrf.mxu3  ;;  %7851 = vmatpush.bf16.msra.mxu0 %v12691_v12 }
 0x3fa   : > { %7167 = vst [vmem:[%s14140_s9 + $0x18] sm:$0xff] %v7160_v61  ;;  %7864 = vmatpush.bf16.msra.mxu1 %v12699_v43  ;;  %v12696_v61 = vld [vmem:[%s13350_s17 + $0xd8] sm:$0xff] }
 0x3fd   : > { %7446 = vmatpush.bf16.msra.mxu2 %v11530_v16  ;;  %v12706_v16 = vld [vmem:[%s13350_s17 + $0x128] sm:$0xff]  ;;  %7852 = vmatpush.bf16.msra.mxu0 %v12690_v46 }
 0x3fe   : > { %7865 = vmatpush.bf16.msra.mxu1 %v12698_v63 }
 0x401   : > { %7447 = vmatpush.bf16.msra.mxu2 %v11510_v0  ;;  %v12682_v0 = vld [vmem:[%s13350_s17 + $0x68] sm:$0xff]  ;;  %7853 = vmatpush.bf16.msra.mxu0 %v12689_v23 }
 0x402   : > { %v7049_v31 = vpop.f32.mrf.mxu0  ;;  %7839 = vmatpush.bf16.msrb.mxu3 %v12682_v0 }
 0x403   : > { %v7062_v53 = vpop.f32.mrf.mxu1 }
 0x405   : > { %7448 = vmatpush.bf16.msra.mxu2 %v11490_v9 }
 0x409   : > { %7449 = vmatpush.bf16.msra.mxu2 %v11470_v4  ;;  %v12688_v4 = vld [vmem:[%s13350_s17 + $0x98] sm:$0xff] }
 0x40a   : > { %v7051_v49 = vpop.f32.mrf.mxu0  ;;  %7854 = vmatpush.bf16.msra.mxu0 %v12688_v4 }
 0x40b   : > { %v7064_v22 = vpop.f32.mrf.mxu1  ;;  %v12679_v49 = vld [vmem:[%s13350_s17 + $0x50] sm:$0xff] }
 0x40c   : > { %7450 = vmatmul.bf16.vlgmr.msra.gmra.mxu2 %v14170_v28  ;;  %v12676_v28 = vld [vmem:[%s13350_s17 + $0x38] sm:$0xff]  ;;  %v12687_v22 = vld [vmem:[%s13350_s17 + $0x90] sm:$0xff] }
 0x40d   : > { %7824 = vmatpush.bf16.msrb.mxu2 %v12676_v28 }
 0x40e   : > { %7855 = vmatpush.bf16.msra.mxu0 %v12687_v22 }
 0x40f   : > { %v6971_v38 = vpop.f32.mrf.mxu2 }
 0x410   : > { %v6985_v44 = vadd.f32 %v6984_v52, %v6971_v38  ;;  %v12702_v38 = vld [vmem:[%s13350_s17 + $0x108] sm:$0xff] }
 0x411   : > { %v7036_v51 = vpop.f32.mrf.mxu3  ;;  %7825 = vmatpush.bf16.msrb.mxu2 %v12675_v7 }
 0x412   : > { %v7050_v21 = vadd.f32 %v7049_v31, %v7036_v51  ;;  %v6998_v56 = vadd.f32 %v14181_v24, %v6985_v44  ;;  %v12681_v31 = vld [vmem:[%s13350_s17 + $0x60] sm:$0xff]  ;;  %v12695_v44 = vld [vmem:[%s13350_s17 + $0xd0] sm:$0xff]  ;;  %v12678_v51 = vld [vmem:[%s13350_s17 + $0x48] sm:$0xff] }
 0x413   : > { %7840 = vmatpush.bf16.msrb.mxu3 %v12681_v31 }
 0x414   : > { %v7063_v29 = vadd.f32 %v7062_v53, %v7050_v21  ;;  %v7011_v40 = vadd.f32 %v14184_v27, %v6998_v56  ;;  %v12697_v53 = vld [vmem:[%s13350_s17 + $0xe0] sm:$0xff]  ;;  %v12686_v21 = vld [vmem:[%s13350_s17 + $0x88] sm:$0xff] }
 0x415   : > { %7826 = vmatpush.bf16.msrb.mxu2 %v12674_v8  ;;  %7866 = vmatpush.bf16.msra.mxu1 %v12697_v53  ;;  %v12701_v56 = vld [vmem:[%s13350_s17 + $0x100] sm:$0xff] }
 0x416   : > { %7856 = vmatpush.bf16.msra.mxu0 %v12686_v21 }
 0x417   : > { %v6973_v59 = vpop.f32.mrf.mxu2  ;;  %7841 = vmatpush.bf16.msrb.mxu3 %v12680_v54 }
 0x418   : > { %v12677_v59 = vld [vmem:[%s13350_s17 + $0x40] sm:$0xff] }
 0x419   : > { %v7038_v30 = vpop.f32.mrf.mxu3  ;;  %7827 = vmatpush.bf16.msrb.mxu2 %v12673_v10  ;;  %7867 = vmatpush.bf16.msra.mxu1 %v12696_v61 }
 0x41a   : > { %v12685_v30 = vld [vmem:[%s13350_s17 + $0x80] sm:$0xff] }
 0x41b   : > { %7842 = vmatpush.bf16.msrb.mxu3 %v12679_v49  ;;  %7857 = vmatpush.bf16.msra.mxu0 %v12685_v30 }
 0x41d   : > { %7828 = vmatpush.bf16.msrb.mxu2 %v12672_v14  ;;  %7868 = vmatpush.bf16.msra.mxu1 %v12695_v44 }
 0x41f   : > { %7843 = vmatpush.bf16.msrb.mxu3 %v12678_v51 }
 0x421   : > { %7829 = vmatpush.bf16.msrb.mxu2 %v12671_v39 }
 0x422   : > { %v7101_v2 = vpop.f32.mrf.mxu0 }
 0x423   : > { %v7114_v45 = vpop.f32.mrf.mxu1  ;;  %7844 = vmatpush.bf16.msrb.mxu3 %v12677_v59 }
 0x424   : > { %v14199_v58 = vadd.f32 %v7114_v45, %v7101_v2  ;;  %v12694_v45 = vld [vmem:[%s13350_s17 + $0xc8] sm:$0xff] }
 0x425   : > { %7830 = vmatpush.bf16.msrb.mxu2 %v12670_v55  ;;  %7869 = vmatpush.bf16.msra.mxu1 %v12694_v45 }
 0x429   : > { %7831 = vmatpush.bf16.msrb.mxu2 %v12669_v36 }
 0x42a   : > { %v7103_v60 = vpop.f32.mrf.mxu0 }
 0x42b   : > { %v7116_v1 = vpop.f32.mrf.mxu1  ;;  %v12693_v60 = vld [vmem:[%s13350_s17 + $0xc0] sm:$0xff] }
 0x42c   : > { %7870 = vmatpush.bf16.msra.mxu1 %v12693_v60 }
 0x42d   : > { %7876 = vmatpush.bf16.msra.mxu2 %v12708_v37 }
 0x42f   : > { %v7023_v6 = vpop.f32.mrf.mxu2 }
 0x430   : > { %v7024_v24 = vadd.f32 %v7023_v6, %v7011_v40 }
 0x431   : > { %7877 = vmatpush.bf16.msra.mxu2 %v12707_v26 }
 0x432   : > { %v7161_v48 = vmax.f32 %v7024_v24, 0.0 }
 0x434   : > { %7168 = vst [vmem:[%s14140_s9 + $0x20] sm:$0xff] %v7161_v48 }
 0x435   : > { %7878 = vmatpush.bf16.msra.mxu2 %v12706_v16 }
 0x436   : > { %v7088_v20 = vpop.f32.mrf.mxu3 }
 0x437   : > { %v7025_v11 = vpop.f32.mrf.mxu2 }
 0x439   : > { %7879 = vmatpush.bf16.msra.mxu2 %v12705_v57 }
 0x43d   : > { %7880 = vmatpush.bf16.msra.mxu2 %v12704_v35 }
 0x43e   : > { %v7090_v18 = vpop.f32.mrf.mxu3 }
 0x441   : > { %7881 = vmatpush.bf16.msra.mxu2 %v12703_v5 }
 0x442   : > { %v14203_v27 = vpop.f32.mrf.mxu0 }
 0x445   : > { %7882 = vmatpush.bf16.msra.mxu2 %v12702_v38 }
 0x449   : > { %7883 = vmatpush.bf16.msra.mxu2 %v12701_v56 }
 0x44a   : > { %v7155_v15 = vpop.f32.mrf.mxu0 }
 0x450   : > { %v7438_v62 = vpop.f32.mrf.mxu1 }
 0x451   : > { %v7075_v17 = vpop.f32.mrf.mxu2  ;;  %v7494_v9 = vmax.f32 %v7438_v62, 0.0 }
 0x452   : > { %v7076_v33 = vadd.f32 %v7075_v17, %v7063_v29 }
 0x453   : > { %v7499_v3 = vpack.c.bf16 %v7494_v9, %v7494_v9 }
 0x454   : > { %v7089_v32 = vadd.f32 %v7088_v20, %v7076_v33 }
 0x455   : > { %7832 = vmatmul.bf16.vlgmr.msrb.gmra.mxu2 %v7499_v3 }
 0x456   : > { %v14216_v25 = vpop.f32.mrf.mxu3  ;;  %v7162_v19 = vmax.f32 %v7089_v32, 0.0 }
 0x458   : > { %7169 = vst [vmem:[%s14140_s9 + $0x28] sm:$0xff] %v7162_v19  ;;  %v7440_v47 = vpop.f32.mrf.mxu1 }
 0x459   : > { %v7077_v50 = vpop.f32.mrf.mxu2 }
 0x45e   : > { %v7142_v52 = vpop.f32.mrf.mxu3 }
 0x470   : > { %v7490_v2 = vpop.f32.mrf.mxu1 }
 0x471   : > { %v7498_v29 = vmax.f32 %v7490_v2, 0.0  ;;  %v7127_v28 = vpop.f32.mrf.mxu2  ;;  %v7477_v48 = vpop.f32.mrf.mxu0 }
 0x472   : > { %v7128_v1 = vadd.f32 %v7127_v28, %v14199_v58  ;;  %v7497_v11 = vmax.f32 %v7477_v48, 0.0 }
 0x473   : > { %v7503_v40 = vpack.c.bf16 %v7498_v29, %v7498_v29 }
 0x474   : > { %v7141_v24 = vadd.f32 %v14216_v25, %v7128_v1  ;;  %v7502_v58 = vpack.c.bf16 %v7497_v11, %v7497_v11 }
 0x475   : > { %7884 = vmatmul.bf16.vlgmr.msra.gmra.mxu2 %v7503_v40 }
 0x476   : > { %v7464_v6 = vpop.f32.mrf.mxu3  ;;  %v7154_v10 = vadd.f32 %v14203_v27, %v7141_v24  ;;  %7871 = vmatmul.bf16.vlgmr.msra.gmra.mxu1 %v7502_v58 }
 0x477   : > { %v7496_v7 = vmax.f32 %v7464_v6, 0.0 }
 0x478   : > { %v7492_v8 = vpop.f32.mrf.mxu1  ;;  %v7163_v18 = vmax.f32 %v7154_v10, 0.0 }
 0x479   : > { %v7501_v20 = vpack.c.bf16 %v7496_v7, %v7496_v7  ;;  %v7129_v14 = vpop.f32.mrf.mxu2  ;;  %v7479_v39 = vpop.f32.mrf.mxu0 }
 0x47a   : > { %7170 = vst [vmem:[%s14140_s9 + $0x30] sm:$0xff] %v7163_v18 }
 0x47b   : > { %7858 = vmatmul.bf16.vlgmr.msra.gmra.mxu0 %v7501_v20 }
 0x47e   : > { %v7466_v15 = vpop.f32.mrf.mxu3 }
 0x48f   : > { %v7451_v55 = vpop.f32.mrf.mxu2 }
 0x490   : > { %v7495_v36 = vmax.f32 %v7451_v55, 0.0 }
 0x492   : > { %v7500_v37 = vpack.c.bf16 %v7495_v36, %v7495_v36 }
 0x494   : > { %7845 = vmatmul.bf16.vlgmr.msrb.gmra.mxu3 %v7500_v37 }
 0x497   : > { %v7453_v17 = vpop.f32.mrf.mxu2 }
 0x498   : > { %13027 = shalt.err (!%p13024_p4)
}
 0x499   : > { %12735 = dma.vmem_to_hbm [thread:$0]  (%p13224_p11), %s7911_s16, 896, %s7913_s11, %s7892_s19  }
 0x49a   : > { %s8102_s10 = sshll.u32 %s13332_s29, 3  ;;  %s11785_s24 = sshll.u32 %s13193_s28, 3 }
 0x49b   : > { %s14343_s12 = sld [smem:[#allocation29_spill]]  ;;  %s407_s1 = scalar_lea.vmem [#allocation13], %s8102_s10 }
 0x49c   : > { %s7924_s16 = sshll.u32 %s407_s1, 4  ;;  %s7897_s22 = scalar_lea.sflag [#allocation14], %s13332_s29  ;;  %s7925_s16 = int_to_ptr.vmem [resolvable:$true] %s7924_s16 }
 0x4a1   : > { %s7922_s9 = scalar_lea.hbm %s14343_s12, %s11785_s24  ;;  %s13048_s20 = scalar_lea.hbm %s14343_s12, 16 }
 0x4a2   : > { %s7926_s7 = sshll.u32 %s7922_s9, 4  ;;  %s7927_s7 = int_to_ptr.hbm [resolvable:$true] %s7926_s7 }
 0x4a3   : > { %s13042_s21 = sshra.s32 %s7927_s7, 4  ;;  %s13043_s21 = int_to_ptr.hbm [resolvable:$true] %s13042_s21 }
 0x4a4   : > { %s13044_s28 = scalar_lea.hbm %s13043_s21, 8  ;;  %p13049_p5 = scmp.lt.s32.totalorder %s13043_s21, %s14343_s12 }
 0x4a5   : > { %p13045_p0 = scmp.ne.s32.totalorder %s13043_s21, %s13044_s28  ;;  %p13050_p2 = scmp.lt.s32.totalorder %s13048_s20, %s13044_s28 }
 0x4a7   : > { %p13046_p13 = pnand %p13045_p0, %p13224_p11  ;;  %p13051_p6 = por %p13050_p2, %p13049_p5 }
 0x4a9   : > { %p13047_p7 = pneg %p13046_p13 }
 0x4ab   : > { %p13052_p9 = pnand %p13051_p6, %p13047_p7 }
 0x4d8   : > { %v7833_v27 = vpop.f32.mrf.mxu2 }
 0x4e0   : > { %v7835_v42 = vpop.f32.mrf.mxu2 }
 0x4f3   : > { %v7872_v33 = vpop.f32.mrf.mxu1 }
 0x4f8   : > { %v7859_v34 = vpop.f32.mrf.mxu0  ;;  %v7885_v26 = vpop.f32.mrf.mxu2 }
 0x4fb   : > { %v7874_v32 = vpop.f32.mrf.mxu1 }
 0x500   : > { %v7861_v25 = vpop.f32.mrf.mxu0  ;;  %v7887_v13 = vpop.f32.mrf.mxu2 }
 0x517   : > { %v7846_v41 = vpop.f32.mrf.mxu3 }
 0x518   : > { %v7847_v12 = vadd.f32 %v7846_v41, %v7833_v27 }
 0x51a   : > { %v7860_v16 = vadd.f32 %v7859_v34, %v7847_v12 }
 0x51c   : > { %v7873_v19 = vadd.f32 %v7872_v33, %v7860_v16 }
 0x51e   : > { %v7886_v43 = vadd.f32 %v7885_v26, %v7873_v19 }
 0x51f   : > { %v7848_v0 = vpop.f32.mrf.mxu3 }
 0x520   : > { %v7889_v46 = vmax.f32 %v7886_v43, 0.0 }
 0x522   : > { %7890 = vst [vmem:[%s407_s1] sm:$0xff] %v7889_v46 }
 0x523   : > { %13055 = shalt.err (!%p13052_p9)
}
 0x524   : > { %12736 = dma.vmem_to_hbm [thread:$0]  (%p13224_p11), %s7925_s16, 128, %s7927_s7, %s7897_s22  }
 0x525 PF: > { %s14344_s29 = sld [smem:[#allocation23_spill]]  ;;  %p14346_p10 = scmp.ge.s32.totalorder %s13118_s27, 2 }
 0x527   : > { %p12760_p1 = pnand %p14346_p10, %p13228_p12 }
 0x529   : > { %p12761_p8 = pneg %p12760_p1 }
 0x52b   : > { %s7938_s30 = sand.u32 1, %s14344_s29  }
 0x52c   : > { %s7939_s8 = scalar_lea.sflag [#allocation4], %s7938_s30 }
 0x52d   : > { %13097 = dma.done.wait (%p12761_p8), %s7939_s8, 896  }
 0x52e   : > { %13099 = vsyncadd (%p12761_p8), %s7939_s8, 4294966400  ;;  %s7949_s15 = scalar_lea.sflag [#allocation14], %s7938_s30 }
 0x52f   : > { %13101 = dma.done.wait (%p12761_p8), %s7949_s15, 128  }
 0x530   : > { %13103 = vsyncadd (%p12761_p8), %s7949_s15, 4294967168  ;;  %s14347_s27 = sld [smem:[#allocation24_spill]]  ;;  %s14349_s24 = smov %s13110_s25 }
 0x531   : > { %s14348_s13 = sld [smem:[#allocation25_spill]]  ;;  %s14350_s25 = smov %s13114_s26 }
 0x536   : > { %p24_p11 = scmp.ge.s32.totalorder %s14347_s27, 4  }
 0x537   : > { %s14351_s26 = smov %s14348_s13 }
 0x538   :  { %26 = sbr.rel (!%p24_p11) target bundleno = 12 (0xc), region = 132 }
 0x53d   :  { %7955 = vsyncpa [#allocation3], 1 }
 0x53e   :  { %7957 = vsyncpa [#allocation3 + $0x1], 1 }
 0x53f   :  { %7958 = vsyncpa [#allocation6], 1 }
 0x540   :  { %7959 = vsyncpa [#allocation10], 1 }
 0x541   :  { %7960 = vsyncpa [#allocation4], 1 }
 0x542   :  { %7962 = vsyncpa [#allocation4 + $0x1], 1 }
 0x543   :  { %7963 = vsyncpa [#allocation14], 1 }
 0x544   :  { %7965 = vsyncpa [#allocation14 + $0x1], 1 }

</bundles_post_ra>
